<compile_context>
chip_gen: v7x
topology: tpu7x:2x2x1
jax: 0.10.0
libtpu: 0.0.40
codegen_flags: <defaults>
</compile_context>

<pallas_src>
import functools

import jax
import jax.numpy as jnp
from jax.experimental import pallas as pl
from jax.experimental.pallas import tpu as pltpu

_VMEM_LIMIT = 32 * 1024 * 1024  # safe on v5e/v6e (128 MiB phys) and v7x (64 MiB phys)


def _round_up(x, m):
    return (x + m - 1) // m * m


def _choose_m_tile(M, tm_max=512):
    """Largest 16-row-multiple tile <= tm_max that divides round_up(M, 16) (zero wasted rows
    beyond the 16-row bf16 packing round-up).  Falls back to tm_max-granularity padding only if
    the best divisor would produce a flood of tiny grid steps."""
    m16 = _round_up(M, 16) // 16
    best = 1
    d = 1
    while d * d <= m16:
        if m16 % d == 0:
            for c in (d, m16 // d):
                if 16 * c <= tm_max and c > best:
                    best = c
        d += 1
    tile = 16 * best
    if tile >= 128 or 16 * m16 <= tm_max:
        return tile, 16 * m16
    return tm_max, _round_up(M, tm_max)


# ----------------------------- Pallas kernels ------------------------------

def _gemm_bias_kernel(a_ref, b_ref, bias_ref, o_ref, *, apply_relu):
    # (TM, K) bf16 @ (K, OC) bf16 -> f32 accumulate on the MXU, + bias, optional fused ReLU.
    acc = jnp.dot(a_ref[...], b_ref[...], preferred_element_type=jnp.float32)
    acc = acc + bias_ref[...]
    if apply_relu:
        acc = jnp.maximum(acc, 0.0)
    o_ref[...] = acc


def _max4_kernel(a_ref, b_ref, c_ref, d_ref, o_ref):
    # elementwise max over the 4 positions of each 2x2 window (ReLU already fused into the GEMM).
    o_ref[...] = jnp.maximum(jnp.maximum(a_ref[...], b_ref[...]),
                             jnp.maximum(c_ref[...], d_ref[...]))


def _avg9_kernel(*refs):
    # refs = 9 shifted-view inputs + 1 output; avg_pool2d(3,1,1) with count_include_pad=True.
    o_ref = refs[-1]
    s = refs[0][...]
    for r in refs[1:-1]:
        s = s + r[...]
    o_ref[...] = s * (1.0 / 9.0)


# ------------------------------ Pallas wrappers -----------------------------

def pallas_gemm_bias(a, w_packed, bias_packed, *, relu=False, tm_max=512):
    """a: (M, K) float; w_packed: (K, OC) bf16; bias_packed: (1, OC) f32 -> (M, OC) f32."""
    M, K = a.shape
    OC = w_packed.shape[1]
    a = a.astype(jnp.bfloat16)
    tm, Mp = _choose_m_tile(M, tm_max)
    if Mp != M:
        a = jnp.pad(a, ((0, Mp - M), (0, 0)))
    out = pl.pallas_call(
        functools.partial(_gemm_bias_kernel, apply_relu=relu),
        out_shape=jax.ShapeDtypeStruct((Mp, OC), jnp.float32),
        grid=(Mp // tm,),
        in_specs=[
            pl.BlockSpec((tm, K), lambda i: (i, 0)),     # A tiled over M
            pl.BlockSpec((K, OC), lambda i: (0, 0)),     # weights resident (small K*OC)
            pl.BlockSpec((1, OC), lambda i: (0, 0)),     # bias resident
        ],
        out_specs=pl.BlockSpec((tm, OC), lambda i: (i, 0)),
        compiler_params=pltpu.CompilerParams(
            dimension_semantics=("parallel",),
            vmem_limit_bytes=_VMEM_LIMIT,
        ),
    )(a, w_packed, bias_packed)
    return out[:M] if Mp != M else out


def maxpool2x2(x):
    """max_pool2d(x, 2) for NHWC input via a 4-input elementwise-max Pallas kernel."""
    N, H, W, C = x.shape
    OH, OW = H // 2, W // 2
    cols = OH * OW * C
    views = [x[:, 0::2, 0::2, :], x[:, 0::2, 1::2, :],
             x[:, 1::2, 0::2, :], x[:, 1::2, 1::2, :]]
    flat = [v.reshape(N, cols) for v in views]          # lane-dense last dim (OH*OW*C)
    out = pl.pallas_call(
        _max4_kernel,
        out_shape=jax.ShapeDtypeStruct((N, cols), jnp.float32),
        in_specs=[pl.BlockSpec((N, cols), lambda: (0, 0)) for _ in range(4)],
        out_specs=pl.BlockSpec((N, cols), lambda: (0, 0)),
        compiler_params=pltpu.CompilerParams(vmem_limit_bytes=_VMEM_LIMIT),
    )(*flat)
    return out.reshape(N, OH, OW, C)


def avg_pool3x3_same(x):
    """F.avg_pool2d(x, 3, 1, 1), count_include_pad=True, NHWC, via 9-view elementwise kernel."""
    N, H, W, C = x.shape
    cols = H * W * C
    xp = jnp.pad(x, ((0, 0), (1, 1), (1, 1), (0, 0)))
    views = [xp[:, i:i + H, j:j + W, :].reshape(N, cols)
             for i in range(3) for j in range(3)]
    out = pl.pallas_call(
        _avg9_kernel,
        out_shape=jax.ShapeDtypeStruct((N, cols), jnp.float32),
        in_specs=[pl.BlockSpec((N, cols), lambda: (0, 0)) for _ in range(9)],
        out_specs=pl.BlockSpec((N, cols), lambda: (0, 0)),
        compiler_params=pltpu.CompilerParams(vmem_limit_bytes=_VMEM_LIMIT),
    )(*views)
    return out.reshape(N, H, W, C)


# ------------------------------ conv lowerings (NHWC) -----------------------

def conv1x1(x, p, *, relu=False):
    # 1x1 conv == plain GEMM over the channel axis, no im2col needed.
    N, H, W, C = x.shape
    OC = p["w"].shape[1]
    out = pallas_gemm_bias(x.reshape(N * H * W, C), p["w"], p["b"], relu=relu)
    return out.reshape(N, H, W, OC)


def conv2d_nhwc(x, p, *, kh, kw, padding=0, relu=False):
    # im2col (glue, channel-last concat so no transposes) + Pallas GEMM (hot path).
    N, H, W, C = x.shape
    OC = p["w"].shape[1]
    if padding:
        x = jnp.pad(x, ((0, 0), (padding, padding), (padding, padding), (0, 0)))
    Hp, Wp = x.shape[1], x.shape[2]
    OH, OW = Hp - kh + 1, Wp - kw + 1
    views = [x[:, i:i + OH, j:j + OW, :] for i in range(kh) for j in range(kw)]
    patches = jnp.concatenate(views, axis=-1).reshape(N * OH * OW, kh * kw * C)
    out = pallas_gemm_bias(patches, p["w"], p["b"], relu=relu)
    return out.reshape(N, OH, OW, OC)


# ------------------------------ parameter init / packing --------------------

def _init_conv(key, oc, ic, kh, kw):
    kw_, kb_ = jax.random.split(key)
    w = jax.random.normal(kw_, (oc, ic, kh, kw), jnp.float32) * 0.05
    b = jax.random.normal(kb_, (oc,), jnp.float32) * 0.05
    return {"w": w, "b": b}


def init_inception(key, in_channels):
    keys = jax.random.split(key, 7)
    return {
        "branch1x1":   _init_conv(keys[0], 16, in_channels, 1, 1),
        "branch5x5_1": _init_conv(keys[1], 16, in_channels, 1, 1),
        "branch5x5_2": _init_conv(keys[2], 24, 16, 5, 5),
        "branch3x3_1": _init_conv(keys[3], 16, in_channels, 1, 1),
        "branch3x3_2": _init_conv(keys[4], 24, 16, 3, 3),
        "branch3x3_3": _init_conv(keys[5], 24, 24, 3, 3),
        "branch_pool": _init_conv(keys[6], 24, in_channels, 1, 1),
    }


def init_net(key):
    keys = jax.random.split(key, 6)
    fc_w = jax.random.normal(keys[4], (10, 1408), jnp.float32) * 0.02
    fc_b = jax.random.normal(keys[5], (10,), jnp.float32) * 0.02
    return {
        "conv1": _init_conv(keys[0], 10, 1, 5, 5),
        "conv2": _init_conv(keys[1], 20, 88, 5, 5),
        "incep1": init_inception(keys[2], 10),
        "incep2": init_inception(keys[3], 20),
        "fc": {"w": fc_w, "b": fc_b},
    }


def _pack_conv(p):
    # PyTorch (OC, IC, KH, KW) -> (KH*KW*IC, OC) bf16 matching the im2col patch ordering above.
    w, b = p["w"], p["b"]
    OC, IC, KH, KW = w.shape
    wk = jnp.transpose(w, (2, 3, 1, 0)).reshape(KH * KW * IC, OC).astype(jnp.bfloat16)
    return {"w": wk, "b": b.astype(jnp.float32).reshape(1, OC)}


def _pack_fused_1x1(p1, p2, p3):
    # fuse branch1x1 / branch5x5_1 / branch3x3_1 (same input) into one 48-output-channel GEMM.
    w = jnp.concatenate([p1["w"], p2["w"], p3["w"]], axis=0)
    b = jnp.concatenate([p1["b"], p2["b"], p3["b"]], axis=0)
    return _pack_conv({"w": w, "b": b})


def pack_inception(p):
    return {
        "fused1x1":    _pack_fused_1x1(p["branch1x1"], p["branch5x5_1"], p["branch3x3_1"]),
        "branch5x5_2": _pack_conv(p["branch5x5_2"]),
        "branch3x3_2": _pack_conv(p["branch3x3_2"]),
        "branch3x3_3": _pack_conv(p["branch3x3_3"]),
        "branch_pool": _pack_conv(p["branch_pool"]),
    }


def pack_params(params):
    # FC weight columns are ordered (C, H, W) in PyTorch's .view(); re-order to NHWC's (H, W, C).
    fc_w = params["fc"]["w"]                                   # (10, 1408), 1408 = 88*4*4
    fc_wk = (fc_w.reshape(10, 88, 4, 4).transpose(2, 3, 1, 0)
             .reshape(4 * 4 * 88, 10).astype(jnp.bfloat16))
    return {
        "conv1": _pack_conv(params["conv1"]),
        "conv2": _pack_conv(params["conv2"]),
        "incep1": pack_inception(params["incep1"]),
        "incep2": pack_inception(params["incep2"]),
        "fc": {"w": fc_wk, "b": params["fc"]["b"].astype(jnp.float32).reshape(1, 10)},
    }


# ------------------------------ model forward -------------------------------

def inception_forward(p, x):
    fused = conv1x1(x, p["fused1x1"])                               # (N,H,W,48) = [1x1 | 5x5_in | 3x3_in]
    b1 = fused[..., 0:16]
    b5 = conv2d_nhwc(fused[..., 16:32], p["branch5x5_2"], kh=5, kw=5, padding=2)
    b3 = conv2d_nhwc(fused[..., 32:48], p["branch3x3_2"], kh=3, kw=3, padding=1)
    b3 = conv2d_nhwc(b3, p["branch3x3_3"], kh=3, kw=3, padding=1)
    bp = avg_pool3x3_same(x)
    bp = conv1x1(bp, p["branch_pool"])
    return jnp.concatenate([b1, b5, b3, bp], axis=-1)               # 16+24+24+24 = 88 channels


@jax.jit
def net_forward(packed, x_nchw):
    n = x_nchw.shape[0]
    x = jnp.transpose(x_nchw, (0, 2, 3, 1)).astype(jnp.float32)     # NHWC once at the boundary
    # relu(maxpool(conv)) == maxpool(relu(conv)): ReLU fused into the GEMM epilogue.
    x = conv2d_nhwc(x, packed["conv1"], kh=5, kw=5, relu=True)      # (N,24,24,10)
    x = maxpool2x2(x)                                               # (N,12,12,10)
    x = inception_forward(packed["incep1"], x)                      # (N,12,12,88)
    x = conv2d_nhwc(x, packed["conv2"], kh=5, kw=5, relu=True)      # (N,8,8,20)
    x = maxpool2x2(x)                                               # (N,4,4,20)
    x = inception_forward(packed["incep2"], x)                      # (N,4,4,88)
    x = x.reshape(n, -1)                                            # (N,1408) in (h,w,c) order
    return pallas_gemm_bias(x, packed["fc"]["w"], packed["fc"]["b"])  # (N,10)


if __name__ == "__main__":
    key = jax.random.PRNGKey(0)
    pkey, xkey = jax.random.split(key)
    params = init_net(pkey)
    packed = pack_params(params)        # one-time weight transform, outside the hot path
    # fc = Linear(1408, 10) with 88 channels at 4x4 implies a 28x28 single-channel input (MNIST).
    x = jax.random.normal(xkey, (2, 1, 28, 28), jnp.float32)
    out = net_forward(packed, x)
    out = jax.block_until_ready(out)
    assert out.shape == (2, 10) and out.dtype == jnp.float32
    print("KERNEL_OK")
</pallas_src>

<mosaic_0001>
module attributes {stable_mosaic.version = 11 : i64} {
  func.func @_gemm_bias_kernel(%arg0: i32, %arg1: memref<384x25xbf16, #tpu.memory_space<vmem>>, %arg2: memref<25x10xbf16, #tpu.memory_space<vmem>>, %arg3: memref<1x10xf32, #tpu.memory_space<vmem>>, %arg4: memref<384x10xf32, #tpu.memory_space<vmem>>) attributes {dimension_semantics = [#tpu.dimension_semantics<parallel>], iteration_bounds = array<i64: 3>, scalar_prefetch = 0 : i64, scratch_operands = 0 : i64, tpu.core_type = #tpu.core_type<tc>, window_params = [{transform_indices = @transform_0, window_bounds = array<i64: 384, 25>}, {pipeline_mode = #tpu.pipeline_mode<synchronous>, transform_indices = @transform_1, window_bounds = array<i64: 25, 10>}, {pipeline_mode = #tpu.pipeline_mode<synchronous>, transform_indices = @transform_2, window_bounds = array<i64: 1, 10>}, {transform_indices = @transform_3, window_bounds = array<i64: 384, 10>}]} {
    %c0 = arith.constant 0 : index
    %c0_0 = arith.constant 0 : index
    %0 = vector.load %arg1[%c0, %c0_0] : memref<384x25xbf16, #tpu.memory_space<vmem>>, vector<384x25xbf16>
    %c0_1 = arith.constant 0 : index
    %c0_2 = arith.constant 0 : index
    %1 = vector.load %arg2[%c0_1, %c0_2] : memref<25x10xbf16, #tpu.memory_space<vmem>>, vector<25x10xbf16>
    %cst = arith.constant dense<0.000000e+00> : vector<384x10xf32>
    %2 = tpu.matmul %0, %1, %cst {dimension_numbers = #tpu.dot_dimension_numbers<[1], [0], [0], [1], [0, 0, 1, 1], [], []>} : vector<384x25xbf16>, vector<25x10xbf16>, vector<384x10xf32> -> vector<384x10xf32>
    %c0_3 = arith.constant 0 : index
    %c0_4 = arith.constant 0 : index
    %3 = vector.load %arg3[%c0_3, %c0_4] : memref<1x10xf32, #tpu.memory_space<vmem>>, vector<1x10xf32>
    %4 = vector.broadcast %3 : vector<1x10xf32> to vector<384x10xf32>
    %5 = arith.addf %2, %4 : vector<384x10xf32>
    %cst_5 = arith.constant 0.000000e+00 : f32
    %6 = vector.broadcast %cst_5 : f32 to vector<384x10xf32>
    %7 = arith.maximumf %5, %6 : vector<384x10xf32>
    %c0_6 = arith.constant 0 : index
    %c0_7 = arith.constant 0 : index
    %8 = vector.load %arg4[%c0_6, %c0_7] : memref<384x10xf32, #tpu.memory_space<vmem>>, vector<384x10xf32>
    tpu.vector_store %arg4[%c0_6, %c0_7], %7 {strides = array<i32>} : memref<384x10xf32, #tpu.memory_space<vmem>>, vector<384x10xf32>,
    return
  }
  func.func @transform_0(%arg0: i32) -> (i32, i32) {
    %c0_i32 = arith.constant 0 : i32
    %c0_i32_0 = arith.constant 0 : i32
    return %arg0, %c0_i32 : i32, i32
  }
  func.func @transform_1(%arg0: i32) -> (i32, i32) {
    %c0_i32 = arith.constant 0 : i32
    %c0_i32_0 = arith.constant 0 : i32
    %c0_i32_1 = arith.constant 0 : i32
    return %c0_i32, %c0_i32_0 : i32, i32
  }
  func.func @transform_2(%arg0: i32) -> (i32, i32) {
    %c0_i32 = arith.constant 0 : i32
    %c0_i32_0 = arith.constant 0 : i32
    %c0_i32_1 = arith.constant 0 : i32
    return %c0_i32, %c0_i32_0 : i32, i32
  }
  func.func @transform_3(%arg0: i32) -> (i32, i32) {
    %c0_i32 = arith.constant 0 : i32
    %c0_i32_0 = arith.constant 0 : i32
    return %arg0, %c0_i32 : i32, i32
  }
}

module attributes {stable_mosaic.version = 11 : i64} {
  func.func @_max4_kernel(%arg0: memref<2x1440xf32, #tpu.memory_space<vmem>>, %arg1: memref<2x1440xf32, #tpu.memory_space<vmem>>, %arg2: memref<2x1440xf32, #tpu.memory_space<vmem>>, %arg3: memref<2x1440xf32, #tpu.memory_space<vmem>>, %arg4: memref<2x1440xf32, #tpu.memory_space<vmem>>) attributes {dimension_semantics = [], scalar_prefetch = 0 : i64, scratch_operands = 0 : i64, tpu.core_type = #tpu.core_type<tc>} {
    %c0 = arith.constant 0 : index
    %c0_0 = arith.constant 0 : index
    %0 = vector.load %arg0[%c0, %c0_0] : memref<2x1440xf32, #tpu.memory_space<vmem>>, vector<2x1440xf32>
    %c0_1 = arith.constant 0 : index
    %c0_2 = arith.constant 0 : index
    %1 = vector.load %arg1[%c0_1, %c0_2] : memref<2x1440xf32, #tpu.memory_space<vmem>>, vector<2x1440xf32>
    %2 = arith.maximumf %0, %1 : vector<2x1440xf32>
    %c0_3 = arith.constant 0 : index
    %c0_4 = arith.constant 0 : index
    %3 = vector.load %arg2[%c0_3, %c0_4] : memref<2x1440xf32, #tpu.memory_space<vmem>>, vector<2x1440xf32>
    %c0_5 = arith.constant 0 : index
    %c0_6 = arith.constant 0 : index
    %4 = vector.load %arg3[%c0_5, %c0_6] : memref<2x1440xf32, #tpu.memory_space<vmem>>, vector<2x1440xf32>
    %5 = arith.maximumf %3, %4 : vector<2x1440xf32>
    %6 = arith.maximumf %2, %5 : vector<2x1440xf32>
    %c0_7 = arith.constant 0 : index
    %c0_8 = arith.constant 0 : index
    %7 = vector.load %arg4[%c0_7, %c0_8] : memref<2x1440xf32, #tpu.memory_space<vmem>>, vector<2x1440xf32>
    tpu.vector_store %arg4[%c0_7, %c0_8], %6 {strides = array<i32>} : memref<2x1440xf32, #tpu.memory_space<vmem>>, vector<2x1440xf32>,
    return
  }
}

module attributes {stable_mosaic.version = 11 : i64} {
  func.func @_gemm_bias_kernel(%arg0: i32, %arg1: memref<288x10xbf16, #tpu.memory_space<vmem>>, %arg2: memref<10x48xbf16, #tpu.memory_space<vmem>>, %arg3: memref<1x48xf32, #tpu.memory_space<vmem>>, %arg4: memref<288x48xf32, #tpu.memory_space<vmem>>) attributes {dimension_semantics = [#tpu.dimension_semantics<parallel>], iteration_bounds = array<i64: 1>, scalar_prefetch = 0 : i64, scratch_operands = 0 : i64, tpu.core_type = #tpu.core_type<tc>, window_params = [{transform_indices = @transform_0, window_bounds = array<i64: 288, 10>}, {pipeline_mode = #tpu.pipeline_mode<synchronous>, transform_indices = @transform_1, window_bounds = array<i64: 10, 48>}, {pipeline_mode = #tpu.pipeline_mode<synchronous>, transform_indices = @transform_2, window_bounds = array<i64: 1, 48>}, {transform_indices = @transform_3, window_bounds = array<i64: 288, 48>}]} {
    %c0 = arith.constant 0 : index
    %c0_0 = arith.constant 0 : index
    %0 = vector.load %arg1[%c0, %c0_0] : memref<288x10xbf16, #tpu.memory_space<vmem>>, vector<288x10xbf16>
    %c0_1 = arith.constant 0 : index
    %c0_2 = arith.constant 0 : index
    %1 = vector.load %arg2[%c0_1, %c0_2] : memref<10x48xbf16, #tpu.memory_space<vmem>>, vector<10x48xbf16>
    %cst = arith.constant dense<0.000000e+00> : vector<288x48xf32>
    %2 = tpu.matmul %0, %1, %cst {dimension_numbers = #tpu.dot_dimension_numbers<[1], [0], [0], [1], [0, 0, 1, 1], [], []>} : vector<288x10xbf16>, vector<10x48xbf16>, vector<288x48xf32> -> vector<288x48xf32>
    %c0_3 = arith.constant 0 : index
    %c0_4 = arith.constant 0 : index
    %3 = vector.load %arg3[%c0_3, %c0_4] : memref<1x48xf32, #tpu.memory_space<vmem>>, vector<1x48xf32>
    %4 = vector.broadcast %3 : vector<1x48xf32> to vector<288x48xf32>
    %5 = arith.addf %2, %4 : vector<288x48xf32>
    %c0_5 = arith.constant 0 : index
    %c0_6 = arith.constant 0 : index
    %6 = vector.load %arg4[%c0_5, %c0_6] : memref<288x48xf32, #tpu.memory_space<vmem>>, vector<288x48xf32>
    tpu.vector_store %arg4[%c0_5, %c0_6], %5 {strides = array<i32>} : memref<288x48xf32, #tpu.memory_space<vmem>>, vector<288x48xf32>,
    return
  }
  func.func @transform_0(%arg0: i32) -> (i32, i32) {
    %c0_i32 = arith.constant 0 : i32
    %c0_i32_0 = arith.constant 0 : i32
    return %arg0, %c0_i32 : i32, i32
  }
  func.func @transform_1(%arg0: i32) -> (i32, i32) {
    %c0_i32 = arith.constant 0 : i32
    %c0_i32_0 = arith.constant 0 : i32
    %c0_i32_1 = arith.constant 0 : i32
    return %c0_i32, %c0_i32_0 : i32, i32
  }
  func.func @transform_2(%arg0: i32) -> (i32, i32) {
    %c0_i32 = arith.constant 0 : i32
    %c0_i32_0 = arith.constant 0 : i32
    %c0_i32_1 = arith.constant 0 : i32
    return %c0_i32, %c0_i32_0 : i32, i32
  }
  func.func @transform_3(%arg0: i32) -> (i32, i32) {
    %c0_i32 = arith.constant 0 : i32
    %c0_i32_0 = arith.constant 0 : i32
    return %arg0, %c0_i32 : i32, i32
  }
}

module attributes {stable_mosaic.version = 11 : i64} {
  func.func @_gemm_bias_kernel(%arg0: i32, %arg1: memref<288x400xbf16, #tpu.memory_space<vmem>>, %arg2: memref<400x24xbf16, #tpu.memory_space<vmem>>, %arg3: memref<1x24xf32, #tpu.memory_space<vmem>>, %arg4: memref<288x24xf32, #tpu.memory_space<vmem>>) attributes {dimension_semantics = [#tpu.dimension_semantics<parallel>], iteration_bounds = array<i64: 1>, scalar_prefetch = 0 : i64, scratch_operands = 0 : i64, tpu.core_type = #tpu.core_type<tc>, window_params = [{transform_indices = @transform_0, window_bounds = array<i64: 288, 400>}, {pipeline_mode = #tpu.pipeline_mode<synchronous>, transform_indices = @transform_1, window_bounds = array<i64: 400, 24>}, {pipeline_mode = #tpu.pipeline_mode<synchronous>, transform_indices = @transform_2, window_bounds = array<i64: 1, 24>}, {transform_indices = @transform_3, window_bounds = array<i64: 288, 24>}]} {
    %c0 = arith.constant 0 : index
    %c0_0 = arith.constant 0 : index
    %0 = vector.load %arg1[%c0, %c0_0] : memref<288x400xbf16, #tpu.memory_space<vmem>>, vector<288x400xbf16>
    %c0_1 = arith.constant 0 : index
    %c0_2 = arith.constant 0 : index
    %1 = vector.load %arg2[%c0_1, %c0_2] : memref<400x24xbf16, #tpu.memory_space<vmem>>, vector<400x24xbf16>
    %cst = arith.constant dense<0.000000e+00> : vector<288x24xf32>
    %2 = tpu.matmul %0, %1, %cst {dimension_numbers = #tpu.dot_dimension_numbers<[1], [0], [0], [1], [0, 0, 1, 1], [], []>} : vector<288x400xbf16>, vector<400x24xbf16>, vector<288x24xf32> -> vector<288x24xf32>
    %c0_3 = arith.constant 0 : index
    %c0_4 = arith.constant 0 : index
    %3 = vector.load %arg3[%c0_3, %c0_4] : memref<1x24xf32, #tpu.memory_space<vmem>>, vector<1x24xf32>
    %4 = vector.broadcast %3 : vector<1x24xf32> to vector<288x24xf32>
    %5 = arith.addf %2, %4 : vector<288x24xf32>
    %c0_5 = arith.constant 0 : index
    %c0_6 = arith.constant 0 : index
    %6 = vector.load %arg4[%c0_5, %c0_6] : memref<288x24xf32, #tpu.memory_space<vmem>>, vector<288x24xf32>
    tpu.vector_store %arg4[%c0_5, %c0_6], %5 {strides = array<i32>} : memref<288x24xf32, #tpu.memory_space<vmem>>, vector<288x24xf32>,
    return
  }
  func.func @transform_0(%arg0: i32) -> (i32, i32) {
    %c0_i32 = arith.constant 0 : i32
    %c0_i32_0 = arith.constant 0 : i32
    return %arg0, %c0_i32 : i32, i32
  }
  func.func @transform_1(%arg0: i32) -> (i32, i32) {
    %c0_i32 = arith.constant 0 : i32
    %c0_i32_0 = arith.constant 0 : i32
    %c0_i32_1 = arith.constant 0 : i32
    return %c0_i32, %c0_i32_0 : i32, i32
  }
  func.func @transform_2(%arg0: i32) -> (i32, i32) {
    %c0_i32 = arith.constant 0 : i32
    %c0_i32_0 = arith.constant 0 : i32
    %c0_i32_1 = arith.constant 0 : i32
    return %c0_i32, %c0_i32_0 : i32, i32
  }
  func.func @transform_3(%arg0: i32) -> (i32, i32) {
    %c0_i32 = arith.constant 0 : i32
    %c0_i32_0 = arith.constant 0 : i32
    return %arg0, %c0_i32 : i32, i32
  }
}

module attributes {stable_mosaic.version = 11 : i64} {
  func.func @_gemm_bias_kernel(%arg0: i32, %arg1: memref<288x144xbf16, #tpu.memory_space<vmem>>, %arg2: memref<144x24xbf16, #tpu.memory_space<vmem>>, %arg3: memref<1x24xf32, #tpu.memory_space<vmem>>, %arg4: memref<288x24xf32, #tpu.memory_space<vmem>>) attributes {dimension_semantics = [#tpu.dimension_semantics<parallel>], iteration_bounds = array<i64: 1>, scalar_prefetch = 0 : i64, scratch_operands = 0 : i64, tpu.core_type = #tpu.core_type<tc>, window_params = [{transform_indices = @transform_0, window_bounds = array<i64: 288, 144>}, {pipeline_mode = #tpu.pipeline_mode<synchronous>, transform_indices = @transform_1, window_bounds = array<i64: 144, 24>}, {pipeline_mode = #tpu.pipeline_mode<synchronous>, transform_indices = @transform_2, window_bounds = array<i64: 1, 24>}, {transform_indices = @transform_3, window_bounds = array<i64: 288, 24>}]} {
    %c0 = arith.constant 0 : index
    %c0_0 = arith.constant 0 : index
    %0 = vector.load %arg1[%c0, %c0_0] : memref<288x144xbf16, #tpu.memory_space<vmem>>, vector<288x144xbf16>
    %c0_1 = arith.constant 0 : index
    %c0_2 = arith.constant 0 : index
    %1 = vector.load %arg2[%c0_1, %c0_2] : memref<144x24xbf16, #tpu.memory_space<vmem>>, vector<144x24xbf16>
    %cst = arith.constant dense<0.000000e+00> : vector<288x24xf32>
    %2 = tpu.matmul %0, %1, %cst {dimension_numbers = #tpu.dot_dimension_numbers<[1], [0], [0], [1], [0, 0, 1, 1], [], []>} : vector<288x144xbf16>, vector<144x24xbf16>, vector<288x24xf32> -> vector<288x24xf32>
    %c0_3 = arith.constant 0 : index
    %c0_4 = arith.constant 0 : index
    %3 = vector.load %arg3[%c0_3, %c0_4] : memref<1x24xf32, #tpu.memory_space<vmem>>, vector<1x24xf32>
    %4 = vector.broadcast %3 : vector<1x24xf32> to vector<288x24xf32>
    %5 = arith.addf %2, %4 : vector<288x24xf32>
    %c0_5 = arith.constant 0 : index
    %c0_6 = arith.constant 0 : index
    %6 = vector.load %arg4[%c0_5, %c0_6] : memref<288x24xf32, #tpu.memory_space<vmem>>, vector<288x24xf32>
    tpu.vector_store %arg4[%c0_5, %c0_6], %5 {strides = array<i32>} : memref<288x24xf32, #tpu.memory_space<vmem>>, vector<288x24xf32>,
    return
  }
  func.func @transform_0(%arg0: i32) -> (i32, i32) {
    %c0_i32 = arith.constant 0 : i32
    %c0_i32_0 = arith.constant 0 : i32
    return %arg0, %c0_i32 : i32, i32
  }
  func.func @transform_1(%arg0: i32) -> (i32, i32) {
    %c0_i32 = arith.constant 0 : i32
    %c0_i32_0 = arith.constant 0 : i32
    %c0_i32_1 = arith.constant 0 : i32
    return %c0_i32, %c0_i32_0 : i32, i32
  }
  func.func @transform_2(%arg0: i32) -> (i32, i32) {
    %c0_i32 = arith.constant 0 : i32
    %c0_i32_0 = arith.constant 0 : i32
    %c0_i32_1 = arith.constant 0 : i32
    return %c0_i32, %c0_i32_0 : i32, i32
  }
  func.func @transform_3(%arg0: i32) -> (i32, i32) {
    %c0_i32 = arith.constant 0 : i32
    %c0_i32_0 = arith.constant 0 : i32
    return %arg0, %c0_i32 : i32, i32
  }
}

module attributes {stable_mosaic.version = 11 : i64} {
  func.func @_gemm_bias_kernel(%arg0: i32, %arg1: memref<288x216xbf16, #tpu.memory_space<vmem>>, %arg2: memref<216x24xbf16, #tpu.memory_space<vmem>>, %arg3: memref<1x24xf32, #tpu.memory_space<vmem>>, %arg4: memref<288x24xf32, #tpu.memory_space<vmem>>) attributes {dimension_semantics = [#tpu.dimension_semantics<parallel>], iteration_bounds = array<i64: 1>, scalar_prefetch = 0 : i64, scratch_operands = 0 : i64, tpu.core_type = #tpu.core_type<tc>, window_params = [{transform_indices = @transform_0, window_bounds = array<i64: 288, 216>}, {pipeline_mode = #tpu.pipeline_mode<synchronous>, transform_indices = @transform_1, window_bounds = array<i64: 216, 24>}, {pipeline_mode = #tpu.pipeline_mode<synchronous>, transform_indices = @transform_2, window_bounds = array<i64: 1, 24>}, {transform_indices = @transform_3, window_bounds = array<i64: 288, 24>}]} {
    %c0 = arith.constant 0 : index
    %c0_0 = arith.constant 0 : index
    %0 = vector.load %arg1[%c0, %c0_0] : memref<288x216xbf16, #tpu.memory_space<vmem>>, vector<288x216xbf16>
    %c0_1 = arith.constant 0 : index
    %c0_2 = arith.constant 0 : index
    %1 = vector.load %arg2[%c0_1, %c0_2] : memref<216x24xbf16, #tpu.memory_space<vmem>>, vector<216x24xbf16>
    %cst = arith.constant dense<0.000000e+00> : vector<288x24xf32>
    %2 = tpu.matmul %0, %1, %cst {dimension_numbers = #tpu.dot_dimension_numbers<[1], [0], [0], [1], [0, 0, 1, 1], [], []>} : vector<288x216xbf16>, vector<216x24xbf16>, vector<288x24xf32> -> vector<288x24xf32>
    %c0_3 = arith.constant 0 : index
    %c0_4 = arith.constant 0 : index
    %3 = vector.load %arg3[%c0_3, %c0_4] : memref<1x24xf32, #tpu.memory_space<vmem>>, vector<1x24xf32>
    %4 = vector.broadcast %3 : vector<1x24xf32> to vector<288x24xf32>
    %5 = arith.addf %2, %4 : vector<288x24xf32>
    %c0_5 = arith.constant 0 : index
    %c0_6 = arith.constant 0 : index
    %6 = vector.load %arg4[%c0_5, %c0_6] : memref<288x24xf32, #tpu.memory_space<vmem>>, vector<288x24xf32>
    tpu.vector_store %arg4[%c0_5, %c0_6], %5 {strides = array<i32>} : memref<288x24xf32, #tpu.memory_space<vmem>>, vector<288x24xf32>,
    return
  }
  func.func @transform_0(%arg0: i32) -> (i32, i32) {
    %c0_i32 = arith.constant 0 : i32
    %c0_i32_0 = arith.constant 0 : i32
    return %arg0, %c0_i32 : i32, i32
  }
  func.func @transform_1(%arg0: i32) -> (i32, i32) {
    %c0_i32 = arith.constant 0 : i32
    %c0_i32_0 = arith.constant 0 : i32
    %c0_i32_1 = arith.constant 0 : i32
    return %c0_i32, %c0_i32_0 : i32, i32
  }
  func.func @transform_2(%arg0: i32) -> (i32, i32) {
    %c0_i32 = arith.constant 0 : i32
    %c0_i32_0 = arith.constant 0 : i32
    %c0_i32_1 = arith.constant 0 : i32
    return %c0_i32, %c0_i32_0 : i32, i32
  }
  func.func @transform_3(%arg0: i32) -> (i32, i32) {
    %c0_i32 = arith.constant 0 : i32
    %c0_i32_0 = arith.constant 0 : i32
    return %arg0, %c0_i32 : i32, i32
  }
}

module attributes {stable_mosaic.version = 11 : i64} {
  func.func @_avg9_kernel(%arg0: memref<2x1440xf32, #tpu.memory_space<vmem>>, %arg1: memref<2x1440xf32, #tpu.memory_space<vmem>>, %arg2: memref<2x1440xf32, #tpu.memory_space<vmem>>, %arg3: memref<2x1440xf32, #tpu.memory_space<vmem>>, %arg4: memref<2x1440xf32, #tpu.memory_space<vmem>>, %arg5: memref<2x1440xf32, #tpu.memory_space<vmem>>, %arg6: memref<2x1440xf32, #tpu.memory_space<vmem>>, %arg7: memref<2x1440xf32, #tpu.memory_space<vmem>>, %arg8: memref<2x1440xf32, #tpu.memory_space<vmem>>, %arg9: memref<2x1440xf32, #tpu.memory_space<vmem>>) attributes {dimension_semantics = [], scalar_prefetch = 0 : i64, scratch_operands = 0 : i64, tpu.core_type = #tpu.core_type<tc>} {
    %c0 = arith.constant 0 : index
    %c0_0 = arith.constant 0 : index
    %0 = vector.load %arg0[%c0, %c0_0] : memref<2x1440xf32, #tpu.memory_space<vmem>>, vector<2x1440xf32>
    %c0_1 = arith.constant 0 : index
    %c0_2 = arith.constant 0 : index
    %1 = vector.load %arg1[%c0_1, %c0_2] : memref<2x1440xf32, #tpu.memory_space<vmem>>, vector<2x1440xf32>
    %2 = arith.addf %0, %1 : vector<2x1440xf32>
    %c0_3 = arith.constant 0 : index
    %c0_4 = arith.constant 0 : index
    %3 = vector.load %arg2[%c0_3, %c0_4] : memref<2x1440xf32, #tpu.memory_space<vmem>>, vector<2x1440xf32>
    %4 = arith.addf %2, %3 : vector<2x1440xf32>
    %c0_5 = arith.constant 0 : index
    %c0_6 = arith.constant 0 : index
    %5 = vector.load %arg3[%c0_5, %c0_6] : memref<2x1440xf32, #tpu.memory_space<vmem>>, vector<2x1440xf32>
    %6 = arith.addf %4, %5 : vector<2x1440xf32>
    %c0_7 = arith.constant 0 : index
    %c0_8 = arith.constant 0 : index
    %7 = vector.load %arg4[%c0_7, %c0_8] : memref<2x1440xf32, #tpu.memory_space<vmem>>, vector<2x1440xf32>
    %8 = arith.addf %6, %7 : vector<2x1440xf32>
    %c0_9 = arith.constant 0 : index
    %c0_10 = arith.constant 0 : index
    %9 = vector.load %arg5[%c0_9, %c0_10] : memref<2x1440xf32, #tpu.memory_space<vmem>>, vector<2x1440xf32>
    %10 = arith.addf %8, %9 : vector<2x1440xf32>
    %c0_11 = arith.constant 0 : index
    %c0_12 = arith.constant 0 : index
    %11 = vector.load %arg6[%c0_11, %c0_12] : memref<2x1440xf32, #tpu.memory_space<vmem>>, vector<2x1440xf32>
    %12 = arith.addf %10, %11 : vector<2x1440xf32>
    %c0_13 = arith.constant 0 : index
    %c0_14 = arith.constant 0 : index
    %13 = vector.load %arg7[%c0_13, %c0_14] : memref<2x1440xf32, #tpu.memory_space<vmem>>, vector<2x1440xf32>
    %14 = arith.addf %12, %13 : vector<2x1440xf32>
    %c0_15 = arith.constant 0 : index
    %c0_16 = arith.constant 0 : index
    %15 = vector.load %arg8[%c0_15, %c0_16] : memref<2x1440xf32, #tpu.memory_space<vmem>>, vector<2x1440xf32>
    %16 = arith.addf %14, %15 : vector<2x1440xf32>
    %cst = arith.constant 0.111111112 : f32
    %17 = vector.broadcast %cst : f32 to vector<2x1440xf32>
    %18 = arith.mulf %16, %17 : vector<2x1440xf32>
    %c0_17 = arith.constant 0 : index
    %c0_18 = arith.constant 0 : index
    %19 = vector.load %arg9[%c0_17, %c0_18] : memref<2x1440xf32, #tpu.memory_space<vmem>>, vector<2x1440xf32>
    tpu.vector_store %arg9[%c0_17, %c0_18], %18 {strides = array<i32>} : memref<2x1440xf32, #tpu.memory_space<vmem>>, vector<2x1440xf32>,
    return
  }
}

module attributes {stable_mosaic.version = 11 : i64} {
  func.func @_gemm_bias_kernel(%arg0: i32, %arg1: memref<288x10xbf16, #tpu.memory_space<vmem>>, %arg2: memref<10x24xbf16, #tpu.memory_space<vmem>>, %arg3: memref<1x24xf32, #tpu.memory_space<vmem>>, %arg4: memref<288x24xf32, #tpu.memory_space<vmem>>) attributes {dimension_semantics = [#tpu.dimension_semantics<parallel>], iteration_bounds = array<i64: 1>, scalar_prefetch = 0 : i64, scratch_operands = 0 : i64, tpu.core_type = #tpu.core_type<tc>, window_params = [{transform_indices = @transform_0, window_bounds = array<i64: 288, 10>}, {pipeline_mode = #tpu.pipeline_mode<synchronous>, transform_indices = @transform_1, window_bounds = array<i64: 10, 24>}, {pipeline_mode = #tpu.pipeline_mode<synchronous>, transform_indices = @transform_2, window_bounds = array<i64: 1, 24>}, {transform_indices = @transform_3, window_bounds = array<i64: 288, 24>}]} {
    %c0 = arith.constant 0 : index
    %c0_0 = arith.constant 0 : index
    %0 = vector.load %arg1[%c0, %c0_0] : memref<288x10xbf16, #tpu.memory_space<vmem>>, vector<288x10xbf16>
    %c0_1 = arith.constant 0 : index
    %c0_2 = arith.constant 0 : index
    %1 = vector.load %arg2[%c0_1, %c0_2] : memref<10x24xbf16, #tpu.memory_space<vmem>>, vector<10x24xbf16>
    %cst = arith.constant dense<0.000000e+00> : vector<288x24xf32>
    %2 = tpu.matmul %0, %1, %cst {dimension_numbers = #tpu.dot_dimension_numbers<[1], [0], [0], [1], [0, 0, 1, 1], [], []>} : vector<288x10xbf16>, vector<10x24xbf16>, vector<288x24xf32> -> vector<288x24xf32>
    %c0_3 = arith.constant 0 : index
    %c0_4 = arith.constant 0 : index
    %3 = vector.load %arg3[%c0_3, %c0_4] : memref<1x24xf32, #tpu.memory_space<vmem>>, vector<1x24xf32>
    %4 = vector.broadcast %3 : vector<1x24xf32> to vector<288x24xf32>
    %5 = arith.addf %2, %4 : vector<288x24xf32>
    %c0_5 = arith.constant 0 : index
    %c0_6 = arith.constant 0 : index
    %6 = vector.load %arg4[%c0_5, %c0_6] : memref<288x24xf32, #tpu.memory_space<vmem>>, vector<288x24xf32>
    tpu.vector_store %arg4[%c0_5, %c0_6], %5 {strides = array<i32>} : memref<288x24xf32, #tpu.memory_space<vmem>>, vector<288x24xf32>,
    return
  }
  func.func @transform_0(%arg0: i32) -> (i32, i32) {
    %c0_i32 = arith.constant 0 : i32
    %c0_i32_0 = arith.constant 0 : i32
    return %arg0, %c0_i32 : i32, i32
  }
  func.func @transform_1(%arg0: i32) -> (i32, i32) {
    %c0_i32 = arith.constant 0 : i32
    %c0_i32_0 = arith.constant 0 : i32
    %c0_i32_1 = arith.constant 0 : i32
    return %c0_i32, %c0_i32_0 : i32, i32
  }
  func.func @transform_2(%arg0: i32) -> (i32, i32) {
    %c0_i32 = arith.constant 0 : i32
    %c0_i32_0 = arith.constant 0 : i32
    %c0_i32_1 = arith.constant 0 : i32
    return %c0_i32, %c0_i32_0 : i32, i32
  }
  func.func @transform_3(%arg0: i32) -> (i32, i32) {
    %c0_i32 = arith.constant 0 : i32
    %c0_i32_0 = arith.constant 0 : i32
    return %arg0, %c0_i32 : i32, i32
  }
}

module attributes {stable_mosaic.version = 11 : i64} {
  func.func @_gemm_bias_kernel(%arg0: i32, %arg1: memref<128x2200xbf16, #tpu.memory_space<vmem>>, %arg2: memref<2200x20xbf16, #tpu.memory_space<vmem>>, %arg3: memref<1x20xf32, #tpu.memory_space<vmem>>, %arg4: memref<128x20xf32, #tpu.memory_space<vmem>>) attributes {dimension_semantics = [#tpu.dimension_semantics<parallel>], iteration_bounds = array<i64: 1>, scalar_prefetch = 0 : i64, scratch_operands = 0 : i64, tpu.core_type = #tpu.core_type<tc>, window_params = [{transform_indices = @transform_0, window_bounds = array<i64: 128, 2200>}, {pipeline_mode = #tpu.pipeline_mode<synchronous>, transform_indices = @transform_1, window_bounds = array<i64: 2200, 20>}, {pipeline_mode = #tpu.pipeline_mode<synchronous>, transform_indices = @transform_2, window_bounds = array<i64: 1, 20>}, {transform_indices = @transform_3, window_bounds = array<i64: 128, 20>}]} {
    %c0 = arith.constant 0 : index
    %c0_0 = arith.constant 0 : index
    %0 = vector.load %arg1[%c0, %c0_0] : memref<128x2200xbf16, #tpu.memory_space<vmem>>, vector<128x2200xbf16>
    %c0_1 = arith.constant 0 : index
    %c0_2 = arith.constant 0 : index
    %1 = vector.load %arg2[%c0_1, %c0_2] : memref<2200x20xbf16, #tpu.memory_space<vmem>>, vector<2200x20xbf16>
    %cst = arith.constant dense<0.000000e+00> : vector<128x20xf32>
    %2 = tpu.matmul %0, %1, %cst {dimension_numbers = #tpu.dot_dimension_numbers<[1], [0], [0], [1], [0, 0, 1, 1], [], []>} : vector<128x2200xbf16>, vector<2200x20xbf16>, vector<128x20xf32> -> vector<128x20xf32>
    %c0_3 = arith.constant 0 : index
    %c0_4 = arith.constant 0 : index
    %3 = vector.load %arg3[%c0_3, %c0_4] : memref<1x20xf32, #tpu.memory_space<vmem>>, vector<1x20xf32>
    %4 = vector.broadcast %3 : vector<1x20xf32> to vector<128x20xf32>
    %5 = arith.addf %2, %4 : vector<128x20xf32>
    %cst_5 = arith.constant 0.000000e+00 : f32
    %6 = vector.broadcast %cst_5 : f32 to vector<128x20xf32>
    %7 = arith.maximumf %5, %6 : vector<128x20xf32>
    %c0_6 = arith.constant 0 : index
    %c0_7 = arith.constant 0 : index
    %8 = vector.load %arg4[%c0_6, %c0_7] : memref<128x20xf32, #tpu.memory_space<vmem>>, vector<128x20xf32>
    tpu.vector_store %arg4[%c0_6, %c0_7], %7 {strides = array<i32>} : memref<128x20xf32, #tpu.memory_space<vmem>>, vector<128x20xf32>,
    return
  }
  func.func @transform_0(%arg0: i32) -> (i32, i32) {
    %c0_i32 = arith.constant 0 : i32
    %c0_i32_0 = arith.constant 0 : i32
    return %arg0, %c0_i32 : i32, i32
  }
  func.func @transform_1(%arg0: i32) -> (i32, i32) {
    %c0_i32 = arith.constant 0 : i32
    %c0_i32_0 = arith.constant 0 : i32
    %c0_i32_1 = arith.constant 0 : i32
    return %c0_i32, %c0_i32_0 : i32, i32
  }
  func.func @transform_2(%arg0: i32) -> (i32, i32) {
    %c0_i32 = arith.constant 0 : i32
    %c0_i32_0 = arith.constant 0 : i32
    %c0_i32_1 = arith.constant 0 : i32
    return %c0_i32, %c0_i32_0 : i32, i32
  }
  func.func @transform_3(%arg0: i32) -> (i32, i32) {
    %c0_i32 = arith.constant 0 : i32
    %c0_i32_0 = arith.constant 0 : i32
    return %arg0, %c0_i32 : i32, i32
  }
}

module attributes {stable_mosaic.version = 11 : i64} {
  func.func @_max4_kernel(%arg0: memref<2x320xf32, #tpu.memory_space<vmem>>, %arg1: memref<2x320xf32, #tpu.memory_space<vmem>>, %arg2: memref<2x320xf32, #tpu.memory_space<vmem>>, %arg3: memref<2x320xf32, #tpu.memory_space<vmem>>, %arg4: memref<2x320xf32, #tpu.memory_space<vmem>>) attributes {dimension_semantics = [], scalar_prefetch = 0 : i64, scratch_operands = 0 : i64, tpu.core_type = #tpu.core_type<tc>} {
    %c0 = arith.constant 0 : index
    %c0_0 = arith.constant 0 : index
    %0 = vector.load %arg0[%c0, %c0_0] : memref<2x320xf32, #tpu.memory_space<vmem>>, vector<2x320xf32>
    %c0_1 = arith.constant 0 : index
    %c0_2 = arith.constant 0 : index
    %1 = vector.load %arg1[%c0_1, %c0_2] : memref<2x320xf32, #tpu.memory_space<vmem>>, vector<2x320xf32>
    %2 = arith.maximumf %0, %1 : vector<2x320xf32>
    %c0_3 = arith.constant 0 : index
    %c0_4 = arith.constant 0 : index
    %3 = vector.load %arg2[%c0_3, %c0_4] : memref<2x320xf32, #tpu.memory_space<vmem>>, vector<2x320xf32>
    %c0_5 = arith.constant 0 : index
    %c0_6 = arith.constant 0 : index
    %4 = vector.load %arg3[%c0_5, %c0_6] : memref<2x320xf32, #tpu.memory_space<vmem>>, vector<2x320xf32>
    %5 = arith.maximumf %3, %4 : vector<2x320xf32>
    %6 = arith.maximumf %2, %5 : vector<2x320xf32>
    %c0_7 = arith.constant 0 : index
    %c0_8 = arith.constant 0 : index
    %7 = vector.load %arg4[%c0_7, %c0_8] : memref<2x320xf32, #tpu.memory_space<vmem>>, vector<2x320xf32>
    tpu.vector_store %arg4[%c0_7, %c0_8], %6 {strides = array<i32>} : memref<2x320xf32, #tpu.memory_space<vmem>>, vector<2x320xf32>,
    return
  }
}

module attributes {stable_mosaic.version = 11 : i64} {
  func.func @_gemm_bias_kernel(%arg0: i32, %arg1: memref<32x20xbf16, #tpu.memory_space<vmem>>, %arg2: memref<20x48xbf16, #tpu.memory_space<vmem>>, %arg3: memref<1x48xf32, #tpu.memory_space<vmem>>, %arg4: memref<32x48xf32, #tpu.memory_space<vmem>>) attributes {dimension_semantics = [#tpu.dimension_semantics<parallel>], iteration_bounds = array<i64: 1>, scalar_prefetch = 0 : i64, scratch_operands = 0 : i64, tpu.core_type = #tpu.core_type<tc>, window_params = [{transform_indices = @transform_0, window_bounds = array<i64: 32, 20>}, {pipeline_mode = #tpu.pipeline_mode<synchronous>, transform_indices = @transform_1, window_bounds = array<i64: 20, 48>}, {pipeline_mode = #tpu.pipeline_mode<synchronous>, transform_indices = @transform_2, window_bounds = array<i64: 1, 48>}, {transform_indices = @transform_3, window_bounds = array<i64: 32, 48>}]} {
    %c0 = arith.constant 0 : index
    %c0_0 = arith.constant 0 : index
    %0 = vector.load %arg1[%c0, %c0_0] : memref<32x20xbf16, #tpu.memory_space<vmem>>, vector<32x20xbf16>
    %c0_1 = arith.constant 0 : index
    %c0_2 = arith.constant 0 : index
    %1 = vector.load %arg2[%c0_1, %c0_2] : memref<20x48xbf16, #tpu.memory_space<vmem>>, vector<20x48xbf16>
    %cst = arith.constant dense<0.000000e+00> : vector<32x48xf32>
    %2 = tpu.matmul %0, %1, %cst {dimension_numbers = #tpu.dot_dimension_numbers<[1], [0], [0], [1], [0, 0, 1, 1], [], []>} : vector<32x20xbf16>, vector<20x48xbf16>, vector<32x48xf32> -> vector<32x48xf32>
    %c0_3 = arith.constant 0 : index
    %c0_4 = arith.constant 0 : index
    %3 = vector.load %arg3[%c0_3, %c0_4] : memref<1x48xf32, #tpu.memory_space<vmem>>, vector<1x48xf32>
    %4 = vector.broadcast %3 : vector<1x48xf32> to vector<32x48xf32>
    %5 = arith.addf %2, %4 : vector<32x48xf32>
    %c0_5 = arith.constant 0 : index
    %c0_6 = arith.constant 0 : index
    %6 = vector.load %arg4[%c0_5, %c0_6] : memref<32x48xf32, #tpu.memory_space<vmem>>, vector<32x48xf32>
    tpu.vector_store %arg4[%c0_5, %c0_6], %5 {strides = array<i32>} : memref<32x48xf32, #tpu.memory_space<vmem>>, vector<32x48xf32>,
    return
  }
  func.func @transform_0(%arg0: i32) -> (i32, i32) {
    %c0_i32 = arith.constant 0 : i32
    %c0_i32_0 = arith.constant 0 : i32
    return %arg0, %c0_i32 : i32, i32
  }
  func.func @transform_1(%arg0: i32) -> (i32, i32) {
    %c0_i32 = arith.constant 0 : i32
    %c0_i32_0 = arith.constant 0 : i32
    %c0_i32_1 = arith.constant 0 : i32
    return %c0_i32, %c0_i32_0 : i32, i32
  }
  func.func @transform_2(%arg0: i32) -> (i32, i32) {
    %c0_i32 = arith.constant 0 : i32
    %c0_i32_0 = arith.constant 0 : i32
    %c0_i32_1 = arith.constant 0 : i32
    return %c0_i32, %c0_i32_0 : i32, i32
  }
  func.func @transform_3(%arg0: i32) -> (i32, i32) {
    %c0_i32 = arith.constant 0 : i32
    %c0_i32_0 = arith.constant 0 : i32
    return %arg0, %c0_i32 : i32, i32
  }
}

module attributes {stable_mosaic.version = 11 : i64} {
  func.func @_gemm_bias_kernel(%arg0: i32, %arg1: memref<32x400xbf16, #tpu.memory_space<vmem>>, %arg2: memref<400x24xbf16, #tpu.memory_space<vmem>>, %arg3: memref<1x24xf32, #tpu.memory_space<vmem>>, %arg4: memref<32x24xf32, #tpu.memory_space<vmem>>) attributes {dimension_semantics = [#tpu.dimension_semantics<parallel>], iteration_bounds = array<i64: 1>, scalar_prefetch = 0 : i64, scratch_operands = 0 : i64, tpu.core_type = #tpu.core_type<tc>, window_params = [{transform_indices = @transform_0, window_bounds = array<i64: 32, 400>}, {pipeline_mode = #tpu.pipeline_mode<synchronous>, transform_indices = @transform_1, window_bounds = array<i64: 400, 24>}, {pipeline_mode = #tpu.pipeline_mode<synchronous>, transform_indices = @transform_2, window_bounds = array<i64: 1, 24>}, {transform_indices = @transform_3, window_bounds = array<i64: 32, 24>}]} {
    %c0 = arith.constant 0 : index
    %c0_0 = arith.constant 0 : index
    %0 = vector.load %arg1[%c0, %c0_0] : memref<32x400xbf16, #tpu.memory_space<vmem>>, vector<32x400xbf16>
    %c0_1 = arith.constant 0 : index
    %c0_2 = arith.constant 0 : index
    %1 = vector.load %arg2[%c0_1, %c0_2] : memref<400x24xbf16, #tpu.memory_space<vmem>>, vector<400x24xbf16>
    %cst = arith.constant dense<0.000000e+00> : vector<32x24xf32>
    %2 = tpu.matmul %0, %1, %cst {dimension_numbers = #tpu.dot_dimension_numbers<[1], [0], [0], [1], [0, 0, 1, 1], [], []>} : vector<32x400xbf16>, vector<400x24xbf16>, vector<32x24xf32> -> vector<32x24xf32>
    %c0_3 = arith.constant 0 : index
    %c0_4 = arith.constant 0 : index
    %3 = vector.load %arg3[%c0_3, %c0_4] : memref<1x24xf32, #tpu.memory_space<vmem>>, vector<1x24xf32>
    %4 = vector.broadcast %3 : vector<1x24xf32> to vector<32x24xf32>
    %5 = arith.addf %2, %4 : vector<32x24xf32>
    %c0_5 = arith.constant 0 : index
    %c0_6 = arith.constant 0 : index
    %6 = vector.load %arg4[%c0_5, %c0_6] : memref<32x24xf32, #tpu.memory_space<vmem>>, vector<32x24xf32>
    tpu.vector_store %arg4[%c0_5, %c0_6], %5 {strides = array<i32>} : memref<32x24xf32, #tpu.memory_space<vmem>>, vector<32x24xf32>,
    return
  }
  func.func @transform_0(%arg0: i32) -> (i32, i32) {
    %c0_i32 = arith.constant 0 : i32
    %c0_i32_0 = arith.constant 0 : i32
    return %arg0, %c0_i32 : i32, i32
  }
  func.func @transform_1(%arg0: i32) -> (i32, i32) {
    %c0_i32 = arith.constant 0 : i32
    %c0_i32_0 = arith.constant 0 : i32
    %c0_i32_1 = arith.constant 0 : i32
    return %c0_i32, %c0_i32_0 : i32, i32
  }
  func.func @transform_2(%arg0: i32) -> (i32, i32) {
    %c0_i32 = arith.constant 0 : i32
    %c0_i32_0 = arith.constant 0 : i32
    %c0_i32_1 = arith.constant 0 : i32
    return %c0_i32, %c0_i32_0 : i32, i32
  }
  func.func @transform_3(%arg0: i32) -> (i32, i32) {
    %c0_i32 = arith.constant 0 : i32
    %c0_i32_0 = arith.constant 0 : i32
    return %arg0, %c0_i32 : i32, i32
  }
}

module attributes {stable_mosaic.version = 11 : i64} {
  func.func @_gemm_bias_kernel(%arg0: i32, %arg1: memref<32x144xbf16, #tpu.memory_space<vmem>>, %arg2: memref<144x24xbf16, #tpu.memory_space<vmem>>, %arg3: memref<1x24xf32, #tpu.memory_space<vmem>>, %arg4: memref<32x24xf32, #tpu.memory_space<vmem>>) attributes {dimension_semantics = [#tpu.dimension_semantics<parallel>], iteration_bounds = array<i64: 1>, scalar_prefetch = 0 : i64, scratch_operands = 0 : i64, tpu.core_type = #tpu.core_type<tc>, window_params = [{transform_indices = @transform_0, window_bounds = array<i64: 32, 144>}, {pipeline_mode = #tpu.pipeline_mode<synchronous>, transform_indices = @transform_1, window_bounds = array<i64: 144, 24>}, {pipeline_mode = #tpu.pipeline_mode<synchronous>, transform_indices = @transform_2, window_bounds = array<i64: 1, 24>}, {transform_indices = @transform_3, window_bounds = array<i64: 32, 24>}]} {
    %c0 = arith.constant 0 : index
    %c0_0 = arith.constant 0 : index
    %0 = vector.load %arg1[%c0, %c0_0] : memref<32x144xbf16, #tpu.memory_space<vmem>>, vector<32x144xbf16>
    %c0_1 = arith.constant 0 : index
    %c0_2 = arith.constant 0 : index
    %1 = vector.load %arg2[%c0_1, %c0_2] : memref<144x24xbf16, #tpu.memory_space<vmem>>, vector<144x24xbf16>
    %cst = arith.constant dense<0.000000e+00> : vector<32x24xf32>
    %2 = tpu.matmul %0, %1, %cst {dimension_numbers = #tpu.dot_dimension_numbers<[1], [0], [0], [1], [0, 0, 1, 1], [], []>} : vector<32x144xbf16>, vector<144x24xbf16>, vector<32x24xf32> -> vector<32x24xf32>
    %c0_3 = arith.constant 0 : index
    %c0_4 = arith.constant 0 : index
    %3 = vector.load %arg3[%c0_3, %c0_4] : memref<1x24xf32, #tpu.memory_space<vmem>>, vector<1x24xf32>
    %4 = vector.broadcast %3 : vector<1x24xf32> to vector<32x24xf32>
    %5 = arith.addf %2, %4 : vector<32x24xf32>
    %c0_5 = arith.constant 0 : index
    %c0_6 = arith.constant 0 : index
    %6 = vector.load %arg4[%c0_5, %c0_6] : memref<32x24xf32, #tpu.memory_space<vmem>>, vector<32x24xf32>
    tpu.vector_store %arg4[%c0_5, %c0_6], %5 {strides = array<i32>} : memref<32x24xf32, #tpu.memory_space<vmem>>, vector<32x24xf32>,
    return
  }
  func.func @transform_0(%arg0: i32) -> (i32, i32) {
    %c0_i32 = arith.constant 0 : i32
    %c0_i32_0 = arith.constant 0 : i32
    return %arg0, %c0_i32 : i32, i32
  }
  func.func @transform_1(%arg0: i32) -> (i32, i32) {
    %c0_i32 = arith.constant 0 : i32
    %c0_i32_0 = arith.constant 0 : i32
    %c0_i32_1 = arith.constant 0 : i32
    return %c0_i32, %c0_i32_0 : i32, i32
  }
  func.func @transform_2(%arg0: i32) -> (i32, i32) {
    %c0_i32 = arith.constant 0 : i32
    %c0_i32_0 = arith.constant 0 : i32
    %c0_i32_1 = arith.constant 0 : i32
    return %c0_i32, %c0_i32_0 : i32, i32
  }
  func.func @transform_3(%arg0: i32) -> (i32, i32) {
    %c0_i32 = arith.constant 0 : i32
    %c0_i32_0 = arith.constant 0 : i32
    return %arg0, %c0_i32 : i32, i32
  }
}

module attributes {stable_mosaic.version = 11 : i64} {
  func.func @_gemm_bias_kernel(%arg0: i32, %arg1: memref<32x216xbf16, #tpu.memory_space<vmem>>, %arg2: memref<216x24xbf16, #tpu.memory_space<vmem>>, %arg3: memref<1x24xf32, #tpu.memory_space<vmem>>, %arg4: memref<32x24xf32, #tpu.memory_space<vmem>>) attributes {dimension_semantics = [#tpu.dimension_semantics<parallel>], iteration_bounds = array<i64: 1>, scalar_prefetch = 0 : i64, scratch_operands = 0 : i64, tpu.core_type = #tpu.core_type<tc>, window_params = [{transform_indices = @transform_0, window_bounds = array<i64: 32, 216>}, {pipeline_mode = #tpu.pipeline_mode<synchronous>, transform_indices = @transform_1, window_bounds = array<i64: 216, 24>}, {pipeline_mode = #tpu.pipeline_mode<synchronous>, transform_indices = @transform_2, window_bounds = array<i64: 1, 24>}, {transform_indices = @transform_3, window_bounds = array<i64: 32, 24>}]} {
    %c0 = arith.constant 0 : index
    %c0_0 = arith.constant 0 : index
    %0 = vector.load %arg1[%c0, %c0_0] : memref<32x216xbf16, #tpu.memory_space<vmem>>, vector<32x216xbf16>
    %c0_1 = arith.constant 0 : index
    %c0_2 = arith.constant 0 : index
    %1 = vector.load %arg2[%c0_1, %c0_2] : memref<216x24xbf16, #tpu.memory_space<vmem>>, vector<216x24xbf16>
    %cst = arith.constant dense<0.000000e+00> : vector<32x24xf32>
    %2 = tpu.matmul %0, %1, %cst {dimension_numbers = #tpu.dot_dimension_numbers<[1], [0], [0], [1], [0, 0, 1, 1], [], []>} : vector<32x216xbf16>, vector<216x24xbf16>, vector<32x24xf32> -> vector<32x24xf32>
    %c0_3 = arith.constant 0 : index
    %c0_4 = arith.constant 0 : index
    %3 = vector.load %arg3[%c0_3, %c0_4] : memref<1x24xf32, #tpu.memory_space<vmem>>, vector<1x24xf32>
    %4 = vector.broadcast %3 : vector<1x24xf32> to vector<32x24xf32>
    %5 = arith.addf %2, %4 : vector<32x24xf32>
    %c0_5 = arith.constant 0 : index
    %c0_6 = arith.constant 0 : index
    %6 = vector.load %arg4[%c0_5, %c0_6] : memref<32x24xf32, #tpu.memory_space<vmem>>, vector<32x24xf32>
    tpu.vector_store %arg4[%c0_5, %c0_6], %5 {strides = array<i32>} : memref<32x24xf32, #tpu.memory_space<vmem>>, vector<32x24xf32>,
    return
  }
  func.func @transform_0(%arg0: i32) -> (i32, i32) {
    %c0_i32 = arith.constant 0 : i32
    %c0_i32_0 = arith.constant 0 : i32
    return %arg0, %c0_i32 : i32, i32
  }
  func.func @transform_1(%arg0: i32) -> (i32, i32) {
    %c0_i32 = arith.constant 0 : i32
    %c0_i32_0 = arith.constant 0 : i32
    %c0_i32_1 = arith.constant 0 : i32
    return %c0_i32, %c0_i32_0 : i32, i32
  }
  func.func @transform_2(%arg0: i32) -> (i32, i32) {
    %c0_i32 = arith.constant 0 : i32
    %c0_i32_0 = arith.constant 0 : i32
    %c0_i32_1 = arith.constant 0 : i32
    return %c0_i32, %c0_i32_0 : i32, i32
  }
  func.func @transform_3(%arg0: i32) -> (i32, i32) {
    %c0_i32 = arith.constant 0 : i32
    %c0_i32_0 = arith.constant 0 : i32
    return %arg0, %c0_i32 : i32, i32
  }
}

module attributes {stable_mosaic.version = 11 : i64} {
  func.func @_avg9_kernel(%arg0: memref<2x320xf32, #tpu.memory_space<vmem>>, %arg1: memref<2x320xf32, #tpu.memory_space<vmem>>, %arg2: memref<2x320xf32, #tpu.memory_space<vmem>>, %arg3: memref<2x320xf32, #tpu.memory_space<vmem>>, %arg4: memref<2x320xf32, #tpu.memory_space<vmem>>, %arg5: memref<2x320xf32, #tpu.memory_space<vmem>>, %arg6: memref<2x320xf32, #tpu.memory_space<vmem>>, %arg7: memref<2x320xf32, #tpu.memory_space<vmem>>, %arg8: memref<2x320xf32, #tpu.memory_space<vmem>>, %arg9: memref<2x320xf32, #tpu.memory_space<vmem>>) attributes {dimension_semantics = [], scalar_prefetch = 0 : i64, scratch_operands = 0 : i64, tpu.core_type = #tpu.core_type<tc>} {
    %c0 = arith.constant 0 : index
    %c0_0 = arith.constant 0 : index
    %0 = vector.load %arg0[%c0, %c0_0] : memref<2x320xf32, #tpu.memory_space<vmem>>, vector<2x320xf32>
    %c0_1 = arith.constant 0 : index
    %c0_2 = arith.constant 0 : index
    %1 = vector.load %arg1[%c0_1, %c0_2] : memref<2x320xf32, #tpu.memory_space<vmem>>, vector<2x320xf32>
    %2 = arith.addf %0, %1 : vector<2x320xf32>
    %c0_3 = arith.constant 0 : index
    %c0_4 = arith.constant 0 : index
    %3 = vector.load %arg2[%c0_3, %c0_4] : memref<2x320xf32, #tpu.memory_space<vmem>>, vector<2x320xf32>
    %4 = arith.addf %2, %3 : vector<2x320xf32>
    %c0_5 = arith.constant 0 : index
    %c0_6 = arith.constant 0 : index
    %5 = vector.load %arg3[%c0_5, %c0_6] : memref<2x320xf32, #tpu.memory_space<vmem>>, vector<2x320xf32>
    %6 = arith.addf %4, %5 : vector<2x320xf32>
    %c0_7 = arith.constant 0 : index
    %c0_8 = arith.constant 0 : index
    %7 = vector.load %arg4[%c0_7, %c0_8] : memref<2x320xf32, #tpu.memory_space<vmem>>, vector<2x320xf32>
    %8 = arith.addf %6, %7 : vector<2x320xf32>
    %c0_9 = arith.constant 0 : index
    %c0_10 = arith.constant 0 : index
    %9 = vector.load %arg5[%c0_9, %c0_10] : memref<2x320xf32, #tpu.memory_space<vmem>>, vector<2x320xf32>
    %10 = arith.addf %8, %9 : vector<2x320xf32>
    %c0_11 = arith.constant 0 : index
    %c0_12 = arith.constant 0 : index
    %11 = vector.load %arg6[%c0_11, %c0_12] : memref<2x320xf32, #tpu.memory_space<vmem>>, vector<2x320xf32>
    %12 = arith.addf %10, %11 : vector<2x320xf32>
    %c0_13 = arith.constant 0 : index
    %c0_14 = arith.constant 0 : index
    %13 = vector.load %arg7[%c0_13, %c0_14] : memref<2x320xf32, #tpu.memory_space<vmem>>, vector<2x320xf32>
    %14 = arith.addf %12, %13 : vector<2x320xf32>
    %c0_15 = arith.constant 0 : index
    %c0_16 = arith.constant 0 : index
    %15 = vector.load %arg8[%c0_15, %c0_16] : memref<2x320xf32, #tpu.memory_space<vmem>>, vector<2x320xf32>
    %16 = arith.addf %14, %15 : vector<2x320xf32>
    %cst = arith.constant 0.111111112 : f32
    %17 = vector.broadcast %cst : f32 to vector<2x320xf32>
    %18 = arith.mulf %16, %17 : vector<2x320xf32>
    %c0_17 = arith.constant 0 : index
    %c0_18 = arith.constant 0 : index
    %19 = vector.load %arg9[%c0_17, %c0_18] : memref<2x320xf32, #tpu.memory_space<vmem>>, vector<2x320xf32>
    tpu.vector_store %arg9[%c0_17, %c0_18], %18 {strides = array<i32>} : memref<2x320xf32, #tpu.memory_space<vmem>>, vector<2x320xf32>,
    return
  }
}

module attributes {stable_mosaic.version = 11 : i64} {
  func.func @_gemm_bias_kernel(%arg0: i32, %arg1: memref<32x20xbf16, #tpu.memory_space<vmem>>, %arg2: memref<20x24xbf16, #tpu.memory_space<vmem>>, %arg3: memref<1x24xf32, #tpu.memory_space<vmem>>, %arg4: memref<32x24xf32, #tpu.memory_space<vmem>>) attributes {dimension_semantics = [#tpu.dimension_semantics<parallel>], iteration_bounds = array<i64: 1>, scalar_prefetch = 0 : i64, scratch_operands = 0 : i64, tpu.core_type = #tpu.core_type<tc>, window_params = [{transform_indices = @transform_0, window_bounds = array<i64: 32, 20>}, {pipeline_mode = #tpu.pipeline_mode<synchronous>, transform_indices = @transform_1, window_bounds = array<i64: 20, 24>}, {pipeline_mode = #tpu.pipeline_mode<synchronous>, transform_indices = @transform_2, window_bounds = array<i64: 1, 24>}, {transform_indices = @transform_3, window_bounds = array<i64: 32, 24>}]} {
    %c0 = arith.constant 0 : index
    %c0_0 = arith.constant 0 : index
    %0 = vector.load %arg1[%c0, %c0_0] : memref<32x20xbf16, #tpu.memory_space<vmem>>, vector<32x20xbf16>
    %c0_1 = arith.constant 0 : index
    %c0_2 = arith.constant 0 : index
    %1 = vector.load %arg2[%c0_1, %c0_2] : memref<20x24xbf16, #tpu.memory_space<vmem>>, vector<20x24xbf16>
    %cst = arith.constant dense<0.000000e+00> : vector<32x24xf32>
    %2 = tpu.matmul %0, %1, %cst {dimension_numbers = #tpu.dot_dimension_numbers<[1], [0], [0], [1], [0, 0, 1, 1], [], []>} : vector<32x20xbf16>, vector<20x24xbf16>, vector<32x24xf32> -> vector<32x24xf32>
    %c0_3 = arith.constant 0 : index
    %c0_4 = arith.constant 0 : index
    %3 = vector.load %arg3[%c0_3, %c0_4] : memref<1x24xf32, #tpu.memory_space<vmem>>, vector<1x24xf32>
    %4 = vector.broadcast %3 : vector<1x24xf32> to vector<32x24xf32>
    %5 = arith.addf %2, %4 : vector<32x24xf32>
    %c0_5 = arith.constant 0 : index
    %c0_6 = arith.constant 0 : index
    %6 = vector.load %arg4[%c0_5, %c0_6] : memref<32x24xf32, #tpu.memory_space<vmem>>, vector<32x24xf32>
    tpu.vector_store %arg4[%c0_5, %c0_6], %5 {strides = array<i32>} : memref<32x24xf32, #tpu.memory_space<vmem>>, vector<32x24xf32>,
    return
  }
  func.func @transform_0(%arg0: i32) -> (i32, i32) {
    %c0_i32 = arith.constant 0 : i32
    %c0_i32_0 = arith.constant 0 : i32
    return %arg0, %c0_i32 : i32, i32
  }
  func.func @transform_1(%arg0: i32) -> (i32, i32) {
    %c0_i32 = arith.constant 0 : i32
    %c0_i32_0 = arith.constant 0 : i32
    %c0_i32_1 = arith.constant 0 : i32
    return %c0_i32, %c0_i32_0 : i32, i32
  }
  func.func @transform_2(%arg0: i32) -> (i32, i32) {
    %c0_i32 = arith.constant 0 : i32
    %c0_i32_0 = arith.constant 0 : i32
    %c0_i32_1 = arith.constant 0 : i32
    return %c0_i32, %c0_i32_0 : i32, i32
  }
  func.func @transform_3(%arg0: i32) -> (i32, i32) {
    %c0_i32 = arith.constant 0 : i32
    %c0_i32_0 = arith.constant 0 : i32
    return %arg0, %c0_i32 : i32, i32
  }
}

module attributes {stable_mosaic.version = 11 : i64} {
  func.func @_gemm_bias_kernel(%arg0: i32, %arg1: memref<16x1408xbf16, #tpu.memory_space<vmem>>, %arg2: memref<1408x10xbf16, #tpu.memory_space<vmem>>, %arg3: memref<1x10xf32, #tpu.memory_space<vmem>>, %arg4: memref<16x10xf32, #tpu.memory_space<vmem>>) attributes {dimension_semantics = [#tpu.dimension_semantics<parallel>], iteration_bounds = array<i64: 1>, scalar_prefetch = 0 : i64, scratch_operands = 0 : i64, tpu.core_type = #tpu.core_type<tc>, window_params = [{transform_indices = @transform_0, window_bounds = array<i64: 16, 1408>}, {pipeline_mode = #tpu.pipeline_mode<synchronous>, transform_indices = @transform_1, window_bounds = array<i64: 1408, 10>}, {pipeline_mode = #tpu.pipeline_mode<synchronous>, transform_indices = @transform_2, window_bounds = array<i64: 1, 10>}, {transform_indices = @transform_3, window_bounds = array<i64: 16, 10>}]} {
    %c0 = arith.constant 0 : index
    %c0_0 = arith.constant 0 : index
    %0 = vector.load %arg1[%c0, %c0_0] : memref<16x1408xbf16, #tpu.memory_space<vmem>>, vector<16x1408xbf16>
    %c0_1 = arith.constant 0 : index
    %c0_2 = arith.constant 0 : index
    %1 = vector.load %arg2[%c0_1, %c0_2] : memref<1408x10xbf16, #tpu.memory_space<vmem>>, vector<1408x10xbf16>
    %cst = arith.constant dense<0.000000e+00> : vector<16x10xf32>
    %2 = tpu.matmul %0, %1, %cst {dimension_numbers = #tpu.dot_dimension_numbers<[1], [0], [0], [1], [0, 0, 1, 1], [], []>} : vector<16x1408xbf16>, vector<1408x10xbf16>, vector<16x10xf32> -> vector<16x10xf32>
    %c0_3 = arith.constant 0 : index
    %c0_4 = arith.constant 0 : index
    %3 = vector.load %arg3[%c0_3, %c0_4] : memref<1x10xf32, #tpu.memory_space<vmem>>, vector<1x10xf32>
    %4 = vector.broadcast %3 : vector<1x10xf32> to vector<16x10xf32>
    %5 = arith.addf %2, %4 : vector<16x10xf32>
    %c0_5 = arith.constant 0 : index
    %c0_6 = arith.constant 0 : index
    %6 = vector.load %arg4[%c0_5, %c0_6] : memref<16x10xf32, #tpu.memory_space<vmem>>, vector<16x10xf32>
    tpu.vector_store %arg4[%c0_5, %c0_6], %5 {strides = array<i32>} : memref<16x10xf32, #tpu.memory_space<vmem>>, vector<16x10xf32>,
    return
  }
  func.func @transform_0(%arg0: i32) -> (i32, i32) {
    %c0_i32 = arith.constant 0 : i32
    %c0_i32_0 = arith.constant 0 : i32
    return %arg0, %c0_i32 : i32, i32
  }
  func.func @transform_1(%arg0: i32) -> (i32, i32) {
    %c0_i32 = arith.constant 0 : i32
    %c0_i32_0 = arith.constant 0 : i32
    %c0_i32_1 = arith.constant 0 : i32
    return %c0_i32, %c0_i32_0 : i32, i32
  }
  func.func @transform_2(%arg0: i32) -> (i32, i32) {
    %c0_i32 = arith.constant 0 : i32
    %c0_i32_0 = arith.constant 0 : i32
    %c0_i32_1 = arith.constant 0 : i32
    return %c0_i32, %c0_i32_0 : i32, i32
  }
  func.func @transform_3(%arg0: i32) -> (i32, i32) {
    %c0_i32 = arith.constant 0 : i32
    %c0_i32_0 = arith.constant 0 : i32
    return %arg0, %c0_i32 : i32, i32
  }
}

</mosaic_0001>

<bundles_post_ra>
// kernel: net_forward.18
= control target key start
LH: loop header
LB: loop body
LE: loop exit
PB: predicated region body
PF: predicated region fallthrough
CT: control target
= control target key end

     0   :  { %vm40_vm0 = vcmask 1041408   ;;  %vm41_vm1 = vcmask 1043458   ;;  %vm43_vm2 = vcmask 1045508   ;;  %vm45_vm3 = vcmask 261126   ;;  %s124_s0 = inlined_call_operand.vmem [shape: f32[2,1440], index: 0, kind: input, shape index: {}]   ;;  %s125_s1 = inlined_call_operand.vmem [shape: f32[2,1440], index: 1, kind: input, shape index: {}]   ;;  %s126_s2 = inlined_call_operand.vmem [shape: f32[2,1440], index: 2, kind: input, shape index: {}]   ;;  %s127_s3 = inlined_call_operand.vmem [shape: f32[2,1440], index: 3, kind: input, shape index: {}]   ;;  %s128_s4 = inlined_call_operand.vmem [shape: f32[2,1440], index: 4, kind: output, shape index: {}]  }
   0x1   :  { %v17_v0 = vld [vmem:[%s124_s0] sm:$0xff]  ;;  %v18_v5 = vld [vmem:[%s124_s0 + $0x8] sm:$0xff]  ;;  %v19_v11 = vld [vmem:[%s124_s0 + $0x10] sm:$0xff] }
   0x2   :  { %v20_v1 = vld [vmem:[%s125_s1] sm:$0xff]  ;;  %v21_v6 = vld [vmem:[%s125_s1 + $0x8] sm:$0xff]  ;;  %v22_v13 = vld [vmem:[%s125_s1 + $0x10] sm:$0xff] }
   0x3   :  { %v26_v2 = vld [vmem:[%s126_s2] sm:$0xff]  ;;  %v23_v3 = vmax.f32 %v17_v0, %v20_v1  ;;  %v24_v8 = vmax.f32 %v18_v5, %v21_v6  ;;  %v27_v9 = vld [vmem:[%s126_s2 + $0x8] sm:$0xff]  ;;  %v28_v14 = vld [vmem:[%s126_s2 + $0x10] sm:$0xff]  ;;  %v25_v17 = vmax.f32 %v19_v11, %v22_v13 }
   0x4   :  { %v29_v4 = vld [vmem:[%s127_s3] sm:$0xff]  ;;  %v30_v10 = vld [vmem:[%s127_s3 + $0x8] sm:$0xff]  ;;  %v31_v15 = vld [vmem:[%s127_s3 + $0x10] sm:$0xff] }
   0x5   :  { %v32_v7 = vmax.f32 %v26_v2, %v29_v4  ;;  %v33_v12 = vmax.f32 %v27_v9, %v30_v10  ;;  %v34_v18 = vmax.f32 %v28_v14, %v31_v15  ;;  %vm42_vm4 = vmor %vm41_vm1, %vm40_vm0 }
   0x6   :  { %vm44_vm5 = vmor %vm43_vm2, %vm42_vm4 }
   0x7   :  { %v35_v16 = vmax.f32 %v23_v3, %v32_v7  ;;  %v36_v19 = vmax.f32 %v24_v8, %v33_v12  ;;  %v37_v20 = vmax.f32 %v25_v17, %v34_v18  ;;  %vm46_vm6 = vmor %vm45_vm3, %vm44_vm5 }
   0x9   :  { %38 = vst [vmem:[%s128_s4] sm:$0xff] %v35_v16  ;;  %39 = vst [vmem:[%s128_s4 + $0x8] sm:$0xff] %v36_v19 }
   0xa   :  { %47 = vst.msk [vmem:[%s128_s4 + $0x10] sm:$0xff] %vm46_vm6, %v37_v20 }

// kernel: net_forward.17
= control target key start
LH: loop header
LB: loop body
LE: loop exit
PB: predicated region body
PF: predicated region fallthrough
CT: control target
= control target key end

     0   :  { %s1029_s12 = smov 0   ;;  %s1257_s0 = inlined_call_operand.vmem [shape: bf16[1152,25], index: 0, kind: input, shape index: {}]   ;;  %s1258_s1 = inlined_call_operand.vmem [shape: bf16[25,10], index: 1, kind: input, shape index: {}]   ;;  %s1259_s2 = inlined_call_operand.vmem [shape: f32[1,10], index: 2, kind: input, shape index: {}]   ;;  %s1260_s3 = inlined_call_operand.vmem [shape: f32[1152,10], index: 3, kind: output, shape index: {}]  }
   0x1 LB: > { %s823_s13 = sadd.s32 4294967295, %s1006_s12   ;;  %p827_p0 = scmp.ge.s32.totalorder %s1006_s12, 1  ;;  %s1006_s12 = sphi %s1029_s12, %s13_s12  }
   0x2   : > { %p138_p1 = scmp.lt.s32.totalorder %s1006_s12, 4 }
   0x4   : > { %p139_p2 = pnand %p827_p0, %p138_p1 }
   0x5   : > { %v974_v0 = vld [vmem:[%s1258_s1] sm:$0xff] (!%p139_p2)   ;;  %vm438_vm0 = vcmask (!%p139_p2), 1043456   ;;  %v975_v1 = vld [vmem:[%s1258_s1 + $0x8] sm:$0x1f] (!%p139_p2)   ;;  %vm439_vm1 = vcmask (!%p139_p2), 1044480   ;;  %s162_s18 = smul.u32 (!%p139_p2), 48, %s823_s13 }
   0x6   : > { %142 = sbr.rel (%p139_p2) target bundleno = 279 (0x117), region = 32  ;;  %909 = vmatprep.subr.bf16.mxu0 (!%p139_p2), %v974_v0  ;;  %961 = vmatprep.subr.bf16.mxu1 (!%p139_p2), %v974_v0  ;;  %v1008_v2 = vmov (!%p139_p2), 65535   ;;  %vm365_vm2 = vcmask (!%p139_p2), 203776   ;;  %v1102_v30 = vld [vmem:[%s1259_s2] ss:$0 sm:$0xff] (!%p139_p2)  ;;  %vm718_vm3 = vcmask (!%p139_p2), 80896  }
   0x7   : > { %910 = vmatpush3.bf16.msra.mxu0 (!%p139_p2), %v974_v0  ;;  %963 = vmatpush3.bf16.msra.mxu1 (!%p139_p2), %v974_v0  ;;  %v440_v3 = vsel (!%p139_p2), %vm438_vm0, 4294967295, %v1008_v2  ;;  %p163_p3 = scmp.lt.s32.totalorder (!%p139_p2), %s162_s18, 143 }
   0x8   : > { %v441_v4 = vsel (!%p139_p2), %vm439_vm1, %v440_v3, 0 }
   0x9   : > { %v443_v5 = vand.u32 (!%p139_p2), %v975_v1, %v441_v4 }
   0xb   : > { %911 = vmatprep.subr.bf16.mxu0 (!%p139_p2), %v443_v5  ;;  %962 = vmatprep.subr.bf16.mxu1 (!%p139_p2), %v443_v5 }
   0xc   : > { %912 = vmatpush3.bf16.msra.mxu0 (!%p139_p2), %v443_v5  ;;  %964 = vmatpush3.bf16.msra.mxu1 (!%p139_p2), %v443_v5 }
   0xd   : > { %s1262_s18 = smov (!%p163_p3, %s162_s18), 143 }
   0xe   : > { %s828_s19 = sshll.u32 %s1262_s18, 2  ;;  %s829_s25 = sshll.u32 %s1262_s18, 3 }
   0xf   : > { %s1049_s22 = scalar_lea.vmem %s1257_s0, %s828_s19  ;;  %s1109_s28 = scalar_lea.vmem %s1260_s3, %s829_s25 }
  0x10   : > { %v976_v6 = vld [vmem:[%s1049_s22] sm:$0xff]   ;;  %v978_v8 = vld [vmem:[%s1049_s22 + $0x8] sm:$0xff]   ;;  %v980_v10 = vld [vmem:[%s1049_s22 + $0x10] sm:$0xff]  }
  0x11   : > { %v977_v7 = vld [vmem:[%s1049_s22 + $0x60] sm:$0xff]   ;;  %913 = vmatprep.mubr.msk.bf16.mxu0 %vm365_vm2, %v976_v6  ;;  %v979_v9 = vld [vmem:[%s1049_s22 + $0x68] sm:$0xff]   ;;  %v981_v11 = vld [vmem:[%s1049_s22 + $0x70] sm:$0xff]  }
  0x12   : > { %937 = vmatprep.mubr.msk.bf16.mxu1 %vm365_vm2, %v977_v7  ;;  %914 = vmatmul.mubr.msk.bf16.vlgmr.msra.gmra.mrb[0].mxu0 %vm365_vm2, %v978_v8  ;;  %v982_v12 = vld [vmem:[%s1049_s22 + $0x18] sm:$0xff]   ;;  %v984_v14 = vld [vmem:[%s1049_s22 + $0x20] sm:$0xff]   ;;  %v986_v16 = vld [vmem:[%s1049_s22 + $0x28] sm:$0xff]  }
  0x13   : > { %938 = vmatmul.mubr.msk.bf16.vlgmr.msra.gmra.mrb[0].mxu1 %vm365_vm2, %v979_v9  ;;  %917 = vmatprep.mubr.msk.bf16.mxu0 %vm365_vm2, %v980_v10  ;;  %v983_v13 = vld [vmem:[%s1049_s22 + $0x78] sm:$0xff]   ;;  %v985_v15 = vld [vmem:[%s1049_s22 + $0x80] sm:$0xff]   ;;  %v987_v17 = vld [vmem:[%s1049_s22 + $0x88] sm:$0xff]  }
  0x14   : > { %941 = vmatprep.mubr.msk.bf16.mxu1 %vm365_vm2, %v981_v11  ;;  %v988_v18 = vld [vmem:[%s1049_s22 + $0x30] sm:$0xff]   ;;  %v990_v20 = vld [vmem:[%s1049_s22 + $0x38] sm:$0xff]   ;;  %v992_v22 = vld [vmem:[%s1049_s22 + $0x40] sm:$0xff]  }
  0x15   : > { %v989_v19 = vld [vmem:[%s1049_s22 + $0x90] sm:$0xff]   ;;  %v991_v21 = vld [vmem:[%s1049_s22 + $0x98] sm:$0xff]   ;;  %v993_v23 = vld [vmem:[%s1049_s22 + $0xa0] sm:$0xff]  }
  0x16   : > { %v994_v24 = vld [vmem:[%s1049_s22 + $0x48] sm:$0xff]   ;;  %v996_v26 = vld [vmem:[%s1049_s22 + $0x50] sm:$0xff]   ;;  %v998_v28 = vld [vmem:[%s1049_s22 + $0x58] sm:$0xff]  }
  0x17   : > { %v995_v25 = vld [vmem:[%s1049_s22 + $0xa8] sm:$0xff]   ;;  %v997_v27 = vld [vmem:[%s1049_s22 + $0xb0] sm:$0xff]   ;;  %v999_v29 = vld [vmem:[%s1049_s22 + $0xb8] sm:$0xff]  }
  0x1a   : > { %918 = vmatmul.mubr.msk.bf16.gmra.mrb[4].mxu0 %vm365_vm2, %v982_v12 }
  0x1b   : > { %942 = vmatmul.mubr.msk.bf16.gmra.mrb[4].mxu1 %vm365_vm2, %v983_v13  ;;  %921 = vmatprep.mubr.msk.bf16.mxu0 %vm365_vm2, %v984_v14 }
  0x1c   : > { %945 = vmatprep.mubr.msk.bf16.mxu1 %vm365_vm2, %v985_v15 }
  0x22   : > { %922 = vmatmul.mubr.msk.bf16.gmra.mrb[8].mxu0 %vm365_vm2, %v986_v16 }
  0x23   : > { %946 = vmatmul.mubr.msk.bf16.gmra.mrb[8].mxu1 %vm365_vm2, %v987_v17  ;;  %925 = vmatprep.mubr.msk.bf16.mxu0 %vm365_vm2, %v988_v18 }
  0x24   : > { %949 = vmatprep.mubr.msk.bf16.mxu1 %vm365_vm2, %v989_v19 }
  0x2a   : > { %926 = vmatmul.mubr.msk.bf16.gmra.mrb[12].mxu0 %vm365_vm2, %v990_v20 }
  0x2b   : > { %950 = vmatmul.mubr.msk.bf16.gmra.mrb[12].mxu1 %vm365_vm2, %v991_v21  ;;  %929 = vmatprep.mubr.msk.bf16.mxu0 %vm365_vm2, %v992_v22 }
  0x2c   : > { %953 = vmatprep.mubr.msk.bf16.mxu1 %vm365_vm2, %v993_v23 }
  0x32   : > { %930 = vmatmul.mubr.msk.bf16.gmra.mrb[16].mxu0 %vm365_vm2, %v994_v24 }
  0x33   : > { %954 = vmatmul.mubr.msk.bf16.gmra.mrb[16].mxu1 %vm365_vm2, %v995_v25  ;;  %933 = vmatprep.mubr.msk.bf16.mxu0 %vm365_vm2, %v996_v26 }
  0x34   : > { %957 = vmatprep.mubr.msk.bf16.mxu1 %vm365_vm2, %v997_v27 }
  0x3a   : > { %934 = vmatmul.mubr.msk.bf16.gmra.mrb[20].mxu0 %vm365_vm2, %v998_v28 }
  0x3b   : > { %958 = vmatmul.mubr.msk.bf16.gmra.mrb[20].mxu1 %vm365_vm2, %v999_v29 }
  0xe5   : > { %v915_v31 = vpop.f32.mrb[0].mxu0 }
  0xe6   : > { %v488_v32 = vadd.f32 %v915_v31, %v1102_v30  ;;  %v939_v33 = vpop.f32.mrb[0].mxu1  ;;  %v479_v34 = vpop.f32.mrb[1].mxu0 }
  0xe7   : > { %v584_v35 = vadd.f32 %v939_v33, %v1102_v30  ;;  %v480_v36 = vadd.f32 %v1102_v30, %v479_v34  ;;  %v575_v37 = vpop.f32.mrb[1].mxu1  ;;  %v916_v38 = vpop.f32.mrb[2].mxu0 }
  0xe8   : > { %v672_v39 = vmax.f32 %v488_v32, 0.0  ;;  %v576_v40 = vadd.f32 %v1102_v30, %v575_v37  ;;  %v491_v41 = vadd.f32 %v916_v38, %v1102_v30  ;;  %v940_v42 = vpop.f32.mrb[2].mxu1  ;;  %v482_v43 = vpop.f32.mrb[3].mxu0 }
  0xe9   : > { %v696_v44 = vmax.f32 %v584_v35, 0.0  ;;  %v670_v45 = vmax.f32 %v480_v36, 0.0  ;;  %v587_v46 = vadd.f32 %v940_v42, %v1102_v30  ;;  %v483_v47 = vadd.f32 %v1102_v30, %v482_v43  ;;  %v578_v48 = vpop.f32.mrb[3].mxu1 }
  0xea   : > { %721 = vst.msk [vmem:[%s1109_s28 + $0x10] sm:$0xff] %vm718_vm3, %v672_v39  ;;  %v694_v49 = vmax.f32 %v576_v40, 0.0  ;;  %v673_v50 = vmax.f32 %v491_v41, 0.0  ;;  %v579_v51 = vadd.f32 %v1102_v30, %v578_v48 }
  0xeb   : > { %745 = vst.msk [vmem:[%s1109_s28 + $0xd0] sm:$0xff] %vm718_vm3, %v696_v44  ;;  %719 = vst.msk [vmem:[%s1109_s28] sm:$0xff] %vm718_vm3, %v670_v45  ;;  %v697_v52 = vmax.f32 %v587_v46, 0.0  ;;  %v671_v53 = vmax.f32 %v483_v47, 0.0 }
  0xec   : > { %743 = vst.msk [vmem:[%s1109_s28 + $0xc0] sm:$0xff] %vm718_vm3, %v694_v49  ;;  %722 = vst.msk [vmem:[%s1109_s28 + $0x18] sm:$0xff] %vm718_vm3, %v673_v50  ;;  %v695_v54 = vmax.f32 %v579_v51, 0.0 }
  0xed   : > { %746 = vst.msk [vmem:[%s1109_s28 + $0xd8] sm:$0xff] %vm718_vm3, %v697_v52  ;;  %720 = vst.msk [vmem:[%s1109_s28 + $0x8] sm:$0xff] %vm718_vm3, %v671_v53  ;;  %v919_v55 = vpop.f32.mrb[4].mxu0 }
  0xee   : > { %744 = vst.msk [vmem:[%s1109_s28 + $0xc8] sm:$0xff] %vm718_vm3, %v695_v54  ;;  %v504_v56 = vadd.f32 %v919_v55, %v1102_v30  ;;  %v943_v57 = vpop.f32.mrb[4].mxu1  ;;  %v495_v58 = vpop.f32.mrb[5].mxu0 }
  0xef   : > { %v600_v59 = vadd.f32 %v943_v57, %v1102_v30  ;;  %v496_v60 = vadd.f32 %v1102_v30, %v495_v58  ;;  %v591_v61 = vpop.f32.mrb[5].mxu1  ;;  %v920_v62 = vpop.f32.mrb[6].mxu0 }
  0xf0   : > { %v676_v63 = vmax.f32 %v504_v56, 0.0  ;;  %v592_v0 = vadd.f32 %v1102_v30, %v591_v61  ;;  %v507_v1 = vadd.f32 %v920_v62, %v1102_v30  ;;  %v944_v2 = vpop.f32.mrb[6].mxu1  ;;  %v498_v3 = vpop.f32.mrb[7].mxu0 }
  0xf1   : > { %v700_v4 = vmax.f32 %v600_v59, 0.0  ;;  %v674_v5 = vmax.f32 %v496_v60, 0.0  ;;  %v603_v6 = vadd.f32 %v944_v2, %v1102_v30  ;;  %v499_v7 = vadd.f32 %v1102_v30, %v498_v3  ;;  %v594_v8 = vpop.f32.mrb[7].mxu1 }
  0xf2   : > { %725 = vst.msk [vmem:[%s1109_s28 + $0x30] sm:$0xff] %vm718_vm3, %v676_v63  ;;  %v698_v9 = vmax.f32 %v592_v0, 0.0  ;;  %v677_v10 = vmax.f32 %v507_v1, 0.0  ;;  %v595_v11 = vadd.f32 %v1102_v30, %v594_v8 }
  0xf3   : > { %749 = vst.msk [vmem:[%s1109_s28 + $0xf0] sm:$0xff] %vm718_vm3, %v700_v4  ;;  %723 = vst.msk [vmem:[%s1109_s28 + $0x20] sm:$0xff] %vm718_vm3, %v674_v5  ;;  %v701_v12 = vmax.f32 %v603_v6, 0.0  ;;  %v675_v13 = vmax.f32 %v499_v7, 0.0 }
  0xf4   : > { %747 = vst.msk [vmem:[%s1109_s28 + $0xe0] sm:$0xff] %vm718_vm3, %v698_v9  ;;  %726 = vst.msk [vmem:[%s1109_s28 + $0x38] sm:$0xff] %vm718_vm3, %v677_v10  ;;  %v699_v14 = vmax.f32 %v595_v11, 0.0 }
  0xf5   : > { %750 = vst.msk [vmem:[%s1109_s28 + $0xf8] sm:$0xff] %vm718_vm3, %v701_v12  ;;  %724 = vst.msk [vmem:[%s1109_s28 + $0x28] sm:$0xff] %vm718_vm3, %v675_v13  ;;  %v923_v15 = vpop.f32.mrb[8].mxu0 }
  0xf6   : > { %748 = vst.msk [vmem:[%s1109_s28 + $0xe8] sm:$0xff] %vm718_vm3, %v699_v14  ;;  %v520_v16 = vadd.f32 %v923_v15, %v1102_v30  ;;  %v947_v17 = vpop.f32.mrb[8].mxu1  ;;  %v511_v18 = vpop.f32.mrb[9].mxu0 }
  0xf7   : > { %v616_v19 = vadd.f32 %v947_v17, %v1102_v30  ;;  %v512_v20 = vadd.f32 %v1102_v30, %v511_v18  ;;  %v607_v21 = vpop.f32.mrb[9].mxu1  ;;  %v924_v22 = vpop.f32.mrb[10].mxu0 }
  0xf8   : > { %v680_v23 = vmax.f32 %v520_v16, 0.0  ;;  %v608_v24 = vadd.f32 %v1102_v30, %v607_v21  ;;  %v523_v25 = vadd.f32 %v924_v22, %v1102_v30  ;;  %v948_v26 = vpop.f32.mrb[10].mxu1  ;;  %v514_v27 = vpop.f32.mrb[11].mxu0 }
  0xf9   : > { %v704_v28 = vmax.f32 %v616_v19, 0.0  ;;  %v678_v29 = vmax.f32 %v512_v20, 0.0  ;;  %v619_v31 = vadd.f32 %v948_v26, %v1102_v30  ;;  %v515_v32 = vadd.f32 %v1102_v30, %v514_v27  ;;  %v610_v33 = vpop.f32.mrb[11].mxu1 }
  0xfa   : > { %729 = vst.msk [vmem:[%s1109_s28 + $0x50] sm:$0xff] %vm718_vm3, %v680_v23  ;;  %v702_v34 = vmax.f32 %v608_v24, 0.0  ;;  %v681_v35 = vmax.f32 %v523_v25, 0.0  ;;  %v611_v36 = vadd.f32 %v1102_v30, %v610_v33 }
  0xfb   : > { %753 = vst.msk [vmem:[%s1109_s28 + $0x110] sm:$0xff] %vm718_vm3, %v704_v28  ;;  %727 = vst.msk [vmem:[%s1109_s28 + $0x40] sm:$0xff] %vm718_vm3, %v678_v29  ;;  %v705_v37 = vmax.f32 %v619_v31, 0.0  ;;  %v679_v38 = vmax.f32 %v515_v32, 0.0 }
  0xfc   : > { %751 = vst.msk [vmem:[%s1109_s28 + $0x100] sm:$0xff] %vm718_vm3, %v702_v34  ;;  %730 = vst.msk [vmem:[%s1109_s28 + $0x58] sm:$0xff] %vm718_vm3, %v681_v35  ;;  %v703_v39 = vmax.f32 %v611_v36, 0.0 }
  0xfd   : > { %754 = vst.msk [vmem:[%s1109_s28 + $0x118] sm:$0xff] %vm718_vm3, %v705_v37  ;;  %728 = vst.msk [vmem:[%s1109_s28 + $0x48] sm:$0xff] %vm718_vm3, %v679_v38  ;;  %v927_v40 = vpop.f32.mrb[12].mxu0 }
  0xfe   : > { %752 = vst.msk [vmem:[%s1109_s28 + $0x108] sm:$0xff] %vm718_vm3, %v703_v39  ;;  %v536_v41 = vadd.f32 %v927_v40, %v1102_v30  ;;  %v951_v42 = vpop.f32.mrb[12].mxu1  ;;  %v527_v43 = vpop.f32.mrb[13].mxu0 }
  0xff   : > { %v632_v44 = vadd.f32 %v951_v42, %v1102_v30  ;;  %v528_v45 = vadd.f32 %v1102_v30, %v527_v43  ;;  %v623_v46 = vpop.f32.mrb[13].mxu1  ;;  %v928_v47 = vpop.f32.mrb[14].mxu0 }
 0x100   : > { %v684_v48 = vmax.f32 %v536_v41, 0.0  ;;  %v624_v49 = vadd.f32 %v1102_v30, %v623_v46  ;;  %v539_v50 = vadd.f32 %v928_v47, %v1102_v30  ;;  %v952_v51 = vpop.f32.mrb[14].mxu1  ;;  %v530_v52 = vpop.f32.mrb[15].mxu0 }
 0x101   : > { %v708_v53 = vmax.f32 %v632_v44, 0.0  ;;  %v682_v54 = vmax.f32 %v528_v45, 0.0  ;;  %v635_v55 = vadd.f32 %v952_v51, %v1102_v30  ;;  %v531_v56 = vadd.f32 %v1102_v30, %v530_v52  ;;  %v626_v57 = vpop.f32.mrb[15].mxu1 }
 0x102   : > { %733 = vst.msk [vmem:[%s1109_s28 + $0x70] sm:$0xff] %vm718_vm3, %v684_v48  ;;  %v706_v58 = vmax.f32 %v624_v49, 0.0  ;;  %v685_v59 = vmax.f32 %v539_v50, 0.0  ;;  %v627_v60 = vadd.f32 %v1102_v30, %v626_v57 }
 0x103   : > { %757 = vst.msk [vmem:[%s1109_s28 + $0x130] sm:$0xff] %vm718_vm3, %v708_v53  ;;  %731 = vst.msk [vmem:[%s1109_s28 + $0x60] sm:$0xff] %vm718_vm3, %v682_v54  ;;  %v709_v61 = vmax.f32 %v635_v55, 0.0  ;;  %v683_v62 = vmax.f32 %v531_v56, 0.0 }
 0x104   : > { %755 = vst.msk [vmem:[%s1109_s28 + $0x120] sm:$0xff] %vm718_vm3, %v706_v58  ;;  %734 = vst.msk [vmem:[%s1109_s28 + $0x78] sm:$0xff] %vm718_vm3, %v685_v59  ;;  %v707_v63 = vmax.f32 %v627_v60, 0.0 }
 0x105   : > { %758 = vst.msk [vmem:[%s1109_s28 + $0x138] sm:$0xff] %vm718_vm3, %v709_v61  ;;  %732 = vst.msk [vmem:[%s1109_s28 + $0x68] sm:$0xff] %vm718_vm3, %v683_v62  ;;  %v931_v0 = vpop.f32.mrb[16].mxu0 }
 0x106   : > { %756 = vst.msk [vmem:[%s1109_s28 + $0x128] sm:$0xff] %vm718_vm3, %v707_v63  ;;  %v552_v1 = vadd.f32 %v931_v0, %v1102_v30  ;;  %v955_v2 = vpop.f32.mrb[16].mxu1  ;;  %v543_v3 = vpop.f32.mrb[17].mxu0 }
 0x107   : > { %v648_v4 = vadd.f32 %v955_v2, %v1102_v30  ;;  %v544_v5 = vadd.f32 %v1102_v30, %v543_v3  ;;  %v639_v6 = vpop.f32.mrb[17].mxu1  ;;  %v932_v7 = vpop.f32.mrb[18].mxu0 }
 0x108   : > { %v688_v8 = vmax.f32 %v552_v1, 0.0  ;;  %v640_v9 = vadd.f32 %v1102_v30, %v639_v6  ;;  %v555_v10 = vadd.f32 %v932_v7, %v1102_v30  ;;  %v956_v11 = vpop.f32.mrb[18].mxu1  ;;  %v546_v12 = vpop.f32.mrb[19].mxu0 }
 0x109   : > { %v712_v13 = vmax.f32 %v648_v4, 0.0  ;;  %v686_v14 = vmax.f32 %v544_v5, 0.0  ;;  %v651_v15 = vadd.f32 %v956_v11, %v1102_v30  ;;  %v547_v16 = vadd.f32 %v1102_v30, %v546_v12  ;;  %v642_v17 = vpop.f32.mrb[19].mxu1 }
 0x10a   : > { %737 = vst.msk [vmem:[%s1109_s28 + $0x90] sm:$0xff] %vm718_vm3, %v688_v8  ;;  %v710_v18 = vmax.f32 %v640_v9, 0.0  ;;  %v689_v19 = vmax.f32 %v555_v10, 0.0  ;;  %v643_v20 = vadd.f32 %v1102_v30, %v642_v17 }
 0x10b   : > { %761 = vst.msk [vmem:[%s1109_s28 + $0x150] sm:$0xff] %vm718_vm3, %v712_v13  ;;  %735 = vst.msk [vmem:[%s1109_s28 + $0x80] sm:$0xff] %vm718_vm3, %v686_v14  ;;  %v713_v21 = vmax.f32 %v651_v15, 0.0  ;;  %v687_v22 = vmax.f32 %v547_v16, 0.0 }
 0x10c   : > { %759 = vst.msk [vmem:[%s1109_s28 + $0x140] sm:$0xff] %vm718_vm3, %v710_v18  ;;  %738 = vst.msk [vmem:[%s1109_s28 + $0x98] sm:$0xff] %vm718_vm3, %v689_v19  ;;  %v711_v23 = vmax.f32 %v643_v20, 0.0 }
 0x10d   : > { %762 = vst.msk [vmem:[%s1109_s28 + $0x158] sm:$0xff] %vm718_vm3, %v713_v21  ;;  %736 = vst.msk [vmem:[%s1109_s28 + $0x88] sm:$0xff] %vm718_vm3, %v687_v22  ;;  %v935_v24 = vpop.f32.mrb[20].mxu0 }
 0x10e   : > { %760 = vst.msk [vmem:[%s1109_s28 + $0x148] sm:$0xff] %vm718_vm3, %v711_v23  ;;  %v568_v25 = vadd.f32 %v935_v24, %v1102_v30  ;;  %v959_v26 = vpop.f32.mrb[20].mxu1  ;;  %v559_v27 = vpop.f32.mrb[21].mxu0 }
 0x10f   : > { %v664_v28 = vadd.f32 %v959_v26, %v1102_v30  ;;  %v560_v29 = vadd.f32 %v1102_v30, %v559_v27  ;;  %v655_v31 = vpop.f32.mrb[21].mxu1  ;;  %v936_v32 = vpop.f32.mrb[22].mxu0 }
 0x110   : > { %v692_v33 = vmax.f32 %v568_v25, 0.0  ;;  %v656_v34 = vadd.f32 %v1102_v30, %v655_v31  ;;  %v571_v35 = vadd.f32 %v936_v32, %v1102_v30  ;;  %v960_v36 = vpop.f32.mrb[22].mxu1  ;;  %v562_v37 = vpop.f32.mrb[23].mxu0 }
 0x111   : > { %v716_v38 = vmax.f32 %v664_v28, 0.0  ;;  %v690_v39 = vmax.f32 %v560_v29, 0.0  ;;  %v667_v40 = vadd.f32 %v960_v36, %v1102_v30  ;;  %v563_v41 = vadd.f32 %v1102_v30, %v562_v37  ;;  %v658_v42 = vpop.f32.mrb[23].mxu1 }
 0x112   : > { %741 = vst.msk [vmem:[%s1109_s28 + $0xb0] sm:$0xff] %vm718_vm3, %v692_v33  ;;  %v714_v43 = vmax.f32 %v656_v34, 0.0  ;;  %v693_v44 = vmax.f32 %v571_v35, 0.0  ;;  %v659_v45 = vadd.f32 %v1102_v30, %v658_v42 }
 0x113   : > { %765 = vst.msk [vmem:[%s1109_s28 + $0x170] sm:$0xff] %vm718_vm3, %v716_v38  ;;  %739 = vst.msk [vmem:[%s1109_s28 + $0xa0] sm:$0xff] %vm718_vm3, %v690_v39  ;;  %v717_v46 = vmax.f32 %v667_v40, 0.0  ;;  %v691_v47 = vmax.f32 %v563_v41, 0.0 }
 0x114   : > { %763 = vst.msk [vmem:[%s1109_s28 + $0x160] sm:$0xff] %vm718_vm3, %v714_v43  ;;  %742 = vst.msk [vmem:[%s1109_s28 + $0xb8] sm:$0xff] %vm718_vm3, %v693_v44  ;;  %v715_v48 = vmax.f32 %v659_v45, 0.0 }
 0x115   : > { %766 = vst.msk [vmem:[%s1109_s28 + $0x178] sm:$0xff] %vm718_vm3, %v717_v46  ;;  %740 = vst.msk [vmem:[%s1109_s28 + $0xa8] sm:$0xff] %vm718_vm3, %v691_v47 }
 0x116   : > { %764 = vst.msk [vmem:[%s1109_s28 + $0x168] sm:$0xff] %vm718_vm3, %v715_v48 }
 0x117 PF: > { %s13_s12 = sadd.s32 1, %s1006_s12  }
 0x118   : > { %p10_p4 = scmp.ge.s32.totalorder %s13_s12, 5  }
 0x11a   :  { %12 = sbr.rel (!%p10_p4) target bundleno = 1 (0x1), region = 62 }

// kernel: net_forward.19
= control target key start
LH: loop header
LB: loop body
LE: loop exit
PB: predicated region body
PF: predicated region fallthrough
CT: control target
= control target key end

     0   :  { %vm210_vm0 = vcmask 1044480   ;;  %vm155_vm1 = vcmask 80896   ;;  %vm391_vm2 = vcmask 392192   ;;  %s830_s1 = inlined_call_operand.vmem [shape: bf16[10,48], index: 1, kind: input, shape index: {}]   ;;  %s831_s0 = inlined_call_operand.vmem [shape: bf16[288,10], index: 0, kind: input, shape index: {}]   ;;  %s832_s2 = inlined_call_operand.vmem [shape: f32[1,48], index: 2, kind: input, shape index: {}]   ;;  %s833_s3 = inlined_call_operand.vmem [shape: f32[288,48], index: 3, kind: output, shape index: {}]  }
   0x1   :  { %v531_v0 = vld [vmem:[%s830_s1] sm:$0x1f]   ;;  %v533_v3 = vld [vmem:[%s831_s0 + $0x8] sm:$0xff]   ;;  %v534_v4 = vld [vmem:[%s831_s0 + $0x50] sm:$0xff]  }
   0x2   :  { %v532_v1 = vld [vmem:[%s831_s0] sm:$0xff]   ;;  %529 = vmatprep.subr.msk.bf16.mxu0 %vm210_vm0, %v531_v0  ;;  %v212_v2 = vsel %vm210_vm0, %v531_v0, 0  ;;  %530 = vmatprep.subr.msk.bf16.mxu1 %vm210_vm0, %v531_v0  ;;  %v535_v5 = vld [vmem:[%s831_s0 + $0x58] sm:$0xff]   ;;  %v536_v6 = vld [vmem:[%s831_s0 + $0x10] sm:$0xff]  }
   0x3   :  { %490 = vmatpush3.bf16.msra.mxu0 %v212_v2  ;;  %491 = vmatprep.mubr.msk.bf16.mxu0 %vm155_vm1, %v532_v1  ;;  %v538_v7 = vld [vmem:[%s831_s0 + $0x60] sm:$0xff]   ;;  %v537_v8 = vld [vmem:[%s831_s0 + $0x18] sm:$0xff]   ;;  %v539_v9 = vld [vmem:[%s831_s0 + $0x68] sm:$0xff]  }
   0x4   :  { %528 = vmatpush3.bf16.msra.mxu1 %v212_v2  ;;  %511 = vmatprep.mubr.msk.bf16.mxu1 %vm155_vm1, %v534_v4  ;;  %v540_v10 = vld [vmem:[%s831_s0 + $0x20] sm:$0xff]   ;;  %v542_v11 = vld [vmem:[%s831_s0 + $0x70] sm:$0xff]   ;;  %v541_v12 = vld [vmem:[%s831_s0 + $0x28] sm:$0xff]  }
   0x5   :  { %v543_v13 = vld [vmem:[%s831_s0 + $0x78] sm:$0xff]   ;;  %v544_v14 = vld [vmem:[%s831_s0 + $0x30] sm:$0xff]   ;;  %v546_v15 = vld [vmem:[%s831_s0 + $0x80] sm:$0xff]  }
   0x6   :  { %492 = vmatmul.mubr.msk.bf16.vlgmr.msra.gmra.mrb[0].mxu0 %vm155_vm1, %v533_v3  ;;  %v545_v16 = vld [vmem:[%s831_s0 + $0x38] sm:$0xff]   ;;  %v547_v17 = vld [vmem:[%s831_s0 + $0x88] sm:$0xff]   ;;  %v548_v18 = vld [vmem:[%s831_s0 + $0x40] sm:$0xff]  }
   0x7   :  { %512 = vmatmul.mubr.msk.bf16.vlgmr.msra.gmra.mrb[0].mxu1 %vm155_vm1, %v535_v5  ;;  %495 = vmatprep.mubr.msk.bf16.mxu0 %vm155_vm1, %v536_v6  ;;  %v549_v19 = vld [vmem:[%s831_s0 + $0x48] sm:$0xff]   ;;  %v648_v20 = vld [vmem:[%s832_s2] ss:$0 sm:$0xff] }
   0x8   :  { %515 = vmatprep.mubr.msk.bf16.mxu1 %vm155_vm1, %v538_v7 }
   0xe   :  { %496 = vmatmul.mubr.msk.bf16.gmra.mrb[4].mxu0 %vm155_vm1, %v537_v8 }
   0xf   :  { %516 = vmatmul.mubr.msk.bf16.gmra.mrb[4].mxu1 %vm155_vm1, %v539_v9  ;;  %499 = vmatprep.mubr.msk.bf16.mxu0 %vm155_vm1, %v540_v10 }
  0x10   :  { %519 = vmatprep.mubr.msk.bf16.mxu1 %vm155_vm1, %v542_v11 }
  0x16   :  { %500 = vmatmul.mubr.msk.bf16.gmra.mrb[8].mxu0 %vm155_vm1, %v541_v12 }
  0x17   :  { %520 = vmatmul.mubr.msk.bf16.gmra.mrb[8].mxu1 %vm155_vm1, %v543_v13  ;;  %503 = vmatprep.mubr.msk.bf16.mxu0 %vm155_vm1, %v544_v14 }
  0x18   :  { %523 = vmatprep.mubr.msk.bf16.mxu1 %vm155_vm1, %v546_v15 }
  0x1e   :  { %504 = vmatmul.mubr.msk.bf16.gmra.mrb[12].mxu0 %vm155_vm1, %v545_v16 }
  0x1f   :  { %524 = vmatmul.mubr.msk.bf16.gmra.mrb[12].mxu1 %vm155_vm1, %v547_v17  ;;  %507 = vmatprep.mubr.msk.bf16.mxu0 %vm155_vm1, %v548_v18 }
  0x26   :  { %508 = vmatmul.mubr.msk.bf16.gmra.mrb[16].mxu0 %vm155_vm1, %v549_v19 }
  0xd9   :  { %v493_v21 = vpop.f32.mrb[0].mxu0 }
  0xda   :  { %v257_v22 = vadd.f32 %v493_v21, %v648_v20  ;;  %v248_v23 = vpop.f32.mrb[1].mxu0  ;;  %v513_v24 = vpop.f32.mrb[0].mxu1 }
  0xdb   :  { %v249_v25 = vadd.f32 %v648_v20, %v248_v23  ;;  %v494_v26 = vpop.f32.mrb[2].mxu0  ;;  %v337_v27 = vadd.f32 %v513_v24, %v648_v20  ;;  %v328_v28 = vpop.f32.mrb[1].mxu1 }
  0xdc   :  { %394 = vst.msk [vmem:[%s833_s3 + $0x10] sm:$0xff] %vm391_vm2, %v257_v22  ;;  %v260_v29 = vadd.f32 %v494_v26, %v648_v20  ;;  %v251_v30 = vpop.f32.mrb[3].mxu0  ;;  %v329_v31 = vadd.f32 %v648_v20, %v328_v28  ;;  %v514_v32 = vpop.f32.mrb[2].mxu1 }
  0xdd   :  { %392 = vst.msk [vmem:[%s833_s3] sm:$0xff] %vm391_vm2, %v249_v25  ;;  %v252_v33 = vadd.f32 %v648_v20, %v251_v30  ;;  %414 = vst.msk [vmem:[%s833_s3 + $0xb0] sm:$0xff] %vm391_vm2, %v337_v27  ;;  %v340_v34 = vadd.f32 %v514_v32, %v648_v20  ;;  %v331_v35 = vpop.f32.mrb[3].mxu1 }
  0xde   :  { %395 = vst.msk [vmem:[%s833_s3 + $0x18] sm:$0xff] %vm391_vm2, %v260_v29  ;;  %412 = vst.msk [vmem:[%s833_s3 + $0xa0] sm:$0xff] %vm391_vm2, %v329_v31  ;;  %v332_v36 = vadd.f32 %v648_v20, %v331_v35 }
  0xdf   :  { %393 = vst.msk [vmem:[%s833_s3 + $0x8] sm:$0xff] %vm391_vm2, %v252_v33  ;;  %415 = vst.msk [vmem:[%s833_s3 + $0xb8] sm:$0xff] %vm391_vm2, %v340_v34 }
  0xe0   :  { %413 = vst.msk [vmem:[%s833_s3 + $0xa8] sm:$0xff] %vm391_vm2, %v332_v36 }
  0xe1   :  { %v497_v37 = vpop.f32.mrb[4].mxu0 }
  0xe2   :  { %v273_v38 = vadd.f32 %v497_v37, %v648_v20  ;;  %v264_v39 = vpop.f32.mrb[5].mxu0  ;;  %v517_v40 = vpop.f32.mrb[4].mxu1 }
  0xe3   :  { %v265_v41 = vadd.f32 %v648_v20, %v264_v39  ;;  %v498_v42 = vpop.f32.mrb[6].mxu0  ;;  %v353_v43 = vadd.f32 %v517_v40, %v648_v20  ;;  %v344_v44 = vpop.f32.mrb[5].mxu1 }
  0xe4   :  { %398 = vst.msk [vmem:[%s833_s3 + $0x30] sm:$0xff] %vm391_vm2, %v273_v38  ;;  %v276_v45 = vadd.f32 %v498_v42, %v648_v20  ;;  %v267_v46 = vpop.f32.mrb[7].mxu0  ;;  %v345_v47 = vadd.f32 %v648_v20, %v344_v44  ;;  %v518_v48 = vpop.f32.mrb[6].mxu1 }
  0xe5   :  { %396 = vst.msk [vmem:[%s833_s3 + $0x20] sm:$0xff] %vm391_vm2, %v265_v41  ;;  %v268_v49 = vadd.f32 %v648_v20, %v267_v46  ;;  %418 = vst.msk [vmem:[%s833_s3 + $0xd0] sm:$0xff] %vm391_vm2, %v353_v43  ;;  %v356_v50 = vadd.f32 %v518_v48, %v648_v20  ;;  %v347_v51 = vpop.f32.mrb[7].mxu1 }
  0xe6   :  { %399 = vst.msk [vmem:[%s833_s3 + $0x38] sm:$0xff] %vm391_vm2, %v276_v45  ;;  %416 = vst.msk [vmem:[%s833_s3 + $0xc0] sm:$0xff] %vm391_vm2, %v345_v47  ;;  %v348_v52 = vadd.f32 %v648_v20, %v347_v51 }
  0xe7   :  { %397 = vst.msk [vmem:[%s833_s3 + $0x28] sm:$0xff] %vm391_vm2, %v268_v49  ;;  %419 = vst.msk [vmem:[%s833_s3 + $0xd8] sm:$0xff] %vm391_vm2, %v356_v50 }
  0xe8   :  { %417 = vst.msk [vmem:[%s833_s3 + $0xc8] sm:$0xff] %vm391_vm2, %v348_v52 }
  0xe9   :  { %v501_v53 = vpop.f32.mrb[8].mxu0 }
  0xea   :  { %v289_v54 = vadd.f32 %v501_v53, %v648_v20  ;;  %v280_v55 = vpop.f32.mrb[9].mxu0  ;;  %v521_v56 = vpop.f32.mrb[8].mxu1 }
  0xeb   :  { %v281_v57 = vadd.f32 %v648_v20, %v280_v55  ;;  %v502_v58 = vpop.f32.mrb[10].mxu0  ;;  %v369_v59 = vadd.f32 %v521_v56, %v648_v20  ;;  %v360_v60 = vpop.f32.mrb[9].mxu1 }
  0xec   :  { %402 = vst.msk [vmem:[%s833_s3 + $0x50] sm:$0xff] %vm391_vm2, %v289_v54  ;;  %v292_v61 = vadd.f32 %v502_v58, %v648_v20  ;;  %v283_v62 = vpop.f32.mrb[11].mxu0  ;;  %v361_v63 = vadd.f32 %v648_v20, %v360_v60  ;;  %v522_v0 = vpop.f32.mrb[10].mxu1 }
  0xed   :  { %400 = vst.msk [vmem:[%s833_s3 + $0x40] sm:$0xff] %vm391_vm2, %v281_v57  ;;  %v284_v1 = vadd.f32 %v648_v20, %v283_v62  ;;  %422 = vst.msk [vmem:[%s833_s3 + $0xf0] sm:$0xff] %vm391_vm2, %v369_v59  ;;  %v372_v2 = vadd.f32 %v522_v0, %v648_v20  ;;  %v363_v3 = vpop.f32.mrb[11].mxu1 }
  0xee   :  { %403 = vst.msk [vmem:[%s833_s3 + $0x58] sm:$0xff] %vm391_vm2, %v292_v61  ;;  %420 = vst.msk [vmem:[%s833_s3 + $0xe0] sm:$0xff] %vm391_vm2, %v361_v63  ;;  %v364_v4 = vadd.f32 %v648_v20, %v363_v3 }
  0xef   :  { %401 = vst.msk [vmem:[%s833_s3 + $0x48] sm:$0xff] %vm391_vm2, %v284_v1  ;;  %423 = vst.msk [vmem:[%s833_s3 + $0xf8] sm:$0xff] %vm391_vm2, %v372_v2 }
  0xf0   :  { %421 = vst.msk [vmem:[%s833_s3 + $0xe8] sm:$0xff] %vm391_vm2, %v364_v4 }
  0xf1   :  { %v505_v5 = vpop.f32.mrb[12].mxu0 }
  0xf2   :  { %v305_v6 = vadd.f32 %v505_v5, %v648_v20  ;;  %v296_v7 = vpop.f32.mrb[13].mxu0  ;;  %v525_v8 = vpop.f32.mrb[12].mxu1 }
  0xf3   :  { %v297_v9 = vadd.f32 %v648_v20, %v296_v7  ;;  %v506_v10 = vpop.f32.mrb[14].mxu0  ;;  %v385_v11 = vadd.f32 %v525_v8, %v648_v20  ;;  %v376_v12 = vpop.f32.mrb[13].mxu1 }
  0xf4   :  { %406 = vst.msk [vmem:[%s833_s3 + $0x70] sm:$0xff] %vm391_vm2, %v305_v6  ;;  %v308_v13 = vadd.f32 %v506_v10, %v648_v20  ;;  %v299_v14 = vpop.f32.mrb[15].mxu0  ;;  %v377_v15 = vadd.f32 %v648_v20, %v376_v12  ;;  %v526_v16 = vpop.f32.mrb[14].mxu1 }
  0xf5   :  { %404 = vst.msk [vmem:[%s833_s3 + $0x60] sm:$0xff] %vm391_vm2, %v297_v9  ;;  %v300_v17 = vadd.f32 %v648_v20, %v299_v14  ;;  %426 = vst.msk [vmem:[%s833_s3 + $0x110] sm:$0xff] %vm391_vm2, %v385_v11  ;;  %v388_v18 = vadd.f32 %v526_v16, %v648_v20  ;;  %v379_v19 = vpop.f32.mrb[15].mxu1 }
  0xf6   :  { %407 = vst.msk [vmem:[%s833_s3 + $0x78] sm:$0xff] %vm391_vm2, %v308_v13  ;;  %424 = vst.msk [vmem:[%s833_s3 + $0x100] sm:$0xff] %vm391_vm2, %v377_v15  ;;  %v380_v21 = vadd.f32 %v648_v20, %v379_v19 }
  0xf7   :  { %405 = vst.msk [vmem:[%s833_s3 + $0x68] sm:$0xff] %vm391_vm2, %v300_v17  ;;  %427 = vst.msk [vmem:[%s833_s3 + $0x118] sm:$0xff] %vm391_vm2, %v388_v18 }
  0xf8   :  { %425 = vst.msk [vmem:[%s833_s3 + $0x108] sm:$0xff] %vm391_vm2, %v380_v21 }
  0xf9   :  { %v509_v22 = vpop.f32.mrb[16].mxu0 }
  0xfa   :  { %v321_v23 = vadd.f32 %v509_v22, %v648_v20  ;;  %v312_v24 = vpop.f32.mrb[17].mxu0 }
  0xfb   :  { %v313_v25 = vadd.f32 %v648_v20, %v312_v24  ;;  %v510_v26 = vpop.f32.mrb[18].mxu0 }
  0xfc   :  { %410 = vst.msk [vmem:[%s833_s3 + $0x90] sm:$0xff] %vm391_vm2, %v321_v23  ;;  %v324_v27 = vadd.f32 %v510_v26, %v648_v20  ;;  %v315_v28 = vpop.f32.mrb[19].mxu0 }
  0xfd   :  { %408 = vst.msk [vmem:[%s833_s3 + $0x80] sm:$0xff] %vm391_vm2, %v313_v25  ;;  %v316_v29 = vadd.f32 %v648_v20, %v315_v28 }
  0xfe   :  { %411 = vst.msk [vmem:[%s833_s3 + $0x98] sm:$0xff] %vm391_vm2, %v324_v27 }
  0xff   :  { %409 = vst.msk [vmem:[%s833_s3 + $0x88] sm:$0xff] %vm391_vm2, %v316_v29 }

// kernel: net_forward.20
= control target key start
LH: loop header
LB: loop body
LE: loop exit
PB: predicated region body
PF: predicated region fallthrough
CT: control target
= control target key end

     0   :  { %v1408_v0 = vmov 0   ;;  %vm636_vm0 = vcmask 130048   ;;  %vm1045_vm1 = vcmask 195584   ;;  %s1948_s1 = inlined_call_operand.vmem [shape: bf16[400,24], index: 1, kind: input, shape index: {}]   ;;  %s1949_s0 = inlined_call_operand.vmem [shape: bf16[288,400], index: 0, kind: input, shape index: {}]   ;;  %s1950_s2 = inlined_call_operand.vmem [shape: f32[1,24], index: 2, kind: input, shape index: {}]   ;;  %s1951_s3 = inlined_call_operand.vmem [shape: f32[288,24], index: 3, kind: output, shape index: {}]  }
   0x1   :  { %691 = vmatprep.subr.bf16.mxu1 %v1408_v0  ;;  %v1275_v1 = vld [vmem:[%s1948_s1] sm:$0xff]   ;;  %868 = vmatprep.subr.bf16.mxu0 %v1408_v0  ;;  %v1276_v2 = vld [vmem:[%s1948_s1 + $0x8] sm:$0xff]   ;;  %v1277_v3 = vld [vmem:[%s1948_s1 + $0x10] sm:$0xff]  }
   0x2   :  { %692 = vmatpush1.bf16.msra.mxu1 %v1275_v1  ;;  %v1282_v4 = vld [vmem:[%s1948_s1 + $0x80] sm:$0xff]   ;;  %v1284_v5 = vld [vmem:[%s1948_s1 + $0x88] sm:$0xff]   ;;  %v1278_v6 = vld [vmem:[%s1948_s1 + $0x18] sm:$0xff]  }
   0x3   :  { %693 = vmatprep.subr.bf16.mxu1 %v1408_v0  ;;  %869 = vmatpush1.bf16.msra.mxu0 %v1282_v4  ;;  %v1286_v7 = vld [vmem:[%s1948_s1 + $0x90] sm:$0xff]   ;;  %v1279_v8 = vld [vmem:[%s1948_s1 + $0x20] sm:$0xff]   ;;  %v1288_v9 = vld [vmem:[%s1948_s1 + $0x98] sm:$0xff]  }
   0x4   :  { %870 = vmatprep.subr.bf16.mxu0 %v1408_v0  ;;  %v1280_v10 = vld [vmem:[%s1948_s1 + $0x28] sm:$0xff]   ;;  %v1290_v11 = vld [vmem:[%s1948_s1 + $0xa0] sm:$0xff]   ;;  %v1281_v12 = vld [vmem:[%s1948_s1 + $0x30] sm:$0xff]  }
   0x5   :  { %v1283_v13 = vld [vmem:[%s1948_s1 + $0x38] sm:$0xff]   ;;  %v1292_v14 = vld [vmem:[%s1948_s1 + $0xa8] sm:$0xff]   ;;  %v1305_v16 = vld [vmem:[%s1949_s0 + $0x4] ss:$16 sps:$4 sm:$0xff]  }
   0x6   :  { %694 = vmatpush1.bf16.msra.mxu1 %v1276_v2  ;;  %v1302_v15 = vld [vmem:[%s1949_s0 + $0xc] ss:$16 sps:$4 sm:$0xff]   ;;  %v1294_v17 = vld [vmem:[%s1948_s1 + $0xb0] sm:$0xff]   ;;  %723 = vmatprep.mubr.bf16.mxu1 %v1305_v16  ;;  %v1285_v18 = vld [vmem:[%s1948_s1 + $0x40] sm:$0xff]  }
   0x7   :  { %695 = vmatprep.subr.bf16.mxu1 %v1408_v0  ;;  %871 = vmatpush1.bf16.msra.mxu0 %v1284_v5  ;;  %v1296_v19 = vld [vmem:[%s1948_s1 + $0xb8] sm:$0xff]   ;;  %v1287_v20 = vld [vmem:[%s1948_s1 + $0x48] sm:$0xff]   ;;  %v1298_v21 = vld [vmem:[%s1948_s1 + $0xc0] sm:$0xff]  }
   0x8   :  { %872 = vmatprep.subr.bf16.mxu0 %v1408_v0  ;;  %1184 = vmatprep.mubr.msk.bf16.mxu0 %vm636_vm0, %v1302_v15  ;;  %v1289_v22 = vld [vmem:[%s1948_s1 + $0x50] sm:$0xff]   ;;  %v1300_v23 = vld [vmem:[%s1949_s0 + $0x8] ss:$16 sps:$4 sm:$0xff]   ;;  %v1306_v24 = vld [vmem:[%s1949_s0 + $0x2c] ss:$16 sps:$4 sm:$0xff]  }
   0x9   :  { %v1291_v25 = vld [vmem:[%s1948_s1 + $0x58] sm:$0xff]   ;;  %v1293_v26 = vld [vmem:[%s1948_s1 + $0x60] sm:$0xff]   ;;  %v1295_v29 = vld [vmem:[%s1948_s1 + $0x68] sm:$0xff]  }
   0xa   :  { %696 = vmatpush1.bf16.msra.mxu1 %v1277_v3  ;;  %v1310_v27 = vld [vmem:[%s1949_s0 + $0x28] ss:$16 sps:$4 sm:$0xff]   ;;  %v1312_v28 = vld [vmem:[%s1949_s0 + $0x4c] ss:$16 sps:$4 sm:$0xff]   ;;  %v1297_v30 = vld [vmem:[%s1948_s1 + $0x70] sm:$0xff]  }
   0xb   :  { %697 = vmatprep.subr.bf16.mxu1 %v1408_v0  ;;  %873 = vmatpush1.bf16.msra.mxu0 %v1286_v7  ;;  %v1316_v31 = vld [vmem:[%s1949_s0 + $0x48] ss:$16 sps:$4 sm:$0xff]   ;;  %v1318_v32 = vld [vmem:[%s1949_s0 + $0x6c] ss:$16 sps:$4 sm:$0xff]   ;;  %v1303_v34 = vld [vmem:[%s1949_s0] ss:$16 sps:$4 sm:$0xff]  }
   0xc   :  { %874 = vmatprep.subr.bf16.mxu0 %v1408_v0  ;;  %v1299_v33 = vld [vmem:[%s1948_s1 + $0x78] sm:$0xff]   ;;  %v1308_v35 = vld [vmem:[%s1949_s0 + $0x24] ss:$16 sps:$4 sm:$0xff]   ;;  %v1311_v38 = vld [vmem:[%s1949_s0 + $0x20] ss:$16 sps:$4 sm:$0xff]  }
   0xd   :  { %v1322_v36 = vld [vmem:[%s1949_s0 + $0x68] ss:$16 sps:$4 sm:$0xff]   ;;  %v1324_v37 = vld [vmem:[%s1949_s0 + $0x8c] ss:$16 sps:$4 sm:$0xff]   ;;  %v1314_v39 = vld [vmem:[%s1949_s0 + $0x44] ss:$16 sps:$4 sm:$0xff]  }
   0xe   :  { %698 = vmatpush1.bf16.msra.mxu1 %v1278_v6  ;;  %v1328_v40 = vld [vmem:[%s1949_s0 + $0x88] ss:$16 sps:$4 sm:$0xff]   ;;  %v1330_v41 = vld [vmem:[%s1949_s0 + $0xac] ss:$16 sps:$4 sm:$0xff]   ;;  %v1317_v42 = vld [vmem:[%s1949_s0 + $0x40] ss:$16 sps:$4 sm:$0xff]  }
   0xf   :  { %699 = vmatprep.subr.bf16.mxu1 %v1408_v0  ;;  %875 = vmatpush1.bf16.msra.mxu0 %v1288_v9  ;;  %v1320_v43 = vld [vmem:[%s1949_s0 + $0x64] ss:$16 sps:$4 sm:$0xff]   ;;  %v1334_v44 = vld [vmem:[%s1949_s0 + $0xa8] ss:$16 sps:$4 sm:$0xff]   ;;  %v1336_v45 = vld [vmem:[%s1949_s0 + $0xcc] ss:$16 sps:$4 sm:$0xff]  }
  0x10   :  { %876 = vmatprep.subr.bf16.mxu0 %v1408_v0  ;;  %v1323_v46 = vld [vmem:[%s1949_s0 + $0x60] ss:$16 sps:$4 sm:$0xff]   ;;  %v1326_v47 = vld [vmem:[%s1949_s0 + $0x84] ss:$16 sps:$4 sm:$0xff]   ;;  %v1340_v48 = vld [vmem:[%s1949_s0 + $0xc8] ss:$16 sps:$4 sm:$0xff]  }
  0x11   :  { %v1342_v49 = vld [vmem:[%s1949_s0 + $0xec] ss:$16 sps:$4 sm:$0xff]   ;;  %v1329_v50 = vld [vmem:[%s1949_s0 + $0x80] ss:$16 sps:$4 sm:$0xff]   ;;  %v1332_v51 = vld [vmem:[%s1949_s0 + $0xa4] ss:$16 sps:$4 sm:$0xff]  }
  0x12   :  { %700 = vmatpush1.bf16.msra.mxu1 %v1279_v8  ;;  %v1346_v52 = vld [vmem:[%s1949_s0 + $0xe8] ss:$16 sps:$4 sm:$0xff]   ;;  %v1348_v53 = vld [vmem:[%s1949_s0 + $0x10c] ss:$16 sps:$4 sm:$0xff]   ;;  %v1335_v54 = vld [vmem:[%s1949_s0 + $0xa0] ss:$16 sps:$4 sm:$0xff]  }
  0x13   :  { %701 = vmatprep.subr.bf16.mxu1 %v1408_v0  ;;  %877 = vmatpush1.bf16.msra.mxu0 %v1290_v11  ;;  %v1338_v55 = vld [vmem:[%s1949_s0 + $0xc4] ss:$16 sps:$4 sm:$0xff]   ;;  %v1352_v56 = vld [vmem:[%s1949_s0 + $0x108] ss:$16 sps:$4 sm:$0xff]   ;;  %v1354_v57 = vld [vmem:[%s1949_s0 + $0x12c] ss:$16 sps:$4 sm:$0xff]  }
  0x14   :  { %878 = vmatprep.subr.bf16.mxu0 %v1408_v0  ;;  %v1341_v58 = vld [vmem:[%s1949_s0 + $0xc0] ss:$16 sps:$4 sm:$0xff]   ;;  %v1344_v59 = vld [vmem:[%s1949_s0 + $0xe4] ss:$16 sps:$4 sm:$0xff]   ;;  %v1358_v60 = vld [vmem:[%s1949_s0 + $0x128] ss:$16 sps:$4 sm:$0xff]  }
  0x15   :  { %v1360_v61 = vld [vmem:[%s1949_s0 + $0x14c] ss:$16 sps:$4 sm:$0xff]   ;;  %v1347_v62 = vld [vmem:[%s1949_s0 + $0xe0] ss:$16 sps:$4 sm:$0xff]   ;;  %v1350_v63 = vld [vmem:[%s1949_s0 + $0x104] ss:$16 sps:$4 sm:$0xff]  }
  0x16   :  { %702 = vmatpush1.bf16.msra.mxu1 %v1280_v10  ;;  %v1366_v1 = vld [vmem:[%s1949_s0 + $0x16c] ss:$16 sps:$4 sm:$0xff]   ;;  %v1353_v2 = vld [vmem:[%s1949_s0 + $0x100] ss:$16 sps:$4 sm:$0xff]   ;;  %v1356_v3 = vld [vmem:[%s1949_s0 + $0x124] ss:$16 sps:$4 sm:$0xff]  }
  0x17   :  { %703 = vmatprep.subr.bf16.mxu1 %v1408_v0  ;;  %879 = vmatpush1.bf16.msra.mxu0 %v1292_v14  ;;  %v1370_v4 = vld [vmem:[%s1949_s0 + $0x168] ss:$16 sps:$4 sm:$0xff]   ;;  %v1372_v5 = vld [vmem:[%s1949_s0 + $0x18c] ss:$16 sps:$4 sm:$0xff]   ;;  %v1359_v6 = vld [vmem:[%s1949_s0 + $0x120] ss:$16 sps:$4 sm:$0xff]  }
  0x18   :  { %880 = vmatprep.subr.bf16.mxu0 %v1408_v0  ;;  %v1362_v7 = vld [vmem:[%s1949_s0 + $0x144] ss:$16 sps:$4 sm:$0xff]   ;;  %v1376_v8 = vld [vmem:[%s1949_s0 + $0x188] ss:$16 sps:$4 sm:$0xff]   ;;  %v1378_v9 = vld [vmem:[%s1949_s0 + $0x1ac] ss:$16 sps:$4 sm:$0xff]  }
  0x19   :  { %v1365_v10 = vld [vmem:[%s1949_s0 + $0x140] ss:$16 sps:$4 sm:$0xff]   ;;  %v1368_v11 = vld [vmem:[%s1949_s0 + $0x164] ss:$16 sps:$4 sm:$0xff]   ;;  %v1388_v16 = vld [vmem:[%s1949_s0 + $0x1c8] ss:$16 sps:$4 sm:$0xff]  }
  0x1a   :  { %704 = vmatpush1.bf16.msra.mxu1 %v1281_v12  ;;  %v1382_v12 = vld [vmem:[%s1949_s0 + $0x1a8] ss:$16 sps:$4 sm:$0xff]   ;;  %v1371_v14 = vld [vmem:[%s1949_s0 + $0x160] ss:$16 sps:$4 sm:$0xff]   ;;  %v1374_v15 = vld [vmem:[%s1949_s0 + $0x184] ss:$16 sps:$4 sm:$0xff]  }
  0x1b   :  { %705 = vmatprep.subr.bf16.mxu1 %v1408_v0  ;;  %881 = vmatpush1.bf16.msra.mxu0 %v1294_v17  ;;  %v1390_v17 = vld [vmem:[%s1949_s0 + $0x1ec] ss:$16 sps:$4 sm:$0xff]  }
  0x1c   :  { %882 = vmatprep.subr.bf16.mxu0 %v1408_v0 }
  0x1e   :  { %706 = vmatpush1.bf16.msra.mxu1 %v1283_v13  ;;  %v1384_v13 = vld [vmem:[%s1949_s0 + $0x1cc] ss:$16 sps:$4 sm:$0xff]  }
  0x1f   :  { %707 = vmatprep.subr.bf16.mxu1 %v1408_v0  ;;  %883 = vmatpush1.bf16.msra.mxu0 %v1296_v19  ;;  %v1380_v19 = vld [vmem:[%s1949_s0 + $0x1a4] ss:$16 sps:$4 sm:$0xff]  }
  0x20   :  { %884 = vmatprep.subr.bf16.mxu0 %v1408_v0 }
  0x22   :  { %708 = vmatpush1.bf16.msra.mxu1 %v1285_v18  ;;  %v1377_v18 = vld [vmem:[%s1949_s0 + $0x180] ss:$16 sps:$4 sm:$0xff]  }
  0x23   :  { %709 = vmatprep.subr.bf16.mxu1 %v1408_v0  ;;  %885 = vmatpush1.bf16.msra.mxu0 %v1298_v21  ;;  %v1396_v21 = vld [vmem:[%s1949_s0 + $0x20c] ss:$16 sps:$4 sm:$0xff]  }
  0x26   :  { %710 = vmatpush1.bf16.msra.mxu1 %v1287_v20  ;;  %901 = vmatmul.mubr.bf16.vlgmr.msra.gmra.mrb[0].mxu0 %v1300_v23  ;;  %v1394_v20 = vld [vmem:[%s1949_s0 + $0x1e8] ss:$16 sps:$4 sm:$0xff]   ;;  %v1386_v23 = vld [vmem:[%s1949_s0 + $0x1c4] ss:$16 sps:$4 sm:$0xff]  }
  0x27   :  { %711 = vmatprep.subr.bf16.mxu1 %v1408_v0  ;;  %1185 = vmatprep.mubr.msk.bf16.mxu0 %vm636_vm0, %v1306_v24  ;;  %v1400_v24 = vld [vmem:[%s1949_s0 + $0x208] ss:$16 sps:$4 sm:$0xff]  }
  0x2a   :  { %712 = vmatpush1.bf16.msra.mxu1 %v1289_v22  ;;  %v1383_v22 = vld [vmem:[%s1949_s0 + $0x1a0] ss:$16 sps:$4 sm:$0xff]  }
  0x2b   :  { %713 = vmatprep.subr.bf16.mxu1 %v1408_v0 }
  0x2e   :  { %714 = vmatpush1.bf16.msra.mxu1 %v1291_v25  ;;  %909 = vmatmul.mubr.bf16.gmra.mrb[4].mxu0 %v1310_v27  ;;  %v1402_v25 = vld [vmem:[%s1949_s0 + $0x22c] ss:$16 sps:$4 sm:$0xff]   ;;  %v1392_v27 = vld [vmem:[%s1949_s0 + $0x1e4] ss:$16 sps:$4 sm:$0xff]  }
  0x2f   :  { %715 = vmatprep.subr.bf16.mxu1 %v1408_v0  ;;  %1186 = vmatprep.mubr.msk.bf16.mxu0 %vm636_vm0, %v1312_v28  ;;  %v1406_v28 = vld [vmem:[%s1949_s0 + $0x228] ss:$16 sps:$4 sm:$0xff]  }
  0x32   :  { %716 = vmatpush1.bf16.msra.mxu1 %v1293_v26  ;;  %v1389_v26 = vld [vmem:[%s1949_s0 + $0x1c0] ss:$16 sps:$4 sm:$0xff]  }
  0x33   :  { %717 = vmatprep.subr.bf16.mxu1 %v1408_v0 }
  0x36   :  { %718 = vmatpush1.bf16.msra.mxu1 %v1295_v29  ;;  %917 = vmatmul.mubr.bf16.gmra.mrb[8].mxu0 %v1316_v31  ;;  %v1395_v29 = vld [vmem:[%s1949_s0 + $0x1e0] ss:$16 sps:$4 sm:$0xff]  }
  0x37   :  { %719 = vmatprep.subr.bf16.mxu1 %v1408_v0  ;;  %1187 = vmatprep.mubr.msk.bf16.mxu0 %vm636_vm0, %v1318_v32  ;;  %v1401_v31 = vld [vmem:[%s1949_s0 + $0x200] ss:$16 sps:$4 sm:$0xff]   ;;  %v1404_v32 = vld [vmem:[%s1949_s0 + $0x224] ss:$16 sps:$4 sm:$0xff]  }
  0x3a   :  { %720 = vmatpush1.bf16.msra.mxu1 %v1297_v30  ;;  %v1398_v30 = vld [vmem:[%s1949_s0 + $0x204] ss:$16 sps:$4 sm:$0xff]  }
  0x3b   :  { %721 = vmatprep.subr.bf16.mxu1 %v1408_v0  ;;  %v1364_v0 = vld [vmem:[%s1949_s0 + $0x148] ss:$16 sps:$4 sm:$0xff]  }
  0x3e   :  { %722 = vmatpush1.bf16.msra.mxu1 %v1299_v33  ;;  %925 = vmatmul.mubr.bf16.gmra.mrb[12].mxu0 %v1322_v36  ;;  %v1407_v33 = vld [vmem:[%s1949_s0 + $0x220] ss:$16 sps:$4 sm:$0xff]  }
  0x3f   :  { %1188 = vmatprep.mubr.msk.bf16.mxu0 %vm636_vm0, %v1324_v37 }
  0x41   :  { %724 = vmatmul.mubr.bf16.vlgmr.msra.gmra.mrb[0].mxu1 %v1303_v34 }
  0x42   :  { %731 = vmatprep.mubr.bf16.mxu1 %v1308_v35 }
  0x46   :  { %933 = vmatmul.mubr.bf16.gmra.mrb[16].mxu0 %v1328_v40 }
  0x47   :  { %1189 = vmatprep.mubr.msk.bf16.mxu0 %vm636_vm0, %v1330_v41 }
  0x49   :  { %732 = vmatmul.mubr.bf16.gmra.mrb[4].mxu1 %v1311_v38 }
  0x4a   :  { %739 = vmatprep.mubr.bf16.mxu1 %v1314_v39 }
  0x4e   :  { %941 = vmatmul.mubr.bf16.gmra.mrb[20].mxu0 %v1334_v44 }
  0x4f   :  { %1190 = vmatprep.mubr.msk.bf16.mxu0 %vm636_vm0, %v1336_v45  ;;  %v1766_v45 = vld [vmem:[%s1950_s2] ss:$0 sm:$0xff] }
  0x51   :  { %740 = vmatmul.mubr.bf16.gmra.mrb[8].mxu1 %v1317_v42 }
  0x52   :  { %747 = vmatprep.mubr.bf16.mxu1 %v1320_v43 }
  0x56   :  { %949 = vmatmul.mubr.bf16.gmra.mrb[24].mxu0 %v1340_v48 }
  0x57   :  { %1191 = vmatprep.mubr.msk.bf16.mxu0 %vm636_vm0, %v1342_v49 }
  0x59   :  { %748 = vmatmul.mubr.bf16.gmra.mrb[12].mxu1 %v1323_v46 }
  0x5a   :  { %755 = vmatprep.mubr.bf16.mxu1 %v1326_v47 }
  0x5e   :  { %957 = vmatmul.mubr.bf16.gmra.mrb[28].mxu0 %v1346_v52 }
  0x5f   :  { %1192 = vmatprep.mubr.msk.bf16.mxu0 %vm636_vm0, %v1348_v53 }
  0x61   :  { %756 = vmatmul.mubr.bf16.gmra.mrb[16].mxu1 %v1329_v50 }
  0x62   :  { %763 = vmatprep.mubr.bf16.mxu1 %v1332_v51 }
  0x66   :  { %965 = vmatmul.mubr.bf16.gmra.mrb[32].mxu0 %v1352_v56 }
  0x67   :  { %1193 = vmatprep.mubr.msk.bf16.mxu0 %vm636_vm0, %v1354_v57 }
  0x69   :  { %764 = vmatmul.mubr.bf16.gmra.mrb[20].mxu1 %v1335_v54 }
  0x6a   :  { %771 = vmatprep.mubr.bf16.mxu1 %v1338_v55 }
  0x6e   :  { %973 = vmatmul.mubr.bf16.gmra.mrb[36].mxu0 %v1358_v60 }
  0x6f   :  { %1194 = vmatprep.mubr.msk.bf16.mxu0 %vm636_vm0, %v1360_v61 }
  0x71   :  { %772 = vmatmul.mubr.bf16.gmra.mrb[24].mxu1 %v1341_v58 }
  0x72   :  { %779 = vmatprep.mubr.bf16.mxu1 %v1344_v59 }
  0x76   :  { %981 = vmatmul.mubr.bf16.gmra.mrb[40].mxu0 %v1364_v0 }
  0x77   :  { %1195 = vmatprep.mubr.msk.bf16.mxu0 %vm636_vm0, %v1366_v1 }
  0x79   :  { %780 = vmatmul.mubr.bf16.gmra.mrb[28].mxu1 %v1347_v62 }
  0x7a   :  { %787 = vmatprep.mubr.bf16.mxu1 %v1350_v63 }
  0x7e   :  { %989 = vmatmul.mubr.bf16.gmra.mrb[44].mxu0 %v1370_v4 }
  0x7f   :  { %1196 = vmatprep.mubr.msk.bf16.mxu0 %vm636_vm0, %v1372_v5 }
  0x81   :  { %788 = vmatmul.mubr.bf16.gmra.mrb[32].mxu1 %v1353_v2 }
  0x82   :  { %795 = vmatprep.mubr.bf16.mxu1 %v1356_v3 }
  0x86   :  { %997 = vmatmul.mubr.bf16.gmra.mrb[48].mxu0 %v1376_v8 }
  0x87   :  { %1197 = vmatprep.mubr.msk.bf16.mxu0 %vm636_vm0, %v1378_v9 }
  0x89   :  { %796 = vmatmul.mubr.bf16.gmra.mrb[36].mxu1 %v1359_v6 }
  0x8a   :  { %803 = vmatprep.mubr.bf16.mxu1 %v1362_v7 }
  0x8e   :  { %1005 = vmatmul.mubr.bf16.gmra.mrb[52].mxu0 %v1382_v12 }
  0x8f   :  { %1198 = vmatprep.mubr.msk.bf16.mxu0 %vm636_vm0, %v1384_v13 }
  0x91   :  { %804 = vmatmul.mubr.bf16.gmra.mrb[40].mxu1 %v1365_v10 }
  0x92   :  { %811 = vmatprep.mubr.bf16.mxu1 %v1368_v11 }
  0x96   :  { %1013 = vmatmul.mubr.bf16.gmra.mrb[56].mxu0 %v1388_v16 }
  0x97   :  { %1199 = vmatprep.mubr.msk.bf16.mxu0 %vm636_vm0, %v1390_v17 }
  0x99   :  { %812 = vmatmul.mubr.bf16.gmra.mrb[44].mxu1 %v1371_v14 }
  0x9a   :  { %819 = vmatprep.mubr.bf16.mxu1 %v1374_v15 }
  0x9e   :  { %1021 = vmatmul.mubr.bf16.gmra.mrb[60].mxu0 %v1394_v20 }
  0x9f   :  { %1200 = vmatprep.mubr.msk.bf16.mxu0 %vm636_vm0, %v1396_v21 }
  0xa1   :  { %820 = vmatmul.mubr.bf16.gmra.mrb[48].mxu1 %v1377_v18 }
  0xa2   :  { %827 = vmatprep.mubr.bf16.mxu1 %v1380_v19 }
  0xa6   :  { %1029 = vmatmul.mubr.bf16.gmra.mrb[64].mxu0 %v1400_v24 }
  0xa7   :  { %1201 = vmatprep.mubr.msk.bf16.mxu0 %vm636_vm0, %v1402_v25 }
  0xa9   :  { %828 = vmatmul.mubr.bf16.gmra.mrb[52].mxu1 %v1383_v22 }
  0xaa   :  { %835 = vmatprep.mubr.bf16.mxu1 %v1386_v23 }
  0xae   :  { %1037 = vmatmul.mubr.bf16.gmra.mrb[68].mxu0 %v1406_v28 }
  0xb1   :  { %836 = vmatmul.mubr.bf16.gmra.mrb[56].mxu1 %v1389_v26 }
  0xb2   :  { %843 = vmatprep.mubr.bf16.mxu1 %v1392_v27 }
  0xb9   :  { %844 = vmatmul.mubr.bf16.gmra.mrb[60].mxu1 %v1395_v29 }
  0xba   :  { %851 = vmatprep.mubr.bf16.mxu1 %v1398_v30 }
  0xc1   :  { %852 = vmatmul.mubr.bf16.gmra.mrb[64].mxu1 %v1401_v31 }
  0xc2   :  { %859 = vmatprep.mubr.bf16.mxu1 %v1404_v32 }
  0xc9   :  { %860 = vmatmul.mubr.bf16.gmra.mrb[68].mxu1 %v1407_v33 }
  0xf9   :  { %v902_v34 = vpop.f32.mrb[0].mxu0 }
  0xfa   :  { %v904_v35 = vpop.f32.mrb[1].mxu0 }
  0xfb   :  { %v905_v36 = vpop.f32.mrb[2].mxu0 }
  0xfc   :  { %v907_v37 = vpop.f32.mrb[3].mxu0 }
 0x101   :  { %v910_v38 = vpop.f32.mrb[4].mxu0 }
 0x102   :  { %v912_v39 = vpop.f32.mrb[5].mxu0 }
 0x103   :  { %v913_v40 = vpop.f32.mrb[6].mxu0 }
 0x104   :  { %v915_v41 = vpop.f32.mrb[7].mxu0 }
 0x109   :  { %v918_v42 = vpop.f32.mrb[8].mxu0 }
 0x10a   :  { %v920_v43 = vpop.f32.mrb[9].mxu0 }
 0x10b   :  { %v921_v44 = vpop.f32.mrb[10].mxu0 }
 0x10c   :  { %v923_v46 = vpop.f32.mrb[11].mxu0 }
 0x111   :  { %v926_v54 = vpop.f32.mrb[12].mxu0 }
 0x112   :  { %v928_v55 = vpop.f32.mrb[13].mxu0 }
 0x113   :  { %v929_v57 = vpop.f32.mrb[14].mxu0 }
 0x114   :  { %v725_v47 = vpop.f32.mrb[0].mxu1  ;;  %v931_v58 = vpop.f32.mrb[15].mxu0 }
 0x115   :  { %v726_v48 = vadd.f32 %v1766_v45, %v725_v47  ;;  %v727_v49 = vpop.f32.mrb[1].mxu1 }
 0x116   :  { %v728_v50 = vpop.f32.mrb[2].mxu1 }
 0x117   :  { %v903_v51 = vadd.f32 %v902_v34, %v726_v48  ;;  %v729_v52 = vadd.f32 %v1766_v45, %v728_v50  ;;  %v730_v53 = vpop.f32.mrb[3].mxu1 }
 0x119   :  { %1046 = vst.msk [vmem:[%s1951_s3] sm:$0xff] %vm1045_vm1, %v903_v51  ;;  %v906_v56 = vadd.f32 %v905_v36, %v729_v52  ;;  %v934_v2 = vpop.f32.mrb[16].mxu0 }
 0x11a   :  { %v936_v3 = vpop.f32.mrb[17].mxu0 }
 0x11b   :  { %1047 = vst.msk [vmem:[%s1951_s3 + $0x8] sm:$0xff] %vm1045_vm1, %v906_v56  ;;  %v937_v5 = vpop.f32.mrb[18].mxu0 }
 0x11c   :  { %v733_v59 = vpop.f32.mrb[4].mxu1  ;;  %v939_v6 = vpop.f32.mrb[19].mxu0 }
 0x11d   :  { %v734_v60 = vadd.f32 %v1766_v45, %v733_v59  ;;  %v735_v61 = vpop.f32.mrb[5].mxu1 }
 0x11e   :  { %v736_v62 = vpop.f32.mrb[6].mxu1 }
 0x11f   :  { %v911_v63 = vadd.f32 %v910_v38, %v734_v60  ;;  %v737_v0 = vadd.f32 %v1766_v45, %v736_v62  ;;  %v738_v1 = vpop.f32.mrb[7].mxu1 }
 0x121   :  { %1048 = vst.msk [vmem:[%s1951_s3 + $0x10] sm:$0xff] %vm1045_vm1, %v911_v63  ;;  %v914_v4 = vadd.f32 %v913_v40, %v737_v0  ;;  %v942_v14 = vpop.f32.mrb[20].mxu0 }
 0x122   :  { %v944_v15 = vpop.f32.mrb[21].mxu0 }
 0x123   :  { %1049 = vst.msk [vmem:[%s1951_s3 + $0x18] sm:$0xff] %vm1045_vm1, %v914_v4  ;;  %v945_v17 = vpop.f32.mrb[22].mxu0 }
 0x124   :  { %v741_v7 = vpop.f32.mrb[8].mxu1  ;;  %v947_v18 = vpop.f32.mrb[23].mxu0 }
 0x125   :  { %v742_v8 = vadd.f32 %v1766_v45, %v741_v7  ;;  %v743_v9 = vpop.f32.mrb[9].mxu1 }
 0x126   :  { %v744_v10 = vpop.f32.mrb[10].mxu1 }
 0x127   :  { %v919_v11 = vadd.f32 %v918_v42, %v742_v8  ;;  %v745_v12 = vadd.f32 %v1766_v45, %v744_v10  ;;  %v746_v13 = vpop.f32.mrb[11].mxu1 }
 0x129   :  { %1050 = vst.msk [vmem:[%s1951_s3 + $0x20] sm:$0xff] %vm1045_vm1, %v919_v11  ;;  %v922_v16 = vadd.f32 %v921_v44, %v745_v12  ;;  %v950_v26 = vpop.f32.mrb[24].mxu0 }
 0x12a   :  { %v952_v27 = vpop.f32.mrb[25].mxu0 }
 0x12b   :  { %1051 = vst.msk [vmem:[%s1951_s3 + $0x28] sm:$0xff] %vm1045_vm1, %v922_v16  ;;  %v953_v29 = vpop.f32.mrb[26].mxu0 }
 0x12c   :  { %v749_v19 = vpop.f32.mrb[12].mxu1  ;;  %v955_v30 = vpop.f32.mrb[27].mxu0 }
 0x12d   :  { %v750_v20 = vadd.f32 %v1766_v45, %v749_v19  ;;  %v751_v21 = vpop.f32.mrb[13].mxu1 }
 0x12e   :  { %v752_v22 = vpop.f32.mrb[14].mxu1 }
 0x12f   :  { %v927_v23 = vadd.f32 %v926_v54, %v750_v20  ;;  %v753_v24 = vadd.f32 %v1766_v45, %v752_v22  ;;  %v754_v25 = vpop.f32.mrb[15].mxu1 }
 0x131   :  { %1052 = vst.msk [vmem:[%s1951_s3 + $0x30] sm:$0xff] %vm1045_vm1, %v927_v23  ;;  %v930_v28 = vadd.f32 %v929_v57, %v753_v24  ;;  %v958_v38 = vpop.f32.mrb[28].mxu0 }
 0x132   :  { %v960_v39 = vpop.f32.mrb[29].mxu0 }
 0x133   :  { %1053 = vst.msk [vmem:[%s1951_s3 + $0x38] sm:$0xff] %vm1045_vm1, %v930_v28  ;;  %v961_v41 = vpop.f32.mrb[30].mxu0 }
 0x134   :  { %v757_v31 = vpop.f32.mrb[16].mxu1  ;;  %v963_v42 = vpop.f32.mrb[31].mxu0 }
 0x135   :  { %v758_v32 = vadd.f32 %v1766_v45, %v757_v31  ;;  %v759_v33 = vpop.f32.mrb[17].mxu1 }
 0x136   :  { %v760_v34 = vpop.f32.mrb[18].mxu1 }
 0x137   :  { %v935_v35 = vadd.f32 %v934_v2, %v758_v32  ;;  %v761_v36 = vadd.f32 %v1766_v45, %v760_v34  ;;  %v762_v37 = vpop.f32.mrb[19].mxu1 }
 0x139   :  { %1054 = vst.msk [vmem:[%s1951_s3 + $0x40] sm:$0xff] %vm1045_vm1, %v935_v35  ;;  %v938_v40 = vadd.f32 %v937_v5, %v761_v36  ;;  %v966_v51 = vpop.f32.mrb[32].mxu0 }
 0x13a   :  { %v968_v52 = vpop.f32.mrb[33].mxu0 }
 0x13b   :  { %1055 = vst.msk [vmem:[%s1951_s3 + $0x48] sm:$0xff] %vm1045_vm1, %v938_v40  ;;  %v969_v54 = vpop.f32.mrb[34].mxu0 }
 0x13c   :  { %v765_v43 = vpop.f32.mrb[20].mxu1  ;;  %v971_v55 = vpop.f32.mrb[35].mxu0 }
 0x13d   :  { %v766_v44 = vadd.f32 %v1766_v45, %v765_v43  ;;  %v767_v46 = vpop.f32.mrb[21].mxu1 }
 0x13e   :  { %v768_v47 = vpop.f32.mrb[22].mxu1 }
 0x13f   :  { %v943_v48 = vadd.f32 %v942_v14, %v766_v44  ;;  %v769_v49 = vadd.f32 %v1766_v45, %v768_v47  ;;  %v770_v50 = vpop.f32.mrb[23].mxu1 }
 0x141   :  { %1056 = vst.msk [vmem:[%s1951_s3 + $0x50] sm:$0xff] %vm1045_vm1, %v943_v48  ;;  %v946_v53 = vadd.f32 %v945_v17, %v769_v49  ;;  %v974_v63 = vpop.f32.mrb[36].mxu0 }
 0x142   :  { %v976_v0 = vpop.f32.mrb[37].mxu0 }
 0x143   :  { %1057 = vst.msk [vmem:[%s1951_s3 + $0x58] sm:$0xff] %vm1045_vm1, %v946_v53  ;;  %v977_v2 = vpop.f32.mrb[38].mxu0 }
 0x144   :  { %v773_v56 = vpop.f32.mrb[24].mxu1  ;;  %v979_v3 = vpop.f32.mrb[39].mxu0 }
 0x145   :  { %v774_v57 = vadd.f32 %v1766_v45, %v773_v56  ;;  %v775_v58 = vpop.f32.mrb[25].mxu1 }
 0x146   :  { %v776_v59 = vpop.f32.mrb[26].mxu1 }
 0x147   :  { %v951_v60 = vadd.f32 %v950_v26, %v774_v57  ;;  %v777_v61 = vadd.f32 %v1766_v45, %v776_v59  ;;  %v778_v62 = vpop.f32.mrb[27].mxu1 }
 0x149   :  { %1058 = vst.msk [vmem:[%s1951_s3 + $0x60] sm:$0xff] %vm1045_vm1, %v951_v60  ;;  %v954_v1 = vadd.f32 %v953_v29, %v777_v61  ;;  %v982_v11 = vpop.f32.mrb[40].mxu0 }
 0x14a   :  { %v984_v12 = vpop.f32.mrb[41].mxu0 }
 0x14b   :  { %1059 = vst.msk [vmem:[%s1951_s3 + $0x68] sm:$0xff] %vm1045_vm1, %v954_v1  ;;  %v985_v14 = vpop.f32.mrb[42].mxu0 }
 0x14c   :  { %v781_v4 = vpop.f32.mrb[28].mxu1  ;;  %v987_v15 = vpop.f32.mrb[43].mxu0 }
 0x14d   :  { %v782_v5 = vadd.f32 %v1766_v45, %v781_v4  ;;  %v783_v6 = vpop.f32.mrb[29].mxu1 }
 0x14e   :  { %v784_v7 = vpop.f32.mrb[30].mxu1 }
 0x14f   :  { %v959_v8 = vadd.f32 %v958_v38, %v782_v5  ;;  %v785_v9 = vadd.f32 %v1766_v45, %v784_v7  ;;  %v786_v10 = vpop.f32.mrb[31].mxu1 }
 0x151   :  { %1060 = vst.msk [vmem:[%s1951_s3 + $0x70] sm:$0xff] %vm1045_vm1, %v959_v8  ;;  %v962_v13 = vadd.f32 %v961_v41, %v785_v9  ;;  %v990_v23 = vpop.f32.mrb[44].mxu0 }
 0x152   :  { %v992_v24 = vpop.f32.mrb[45].mxu0 }
 0x153   :  { %1061 = vst.msk [vmem:[%s1951_s3 + $0x78] sm:$0xff] %vm1045_vm1, %v962_v13  ;;  %v993_v26 = vpop.f32.mrb[46].mxu0 }
 0x154   :  { %v789_v16 = vpop.f32.mrb[32].mxu1  ;;  %v995_v27 = vpop.f32.mrb[47].mxu0 }
 0x155   :  { %v790_v17 = vadd.f32 %v1766_v45, %v789_v16  ;;  %v791_v18 = vpop.f32.mrb[33].mxu1 }
 0x156   :  { %v792_v19 = vpop.f32.mrb[34].mxu1 }
 0x157   :  { %v967_v20 = vadd.f32 %v966_v51, %v790_v17  ;;  %v793_v21 = vadd.f32 %v1766_v45, %v792_v19  ;;  %v794_v22 = vpop.f32.mrb[35].mxu1 }
 0x159   :  { %1062 = vst.msk [vmem:[%s1951_s3 + $0x80] sm:$0xff] %vm1045_vm1, %v967_v20  ;;  %v970_v25 = vadd.f32 %v969_v54, %v793_v21  ;;  %v998_v35 = vpop.f32.mrb[48].mxu0 }
 0x15a   :  { %v1000_v36 = vpop.f32.mrb[49].mxu0 }
 0x15b   :  { %1063 = vst.msk [vmem:[%s1951_s3 + $0x88] sm:$0xff] %vm1045_vm1, %v970_v25  ;;  %v1001_v38 = vpop.f32.mrb[50].mxu0 }
 0x15c   :  { %v797_v28 = vpop.f32.mrb[36].mxu1  ;;  %v1003_v39 = vpop.f32.mrb[51].mxu0 }
 0x15d   :  { %v798_v29 = vadd.f32 %v1766_v45, %v797_v28  ;;  %v799_v30 = vpop.f32.mrb[37].mxu1 }
 0x15e   :  { %v800_v31 = vpop.f32.mrb[38].mxu1 }
 0x15f   :  { %v975_v32 = vadd.f32 %v974_v63, %v798_v29  ;;  %v801_v33 = vadd.f32 %v1766_v45, %v800_v31  ;;  %v802_v34 = vpop.f32.mrb[39].mxu1 }
 0x161   :  { %1064 = vst.msk [vmem:[%s1951_s3 + $0x90] sm:$0xff] %vm1045_vm1, %v975_v32  ;;  %v978_v37 = vadd.f32 %v977_v2, %v801_v33  ;;  %v1006_v48 = vpop.f32.mrb[52].mxu0 }
 0x162   :  { %v1008_v49 = vpop.f32.mrb[53].mxu0 }
 0x163   :  { %1065 = vst.msk [vmem:[%s1951_s3 + $0x98] sm:$0xff] %vm1045_vm1, %v978_v37  ;;  %v1009_v51 = vpop.f32.mrb[54].mxu0 }
 0x164   :  { %v805_v40 = vpop.f32.mrb[40].mxu1  ;;  %v1011_v52 = vpop.f32.mrb[55].mxu0 }
 0x165   :  { %v806_v41 = vadd.f32 %v1766_v45, %v805_v40  ;;  %v807_v42 = vpop.f32.mrb[41].mxu1 }
 0x166   :  { %v808_v43 = vpop.f32.mrb[42].mxu1 }
 0x167   :  { %v983_v44 = vadd.f32 %v982_v11, %v806_v41  ;;  %v809_v46 = vadd.f32 %v1766_v45, %v808_v43  ;;  %v810_v47 = vpop.f32.mrb[43].mxu1 }
 0x169   :  { %1066 = vst.msk [vmem:[%s1951_s3 + $0xa0] sm:$0xff] %vm1045_vm1, %v983_v44  ;;  %v986_v50 = vadd.f32 %v985_v14, %v809_v46  ;;  %v1014_v60 = vpop.f32.mrb[56].mxu0 }
 0x16a   :  { %v1016_v61 = vpop.f32.mrb[57].mxu0 }
 0x16b   :  { %1067 = vst.msk [vmem:[%s1951_s3 + $0xa8] sm:$0xff] %vm1045_vm1, %v986_v50  ;;  %v1017_v63 = vpop.f32.mrb[58].mxu0 }
 0x16c   :  { %v813_v53 = vpop.f32.mrb[44].mxu1  ;;  %v1019_v0 = vpop.f32.mrb[59].mxu0 }
 0x16d   :  { %v814_v54 = vadd.f32 %v1766_v45, %v813_v53  ;;  %v815_v55 = vpop.f32.mrb[45].mxu1 }
 0x16e   :  { %v816_v56 = vpop.f32.mrb[46].mxu1 }
 0x16f   :  { %v991_v57 = vadd.f32 %v990_v23, %v814_v54  ;;  %v817_v58 = vadd.f32 %v1766_v45, %v816_v56  ;;  %v818_v59 = vpop.f32.mrb[47].mxu1 }
 0x171   :  { %1068 = vst.msk [vmem:[%s1951_s3 + $0xb0] sm:$0xff] %vm1045_vm1, %v991_v57  ;;  %v994_v62 = vadd.f32 %v993_v26, %v817_v58  ;;  %v1022_v8 = vpop.f32.mrb[60].mxu0 }
 0x172   :  { %v1024_v9 = vpop.f32.mrb[61].mxu0 }
 0x173   :  { %1069 = vst.msk [vmem:[%s1951_s3 + $0xb8] sm:$0xff] %vm1045_vm1, %v994_v62  ;;  %v1025_v11 = vpop.f32.mrb[62].mxu0 }
 0x174   :  { %v821_v1 = vpop.f32.mrb[48].mxu1  ;;  %v1027_v12 = vpop.f32.mrb[63].mxu0 }
 0x175   :  { %v822_v2 = vadd.f32 %v1766_v45, %v821_v1  ;;  %v823_v3 = vpop.f32.mrb[49].mxu1 }
 0x176   :  { %v824_v4 = vpop.f32.mrb[50].mxu1 }
 0x177   :  { %v999_v5 = vadd.f32 %v998_v35, %v822_v2  ;;  %v825_v6 = vadd.f32 %v1766_v45, %v824_v4  ;;  %v826_v7 = vpop.f32.mrb[51].mxu1 }
 0x179   :  { %1070 = vst.msk [vmem:[%s1951_s3 + $0xc0] sm:$0xff] %vm1045_vm1, %v999_v5  ;;  %v1002_v10 = vadd.f32 %v1001_v38, %v825_v6  ;;  %v1030_v20 = vpop.f32.mrb[64].mxu0 }
 0x17a   :  { %v1032_v21 = vpop.f32.mrb[65].mxu0 }
 0x17b   :  { %1071 = vst.msk [vmem:[%s1951_s3 + $0xc8] sm:$0xff] %vm1045_vm1, %v1002_v10  ;;  %v1033_v23 = vpop.f32.mrb[66].mxu0 }
 0x17c   :  { %v829_v13 = vpop.f32.mrb[52].mxu1  ;;  %v1035_v24 = vpop.f32.mrb[67].mxu0 }
 0x17d   :  { %v830_v14 = vadd.f32 %v1766_v45, %v829_v13  ;;  %v831_v15 = vpop.f32.mrb[53].mxu1 }
 0x17e   :  { %v832_v16 = vpop.f32.mrb[54].mxu1 }
 0x17f   :  { %v1007_v17 = vadd.f32 %v1006_v48, %v830_v14  ;;  %v833_v18 = vadd.f32 %v1766_v45, %v832_v16  ;;  %v834_v19 = vpop.f32.mrb[55].mxu1 }
 0x181   :  { %1072 = vst.msk [vmem:[%s1951_s3 + $0xd0] sm:$0xff] %vm1045_vm1, %v1007_v17  ;;  %v1010_v22 = vadd.f32 %v1009_v51, %v833_v18  ;;  %v1038_v32 = vpop.f32.mrb[68].mxu0 }
 0x182   :  { %v1040_v33 = vpop.f32.mrb[69].mxu0 }
 0x183   :  { %1073 = vst.msk [vmem:[%s1951_s3 + $0xd8] sm:$0xff] %vm1045_vm1, %v1010_v22  ;;  %v1041_v35 = vpop.f32.mrb[70].mxu0 }
 0x184   :  { %v837_v25 = vpop.f32.mrb[56].mxu1  ;;  %v1043_v36 = vpop.f32.mrb[71].mxu0 }
 0x185   :  { %v838_v26 = vadd.f32 %v1766_v45, %v837_v25  ;;  %v839_v27 = vpop.f32.mrb[57].mxu1 }
 0x186   :  { %v840_v28 = vpop.f32.mrb[58].mxu1 }
 0x187   :  { %v1015_v29 = vadd.f32 %v1014_v60, %v838_v26  ;;  %v841_v30 = vadd.f32 %v1766_v45, %v840_v28  ;;  %v842_v31 = vpop.f32.mrb[59].mxu1 }
 0x189   :  { %1074 = vst.msk [vmem:[%s1951_s3 + $0xe0] sm:$0xff] %vm1045_vm1, %v1015_v29  ;;  %v1018_v34 = vadd.f32 %v1017_v63, %v841_v30 }
 0x18b   :  { %1075 = vst.msk [vmem:[%s1951_s3 + $0xe8] sm:$0xff] %vm1045_vm1, %v1018_v34 }
 0x18c   :  { %v845_v37 = vpop.f32.mrb[60].mxu1 }
 0x18d   :  { %v846_v38 = vadd.f32 %v1766_v45, %v845_v37  ;;  %v847_v39 = vpop.f32.mrb[61].mxu1 }
 0x18e   :  { %v848_v40 = vpop.f32.mrb[62].mxu1 }
 0x18f   :  { %v1023_v41 = vadd.f32 %v1022_v8, %v846_v38  ;;  %v849_v42 = vadd.f32 %v1766_v45, %v848_v40  ;;  %v850_v43 = vpop.f32.mrb[63].mxu1 }
 0x191   :  { %1076 = vst.msk [vmem:[%s1951_s3 + $0xf0] sm:$0xff] %vm1045_vm1, %v1023_v41  ;;  %v1026_v44 = vadd.f32 %v1025_v11, %v849_v42 }
 0x193   :  { %1077 = vst.msk [vmem:[%s1951_s3 + $0xf8] sm:$0xff] %vm1045_vm1, %v1026_v44 }
 0x194   :  { %v853_v46 = vpop.f32.mrb[64].mxu1 }
 0x195   :  { %v854_v47 = vadd.f32 %v1766_v45, %v853_v46  ;;  %v855_v48 = vpop.f32.mrb[65].mxu1 }
 0x196   :  { %v856_v49 = vpop.f32.mrb[66].mxu1 }
 0x197   :  { %v1031_v50 = vadd.f32 %v1030_v20, %v854_v47  ;;  %v857_v51 = vadd.f32 %v1766_v45, %v856_v49  ;;  %v858_v52 = vpop.f32.mrb[67].mxu1 }
 0x199   :  { %1078 = vst.msk [vmem:[%s1951_s3 + $0x100] sm:$0xff] %vm1045_vm1, %v1031_v50  ;;  %v1034_v53 = vadd.f32 %v1033_v23, %v857_v51 }
 0x19b   :  { %1079 = vst.msk [vmem:[%s1951_s3 + $0x108] sm:$0xff] %vm1045_vm1, %v1034_v53 }
 0x19c   :  { %v861_v54 = vpop.f32.mrb[68].mxu1 }
 0x19d   :  { %v862_v55 = vadd.f32 %v1766_v45, %v861_v54  ;;  %v863_v56 = vpop.f32.mrb[69].mxu1 }
 0x19e   :  { %v864_v57 = vpop.f32.mrb[70].mxu1 }
 0x19f   :  { %v1039_v58 = vadd.f32 %v1038_v32, %v862_v55  ;;  %v865_v59 = vadd.f32 %v1766_v45, %v864_v57  ;;  %v866_v60 = vpop.f32.mrb[71].mxu1 }
 0x1a1   :  { %1080 = vst.msk [vmem:[%s1951_s3 + $0x110] sm:$0xff] %vm1045_vm1, %v1039_v58  ;;  %v1042_v61 = vadd.f32 %v1041_v35, %v865_v59 }
 0x1a3   :  { %1081 = vst.msk [vmem:[%s1951_s3 + $0x118] sm:$0xff] %vm1045_vm1, %v1042_v61 }

// kernel: net_forward.21
= control target key start
LH: loop header
LB: loop body
LE: loop exit
PB: predicated region body
PF: predicated region fallthrough
CT: control target
= control target key end

     0   :  { %v711_v0 = vmov 0   ;;  %vm292_vm0 = vcmask 130048   ;;  %vm524_vm1 = vcmask 195584   ;;  %s1070_s1 = inlined_call_operand.vmem [shape: bf16[144,24], index: 1, kind: input, shape index: {}]   ;;  %s1071_s0 = inlined_call_operand.vmem [shape: bf16[288,144], index: 0, kind: input, shape index: {}]   ;;  %s1072_s2 = inlined_call_operand.vmem [shape: f32[1,24], index: 2, kind: input, shape index: {}]   ;;  %s1073_s3 = inlined_call_operand.vmem [shape: f32[288,24], index: 3, kind: output, shape index: {}]  }
   0x1   :  { %347 = vmatprep.subr.bf16.mxu0 %v711_v0  ;;  %629 = vmatprep.subr.bf16.mxu1 %v711_v0  ;;  %v648_v1 = vld [vmem:[%s1070_s1] sm:$0xff]   ;;  %v649_v2 = vld [vmem:[%s1070_s1 + $0x8] sm:$0xff]   ;;  %v650_v3 = vld [vmem:[%s1070_s1 + $0x10] sm:$0xff]  }
   0x2   :  { %348 = vmatpush1.bf16.msra.mxu0 %v648_v1  ;;  %638 = vmatpush1.bf16.msra.mxu1 %v648_v1  ;;  %v651_v4 = vld [vmem:[%s1070_s1 + $0x18] sm:$0xff]   ;;  %v659_v5 = vld [vmem:[%s1071_s0 + $0x4] ss:$8 sps:$4 sm:$0xff]   ;;  %v654_v9 = vld [vmem:[%s1070_s1 + $0x30] sm:$0xff]  }
   0x3   :  { %349 = vmatprep.subr.bf16.mxu0 %v711_v0  ;;  %630 = vmatprep.subr.bf16.mxu1 %v711_v0  ;;  %v662_v6 = vld [vmem:[%s1071_s0 + $0x94] ss:$8 sps:$4 sm:$0xff]   ;;  %v652_v7 = vld [vmem:[%s1070_s1 + $0x20] sm:$0xff]   ;;  %v653_v8 = vld [vmem:[%s1070_s1 + $0x28] sm:$0xff]  }
   0x4   :  { %611 = vmatprep.mubr.msk.bf16.mxu0 %vm292_vm0, %v659_v5  ;;  %620 = vmatprep.mubr.msk.bf16.mxu1 %vm292_vm0, %v662_v6  ;;  %v655_v10 = vld [vmem:[%s1070_s1 + $0x38] sm:$0xff]   ;;  %v656_v11 = vld [vmem:[%s1070_s1 + $0x40] sm:$0xff]  }
   0x5   :  { %v657_v12 = vld [vmem:[%s1071_s0] ss:$8 sps:$4 sm:$0xff]   ;;  %v660_v13 = vld [vmem:[%s1071_s0 + $0x90] ss:$8 sps:$4 sm:$0xff]   ;;  %v663_v14 = vld [vmem:[%s1071_s0 + $0x14] ss:$8 sps:$4 sm:$0xff]  }
   0x6   :  { %350 = vmatpush1.bf16.msra.mxu0 %v649_v2  ;;  %639 = vmatpush1.bf16.msra.mxu1 %v649_v2  ;;  %v665_v15 = vld [vmem:[%s1071_s0 + $0xa4] ss:$8 sps:$4 sm:$0xff]   ;;  %v667_v16 = vld [vmem:[%s1071_s0 + $0x10] ss:$8 sps:$4 sm:$0xff]   ;;  %v668_v17 = vld [vmem:[%s1071_s0 + $0xa0] ss:$8 sps:$4 sm:$0xff]  }
   0x7   :  { %351 = vmatprep.subr.bf16.mxu0 %v711_v0  ;;  %631 = vmatprep.subr.bf16.mxu1 %v711_v0  ;;  %v669_v18 = vld [vmem:[%s1071_s0 + $0x24] ss:$8 sps:$4 sm:$0xff]   ;;  %v671_v19 = vld [vmem:[%s1071_s0 + $0xb4] ss:$8 sps:$4 sm:$0xff]   ;;  %v673_v20 = vld [vmem:[%s1071_s0 + $0x20] ss:$8 sps:$4 sm:$0xff]  }
   0x8   :  { %v674_v21 = vld [vmem:[%s1071_s0 + $0xb0] ss:$8 sps:$4 sm:$0xff]   ;;  %v675_v22 = vld [vmem:[%s1071_s0 + $0x34] ss:$8 sps:$4 sm:$0xff]   ;;  %v677_v23 = vld [vmem:[%s1071_s0 + $0xc4] ss:$8 sps:$4 sm:$0xff]  }
   0x9   :  { %v679_v24 = vld [vmem:[%s1071_s0 + $0x30] ss:$8 sps:$4 sm:$0xff]   ;;  %v680_v25 = vld [vmem:[%s1071_s0 + $0xc0] ss:$8 sps:$4 sm:$0xff]   ;;  %v681_v26 = vld [vmem:[%s1071_s0 + $0x44] ss:$8 sps:$4 sm:$0xff]  }
   0xa   :  { %352 = vmatpush1.bf16.msra.mxu0 %v650_v3  ;;  %640 = vmatpush1.bf16.msra.mxu1 %v650_v3  ;;  %v683_v27 = vld [vmem:[%s1071_s0 + $0xd4] ss:$8 sps:$4 sm:$0xff]   ;;  %v685_v28 = vld [vmem:[%s1071_s0 + $0x40] ss:$8 sps:$4 sm:$0xff]   ;;  %v686_v29 = vld [vmem:[%s1071_s0 + $0xd0] ss:$8 sps:$4 sm:$0xff]  }
   0xb   :  { %353 = vmatprep.subr.bf16.mxu0 %v711_v0  ;;  %632 = vmatprep.subr.bf16.mxu1 %v711_v0  ;;  %v687_v30 = vld [vmem:[%s1071_s0 + $0x54] ss:$8 sps:$4 sm:$0xff]   ;;  %v689_v31 = vld [vmem:[%s1071_s0 + $0xe4] ss:$8 sps:$4 sm:$0xff]   ;;  %v691_v32 = vld [vmem:[%s1071_s0 + $0x50] ss:$8 sps:$4 sm:$0xff]  }
   0xc   :  { %v692_v33 = vld [vmem:[%s1071_s0 + $0xe0] ss:$8 sps:$4 sm:$0xff]   ;;  %v693_v34 = vld [vmem:[%s1071_s0 + $0x64] ss:$8 sps:$4 sm:$0xff]   ;;  %v695_v35 = vld [vmem:[%s1071_s0 + $0xf4] ss:$8 sps:$4 sm:$0xff]  }
   0xd   :  { %v697_v36 = vld [vmem:[%s1071_s0 + $0x60] ss:$8 sps:$4 sm:$0xff]   ;;  %v698_v37 = vld [vmem:[%s1071_s0 + $0xf0] ss:$8 sps:$4 sm:$0xff]   ;;  %v699_v38 = vld [vmem:[%s1071_s0 + $0x74] ss:$8 sps:$4 sm:$0xff]  }
   0xe   :  { %354 = vmatpush1.bf16.msra.mxu0 %v651_v4  ;;  %641 = vmatpush1.bf16.msra.mxu1 %v651_v4  ;;  %v701_v39 = vld [vmem:[%s1071_s0 + $0x104] ss:$8 sps:$4 sm:$0xff]   ;;  %v703_v40 = vld [vmem:[%s1071_s0 + $0x70] ss:$8 sps:$4 sm:$0xff]   ;;  %v704_v41 = vld [vmem:[%s1071_s0 + $0x100] ss:$8 sps:$4 sm:$0xff]  }
   0xf   :  { %355 = vmatprep.subr.bf16.mxu0 %v711_v0  ;;  %633 = vmatprep.subr.bf16.mxu1 %v711_v0  ;;  %v705_v42 = vld [vmem:[%s1071_s0 + $0x84] ss:$8 sps:$4 sm:$0xff]   ;;  %v707_v43 = vld [vmem:[%s1071_s0 + $0x114] ss:$8 sps:$4 sm:$0xff]   ;;  %v709_v44 = vld [vmem:[%s1071_s0 + $0x80] ss:$8 sps:$4 sm:$0xff]  }
  0x10   :  { %v710_v45 = vld [vmem:[%s1071_s0 + $0x110] ss:$8 sps:$4 sm:$0xff]   ;;  %v888_v46 = vld [vmem:[%s1072_s2] ss:$0 sm:$0xff] }
  0x12   :  { %356 = vmatpush1.bf16.msra.mxu0 %v652_v7  ;;  %642 = vmatpush1.bf16.msra.mxu1 %v652_v7 }
  0x13   :  { %357 = vmatprep.subr.bf16.mxu0 %v711_v0  ;;  %634 = vmatprep.subr.bf16.mxu1 %v711_v0 }
  0x16   :  { %358 = vmatpush1.bf16.msra.mxu0 %v653_v8  ;;  %643 = vmatpush1.bf16.msra.mxu1 %v653_v8 }
  0x17   :  { %359 = vmatprep.subr.bf16.mxu0 %v711_v0  ;;  %635 = vmatprep.subr.bf16.mxu1 %v711_v0 }
  0x1a   :  { %360 = vmatpush1.bf16.msra.mxu0 %v654_v9  ;;  %644 = vmatpush1.bf16.msra.mxu1 %v654_v9 }
  0x1b   :  { %361 = vmatprep.subr.bf16.mxu0 %v711_v0  ;;  %636 = vmatprep.subr.bf16.mxu1 %v711_v0 }
  0x1e   :  { %362 = vmatpush1.bf16.msra.mxu0 %v655_v10  ;;  %645 = vmatpush1.bf16.msra.mxu1 %v655_v10 }
  0x1f   :  { %363 = vmatprep.subr.bf16.mxu0 %v711_v0  ;;  %637 = vmatprep.subr.bf16.mxu1 %v711_v0 }
  0x22   :  { %364 = vmatpush1.bf16.msra.mxu0 %v656_v11  ;;  %646 = vmatpush1.bf16.msra.mxu1 %v656_v11 }
  0x25   :  { %380 = vmatmul.mubr.bf16.vlgmr.msra.gmra.mrb[0].mxu0 %v657_v12  ;;  %452 = vmatmul.mubr.bf16.vlgmr.msra.gmra.mrb[0].mxu1 %v660_v13 }
  0x26   :  { %612 = vmatprep.mubr.msk.bf16.mxu0 %vm292_vm0, %v663_v14  ;;  %621 = vmatprep.mubr.msk.bf16.mxu1 %vm292_vm0, %v665_v15 }
  0x2d   :  { %388 = vmatmul.mubr.bf16.gmra.mrb[4].mxu0 %v667_v16  ;;  %460 = vmatmul.mubr.bf16.gmra.mrb[4].mxu1 %v668_v17 }
  0x2e   :  { %613 = vmatprep.mubr.msk.bf16.mxu0 %vm292_vm0, %v669_v18  ;;  %622 = vmatprep.mubr.msk.bf16.mxu1 %vm292_vm0, %v671_v19 }
  0x35   :  { %396 = vmatmul.mubr.bf16.gmra.mrb[8].mxu0 %v673_v20  ;;  %468 = vmatmul.mubr.bf16.gmra.mrb[8].mxu1 %v674_v21 }
  0x36   :  { %614 = vmatprep.mubr.msk.bf16.mxu0 %vm292_vm0, %v675_v22  ;;  %623 = vmatprep.mubr.msk.bf16.mxu1 %vm292_vm0, %v677_v23 }
  0x3d   :  { %404 = vmatmul.mubr.bf16.gmra.mrb[12].mxu0 %v679_v24  ;;  %476 = vmatmul.mubr.bf16.gmra.mrb[12].mxu1 %v680_v25 }
  0x3e   :  { %615 = vmatprep.mubr.msk.bf16.mxu0 %vm292_vm0, %v681_v26  ;;  %624 = vmatprep.mubr.msk.bf16.mxu1 %vm292_vm0, %v683_v27 }
  0x45   :  { %412 = vmatmul.mubr.bf16.gmra.mrb[16].mxu0 %v685_v28  ;;  %484 = vmatmul.mubr.bf16.gmra.mrb[16].mxu1 %v686_v29 }
  0x46   :  { %616 = vmatprep.mubr.msk.bf16.mxu0 %vm292_vm0, %v687_v30  ;;  %625 = vmatprep.mubr.msk.bf16.mxu1 %vm292_vm0, %v689_v31 }
  0x4d   :  { %420 = vmatmul.mubr.bf16.gmra.mrb[20].mxu0 %v691_v32  ;;  %492 = vmatmul.mubr.bf16.gmra.mrb[20].mxu1 %v692_v33 }
  0x4e   :  { %617 = vmatprep.mubr.msk.bf16.mxu0 %vm292_vm0, %v693_v34  ;;  %626 = vmatprep.mubr.msk.bf16.mxu1 %vm292_vm0, %v695_v35 }
  0x55   :  { %428 = vmatmul.mubr.bf16.gmra.mrb[24].mxu0 %v697_v36  ;;  %500 = vmatmul.mubr.bf16.gmra.mrb[24].mxu1 %v698_v37 }
  0x56   :  { %618 = vmatprep.mubr.msk.bf16.mxu0 %vm292_vm0, %v699_v38  ;;  %627 = vmatprep.mubr.msk.bf16.mxu1 %vm292_vm0, %v701_v39 }
  0x5d   :  { %436 = vmatmul.mubr.bf16.gmra.mrb[28].mxu0 %v703_v40  ;;  %508 = vmatmul.mubr.bf16.gmra.mrb[28].mxu1 %v704_v41 }
  0x5e   :  { %619 = vmatprep.mubr.msk.bf16.mxu0 %vm292_vm0, %v705_v42  ;;  %628 = vmatprep.mubr.msk.bf16.mxu1 %vm292_vm0, %v707_v43 }
  0x65   :  { %444 = vmatmul.mubr.bf16.gmra.mrb[32].mxu0 %v709_v44  ;;  %516 = vmatmul.mubr.bf16.gmra.mrb[32].mxu1 %v710_v45 }
  0xf8   :  { %v381_v47 = vpop.f32.mrb[0].mxu0  ;;  %v453_v48 = vpop.f32.mrb[0].mxu1 }
  0xf9   :  { %v382_v49 = vadd.f32 %v888_v46, %v381_v47  ;;  %v454_v50 = vadd.f32 %v888_v46, %v453_v48  ;;  %v383_v51 = vpop.f32.mrb[1].mxu0  ;;  %v455_v52 = vpop.f32.mrb[1].mxu1 }
  0xfa   :  { %v384_v53 = vpop.f32.mrb[2].mxu0  ;;  %v456_v54 = vpop.f32.mrb[2].mxu1 }
  0xfb   :  { %525 = vst.msk [vmem:[%s1073_s3] sm:$0xff] %vm524_vm1, %v382_v49  ;;  %543 = vst.msk [vmem:[%s1073_s3 + $0x90] sm:$0xff] %vm524_vm1, %v454_v50  ;;  %v385_v55 = vadd.f32 %v888_v46, %v384_v53  ;;  %v457_v56 = vadd.f32 %v888_v46, %v456_v54  ;;  %v386_v57 = vpop.f32.mrb[3].mxu0  ;;  %v458_v58 = vpop.f32.mrb[3].mxu1 }
  0xfd   :  { %526 = vst.msk [vmem:[%s1073_s3 + $0x8] sm:$0xff] %vm524_vm1, %v385_v55  ;;  %544 = vst.msk [vmem:[%s1073_s3 + $0x98] sm:$0xff] %vm524_vm1, %v457_v56 }
 0x100   :  { %v389_v59 = vpop.f32.mrb[4].mxu0  ;;  %v461_v60 = vpop.f32.mrb[4].mxu1 }
 0x101   :  { %v390_v61 = vadd.f32 %v888_v46, %v389_v59  ;;  %v462_v62 = vadd.f32 %v888_v46, %v461_v60  ;;  %v391_v63 = vpop.f32.mrb[5].mxu0  ;;  %v463_v0 = vpop.f32.mrb[5].mxu1 }
 0x102   :  { %v392_v1 = vpop.f32.mrb[6].mxu0  ;;  %v464_v2 = vpop.f32.mrb[6].mxu1 }
 0x103   :  { %527 = vst.msk [vmem:[%s1073_s3 + $0x10] sm:$0xff] %vm524_vm1, %v390_v61  ;;  %545 = vst.msk [vmem:[%s1073_s3 + $0xa0] sm:$0xff] %vm524_vm1, %v462_v62  ;;  %v393_v3 = vadd.f32 %v888_v46, %v392_v1  ;;  %v465_v4 = vadd.f32 %v888_v46, %v464_v2  ;;  %v394_v5 = vpop.f32.mrb[7].mxu0  ;;  %v466_v6 = vpop.f32.mrb[7].mxu1 }
 0x105   :  { %528 = vst.msk [vmem:[%s1073_s3 + $0x18] sm:$0xff] %vm524_vm1, %v393_v3  ;;  %546 = vst.msk [vmem:[%s1073_s3 + $0xa8] sm:$0xff] %vm524_vm1, %v465_v4 }
 0x108   :  { %v397_v7 = vpop.f32.mrb[8].mxu0  ;;  %v469_v8 = vpop.f32.mrb[8].mxu1 }
 0x109   :  { %v398_v9 = vadd.f32 %v888_v46, %v397_v7  ;;  %v470_v10 = vadd.f32 %v888_v46, %v469_v8  ;;  %v399_v11 = vpop.f32.mrb[9].mxu0  ;;  %v471_v12 = vpop.f32.mrb[9].mxu1 }
 0x10a   :  { %v400_v13 = vpop.f32.mrb[10].mxu0  ;;  %v472_v14 = vpop.f32.mrb[10].mxu1 }
 0x10b   :  { %529 = vst.msk [vmem:[%s1073_s3 + $0x20] sm:$0xff] %vm524_vm1, %v398_v9  ;;  %547 = vst.msk [vmem:[%s1073_s3 + $0xb0] sm:$0xff] %vm524_vm1, %v470_v10  ;;  %v401_v15 = vadd.f32 %v888_v46, %v400_v13  ;;  %v473_v16 = vadd.f32 %v888_v46, %v472_v14  ;;  %v402_v17 = vpop.f32.mrb[11].mxu0  ;;  %v474_v18 = vpop.f32.mrb[11].mxu1 }
 0x10d   :  { %530 = vst.msk [vmem:[%s1073_s3 + $0x28] sm:$0xff] %vm524_vm1, %v401_v15  ;;  %548 = vst.msk [vmem:[%s1073_s3 + $0xb8] sm:$0xff] %vm524_vm1, %v473_v16 }
 0x110   :  { %v405_v19 = vpop.f32.mrb[12].mxu0  ;;  %v477_v20 = vpop.f32.mrb[12].mxu1 }
 0x111   :  { %v406_v21 = vadd.f32 %v888_v46, %v405_v19  ;;  %v478_v22 = vadd.f32 %v888_v46, %v477_v20  ;;  %v407_v23 = vpop.f32.mrb[13].mxu0  ;;  %v479_v24 = vpop.f32.mrb[13].mxu1 }
 0x112   :  { %v408_v25 = vpop.f32.mrb[14].mxu0  ;;  %v480_v26 = vpop.f32.mrb[14].mxu1 }
 0x113   :  { %531 = vst.msk [vmem:[%s1073_s3 + $0x30] sm:$0xff] %vm524_vm1, %v406_v21  ;;  %549 = vst.msk [vmem:[%s1073_s3 + $0xc0] sm:$0xff] %vm524_vm1, %v478_v22  ;;  %v409_v27 = vadd.f32 %v888_v46, %v408_v25  ;;  %v481_v28 = vadd.f32 %v888_v46, %v480_v26  ;;  %v410_v29 = vpop.f32.mrb[15].mxu0  ;;  %v482_v30 = vpop.f32.mrb[15].mxu1 }
 0x115   :  { %532 = vst.msk [vmem:[%s1073_s3 + $0x38] sm:$0xff] %vm524_vm1, %v409_v27  ;;  %550 = vst.msk [vmem:[%s1073_s3 + $0xc8] sm:$0xff] %vm524_vm1, %v481_v28 }
 0x118   :  { %v413_v31 = vpop.f32.mrb[16].mxu0  ;;  %v485_v32 = vpop.f32.mrb[16].mxu1 }
 0x119   :  { %v414_v33 = vadd.f32 %v888_v46, %v413_v31  ;;  %v486_v34 = vadd.f32 %v888_v46, %v485_v32  ;;  %v415_v35 = vpop.f32.mrb[17].mxu0  ;;  %v487_v36 = vpop.f32.mrb[17].mxu1 }
 0x11a   :  { %v416_v37 = vpop.f32.mrb[18].mxu0  ;;  %v488_v38 = vpop.f32.mrb[18].mxu1 }
 0x11b   :  { %533 = vst.msk [vmem:[%s1073_s3 + $0x40] sm:$0xff] %vm524_vm1, %v414_v33  ;;  %551 = vst.msk [vmem:[%s1073_s3 + $0xd0] sm:$0xff] %vm524_vm1, %v486_v34  ;;  %v417_v39 = vadd.f32 %v888_v46, %v416_v37  ;;  %v489_v40 = vadd.f32 %v888_v46, %v488_v38  ;;  %v418_v41 = vpop.f32.mrb[19].mxu0  ;;  %v490_v42 = vpop.f32.mrb[19].mxu1 }
 0x11d   :  { %534 = vst.msk [vmem:[%s1073_s3 + $0x48] sm:$0xff] %vm524_vm1, %v417_v39  ;;  %552 = vst.msk [vmem:[%s1073_s3 + $0xd8] sm:$0xff] %vm524_vm1, %v489_v40 }
 0x120   :  { %v421_v43 = vpop.f32.mrb[20].mxu0  ;;  %v493_v44 = vpop.f32.mrb[20].mxu1 }
 0x121   :  { %v422_v45 = vadd.f32 %v888_v46, %v421_v43  ;;  %v494_v47 = vadd.f32 %v888_v46, %v493_v44  ;;  %v423_v48 = vpop.f32.mrb[21].mxu0  ;;  %v495_v49 = vpop.f32.mrb[21].mxu1 }
 0x122   :  { %v424_v50 = vpop.f32.mrb[22].mxu0  ;;  %v496_v51 = vpop.f32.mrb[22].mxu1 }
 0x123   :  { %535 = vst.msk [vmem:[%s1073_s3 + $0x50] sm:$0xff] %vm524_vm1, %v422_v45  ;;  %553 = vst.msk [vmem:[%s1073_s3 + $0xe0] sm:$0xff] %vm524_vm1, %v494_v47  ;;  %v425_v52 = vadd.f32 %v888_v46, %v424_v50  ;;  %v497_v53 = vadd.f32 %v888_v46, %v496_v51  ;;  %v426_v54 = vpop.f32.mrb[23].mxu0  ;;  %v498_v55 = vpop.f32.mrb[23].mxu1 }
 0x125   :  { %536 = vst.msk [vmem:[%s1073_s3 + $0x58] sm:$0xff] %vm524_vm1, %v425_v52  ;;  %554 = vst.msk [vmem:[%s1073_s3 + $0xe8] sm:$0xff] %vm524_vm1, %v497_v53 }
 0x128   :  { %v429_v56 = vpop.f32.mrb[24].mxu0  ;;  %v501_v57 = vpop.f32.mrb[24].mxu1 }
 0x129   :  { %v430_v58 = vadd.f32 %v888_v46, %v429_v56  ;;  %v502_v59 = vadd.f32 %v888_v46, %v501_v57  ;;  %v431_v60 = vpop.f32.mrb[25].mxu0  ;;  %v503_v61 = vpop.f32.mrb[25].mxu1 }
 0x12a   :  { %v432_v62 = vpop.f32.mrb[26].mxu0  ;;  %v504_v63 = vpop.f32.mrb[26].mxu1 }
 0x12b   :  { %537 = vst.msk [vmem:[%s1073_s3 + $0x60] sm:$0xff] %vm524_vm1, %v430_v58  ;;  %555 = vst.msk [vmem:[%s1073_s3 + $0xf0] sm:$0xff] %vm524_vm1, %v502_v59  ;;  %v433_v0 = vadd.f32 %v888_v46, %v432_v62  ;;  %v505_v1 = vadd.f32 %v888_v46, %v504_v63  ;;  %v434_v2 = vpop.f32.mrb[27].mxu0  ;;  %v506_v3 = vpop.f32.mrb[27].mxu1 }
 0x12d   :  { %538 = vst.msk [vmem:[%s1073_s3 + $0x68] sm:$0xff] %vm524_vm1, %v433_v0  ;;  %556 = vst.msk [vmem:[%s1073_s3 + $0xf8] sm:$0xff] %vm524_vm1, %v505_v1 }
 0x130   :  { %v437_v4 = vpop.f32.mrb[28].mxu0  ;;  %v509_v5 = vpop.f32.mrb[28].mxu1 }
 0x131   :  { %v438_v6 = vadd.f32 %v888_v46, %v437_v4  ;;  %v510_v7 = vadd.f32 %v888_v46, %v509_v5  ;;  %v439_v8 = vpop.f32.mrb[29].mxu0  ;;  %v511_v9 = vpop.f32.mrb[29].mxu1 }
 0x132   :  { %v440_v10 = vpop.f32.mrb[30].mxu0  ;;  %v512_v11 = vpop.f32.mrb[30].mxu1 }
 0x133   :  { %539 = vst.msk [vmem:[%s1073_s3 + $0x70] sm:$0xff] %vm524_vm1, %v438_v6  ;;  %557 = vst.msk [vmem:[%s1073_s3 + $0x100] sm:$0xff] %vm524_vm1, %v510_v7  ;;  %v441_v12 = vadd.f32 %v888_v46, %v440_v10  ;;  %v513_v13 = vadd.f32 %v888_v46, %v512_v11  ;;  %v442_v14 = vpop.f32.mrb[31].mxu0  ;;  %v514_v15 = vpop.f32.mrb[31].mxu1 }
 0x135   :  { %540 = vst.msk [vmem:[%s1073_s3 + $0x78] sm:$0xff] %vm524_vm1, %v441_v12  ;;  %558 = vst.msk [vmem:[%s1073_s3 + $0x108] sm:$0xff] %vm524_vm1, %v513_v13 }
 0x138   :  { %v445_v16 = vpop.f32.mrb[32].mxu0  ;;  %v517_v17 = vpop.f32.mrb[32].mxu1 }
 0x139   :  { %v446_v18 = vadd.f32 %v888_v46, %v445_v16  ;;  %v518_v19 = vadd.f32 %v888_v46, %v517_v17  ;;  %v447_v20 = vpop.f32.mrb[33].mxu0  ;;  %v519_v21 = vpop.f32.mrb[33].mxu1 }
 0x13a   :  { %v448_v22 = vpop.f32.mrb[34].mxu0  ;;  %v520_v23 = vpop.f32.mrb[34].mxu1 }
 0x13b   :  { %541 = vst.msk [vmem:[%s1073_s3 + $0x80] sm:$0xff] %vm524_vm1, %v446_v18  ;;  %559 = vst.msk [vmem:[%s1073_s3 + $0x110] sm:$0xff] %vm524_vm1, %v518_v19  ;;  %v449_v24 = vadd.f32 %v888_v46, %v448_v22  ;;  %v521_v25 = vadd.f32 %v888_v46, %v520_v23  ;;  %v450_v26 = vpop.f32.mrb[35].mxu0  ;;  %v522_v27 = vpop.f32.mrb[35].mxu1 }
 0x13d   :  { %542 = vst.msk [vmem:[%s1073_s3 + $0x88] sm:$0xff] %vm524_vm1, %v449_v24  ;;  %560 = vst.msk [vmem:[%s1073_s3 + $0x118] sm:$0xff] %vm524_vm1, %v521_v25 }

// kernel: net_forward.22
= control target key start
LH: loop header
LB: loop body
LE: loop exit
PB: predicated region body
PF: predicated region fallthrough
CT: control target
= control target key end

     0   :  { %v771_v0 = vmov 0   ;;  %vm328_vm0 = vcmask 719872   ;;  %vm383_vm1 = vcmask 1043456   ;;  %vm564_vm2 = vcmask 195584   ;;  %s1173_s1 = inlined_call_operand.vmem [shape: bf16[216,24], index: 1, kind: input, shape index: {}]   ;;  %s1174_s0 = inlined_call_operand.vmem [shape: bf16[288,216], index: 0, kind: input, shape index: {}]   ;;  %s1175_s2 = inlined_call_operand.vmem [shape: f32[1,24], index: 2, kind: input, shape index: {}]   ;;  %s1176_s3 = inlined_call_operand.vmem [shape: f32[288,24], index: 3, kind: output, shape index: {}]  }
   0x1   :  { %387 = vmatprep.subr.bf16.mxu0 %v771_v0  ;;  %674 = vmatprep.subr.bf16.mxu1 %v771_v0  ;;  %v703_v1 = vld [vmem:[%s1173_s1] sm:$0xff]   ;;  %v704_v2 = vld [vmem:[%s1173_s1 + $0x8] sm:$0xff]   ;;  %v705_v3 = vld [vmem:[%s1173_s1 + $0x10] sm:$0xff]  }
   0x2   :  { %388 = vmatpush1.bf16.msra.mxu0 %v703_v1  ;;  %688 = vmatpush1.bf16.msra.mxu1 %v703_v1  ;;  %v706_v4 = vld [vmem:[%s1173_s1 + $0x18] sm:$0xff]   ;;  %v707_v5 = vld [vmem:[%s1173_s1 + $0x20] sm:$0xff]   ;;  %v708_v8 = vld [vmem:[%s1173_s1 + $0x28] sm:$0xff]  }
   0x3   :  { %389 = vmatprep.subr.bf16.mxu0 %v771_v0  ;;  %675 = vmatprep.subr.bf16.mxu1 %v771_v0  ;;  %v719_v6 = vld [vmem:[%s1174_s0 + $0x4] ss:$8 sps:$4 sm:$0xff]   ;;  %v722_v7 = vld [vmem:[%s1174_s0 + $0x94] ss:$8 sps:$4 sm:$0xff]   ;;  %v716_v16 = vld [vmem:[%s1173_s1 + $0x68] ss:$0 sps:$4 sm:$0xff]  }
   0x4   :  { %656 = vmatprep.mubr.msk.bf16.mxu0 %vm328_vm0, %v719_v6  ;;  %665 = vmatprep.mubr.msk.bf16.mxu1 %vm328_vm0, %v722_v7  ;;  %v709_v9 = vld [vmem:[%s1173_s1 + $0x30] sm:$0xff]   ;;  %v710_v10 = vld [vmem:[%s1173_s1 + $0x38] sm:$0xff]   ;;  %v711_v11 = vld [vmem:[%s1173_s1 + $0x40] sm:$0xff]   ;;  %v385_v17 = vsel %vm383_vm1, %v716_v16, 0 }
   0x5   :  { %v712_v12 = vld [vmem:[%s1173_s1 + $0x48] sm:$0xff]   ;;  %v713_v13 = vld [vmem:[%s1173_s1 + $0x50] sm:$0xff]   ;;  %v714_v14 = vld [vmem:[%s1173_s1 + $0x58] sm:$0xff]  }
   0x6   :  { %390 = vmatpush1.bf16.msra.mxu0 %v704_v2  ;;  %689 = vmatpush1.bf16.msra.mxu1 %v704_v2  ;;  %v715_v15 = vld [vmem:[%s1173_s1 + $0x60] sm:$0xff]   ;;  %v720_v19 = vld [vmem:[%s1174_s0 + $0x90] ss:$8 sps:$4 sm:$0xff]   ;;  %v723_v20 = vld [vmem:[%s1174_s0 + $0x14] ss:$8 sps:$4 sm:$0xff]  }
   0x7   :  { %391 = vmatprep.subr.bf16.mxu0 %v771_v0  ;;  %676 = vmatprep.subr.bf16.mxu1 %v771_v0  ;;  %v717_v18 = vld [vmem:[%s1174_s0] ss:$8 sps:$4 sm:$0xff]   ;;  %v725_v21 = vld [vmem:[%s1174_s0 + $0xa4] ss:$8 sps:$4 sm:$0xff]   ;;  %v727_v22 = vld [vmem:[%s1174_s0 + $0x10] ss:$8 sps:$4 sm:$0xff]  }
   0x8   :  { %v728_v23 = vld [vmem:[%s1174_s0 + $0xa0] ss:$8 sps:$4 sm:$0xff]   ;;  %v729_v24 = vld [vmem:[%s1174_s0 + $0x24] ss:$8 sps:$4 sm:$0xff]   ;;  %v731_v25 = vld [vmem:[%s1174_s0 + $0xb4] ss:$8 sps:$4 sm:$0xff]  }
   0x9   :  { %v733_v26 = vld [vmem:[%s1174_s0 + $0x20] ss:$8 sps:$4 sm:$0xff]   ;;  %v734_v27 = vld [vmem:[%s1174_s0 + $0xb0] ss:$8 sps:$4 sm:$0xff]   ;;  %v735_v28 = vld [vmem:[%s1174_s0 + $0x34] ss:$8 sps:$4 sm:$0xff]  }
   0xa   :  { %392 = vmatpush1.bf16.msra.mxu0 %v705_v3  ;;  %690 = vmatpush1.bf16.msra.mxu1 %v705_v3  ;;  %v737_v29 = vld [vmem:[%s1174_s0 + $0xc4] ss:$8 sps:$4 sm:$0xff]   ;;  %v739_v30 = vld [vmem:[%s1174_s0 + $0x30] ss:$8 sps:$4 sm:$0xff]   ;;  %v740_v31 = vld [vmem:[%s1174_s0 + $0xc0] ss:$8 sps:$4 sm:$0xff]  }
   0xb   :  { %393 = vmatprep.subr.bf16.mxu0 %v771_v0  ;;  %677 = vmatprep.subr.bf16.mxu1 %v771_v0  ;;  %v741_v32 = vld [vmem:[%s1174_s0 + $0x44] ss:$8 sps:$4 sm:$0xff]   ;;  %v743_v33 = vld [vmem:[%s1174_s0 + $0xd4] ss:$8 sps:$4 sm:$0xff]   ;;  %v745_v34 = vld [vmem:[%s1174_s0 + $0x40] ss:$8 sps:$4 sm:$0xff]  }
   0xc   :  { %v746_v35 = vld [vmem:[%s1174_s0 + $0xd0] ss:$8 sps:$4 sm:$0xff]   ;;  %v747_v36 = vld [vmem:[%s1174_s0 + $0x54] ss:$8 sps:$4 sm:$0xff]   ;;  %v749_v37 = vld [vmem:[%s1174_s0 + $0xe4] ss:$8 sps:$4 sm:$0xff]  }
   0xd   :  { %v751_v38 = vld [vmem:[%s1174_s0 + $0x50] ss:$8 sps:$4 sm:$0xff]   ;;  %v752_v39 = vld [vmem:[%s1174_s0 + $0xe0] ss:$8 sps:$4 sm:$0xff]   ;;  %v753_v40 = vld [vmem:[%s1174_s0 + $0x64] ss:$8 sps:$4 sm:$0xff]  }
   0xe   :  { %394 = vmatpush1.bf16.msra.mxu0 %v706_v4  ;;  %691 = vmatpush1.bf16.msra.mxu1 %v706_v4  ;;  %v755_v41 = vld [vmem:[%s1174_s0 + $0xf4] ss:$8 sps:$4 sm:$0xff]   ;;  %v757_v42 = vld [vmem:[%s1174_s0 + $0x60] ss:$8 sps:$4 sm:$0xff]   ;;  %v758_v43 = vld [vmem:[%s1174_s0 + $0xf0] ss:$8 sps:$4 sm:$0xff]  }
   0xf   :  { %395 = vmatprep.subr.bf16.mxu0 %v771_v0  ;;  %678 = vmatprep.subr.bf16.mxu1 %v771_v0  ;;  %v759_v44 = vld [vmem:[%s1174_s0 + $0x74] ss:$8 sps:$4 sm:$0xff]   ;;  %v761_v45 = vld [vmem:[%s1174_s0 + $0x104] ss:$8 sps:$4 sm:$0xff]   ;;  %v763_v46 = vld [vmem:[%s1174_s0 + $0x70] ss:$8 sps:$4 sm:$0xff]  }
  0x10   :  { %v764_v47 = vld [vmem:[%s1174_s0 + $0x100] ss:$8 sps:$4 sm:$0xff]   ;;  %v765_v48 = vld [vmem:[%s1174_s0 + $0x84] ss:$8 sps:$4 sm:$0xff]   ;;  %v767_v49 = vld [vmem:[%s1174_s0 + $0x114] ss:$8 sps:$4 sm:$0xff]  }
  0x11   :  { %v769_v50 = vld [vmem:[%s1174_s0 + $0x80] ss:$8 sps:$4 sm:$0xff]   ;;  %v770_v51 = vld [vmem:[%s1174_s0 + $0x110] ss:$8 sps:$4 sm:$0xff]  }
  0x12   :  { %396 = vmatpush1.bf16.msra.mxu0 %v707_v5  ;;  %692 = vmatpush1.bf16.msra.mxu1 %v707_v5  ;;  %v991_v52 = vld [vmem:[%s1175_s2] ss:$0 sm:$0xff] }
  0x13   :  { %397 = vmatprep.subr.bf16.mxu0 %v771_v0  ;;  %679 = vmatprep.subr.bf16.mxu1 %v771_v0 }
  0x16   :  { %398 = vmatpush1.bf16.msra.mxu0 %v708_v8  ;;  %693 = vmatpush1.bf16.msra.mxu1 %v708_v8 }
  0x17   :  { %399 = vmatprep.subr.bf16.mxu0 %v771_v0  ;;  %680 = vmatprep.subr.bf16.mxu1 %v771_v0 }
  0x1a   :  { %400 = vmatpush1.bf16.msra.mxu0 %v709_v9  ;;  %694 = vmatpush1.bf16.msra.mxu1 %v709_v9 }
  0x1b   :  { %401 = vmatprep.subr.bf16.mxu0 %v771_v0  ;;  %681 = vmatprep.subr.bf16.mxu1 %v771_v0 }
  0x1e   :  { %402 = vmatpush1.bf16.msra.mxu0 %v710_v10  ;;  %695 = vmatpush1.bf16.msra.mxu1 %v710_v10 }
  0x1f   :  { %403 = vmatprep.subr.bf16.mxu0 %v771_v0  ;;  %682 = vmatprep.subr.bf16.mxu1 %v771_v0 }
  0x22   :  { %404 = vmatpush1.bf16.msra.mxu0 %v711_v11  ;;  %696 = vmatpush1.bf16.msra.mxu1 %v711_v11 }
  0x23   :  { %405 = vmatprep.subr.bf16.mxu0 %v771_v0  ;;  %683 = vmatprep.subr.bf16.mxu1 %v771_v0 }
  0x26   :  { %406 = vmatpush1.bf16.msra.mxu0 %v712_v12  ;;  %697 = vmatpush1.bf16.msra.mxu1 %v712_v12 }
  0x27   :  { %407 = vmatprep.subr.bf16.mxu0 %v771_v0  ;;  %684 = vmatprep.subr.bf16.mxu1 %v771_v0 }
  0x2a   :  { %408 = vmatpush1.bf16.msra.mxu0 %v713_v13  ;;  %698 = vmatpush1.bf16.msra.mxu1 %v713_v13 }
  0x2b   :  { %409 = vmatprep.subr.bf16.mxu0 %v771_v0  ;;  %685 = vmatprep.subr.bf16.mxu1 %v771_v0 }
  0x2e   :  { %410 = vmatpush1.bf16.msra.mxu0 %v714_v14  ;;  %699 = vmatpush1.bf16.msra.mxu1 %v714_v14 }
  0x2f   :  { %411 = vmatprep.subr.bf16.mxu0 %v771_v0  ;;  %686 = vmatprep.subr.bf16.mxu1 %v771_v0 }
  0x32   :  { %412 = vmatpush1.bf16.msra.mxu0 %v715_v15  ;;  %700 = vmatpush1.bf16.msra.mxu1 %v715_v15 }
  0x33   :  { %413 = vmatprep.subr.bf16.mxu0 %v771_v0  ;;  %687 = vmatprep.subr.bf16.mxu1 %v771_v0 }
  0x36   :  { %414 = vmatpush1.bf16.msra.mxu0 %v385_v17  ;;  %701 = vmatpush1.bf16.msra.mxu1 %v385_v17 }
  0x39   :  { %420 = vmatmul.mubr.bf16.vlgmr.msra.gmra.mrb[0].mxu0 %v717_v18  ;;  %492 = vmatmul.mubr.bf16.vlgmr.msra.gmra.mrb[0].mxu1 %v720_v19 }
  0x3a   :  { %657 = vmatprep.mubr.msk.bf16.mxu0 %vm328_vm0, %v723_v20  ;;  %666 = vmatprep.mubr.msk.bf16.mxu1 %vm328_vm0, %v725_v21 }
  0x41   :  { %428 = vmatmul.mubr.bf16.gmra.mrb[4].mxu0 %v727_v22  ;;  %500 = vmatmul.mubr.bf16.gmra.mrb[4].mxu1 %v728_v23 }
  0x42   :  { %658 = vmatprep.mubr.msk.bf16.mxu0 %vm328_vm0, %v729_v24  ;;  %667 = vmatprep.mubr.msk.bf16.mxu1 %vm328_vm0, %v731_v25 }
  0x49   :  { %436 = vmatmul.mubr.bf16.gmra.mrb[8].mxu0 %v733_v26  ;;  %508 = vmatmul.mubr.bf16.gmra.mrb[8].mxu1 %v734_v27 }
  0x4a   :  { %659 = vmatprep.mubr.msk.bf16.mxu0 %vm328_vm0, %v735_v28  ;;  %668 = vmatprep.mubr.msk.bf16.mxu1 %vm328_vm0, %v737_v29 }
  0x51   :  { %444 = vmatmul.mubr.bf16.gmra.mrb[12].mxu0 %v739_v30  ;;  %516 = vmatmul.mubr.bf16.gmra.mrb[12].mxu1 %v740_v31 }
  0x52   :  { %660 = vmatprep.mubr.msk.bf16.mxu0 %vm328_vm0, %v741_v32  ;;  %669 = vmatprep.mubr.msk.bf16.mxu1 %vm328_vm0, %v743_v33 }
  0x59   :  { %452 = vmatmul.mubr.bf16.gmra.mrb[16].mxu0 %v745_v34  ;;  %524 = vmatmul.mubr.bf16.gmra.mrb[16].mxu1 %v746_v35 }
  0x5a   :  { %661 = vmatprep.mubr.msk.bf16.mxu0 %vm328_vm0, %v747_v36  ;;  %670 = vmatprep.mubr.msk.bf16.mxu1 %vm328_vm0, %v749_v37 }
  0x61   :  { %460 = vmatmul.mubr.bf16.gmra.mrb[20].mxu0 %v751_v38  ;;  %532 = vmatmul.mubr.bf16.gmra.mrb[20].mxu1 %v752_v39 }
  0x62   :  { %662 = vmatprep.mubr.msk.bf16.mxu0 %vm328_vm0, %v753_v40  ;;  %671 = vmatprep.mubr.msk.bf16.mxu1 %vm328_vm0, %v755_v41 }
  0x69   :  { %468 = vmatmul.mubr.bf16.gmra.mrb[24].mxu0 %v757_v42  ;;  %540 = vmatmul.mubr.bf16.gmra.mrb[24].mxu1 %v758_v43 }
  0x6a   :  { %663 = vmatprep.mubr.msk.bf16.mxu0 %vm328_vm0, %v759_v44  ;;  %672 = vmatprep.mubr.msk.bf16.mxu1 %vm328_vm0, %v761_v45 }
  0x71   :  { %476 = vmatmul.mubr.bf16.gmra.mrb[28].mxu0 %v763_v46  ;;  %548 = vmatmul.mubr.bf16.gmra.mrb[28].mxu1 %v764_v47 }
  0x72   :  { %664 = vmatprep.mubr.msk.bf16.mxu0 %vm328_vm0, %v765_v48  ;;  %673 = vmatprep.mubr.msk.bf16.mxu1 %vm328_vm0, %v767_v49 }
  0x79   :  { %484 = vmatmul.mubr.bf16.gmra.mrb[32].mxu0 %v769_v50  ;;  %556 = vmatmul.mubr.bf16.gmra.mrb[32].mxu1 %v770_v51 }
 0x10c   :  { %v421_v53 = vpop.f32.mrb[0].mxu0  ;;  %v493_v54 = vpop.f32.mrb[0].mxu1 }
 0x10d   :  { %v422_v55 = vadd.f32 %v991_v52, %v421_v53  ;;  %v494_v56 = vadd.f32 %v991_v52, %v493_v54  ;;  %v423_v57 = vpop.f32.mrb[1].mxu0  ;;  %v495_v58 = vpop.f32.mrb[1].mxu1 }
 0x10e   :  { %v424_v59 = vpop.f32.mrb[2].mxu0  ;;  %v496_v60 = vpop.f32.mrb[2].mxu1 }
 0x10f   :  { %565 = vst.msk [vmem:[%s1176_s3] sm:$0xff] %vm564_vm2, %v422_v55  ;;  %583 = vst.msk [vmem:[%s1176_s3 + $0x90] sm:$0xff] %vm564_vm2, %v494_v56  ;;  %v425_v61 = vadd.f32 %v991_v52, %v424_v59  ;;  %v497_v62 = vadd.f32 %v991_v52, %v496_v60  ;;  %v426_v63 = vpop.f32.mrb[3].mxu0  ;;  %v498_v0 = vpop.f32.mrb[3].mxu1 }
 0x111   :  { %566 = vst.msk [vmem:[%s1176_s3 + $0x8] sm:$0xff] %vm564_vm2, %v425_v61  ;;  %584 = vst.msk [vmem:[%s1176_s3 + $0x98] sm:$0xff] %vm564_vm2, %v497_v62 }
 0x114   :  { %v429_v1 = vpop.f32.mrb[4].mxu0  ;;  %v501_v2 = vpop.f32.mrb[4].mxu1 }
 0x115   :  { %v430_v3 = vadd.f32 %v991_v52, %v429_v1  ;;  %v502_v4 = vadd.f32 %v991_v52, %v501_v2  ;;  %v431_v5 = vpop.f32.mrb[5].mxu0  ;;  %v503_v6 = vpop.f32.mrb[5].mxu1 }
 0x116   :  { %v432_v7 = vpop.f32.mrb[6].mxu0  ;;  %v504_v8 = vpop.f32.mrb[6].mxu1 }
 0x117   :  { %567 = vst.msk [vmem:[%s1176_s3 + $0x10] sm:$0xff] %vm564_vm2, %v430_v3  ;;  %585 = vst.msk [vmem:[%s1176_s3 + $0xa0] sm:$0xff] %vm564_vm2, %v502_v4  ;;  %v433_v9 = vadd.f32 %v991_v52, %v432_v7  ;;  %v505_v10 = vadd.f32 %v991_v52, %v504_v8  ;;  %v434_v11 = vpop.f32.mrb[7].mxu0  ;;  %v506_v12 = vpop.f32.mrb[7].mxu1 }
 0x119   :  { %568 = vst.msk [vmem:[%s1176_s3 + $0x18] sm:$0xff] %vm564_vm2, %v433_v9  ;;  %586 = vst.msk [vmem:[%s1176_s3 + $0xa8] sm:$0xff] %vm564_vm2, %v505_v10 }
 0x11c   :  { %v437_v13 = vpop.f32.mrb[8].mxu0  ;;  %v509_v14 = vpop.f32.mrb[8].mxu1 }
 0x11d   :  { %v438_v15 = vadd.f32 %v991_v52, %v437_v13  ;;  %v510_v16 = vadd.f32 %v991_v52, %v509_v14  ;;  %v439_v17 = vpop.f32.mrb[9].mxu0  ;;  %v511_v18 = vpop.f32.mrb[9].mxu1 }
 0x11e   :  { %v440_v19 = vpop.f32.mrb[10].mxu0  ;;  %v512_v20 = vpop.f32.mrb[10].mxu1 }
 0x11f   :  { %569 = vst.msk [vmem:[%s1176_s3 + $0x20] sm:$0xff] %vm564_vm2, %v438_v15  ;;  %587 = vst.msk [vmem:[%s1176_s3 + $0xb0] sm:$0xff] %vm564_vm2, %v510_v16  ;;  %v441_v21 = vadd.f32 %v991_v52, %v440_v19  ;;  %v513_v22 = vadd.f32 %v991_v52, %v512_v20  ;;  %v442_v23 = vpop.f32.mrb[11].mxu0  ;;  %v514_v24 = vpop.f32.mrb[11].mxu1 }
 0x121   :  { %570 = vst.msk [vmem:[%s1176_s3 + $0x28] sm:$0xff] %vm564_vm2, %v441_v21  ;;  %588 = vst.msk [vmem:[%s1176_s3 + $0xb8] sm:$0xff] %vm564_vm2, %v513_v22 }
 0x124   :  { %v445_v25 = vpop.f32.mrb[12].mxu0  ;;  %v517_v26 = vpop.f32.mrb[12].mxu1 }
 0x125   :  { %v446_v27 = vadd.f32 %v991_v52, %v445_v25  ;;  %v518_v28 = vadd.f32 %v991_v52, %v517_v26  ;;  %v447_v29 = vpop.f32.mrb[13].mxu0  ;;  %v519_v30 = vpop.f32.mrb[13].mxu1 }
 0x126   :  { %v448_v31 = vpop.f32.mrb[14].mxu0  ;;  %v520_v32 = vpop.f32.mrb[14].mxu1 }
 0x127   :  { %571 = vst.msk [vmem:[%s1176_s3 + $0x30] sm:$0xff] %vm564_vm2, %v446_v27  ;;  %589 = vst.msk [vmem:[%s1176_s3 + $0xc0] sm:$0xff] %vm564_vm2, %v518_v28  ;;  %v449_v33 = vadd.f32 %v991_v52, %v448_v31  ;;  %v521_v34 = vadd.f32 %v991_v52, %v520_v32  ;;  %v450_v35 = vpop.f32.mrb[15].mxu0  ;;  %v522_v36 = vpop.f32.mrb[15].mxu1 }
 0x129   :  { %572 = vst.msk [vmem:[%s1176_s3 + $0x38] sm:$0xff] %vm564_vm2, %v449_v33  ;;  %590 = vst.msk [vmem:[%s1176_s3 + $0xc8] sm:$0xff] %vm564_vm2, %v521_v34 }
 0x12c   :  { %v453_v37 = vpop.f32.mrb[16].mxu0  ;;  %v525_v38 = vpop.f32.mrb[16].mxu1 }
 0x12d   :  { %v454_v39 = vadd.f32 %v991_v52, %v453_v37  ;;  %v526_v40 = vadd.f32 %v991_v52, %v525_v38  ;;  %v455_v41 = vpop.f32.mrb[17].mxu0  ;;  %v527_v42 = vpop.f32.mrb[17].mxu1 }
 0x12e   :  { %v456_v43 = vpop.f32.mrb[18].mxu0  ;;  %v528_v44 = vpop.f32.mrb[18].mxu1 }
 0x12f   :  { %573 = vst.msk [vmem:[%s1176_s3 + $0x40] sm:$0xff] %vm564_vm2, %v454_v39  ;;  %591 = vst.msk [vmem:[%s1176_s3 + $0xd0] sm:$0xff] %vm564_vm2, %v526_v40  ;;  %v457_v45 = vadd.f32 %v991_v52, %v456_v43  ;;  %v529_v46 = vadd.f32 %v991_v52, %v528_v44  ;;  %v458_v47 = vpop.f32.mrb[19].mxu0  ;;  %v530_v48 = vpop.f32.mrb[19].mxu1 }
 0x131   :  { %574 = vst.msk [vmem:[%s1176_s3 + $0x48] sm:$0xff] %vm564_vm2, %v457_v45  ;;  %592 = vst.msk [vmem:[%s1176_s3 + $0xd8] sm:$0xff] %vm564_vm2, %v529_v46 }
 0x134   :  { %v461_v49 = vpop.f32.mrb[20].mxu0  ;;  %v533_v50 = vpop.f32.mrb[20].mxu1 }
 0x135   :  { %v462_v51 = vadd.f32 %v991_v52, %v461_v49  ;;  %v534_v53 = vadd.f32 %v991_v52, %v533_v50  ;;  %v463_v54 = vpop.f32.mrb[21].mxu0  ;;  %v535_v55 = vpop.f32.mrb[21].mxu1 }
 0x136   :  { %v464_v56 = vpop.f32.mrb[22].mxu0  ;;  %v536_v57 = vpop.f32.mrb[22].mxu1 }
 0x137   :  { %575 = vst.msk [vmem:[%s1176_s3 + $0x50] sm:$0xff] %vm564_vm2, %v462_v51  ;;  %593 = vst.msk [vmem:[%s1176_s3 + $0xe0] sm:$0xff] %vm564_vm2, %v534_v53  ;;  %v465_v58 = vadd.f32 %v991_v52, %v464_v56  ;;  %v537_v59 = vadd.f32 %v991_v52, %v536_v57  ;;  %v466_v60 = vpop.f32.mrb[23].mxu0  ;;  %v538_v61 = vpop.f32.mrb[23].mxu1 }
 0x139   :  { %576 = vst.msk [vmem:[%s1176_s3 + $0x58] sm:$0xff] %vm564_vm2, %v465_v58  ;;  %594 = vst.msk [vmem:[%s1176_s3 + $0xe8] sm:$0xff] %vm564_vm2, %v537_v59 }
 0x13c   :  { %v469_v62 = vpop.f32.mrb[24].mxu0  ;;  %v541_v63 = vpop.f32.mrb[24].mxu1 }
 0x13d   :  { %v470_v0 = vadd.f32 %v991_v52, %v469_v62  ;;  %v542_v1 = vadd.f32 %v991_v52, %v541_v63  ;;  %v471_v2 = vpop.f32.mrb[25].mxu0  ;;  %v543_v3 = vpop.f32.mrb[25].mxu1 }
 0x13e   :  { %v472_v4 = vpop.f32.mrb[26].mxu0  ;;  %v544_v5 = vpop.f32.mrb[26].mxu1 }
 0x13f   :  { %577 = vst.msk [vmem:[%s1176_s3 + $0x60] sm:$0xff] %vm564_vm2, %v470_v0  ;;  %595 = vst.msk [vmem:[%s1176_s3 + $0xf0] sm:$0xff] %vm564_vm2, %v542_v1  ;;  %v473_v6 = vadd.f32 %v991_v52, %v472_v4  ;;  %v545_v7 = vadd.f32 %v991_v52, %v544_v5  ;;  %v474_v8 = vpop.f32.mrb[27].mxu0  ;;  %v546_v9 = vpop.f32.mrb[27].mxu1 }
 0x141   :  { %578 = vst.msk [vmem:[%s1176_s3 + $0x68] sm:$0xff] %vm564_vm2, %v473_v6  ;;  %596 = vst.msk [vmem:[%s1176_s3 + $0xf8] sm:$0xff] %vm564_vm2, %v545_v7 }
 0x144   :  { %v477_v10 = vpop.f32.mrb[28].mxu0  ;;  %v549_v11 = vpop.f32.mrb[28].mxu1 }
 0x145   :  { %v478_v12 = vadd.f32 %v991_v52, %v477_v10  ;;  %v550_v13 = vadd.f32 %v991_v52, %v549_v11  ;;  %v479_v14 = vpop.f32.mrb[29].mxu0  ;;  %v551_v15 = vpop.f32.mrb[29].mxu1 }
 0x146   :  { %v480_v16 = vpop.f32.mrb[30].mxu0  ;;  %v552_v17 = vpop.f32.mrb[30].mxu1 }
 0x147   :  { %579 = vst.msk [vmem:[%s1176_s3 + $0x70] sm:$0xff] %vm564_vm2, %v478_v12  ;;  %597 = vst.msk [vmem:[%s1176_s3 + $0x100] sm:$0xff] %vm564_vm2, %v550_v13  ;;  %v481_v18 = vadd.f32 %v991_v52, %v480_v16  ;;  %v553_v19 = vadd.f32 %v991_v52, %v552_v17  ;;  %v482_v20 = vpop.f32.mrb[31].mxu0  ;;  %v554_v21 = vpop.f32.mrb[31].mxu1 }
 0x149   :  { %580 = vst.msk [vmem:[%s1176_s3 + $0x78] sm:$0xff] %vm564_vm2, %v481_v18  ;;  %598 = vst.msk [vmem:[%s1176_s3 + $0x108] sm:$0xff] %vm564_vm2, %v553_v19 }
 0x14c   :  { %v485_v22 = vpop.f32.mrb[32].mxu0  ;;  %v557_v23 = vpop.f32.mrb[32].mxu1 }
 0x14d   :  { %v486_v24 = vadd.f32 %v991_v52, %v485_v22  ;;  %v558_v25 = vadd.f32 %v991_v52, %v557_v23  ;;  %v487_v26 = vpop.f32.mrb[33].mxu0  ;;  %v559_v27 = vpop.f32.mrb[33].mxu1 }
 0x14e   :  { %v488_v28 = vpop.f32.mrb[34].mxu0  ;;  %v560_v29 = vpop.f32.mrb[34].mxu1 }
 0x14f   :  { %581 = vst.msk [vmem:[%s1176_s3 + $0x80] sm:$0xff] %vm564_vm2, %v486_v24  ;;  %599 = vst.msk [vmem:[%s1176_s3 + $0x110] sm:$0xff] %vm564_vm2, %v558_v25  ;;  %v489_v30 = vadd.f32 %v991_v52, %v488_v28  ;;  %v561_v31 = vadd.f32 %v991_v52, %v560_v29  ;;  %v490_v32 = vpop.f32.mrb[35].mxu0  ;;  %v562_v33 = vpop.f32.mrb[35].mxu1 }
 0x151   :  { %582 = vst.msk [vmem:[%s1176_s3 + $0x88] sm:$0xff] %vm564_vm2, %v489_v30  ;;  %600 = vst.msk [vmem:[%s1176_s3 + $0x118] sm:$0xff] %vm564_vm2, %v561_v31 }

// kernel: net_forward.23
= control target key start
LH: loop header
LB: loop body
LE: loop exit
PB: predicated region body
PF: predicated region fallthrough
CT: control target
= control target key end

     0   :  { %vm88_vm0 = vcmask 1041408   ;;  %vm89_vm1 = vcmask 1043458   ;;  %vm91_vm3 = vcmask 1045508   ;;  %vm93_vm5 = vcmask 261126   ;;  %s240_s0 = inlined_call_operand.vmem [shape: f32[2,1440], index: 0, kind: input, shape index: {}]   ;;  %s241_s1 = inlined_call_operand.vmem [shape: f32[2,1440], index: 1, kind: input, shape index: {}]   ;;  %s242_s2 = inlined_call_operand.vmem [shape: f32[2,1440], index: 2, kind: input, shape index: {}]   ;;  %s243_s3 = inlined_call_operand.vmem [shape: f32[2,1440], index: 3, kind: input, shape index: {}]   ;;  %s244_s4 = inlined_call_operand.vmem [shape: f32[2,1440], index: 4, kind: input, shape index: {}]   ;;  %s245_s5 = inlined_call_operand.vmem [shape: f32[2,1440], index: 5, kind: input, shape index: {}]   ;;  %s246_s6 = inlined_call_operand.vmem [shape: f32[2,1440], index: 6, kind: input, shape index: {}]   ;;  %s247_s7 = inlined_call_operand.vmem [shape: f32[2,1440], index: 7, kind: input, shape index: {}]   ;;  %s248_s8 = inlined_call_operand.vmem [shape: f32[2,1440], index: 8, kind: input, shape index: {}]   ;;  %s249_s9 = inlined_call_operand.vmem [shape: f32[2,1440], index: 9, kind: output, shape index: {}]  }
   0x1   :  { %v32_v0 = vld [vmem:[%s240_s0] sm:$0xff]  ;;  %v33_v6 = vld [vmem:[%s240_s0 + $0x8] sm:$0xff]  ;;  %v34_v15 = vld [vmem:[%s240_s0 + $0x10] sm:$0xff] }
   0x2   :  { %v35_v1 = vld [vmem:[%s241_s1] sm:$0xff]  ;;  %v36_v7 = vld [vmem:[%s241_s1 + $0x8] sm:$0xff]  ;;  %v37_v16 = vld [vmem:[%s241_s1 + $0x10] sm:$0xff] }
   0x3   :  { %v41_v2 = vld [vmem:[%s242_s2] sm:$0xff]  ;;  %v38_v3 = vadd.f32 %v35_v1, %v32_v0  ;;  %v42_v8 = vld [vmem:[%s242_s2 + $0x8] sm:$0xff]  ;;  %v39_v10 = vadd.f32 %v36_v7, %v33_v6  ;;  %v43_v17 = vld [vmem:[%s242_s2 + $0x10] sm:$0xff]  ;;  %v40_v20 = vadd.f32 %v37_v16, %v34_v15 }
   0x4   :  { %v47_v4 = vld [vmem:[%s243_s3] sm:$0xff]  ;;  %v48_v13 = vld [vmem:[%s243_s3 + $0x8] sm:$0xff]  ;;  %v49_v23 = vld [vmem:[%s243_s3 + $0x10] sm:$0xff] }
   0x5   :  { %v44_v5 = vadd.f32 %v41_v2, %v38_v3  ;;  %v53_v9 = vld [vmem:[%s244_s4] sm:$0xff]  ;;  %v45_v14 = vadd.f32 %v42_v8, %v39_v10  ;;  %v54_v19 = vld [vmem:[%s244_s4 + $0x8] sm:$0xff]  ;;  %v46_v26 = vadd.f32 %v43_v17, %v40_v20  ;;  %v55_v29 = vld [vmem:[%s244_s4 + $0x10] sm:$0xff] }
   0x6   :  { %v59_v12 = vld [vmem:[%s245_s5] sm:$0xff]  ;;  %v60_v25 = vld [vmem:[%s245_s5 + $0x8] sm:$0xff]  ;;  %v61_v35 = vld [vmem:[%s245_s5 + $0x10] sm:$0xff] }
   0x7   :  { %v50_v11 = vadd.f32 %v47_v4, %v44_v5  ;;  %v65_v21 = vld [vmem:[%s246_s6] sm:$0xff]  ;;  %v51_v22 = vadd.f32 %v48_v13, %v45_v14  ;;  %v66_v31 = vld [vmem:[%s246_s6 + $0x8] sm:$0xff]  ;;  %v52_v32 = vadd.f32 %v49_v23, %v46_v26  ;;  %v67_v40 = vld [vmem:[%s246_s6 + $0x10] sm:$0xff] }
   0x8   :  { %v71_v27 = vld [vmem:[%s247_s7] sm:$0xff]  ;;  %v72_v37 = vld [vmem:[%s247_s7 + $0x8] sm:$0xff]  ;;  %v73_v45 = vld [vmem:[%s247_s7 + $0x10] sm:$0xff] }
   0x9   :  { %v56_v18 = vadd.f32 %v53_v9, %v50_v11  ;;  %v57_v28 = vadd.f32 %v54_v19, %v51_v22  ;;  %v77_v33 = vld [vmem:[%s248_s8] sm:$0xff]  ;;  %v58_v38 = vadd.f32 %v55_v29, %v52_v32  ;;  %v78_v42 = vld [vmem:[%s248_s8 + $0x8] sm:$0xff]  ;;  %vm90_vm2 = vmor %vm89_vm1, %vm88_vm0 }
   0xa   :  { %v79_v49 = vld [vmem:[%s248_s8 + $0x10] sm:$0xff]  ;;  %vm92_vm4 = vmor %vm91_vm3, %vm90_vm2 }
   0xb   :  { %v62_v24 = vadd.f32 %v59_v12, %v56_v18  ;;  %v63_v34 = vadd.f32 %v60_v25, %v57_v28  ;;  %v64_v43 = vadd.f32 %v61_v35, %v58_v38  ;;  %vm94_vm6 = vmor %vm93_vm5, %vm92_vm4 }
   0xd   :  { %v68_v30 = vadd.f32 %v65_v21, %v62_v24  ;;  %v69_v39 = vadd.f32 %v66_v31, %v63_v34  ;;  %v70_v47 = vadd.f32 %v67_v40, %v64_v43 }
   0xf   :  { %v74_v36 = vadd.f32 %v71_v27, %v68_v30  ;;  %v75_v44 = vadd.f32 %v72_v37, %v69_v39  ;;  %v76_v50 = vadd.f32 %v73_v45, %v70_v47 }
  0x11   :  { %v80_v41 = vadd.f32 %v77_v33, %v74_v36  ;;  %v81_v48 = vadd.f32 %v78_v42, %v75_v44  ;;  %v82_v52 = vadd.f32 %v79_v49, %v76_v50 }
  0x13   :  { %v83_v46 = vmul.f32 0.11111111, %v80_v41  ;;  %v84_v51 = vmul.f32 0.11111111, %v81_v48  ;;  %v85_v53 = vmul.f32 0.11111111, %v82_v52 }
  0x15   :  { %86 = vst [vmem:[%s249_s9] sm:$0xff] %v83_v46  ;;  %87 = vst [vmem:[%s249_s9 + $0x8] sm:$0xff] %v84_v51 }
  0x16   :  { %95 = vst.msk [vmem:[%s249_s9 + $0x10] sm:$0xff] %vm94_vm6, %v85_v53 }

// kernel: net_forward.24
= control target key start
LH: loop header
LB: loop body
LE: loop exit
PB: predicated region body
PF: predicated region fallthrough
CT: control target
= control target key end

     0   :  { %vm210_vm0 = vcmask 1044480   ;;  %vm155_vm1 = vcmask 80896   ;;  %vm391_vm2 = vcmask 195584   ;;  %s830_s1 = inlined_call_operand.vmem [shape: bf16[10,24], index: 1, kind: input, shape index: {}]   ;;  %s831_s0 = inlined_call_operand.vmem [shape: bf16[288,10], index: 0, kind: input, shape index: {}]   ;;  %s832_s2 = inlined_call_operand.vmem [shape: f32[1,24], index: 2, kind: input, shape index: {}]   ;;  %s833_s3 = inlined_call_operand.vmem [shape: f32[288,24], index: 3, kind: output, shape index: {}]  }
   0x1   :  { %v531_v0 = vld [vmem:[%s830_s1] sm:$0x1f]   ;;  %v533_v3 = vld [vmem:[%s831_s0 + $0x8] sm:$0xff]   ;;  %v534_v4 = vld [vmem:[%s831_s0 + $0x50] sm:$0xff]  }
   0x2   :  { %v532_v1 = vld [vmem:[%s831_s0] sm:$0xff]   ;;  %529 = vmatprep.subr.msk.bf16.mxu0 %vm210_vm0, %v531_v0  ;;  %v212_v2 = vsel %vm210_vm0, %v531_v0, 0  ;;  %530 = vmatprep.subr.msk.bf16.mxu1 %vm210_vm0, %v531_v0  ;;  %v535_v5 = vld [vmem:[%s831_s0 + $0x58] sm:$0xff]   ;;  %v536_v6 = vld [vmem:[%s831_s0 + $0x10] sm:$0xff]  }
   0x3   :  { %490 = vmatpush3.bf16.msra.mxu0 %v212_v2  ;;  %491 = vmatprep.mubr.msk.bf16.mxu0 %vm155_vm1, %v532_v1  ;;  %v538_v7 = vld [vmem:[%s831_s0 + $0x60] sm:$0xff]   ;;  %v537_v8 = vld [vmem:[%s831_s0 + $0x18] sm:$0xff]   ;;  %v539_v9 = vld [vmem:[%s831_s0 + $0x68] sm:$0xff]  }
   0x4   :  { %528 = vmatpush3.bf16.msra.mxu1 %v212_v2  ;;  %511 = vmatprep.mubr.msk.bf16.mxu1 %vm155_vm1, %v534_v4  ;;  %v540_v10 = vld [vmem:[%s831_s0 + $0x20] sm:$0xff]   ;;  %v542_v11 = vld [vmem:[%s831_s0 + $0x70] sm:$0xff]   ;;  %v541_v12 = vld [vmem:[%s831_s0 + $0x28] sm:$0xff]  }
   0x5   :  { %v543_v13 = vld [vmem:[%s831_s0 + $0x78] sm:$0xff]   ;;  %v544_v14 = vld [vmem:[%s831_s0 + $0x30] sm:$0xff]   ;;  %v546_v15 = vld [vmem:[%s831_s0 + $0x80] sm:$0xff]  }
   0x6   :  { %492 = vmatmul.mubr.msk.bf16.vlgmr.msra.gmra.mrb[0].mxu0 %vm155_vm1, %v533_v3  ;;  %v545_v16 = vld [vmem:[%s831_s0 + $0x38] sm:$0xff]   ;;  %v547_v17 = vld [vmem:[%s831_s0 + $0x88] sm:$0xff]   ;;  %v548_v18 = vld [vmem:[%s831_s0 + $0x40] sm:$0xff]  }
   0x7   :  { %512 = vmatmul.mubr.msk.bf16.vlgmr.msra.gmra.mrb[0].mxu1 %vm155_vm1, %v535_v5  ;;  %495 = vmatprep.mubr.msk.bf16.mxu0 %vm155_vm1, %v536_v6  ;;  %v549_v19 = vld [vmem:[%s831_s0 + $0x48] sm:$0xff]   ;;  %v648_v20 = vld [vmem:[%s832_s2] ss:$0 sm:$0xff] }
   0x8   :  { %515 = vmatprep.mubr.msk.bf16.mxu1 %vm155_vm1, %v538_v7 }
   0xe   :  { %496 = vmatmul.mubr.msk.bf16.gmra.mrb[4].mxu0 %vm155_vm1, %v537_v8 }
   0xf   :  { %516 = vmatmul.mubr.msk.bf16.gmra.mrb[4].mxu1 %vm155_vm1, %v539_v9  ;;  %499 = vmatprep.mubr.msk.bf16.mxu0 %vm155_vm1, %v540_v10 }
  0x10   :  { %519 = vmatprep.mubr.msk.bf16.mxu1 %vm155_vm1, %v542_v11 }
  0x16   :  { %500 = vmatmul.mubr.msk.bf16.gmra.mrb[8].mxu0 %vm155_vm1, %v541_v12 }
  0x17   :  { %520 = vmatmul.mubr.msk.bf16.gmra.mrb[8].mxu1 %vm155_vm1, %v543_v13  ;;  %503 = vmatprep.mubr.msk.bf16.mxu0 %vm155_vm1, %v544_v14 }
  0x18   :  { %523 = vmatprep.mubr.msk.bf16.mxu1 %vm155_vm1, %v546_v15 }
  0x1e   :  { %504 = vmatmul.mubr.msk.bf16.gmra.mrb[12].mxu0 %vm155_vm1, %v545_v16 }
  0x1f   :  { %524 = vmatmul.mubr.msk.bf16.gmra.mrb[12].mxu1 %vm155_vm1, %v547_v17  ;;  %507 = vmatprep.mubr.msk.bf16.mxu0 %vm155_vm1, %v548_v18 }
  0x26   :  { %508 = vmatmul.mubr.msk.bf16.gmra.mrb[16].mxu0 %vm155_vm1, %v549_v19 }
  0xd9   :  { %v493_v21 = vpop.f32.mrb[0].mxu0 }
  0xda   :  { %v257_v22 = vadd.f32 %v493_v21, %v648_v20  ;;  %v248_v23 = vpop.f32.mrb[1].mxu0  ;;  %v513_v24 = vpop.f32.mrb[0].mxu1 }
  0xdb   :  { %v249_v25 = vadd.f32 %v648_v20, %v248_v23  ;;  %v494_v26 = vpop.f32.mrb[2].mxu0  ;;  %v337_v27 = vadd.f32 %v513_v24, %v648_v20  ;;  %v328_v28 = vpop.f32.mrb[1].mxu1 }
  0xdc   :  { %394 = vst.msk [vmem:[%s833_s3 + $0x10] sm:$0xff] %vm391_vm2, %v257_v22  ;;  %v260_v29 = vadd.f32 %v494_v26, %v648_v20  ;;  %v251_v30 = vpop.f32.mrb[3].mxu0  ;;  %v329_v31 = vadd.f32 %v648_v20, %v328_v28  ;;  %v514_v32 = vpop.f32.mrb[2].mxu1 }
  0xdd   :  { %392 = vst.msk [vmem:[%s833_s3] sm:$0xff] %vm391_vm2, %v249_v25  ;;  %v252_v33 = vadd.f32 %v648_v20, %v251_v30  ;;  %414 = vst.msk [vmem:[%s833_s3 + $0xb0] sm:$0xff] %vm391_vm2, %v337_v27  ;;  %v340_v34 = vadd.f32 %v514_v32, %v648_v20  ;;  %v331_v35 = vpop.f32.mrb[3].mxu1 }
  0xde   :  { %395 = vst.msk [vmem:[%s833_s3 + $0x18] sm:$0xff] %vm391_vm2, %v260_v29  ;;  %412 = vst.msk [vmem:[%s833_s3 + $0xa0] sm:$0xff] %vm391_vm2, %v329_v31  ;;  %v332_v36 = vadd.f32 %v648_v20, %v331_v35 }
  0xdf   :  { %393 = vst.msk [vmem:[%s833_s3 + $0x8] sm:$0xff] %vm391_vm2, %v252_v33  ;;  %415 = vst.msk [vmem:[%s833_s3 + $0xb8] sm:$0xff] %vm391_vm2, %v340_v34 }
  0xe0   :  { %413 = vst.msk [vmem:[%s833_s3 + $0xa8] sm:$0xff] %vm391_vm2, %v332_v36 }
  0xe1   :  { %v497_v37 = vpop.f32.mrb[4].mxu0 }
  0xe2   :  { %v273_v38 = vadd.f32 %v497_v37, %v648_v20  ;;  %v264_v39 = vpop.f32.mrb[5].mxu0  ;;  %v517_v40 = vpop.f32.mrb[4].mxu1 }
  0xe3   :  { %v265_v41 = vadd.f32 %v648_v20, %v264_v39  ;;  %v498_v42 = vpop.f32.mrb[6].mxu0  ;;  %v353_v43 = vadd.f32 %v517_v40, %v648_v20  ;;  %v344_v44 = vpop.f32.mrb[5].mxu1 }
  0xe4   :  { %398 = vst.msk [vmem:[%s833_s3 + $0x30] sm:$0xff] %vm391_vm2, %v273_v38  ;;  %v276_v45 = vadd.f32 %v498_v42, %v648_v20  ;;  %v267_v46 = vpop.f32.mrb[7].mxu0  ;;  %v345_v47 = vadd.f32 %v648_v20, %v344_v44  ;;  %v518_v48 = vpop.f32.mrb[6].mxu1 }
  0xe5   :  { %396 = vst.msk [vmem:[%s833_s3 + $0x20] sm:$0xff] %vm391_vm2, %v265_v41  ;;  %v268_v49 = vadd.f32 %v648_v20, %v267_v46  ;;  %418 = vst.msk [vmem:[%s833_s3 + $0xd0] sm:$0xff] %vm391_vm2, %v353_v43  ;;  %v356_v50 = vadd.f32 %v518_v48, %v648_v20  ;;  %v347_v51 = vpop.f32.mrb[7].mxu1 }
  0xe6   :  { %399 = vst.msk [vmem:[%s833_s3 + $0x38] sm:$0xff] %vm391_vm2, %v276_v45  ;;  %416 = vst.msk [vmem:[%s833_s3 + $0xc0] sm:$0xff] %vm391_vm2, %v345_v47  ;;  %v348_v52 = vadd.f32 %v648_v20, %v347_v51 }
  0xe7   :  { %397 = vst.msk [vmem:[%s833_s3 + $0x28] sm:$0xff] %vm391_vm2, %v268_v49  ;;  %419 = vst.msk [vmem:[%s833_s3 + $0xd8] sm:$0xff] %vm391_vm2, %v356_v50 }
  0xe8   :  { %417 = vst.msk [vmem:[%s833_s3 + $0xc8] sm:$0xff] %vm391_vm2, %v348_v52 }
  0xe9   :  { %v501_v53 = vpop.f32.mrb[8].mxu0 }
  0xea   :  { %v289_v54 = vadd.f32 %v501_v53, %v648_v20  ;;  %v280_v55 = vpop.f32.mrb[9].mxu0  ;;  %v521_v56 = vpop.f32.mrb[8].mxu1 }
  0xeb   :  { %v281_v57 = vadd.f32 %v648_v20, %v280_v55  ;;  %v502_v58 = vpop.f32.mrb[10].mxu0  ;;  %v369_v59 = vadd.f32 %v521_v56, %v648_v20  ;;  %v360_v60 = vpop.f32.mrb[9].mxu1 }
  0xec   :  { %402 = vst.msk [vmem:[%s833_s3 + $0x50] sm:$0xff] %vm391_vm2, %v289_v54  ;;  %v292_v61 = vadd.f32 %v502_v58, %v648_v20  ;;  %v283_v62 = vpop.f32.mrb[11].mxu0  ;;  %v361_v63 = vadd.f32 %v648_v20, %v360_v60  ;;  %v522_v0 = vpop.f32.mrb[10].mxu1 }
  0xed   :  { %400 = vst.msk [vmem:[%s833_s3 + $0x40] sm:$0xff] %vm391_vm2, %v281_v57  ;;  %v284_v1 = vadd.f32 %v648_v20, %v283_v62  ;;  %422 = vst.msk [vmem:[%s833_s3 + $0xf0] sm:$0xff] %vm391_vm2, %v369_v59  ;;  %v372_v2 = vadd.f32 %v522_v0, %v648_v20  ;;  %v363_v3 = vpop.f32.mrb[11].mxu1 }
  0xee   :  { %403 = vst.msk [vmem:[%s833_s3 + $0x58] sm:$0xff] %vm391_vm2, %v292_v61  ;;  %420 = vst.msk [vmem:[%s833_s3 + $0xe0] sm:$0xff] %vm391_vm2, %v361_v63  ;;  %v364_v4 = vadd.f32 %v648_v20, %v363_v3 }
  0xef   :  { %401 = vst.msk [vmem:[%s833_s3 + $0x48] sm:$0xff] %vm391_vm2, %v284_v1  ;;  %423 = vst.msk [vmem:[%s833_s3 + $0xf8] sm:$0xff] %vm391_vm2, %v372_v2 }
  0xf0   :  { %421 = vst.msk [vmem:[%s833_s3 + $0xe8] sm:$0xff] %vm391_vm2, %v364_v4 }
  0xf1   :  { %v505_v5 = vpop.f32.mrb[12].mxu0 }
  0xf2   :  { %v305_v6 = vadd.f32 %v505_v5, %v648_v20  ;;  %v296_v7 = vpop.f32.mrb[13].mxu0  ;;  %v525_v8 = vpop.f32.mrb[12].mxu1 }
  0xf3   :  { %v297_v9 = vadd.f32 %v648_v20, %v296_v7  ;;  %v506_v10 = vpop.f32.mrb[14].mxu0  ;;  %v385_v11 = vadd.f32 %v525_v8, %v648_v20  ;;  %v376_v12 = vpop.f32.mrb[13].mxu1 }
  0xf4   :  { %406 = vst.msk [vmem:[%s833_s3 + $0x70] sm:$0xff] %vm391_vm2, %v305_v6  ;;  %v308_v13 = vadd.f32 %v506_v10, %v648_v20  ;;  %v299_v14 = vpop.f32.mrb[15].mxu0  ;;  %v377_v15 = vadd.f32 %v648_v20, %v376_v12  ;;  %v526_v16 = vpop.f32.mrb[14].mxu1 }
  0xf5   :  { %404 = vst.msk [vmem:[%s833_s3 + $0x60] sm:$0xff] %vm391_vm2, %v297_v9  ;;  %v300_v17 = vadd.f32 %v648_v20, %v299_v14  ;;  %426 = vst.msk [vmem:[%s833_s3 + $0x110] sm:$0xff] %vm391_vm2, %v385_v11  ;;  %v388_v18 = vadd.f32 %v526_v16, %v648_v20  ;;  %v379_v19 = vpop.f32.mrb[15].mxu1 }
  0xf6   :  { %407 = vst.msk [vmem:[%s833_s3 + $0x78] sm:$0xff] %vm391_vm2, %v308_v13  ;;  %424 = vst.msk [vmem:[%s833_s3 + $0x100] sm:$0xff] %vm391_vm2, %v377_v15  ;;  %v380_v21 = vadd.f32 %v648_v20, %v379_v19 }
  0xf7   :  { %405 = vst.msk [vmem:[%s833_s3 + $0x68] sm:$0xff] %vm391_vm2, %v300_v17  ;;  %427 = vst.msk [vmem:[%s833_s3 + $0x118] sm:$0xff] %vm391_vm2, %v388_v18 }
  0xf8   :  { %425 = vst.msk [vmem:[%s833_s3 + $0x108] sm:$0xff] %vm391_vm2, %v380_v21 }
  0xf9   :  { %v509_v22 = vpop.f32.mrb[16].mxu0 }
  0xfa   :  { %v321_v23 = vadd.f32 %v509_v22, %v648_v20  ;;  %v312_v24 = vpop.f32.mrb[17].mxu0 }
  0xfb   :  { %v313_v25 = vadd.f32 %v648_v20, %v312_v24  ;;  %v510_v26 = vpop.f32.mrb[18].mxu0 }
  0xfc   :  { %410 = vst.msk [vmem:[%s833_s3 + $0x90] sm:$0xff] %vm391_vm2, %v321_v23  ;;  %v324_v27 = vadd.f32 %v510_v26, %v648_v20  ;;  %v315_v28 = vpop.f32.mrb[19].mxu0 }
  0xfd   :  { %408 = vst.msk [vmem:[%s833_s3 + $0x80] sm:$0xff] %vm391_vm2, %v313_v25  ;;  %v316_v29 = vadd.f32 %v648_v20, %v315_v28 }
  0xfe   :  { %411 = vst.msk [vmem:[%s833_s3 + $0x98] sm:$0xff] %vm391_vm2, %v324_v27 }
  0xff   :  { %409 = vst.msk [vmem:[%s833_s3 + $0x88] sm:$0xff] %vm391_vm2, %v316_v29 }

// kernel: net_forward.26
= control target key start
LH: loop header
LB: loop body
LE: loop exit
PB: predicated region body
PF: predicated region fallthrough
CT: control target
= control target key end

     0   :  { %vm24_vm0 = vcmask 1041408   ;;  %vm25_vm1 = vcmask 1043458   ;;  %vm27_vm2 = vcmask 521220   ;;  %s74_s0 = inlined_call_operand.vmem [shape: f32[2,320], index: 0, kind: input, shape index: {}]   ;;  %s75_s1 = inlined_call_operand.vmem [shape: f32[2,320], index: 1, kind: input, shape index: {}]   ;;  %s76_s2 = inlined_call_operand.vmem [shape: f32[2,320], index: 2, kind: input, shape index: {}]   ;;  %s77_s3 = inlined_call_operand.vmem [shape: f32[2,320], index: 3, kind: input, shape index: {}]   ;;  %s78_s4 = inlined_call_operand.vmem [shape: f32[2,320], index: 4, kind: output, shape index: {}]  }
   0x1   :  { %v17_v0 = vld [vmem:[%s74_s0] sm:$0x3f]  ;;  %vm26_vm3 = vmor %vm25_vm1, %vm24_vm0 }
   0x2   :  { %v18_v1 = vld [vmem:[%s75_s1] sm:$0x3f]  ;;  %vm28_vm4 = vmor %vm27_vm2, %vm26_vm3 }
   0x3   :  { %v20_v2 = vld [vmem:[%s76_s2] sm:$0x3f]  ;;  %v19_v3 = vmax.f32 %v17_v0, %v18_v1 }
   0x4   :  { %v21_v4 = vld [vmem:[%s77_s3] sm:$0x3f] }
   0x5   :  { %v22_v5 = vmax.f32 %v20_v2, %v21_v4 }
   0x7   :  { %v23_v6 = vmax.f32 %v19_v3, %v22_v5 }
   0x9   :  { %29 = vst.msk [vmem:[%s78_s4] sm:$0x3f] %vm28_vm4, %v23_v6 }

// kernel: net_forward.27
= control target key start
LH: loop header
LB: loop body
LE: loop exit
PB: predicated region body
PF: predicated region fallthrough
CT: control target
= control target key end

     0   :  { %vm48_vm0 = vcmask 162816   ;;  %vm55_vm1 = vcmask 1041408   ;;  %vm108_vm2 = vcmask 392192   ;;  %s188_s1 = inlined_call_operand.vmem [shape: bf16[20,48], index: 1, kind: input, shape index: {}]   ;;  %s189_s0 = inlined_call_operand.vmem [shape: bf16[32,20], index: 0, kind: input, shape index: {}]   ;;  %s190_s2 = inlined_call_operand.vmem [shape: f32[1,48], index: 2, kind: input, shape index: {}]   ;;  %s191_s3 = inlined_call_operand.vmem [shape: f32[32,48], index: 3, kind: output, shape index: {}]  }
   0x1   :  { %v137_v0 = vld [vmem:[%s188_s1] sm:$0xff]   ;;  %v138_v1 = vld [vmem:[%s188_s1 + $0x8] ss:$0 sps:$4 sm:$0x33]  }
   0x2   :  { %v139_v2 = vld [vmem:[%s189_s0] sm:$0xff]   ;;  %128 = vmatprep.subr.bf16.mxu0 %v137_v0  ;;  %v57_v3 = vsel %vm55_vm1, %v138_v1, 0  ;;  %v140_v4 = vld [vmem:[%s189_s0 + $0x8] sm:$0xff]  }
   0x3   :  { %129 = vmatpush3.bf16.msra.mxu0 %v137_v0  ;;  %132 = vmatprep.mubr.msk.bf16.mxu0 %vm48_vm0, %v139_v2  ;;  %v117_v5 = vld [vmem:[%s190_s2] ss:$0 sm:$0xff] }
   0x4   :  { %136 = vmatprep.subr.msk.bf16.mxu0 %vm55_vm1, %v138_v1 }
   0x7   :  { %131 = vmatpush3.bf16.msra.mxu0 %v57_v3 }
   0xa   :  { %133 = vmatmul.mubr.msk.bf16.vlgmr.msra.gmra.mrb[0].mxu0 %vm48_vm0, %v140_v4 }
  0xdd   :  { %v134_v6 = vpop.f32.mrb[0].mxu0 }
  0xde   :  { %v102_v7 = vadd.f32 %v134_v6, %v117_v5  ;;  %v93_v8 = vpop.f32.mrb[1].mxu0 }
  0xdf   :  { %v94_v9 = vadd.f32 %v117_v5, %v93_v8  ;;  %v135_v10 = vpop.f32.mrb[2].mxu0 }
  0xe0   :  { %111 = vst.msk [vmem:[%s191_s3 + $0x10] sm:$0xff] %vm108_vm2, %v102_v7  ;;  %v105_v11 = vadd.f32 %v135_v10, %v117_v5  ;;  %v96_v12 = vpop.f32.mrb[3].mxu0 }
  0xe1   :  { %109 = vst.msk [vmem:[%s191_s3] sm:$0xff] %vm108_vm2, %v94_v9  ;;  %v97_v13 = vadd.f32 %v117_v5, %v96_v12 }
  0xe2   :  { %112 = vst.msk [vmem:[%s191_s3 + $0x18] sm:$0xff] %vm108_vm2, %v105_v11 }
  0xe3   :  { %110 = vst.msk [vmem:[%s191_s3 + $0x8] sm:$0xff] %vm108_vm2, %v97_v13 }

// kernel: net_forward.25
= control target key start
LH: loop header
LB: loop body
LE: loop exit
PB: predicated region body
PF: predicated region fallthrough
CT: control target
= control target key end

     0   :  { %vm2003_vm0 = vcmask 1043456   ;;  %vm1978_vm1 = vcmask 195584   ;;  %vm2896_vm2 = vcmask 162816   ;;  %s5253_s1 = inlined_call_operand.vmem [shape: bf16[2200,20], index: 1, kind: input, shape index: {}]   ;;  %s5254_s0 = inlined_call_operand.vmem [shape: bf16[128,2200], index: 0, kind: input, shape index: {}]   ;;  %s5255_s2 = inlined_call_operand.vmem [shape: f32[1,20], index: 2, kind: input, shape index: {}]   ;;  %s5256_s3 = inlined_call_operand.vmem [shape: f32[128,20], index: 3, kind: output, shape index: {}]  }
   0x1   :  { %v3737_v0 = vld [vmem:[%s5253_s1 + $0x40] sm:$0xff]   ;;  %v3739_v2 = vld [vmem:[%s5253_s1 + $0x48] sm:$0xff]   ;;  %v3741_v4 = vld [vmem:[%s5253_s1 + $0x50] sm:$0xff]  }
   0x2   :  { %v3738_v1 = vld [vmem:[%s5253_s1] sm:$0xff]   ;;  %3720 = vmatprep.subr.bf16.mxu1 %v3737_v0  ;;  %3208 = vmatprep.subr.bf16.mxu0 %v3737_v0  ;;  %v3740_v3 = vld [vmem:[%s5253_s1 + $0x8] sm:$0xff]   ;;  %v3742_v5 = vld [vmem:[%s5253_s1 + $0x10] sm:$0xff]  }
   0x3   :  { %3728 = vmatpush3.bf16.msra.mxu1 %v3738_v1  ;;  %3209 = vmatpush3.bf16.msra.mxu0 %v3738_v1  ;;  %v3743_v6 = vld [vmem:[%s5253_s1 + $0x58] sm:$0xff]   ;;  %v3745_v8 = vld [vmem:[%s5253_s1 + $0x60] sm:$0xff]   ;;  %v3747_v10 = vld [vmem:[%s5253_s1 + $0x68] sm:$0xff]  }
   0x4   :  { %3721 = vmatprep.subr.bf16.mxu1 %v3739_v2  ;;  %3210 = vmatprep.subr.bf16.mxu0 %v3739_v2  ;;  %v3744_v7 = vld [vmem:[%s5253_s1 + $0x18] sm:$0xff]   ;;  %v3746_v9 = vld [vmem:[%s5253_s1 + $0x20] sm:$0xff]   ;;  %v3748_v12 = vld [vmem:[%s5253_s1 + $0x28] sm:$0xff]  }
   0x5   :  { %v3755_v11 = vld [vmem:[%s5254_s0 + $0x244] ss:$72 sps:$4 sm:$0xff]   ;;  %v3749_v14 = vld [vmem:[%s5253_s1 + $0x70] sm:$0xff]   ;;  %v3751_v16 = vld [vmem:[%s5253_s1 + $0x78] sm:$0xff]  }
   0x6   :  { %v3759_v13 = vld [vmem:[%s5254_s0 + $0x4] ss:$72 sps:$4 sm:$0xff]   ;;  %2071 = vmatprep.mubr.bf16.mxu1 %v3755_v11  ;;  %v3750_v15 = vld [vmem:[%s5253_s1 + $0x30] sm:$0xff]   ;;  %v3752_v17 = vld [vmem:[%s5253_s1 + $0x38] sm:$0xff]  }
   0x7   :  { %3729 = vmatpush3.bf16.msra.mxu1 %v3740_v3  ;;  %3211 = vmatpush3.bf16.msra.mxu0 %v3740_v3  ;;  %v3756_v18 = vld [vmem:[%s5253_s1 + $0xc0] sm:$0xff]   ;;  %v3763_v24 = vld [vmem:[%s5253_s1 + $0xc8] sm:$0xff]   ;;  %v3766_v26 = vld [vmem:[%s5254_s0 + $0x2d4] ss:$72 sps:$4 sm:$0xff]  }
   0x8   :  { %3722 = vmatprep.subr.bf16.mxu1 %v3741_v4  ;;  %3212 = vmatprep.subr.bf16.mxu0 %v3741_v4  ;;  %v3753_v19 = vld [vmem:[%s5254_s0 + $0x240] ss:$72 sps:$4 sm:$0xff]   ;;  %v3771_v28 = vld [vmem:[%s5254_s0 + $0x94] ss:$72 sps:$4 sm:$0xff]   ;;  %v3769_v31 = vld [vmem:[%s5254_s0 + $0x2d0] ss:$72 sps:$4 sm:$0xff]  }
   0x9   :  { %2039 = vmatprep.mubr.bf16.mxu0 %v3759_v13  ;;  %v3757_v20 = vld [vmem:[%s5254_s0] ss:$72 sps:$4 sm:$0xff]   ;;  %v3770_v30 = vld [vmem:[%s5253_s1 + $0xd0] sm:$0xff]   ;;  %v3777_v36 = vld [vmem:[%s5253_s1 + $0xd8] sm:$0xff]  }
   0xa   :  { %v3761_v21 = vld [vmem:[%s5253_s1 + $0x140] sm:$0xff]   ;;  %v3765_v25 = vld [vmem:[%s5253_s1 + $0x148] sm:$0xff]   ;;  %v3775_v32 = vld [vmem:[%s5253_s1 + $0x150] sm:$0xff]  }
   0xb   :  { %3730 = vmatpush3.bf16.msra.mxu1 %v3742_v5  ;;  %3213 = vmatpush3.bf16.msra.mxu0 %v3742_v5  ;;  %v3760_v22 = vld [vmem:[%s5253_s1 + $0x80] sm:$0xff]   ;;  %v3764_v27 = vld [vmem:[%s5253_s1 + $0x88] sm:$0xff]   ;;  %v3773_v33 = vld [vmem:[%s5253_s1 + $0x90] sm:$0xff]  }
   0xc   :  { %3723 = vmatprep.subr.bf16.mxu1 %v3743_v6  ;;  %3214 = vmatprep.subr.bf16.mxu0 %v3743_v6  ;;  %v3762_v23 = vld [vmem:[%s5253_s1 + $0x100] sm:$0xff]   ;;  %v3768_v29 = vld [vmem:[%s5253_s1 + $0x108] sm:$0xff]   ;;  %v3774_v34 = vld [vmem:[%s5254_s0 + $0x90] ss:$72 sps:$4 sm:$0xff]  }
   0xd   :  { %v3776_v35 = vld [vmem:[%s5253_s1 + $0x110] sm:$0xff]   ;;  %v3779_v37 = vld [vmem:[%s5253_s1 + $0x158] sm:$0xff]   ;;  %v3780_v39 = vld [vmem:[%s5254_s0 + $0x364] ss:$72 sps:$4 sm:$0xff]  }
   0xe   :  { %v3778_v38 = vld [vmem:[%s5253_s1 + $0x98] sm:$0xff]   ;;  %v3785_v40 = vld [vmem:[%s5254_s0 + $0x124] ss:$72 sps:$4 sm:$0xff]   ;;  %v3783_v43 = vld [vmem:[%s5254_s0 + $0x360] ss:$72 sps:$4 sm:$0xff]  }
   0xf   :  { %3731 = vmatpush3.bf16.msra.mxu1 %v3744_v7  ;;  %3215 = vmatpush3.bf16.msra.mxu0 %v3744_v7  ;;  %v3782_v41 = vld [vmem:[%s5253_s1 + $0x118] sm:$0xff]   ;;  %v3784_v42 = vld [vmem:[%s5253_s1 + $0xe0] sm:$0xff]   ;;  %v3791_v48 = vld [vmem:[%s5253_s1 + $0xe8] sm:$0xff]  }
  0x10   :  { %3724 = vmatprep.subr.bf16.mxu1 %v3745_v8  ;;  %3216 = vmatprep.subr.bf16.mxu0 %v3745_v8  ;;  %v3789_v44 = vld [vmem:[%s5253_s1 + $0x160] sm:$0xff]   ;;  %v3793_v49 = vld [vmem:[%s5253_s1 + $0x168] sm:$0xff]   ;;  %v3794_v51 = vld [vmem:[%s5254_s0 + $0x3f4] ss:$72 sps:$4 sm:$0xff]  }
  0x11   :  { %v3787_v45 = vld [vmem:[%s5253_s1 + $0xa0] sm:$0xff]   ;;  %v3792_v50 = vld [vmem:[%s5253_s1 + $0xa8] sm:$0xff]   ;;  %v3799_v53 = vld [vmem:[%s5254_s0 + $0x1b4] ss:$72 sps:$4 sm:$0xff]  }
  0x12   :  { %v3788_v46 = vld [vmem:[%s5254_s0 + $0x120] ss:$72 sps:$4 sm:$0xff]   ;;  %v3797_v54 = vld [vmem:[%s5254_s0 + $0x3f0] ss:$72 sps:$4 sm:$0xff]   ;;  %v3810_v63 = vld [vmem:[%s5254_s0 + $0xc] ss:$72 sps:$4 sm:$0xff]  }
  0x13   :  { %3732 = vmatpush3.bf16.msra.mxu1 %v3746_v9  ;;  %3217 = vmatpush3.bf16.msra.mxu0 %v3746_v9  ;;  %v3790_v47 = vld [vmem:[%s5253_s1 + $0x120] sm:$0xff]   ;;  %v3796_v52 = vld [vmem:[%s5253_s1 + $0x128] sm:$0xff]   ;;  %v3798_v55 = vld [vmem:[%s5253_s1 + $0xf0] sm:$0xff]  }
  0x14   :  { %3725 = vmatprep.subr.bf16.mxu1 %v3747_v10  ;;  %3218 = vmatprep.subr.bf16.mxu0 %v3747_v10  ;;  %v3801_v56 = vld [vmem:[%s5253_s1 + $0xb0] sm:$0xff]   ;;  %v3805_v60 = vld [vmem:[%s5253_s1 + $0xf8] sm:$0xff]   ;;  %v3812_v2 = vld [vmem:[%s5253_s1 + $0x1c0] sm:$0xff]  }
  0x15   :  { %v3803_v57 = vld [vmem:[%s5253_s1 + $0x170] sm:$0xff]   ;;  %v3807_v61 = vld [vmem:[%s5253_s1 + $0x178] sm:$0xff]   ;;  %v3816_v5 = vld [vmem:[%s5253_s1 + $0x180] sm:$0xff]  }
  0x16   :  { %v3802_v58 = vld [vmem:[%s5254_s0 + $0x1b0] ss:$72 sps:$4 sm:$0xff]   ;;  %v3815_v4 = vld [vmem:[%s5254_s0 + $0x14] ss:$72 sps:$4 sm:$0xff]   ;;  %v3817_v6 = vld [vmem:[%s5253_s1 + $0x240] sm:$0xff]  }
  0x17   :  { %3733 = vmatpush3.bf16.msra.mxu1 %v3748_v12  ;;  %3219 = vmatpush3.bf16.msra.mxu0 %v3748_v12  ;;  %v3804_v59 = vld [vmem:[%s5253_s1 + $0x130] sm:$0xff]   ;;  %v3806_v62 = vld [vmem:[%s5253_s1 + $0xb8] sm:$0xff]   ;;  %v3818_v7 = vld [vmem:[%s5253_s1 + $0x200] sm:$0xff]  }
  0x18   :  { %3726 = vmatprep.subr.bf16.mxu1 %v3749_v14  ;;  %3220 = vmatprep.subr.bf16.mxu0 %v3749_v14  ;;  %v3811_v0 = vld [vmem:[%s5253_s1 + $0x138] sm:$0xff]   ;;  %v3808_v1 = vld [vmem:[%s5254_s0 + $0x8] ss:$72 sps:$4 sm:$0xff]   ;;  %v3823_v11 = vld [vmem:[%s5254_s0 + $0xa4] ss:$72 sps:$4 sm:$0xff]  }
  0x19   :  { %v3813_v3 = vld [vmem:[%s5254_s0 + $0x10] ss:$72 sps:$4 sm:$0xff]   ;;  %v3819_v8 = vld [vmem:[%s5254_s0 + $0x9c] ss:$72 sps:$4 sm:$0xff]   ;;  %v3822_v9 = vld [vmem:[%s5253_s1 + $0x1c8] sm:$0xff]  }
  0x1a   :  { %v3821_v10 = vld [vmem:[%s5254_s0 + $0x98] ss:$72 sps:$4 sm:$0xff]   ;;  %v3825_v12 = vld [vmem:[%s5253_s1 + $0x188] sm:$0xff]  }
  0x1b   :  { %3734 = vmatpush3.bf16.msra.mxu1 %v3750_v15  ;;  %3221 = vmatpush3.bf16.msra.mxu0 %v3750_v15  ;;  %v3826_v13 = vld [vmem:[%s5254_s0 + $0xa0] ss:$72 sps:$4 sm:$0xff]  }
  0x1c   :  { %3727 = vmatprep.subr.bf16.mxu1 %v3751_v16  ;;  %3222 = vmatprep.subr.bf16.mxu0 %v3751_v16  ;;  %v3827_v14 = vld [vmem:[%s5253_s1 + $0x248] sm:$0xff]  }
  0x1d   :  { %v3828_v15 = vld [vmem:[%s5253_s1 + $0x208] sm:$0xff]  }
  0x1e   :  { %v3829_v16 = vld [vmem:[%s5254_s0 + $0x12c] ss:$72 sps:$4 sm:$0xff]  }
  0x1f   :  { %3735 = vmatpush3.bf16.msra.mxu1 %v3752_v17  ;;  %3223 = vmatpush3.bf16.msra.mxu0 %v3752_v17  ;;  %v3832_v17 = vld [vmem:[%s5253_s1 + $0x1d0] sm:$0xff]  }
  0x20   :  { %3272 = vmatprep.subr.bf16.mxu1 %v3756_v18  ;;  %3336 = vmatprep.subr.bf16.mxu0 %v3761_v21  ;;  %v3833_v18 = vld [vmem:[%s5254_s0 + $0x134] ss:$72 sps:$4 sm:$0xff]   ;;  %v3836_v21 = vld [vmem:[%s5254_s0 + $0x130] ss:$72 sps:$4 sm:$0xff]  }
  0x22   :  { %2072 = vmatmul.mubr.bf16.vlgmr.msra.gmra.mrb[0].mxu1 %v3753_v19  ;;  %2040 = vmatmul.mubr.bf16.vlgmr.msra.gmra.mrb[0].mxu0 %v3757_v20  ;;  %v3831_v19 = vld [vmem:[%s5254_s0 + $0x128] ss:$72 sps:$4 sm:$0xff]  }
  0x23   :  { %3273 = vmatpush3.bf16.msra.mxu1 %v3760_v22  ;;  %3337 = vmatpush3.bf16.msra.mxu0 %v3762_v23  ;;  %v3835_v20 = vld [vmem:[%s5253_s1 + $0x190] sm:$0xff]  }
  0x24   :  { %3274 = vmatprep.subr.bf16.mxu1 %v3763_v24  ;;  %3338 = vmatprep.subr.bf16.mxu0 %v3765_v25  ;;  %v3837_v22 = vld [vmem:[%s5253_s1 + $0x250] sm:$0xff]   ;;  %v3839_v24 = vld [vmem:[%s5254_s0 + $0x1bc] ss:$72 sps:$4 sm:$0xff]  }
  0x25   :  { %2079 = vmatprep.mubr.bf16.mxu1 %v3766_v26  ;;  %2047 = vmatprep.mubr.bf16.mxu0 %v3771_v28  ;;  %v3838_v23 = vld [vmem:[%s5253_s1 + $0x210] sm:$0xff]   ;;  %v3842_v25 = vld [vmem:[%s5253_s1 + $0x1d8] sm:$0xff]   ;;  %v3843_v26 = vld [vmem:[%s5254_s0 + $0x1c4] ss:$72 sps:$4 sm:$0xff]  }
  0x26   :  { %v3841_v28 = vld [vmem:[%s5254_s0 + $0x1b8] ss:$72 sps:$4 sm:$0xff]  }
  0x27   :  { %3275 = vmatpush3.bf16.msra.mxu1 %v3764_v27  ;;  %3339 = vmatpush3.bf16.msra.mxu0 %v3768_v29  ;;  %v3845_v27 = vld [vmem:[%s5253_s1 + $0x198] sm:$0xff]  }
  0x28   :  { %3276 = vmatprep.subr.bf16.mxu1 %v3770_v30  ;;  %3340 = vmatprep.subr.bf16.mxu0 %v3775_v32  ;;  %v3847_v29 = vld [vmem:[%s5253_s1 + $0x258] sm:$0xff]   ;;  %v3849_v32 = vld [vmem:[%s5254_s0 + $0x24c] ss:$72 sps:$4 sm:$0xff]  }
  0x29   :  { %v3848_v30 = vld [vmem:[%s5253_s1 + $0x218] sm:$0xff]  }
  0x2a   :  { %2080 = vmatmul.mubr.bf16.gmra.mrb[4].mxu1 %v3769_v31  ;;  %2048 = vmatmul.mubr.bf16.gmra.mrb[4].mxu0 %v3774_v34  ;;  %v3846_v31 = vld [vmem:[%s5254_s0 + $0x1c0] ss:$72 sps:$4 sm:$0xff]   ;;  %v3853_v34 = vld [vmem:[%s5254_s0 + $0x254] ss:$72 sps:$4 sm:$0xff]  }
  0x2b   :  { %3277 = vmatpush3.bf16.msra.mxu1 %v3773_v33  ;;  %3341 = vmatpush3.bf16.msra.mxu0 %v3776_v35  ;;  %v3852_v33 = vld [vmem:[%s5253_s1 + $0x1e0] sm:$0xff]  }
  0x2c   :  { %3278 = vmatprep.subr.bf16.mxu1 %v3777_v36  ;;  %3342 = vmatprep.subr.bf16.mxu0 %v3779_v37  ;;  %v3855_v35 = vld [vmem:[%s5253_s1 + $0x1a0] sm:$0xff]  }
  0x2d   :  { %2087 = vmatprep.mubr.bf16.mxu1 %v3780_v39  ;;  %2055 = vmatprep.mubr.bf16.mxu0 %v3785_v40  ;;  %v3857_v36 = vld [vmem:[%s5253_s1 + $0x260] sm:$0xff]   ;;  %v3856_v39 = vld [vmem:[%s5254_s0 + $0x250] ss:$72 sps:$4 sm:$0xff]  }
  0x2e   :  { %v3858_v37 = vld [vmem:[%s5253_s1 + $0x220] sm:$0xff]  }
  0x2f   :  { %3279 = vmatpush3.bf16.msra.mxu1 %v3778_v38  ;;  %3343 = vmatpush3.bf16.msra.mxu0 %v3782_v41  ;;  %v3851_v38 = vld [vmem:[%s5254_s0 + $0x248] ss:$72 sps:$4 sm:$0xff]   ;;  %v3859_v40 = vld [vmem:[%s5254_s0 + $0x2dc] ss:$72 sps:$4 sm:$0xff]  }
  0x30   :  { %3280 = vmatprep.subr.bf16.mxu1 %v3784_v42  ;;  %3344 = vmatprep.subr.bf16.mxu0 %v3789_v44  ;;  %v3862_v41 = vld [vmem:[%s5253_s1 + $0x1e8] sm:$0xff]  }
  0x31   :  { %v3863_v42 = vld [vmem:[%s5254_s0 + $0x2e4] ss:$72 sps:$4 sm:$0xff]  }
  0x32   :  { %2088 = vmatmul.mubr.bf16.gmra.mrb[8].mxu1 %v3783_v43  ;;  %2056 = vmatmul.mubr.bf16.gmra.mrb[8].mxu0 %v3788_v46  ;;  %v3865_v43 = vld [vmem:[%s5253_s1 + $0x1a8] sm:$0xff]   ;;  %v3861_v46 = vld [vmem:[%s5254_s0 + $0x2d8] ss:$72 sps:$4 sm:$0xff]  }
  0x33   :  { %3281 = vmatpush3.bf16.msra.mxu1 %v3787_v45  ;;  %3345 = vmatpush3.bf16.msra.mxu0 %v3790_v47  ;;  %v3867_v44 = vld [vmem:[%s5253_s1 + $0x268] sm:$0xff]  }
  0x34   :  { %3282 = vmatprep.subr.bf16.mxu1 %v3791_v48  ;;  %3346 = vmatprep.subr.bf16.mxu0 %v3793_v49  ;;  %v3868_v45 = vld [vmem:[%s5253_s1 + $0x228] sm:$0xff]   ;;  %v3872_v48 = vld [vmem:[%s5253_s1 + $0x1f0] sm:$0xff]  }
  0x35   :  { %2095 = vmatprep.mubr.bf16.mxu1 %v3794_v51  ;;  %2063 = vmatprep.mubr.bf16.mxu0 %v3799_v53  ;;  %v3866_v47 = vld [vmem:[%s5254_s0 + $0x2e0] ss:$72 sps:$4 sm:$0xff]   ;;  %v3869_v49 = vld [vmem:[%s5254_s0 + $0x36c] ss:$72 sps:$4 sm:$0xff]  }
  0x36   :  { %v3873_v51 = vld [vmem:[%s5254_s0 + $0x374] ss:$72 sps:$4 sm:$0xff]  }
  0x37   :  { %3283 = vmatpush3.bf16.msra.mxu1 %v3792_v50  ;;  %3347 = vmatpush3.bf16.msra.mxu0 %v3796_v52  ;;  %v3875_v50 = vld [vmem:[%s5253_s1 + $0x1b0] sm:$0xff]  }
  0x38   :  { %3284 = vmatprep.subr.bf16.mxu1 %v3798_v55  ;;  %3348 = vmatprep.subr.bf16.mxu0 %v3803_v57  ;;  %v3877_v52 = vld [vmem:[%s5253_s1 + $0x270] sm:$0xff]   ;;  %v3879_v57 = vld [vmem:[%s5254_s0 + $0x3fc] ss:$72 sps:$4 sm:$0xff]  }
  0x39   :  { %v3878_v53 = vld [vmem:[%s5253_s1 + $0x230] sm:$0xff]  }
  0x3a   :  { %2096 = vmatmul.mubr.bf16.gmra.mrb[12].mxu1 %v3797_v54  ;;  %2064 = vmatmul.mubr.bf16.gmra.mrb[12].mxu0 %v3802_v58  ;;  %v3882_v54 = vld [vmem:[%s5253_s1 + $0x1f8] sm:$0xff]   ;;  %v3871_v55 = vld [vmem:[%s5254_s0 + $0x368] ss:$72 sps:$4 sm:$0xff]   ;;  %v3883_v58 = vld [vmem:[%s5254_s0 + $0x404] ss:$72 sps:$4 sm:$0xff]  }
  0x3b   :  { %3285 = vmatpush3.bf16.msra.mxu1 %v3801_v56  ;;  %3349 = vmatpush3.bf16.msra.mxu0 %v3804_v59  ;;  %v3876_v56 = vld [vmem:[%s5254_s0 + $0x370] ss:$72 sps:$4 sm:$0xff]  }
  0x3c   :  { %3286 = vmatprep.subr.bf16.mxu1 %v3805_v60  ;;  %3350 = vmatprep.subr.bf16.mxu0 %v3807_v61  ;;  %v3885_v59 = vld [vmem:[%s5253_s1 + $0x1b8] sm:$0xff]  }
  0x3d   :  { %2136 = vmatprep.mubr.bf16.mxu1 %v3810_v63  ;;  %2233 = vmatprep.mubr.bf16.mxu0 %v3815_v4  ;;  %v3887_v60 = vld [vmem:[%s5253_s1 + $0x278] sm:$0xff]  }
  0x3e   :  { %v3888_v61 = vld [vmem:[%s5253_s1 + $0x238] sm:$0xff]  }
  0x3f   :  { %3287 = vmatpush3.bf16.msra.mxu1 %v3806_v62  ;;  %3351 = vmatpush3.bf16.msra.mxu0 %v3811_v0  ;;  %v3892_v62 = vld [vmem:[%s5253_s1 + $0x2c0] sm:$0xff]  }
  0x40   :  { %3400 = vmatprep.subr.bf16.mxu1 %v3812_v2  ;;  %3464 = vmatprep.subr.bf16.mxu0 %v3817_v6  ;;  %v3881_v63 = vld [vmem:[%s5254_s0 + $0x3f8] ss:$72 sps:$4 sm:$0xff]   ;;  %v3891_v2 = vld [vmem:[%s5254_s0 + $0x1c] ss:$72 sps:$4 sm:$0xff]  }
  0x41   :  { %v3897_v0 = vld [vmem:[%s5253_s1 + $0x340] sm:$0xff]  }
  0x42   :  { %2137 = vmatmul.mubr.bf16.vlgmr.msra.gmra.mrb[16].mxu1 %v3808_v1  ;;  %2234 = vmatmul.mubr.bf16.vlgmr.msra.gmra.mrb[16].mxu0 %v3813_v3  ;;  %v3886_v1 = vld [vmem:[%s5254_s0 + $0x400] ss:$72 sps:$4 sm:$0xff]   ;;  %v3895_v3 = vld [vmem:[%s5254_s0 + $0x24] ss:$72 sps:$4 sm:$0xff]  }
  0x43   :  { %3401 = vmatpush3.bf16.msra.mxu1 %v3816_v5  ;;  %3465 = vmatpush3.bf16.msra.mxu0 %v3818_v7  ;;  %v3889_v4 = vld [vmem:[%s5254_s0 + $0x18] ss:$72 sps:$4 sm:$0xff]  }
  0x44   :  { %2144 = vmatprep.mubr.bf16.mxu1 %v3819_v8  ;;  %3402 = vmatprep.subr.bf16.mxu1 %v3822_v9  ;;  %v3893_v5 = vld [vmem:[%s5254_s0 + $0x20] ss:$72 sps:$4 sm:$0xff]   ;;  %v3899_v8 = vld [vmem:[%s5254_s0 + $0xac] ss:$72 sps:$4 sm:$0xff]  }
  0x45   :  { %2241 = vmatprep.mubr.bf16.mxu0 %v3823_v11  ;;  %3466 = vmatprep.subr.bf16.mxu0 %v3827_v14  ;;  %v3896_v6 = vld [vmem:[%s5253_s1 + $0x280] sm:$0xff]   ;;  %v3902_v9 = vld [vmem:[%s5253_s1 + $0x2c8] sm:$0xff]   ;;  %v3912_v14 = vld [vmem:[%s5253_s1 + $0x2d0] sm:$0xff]  }
  0x46   :  { %v3898_v7 = vld [vmem:[%s5253_s1 + $0x300] sm:$0xff]   ;;  %v3905_v11 = vld [vmem:[%s5253_s1 + $0x288] sm:$0xff]  }
  0x47   :  { %3403 = vmatpush3.bf16.msra.mxu1 %v3825_v12  ;;  %3467 = vmatpush3.bf16.msra.mxu0 %v3828_v15  ;;  %v3907_v12 = vld [vmem:[%s5253_s1 + $0x348] sm:$0xff]  }
  0x48   :  { %3404 = vmatprep.subr.bf16.mxu1 %v3832_v17  ;;  %3468 = vmatprep.subr.bf16.mxu0 %v3837_v22  ;;  %v3901_v15 = vld [vmem:[%s5254_s0 + $0xa8] ss:$72 sps:$4 sm:$0xff]   ;;  %v3922_v22 = vld [vmem:[%s5253_s1 + $0x2d8] sm:$0xff]  }
  0x49   :  { %v3917_v17 = vld [vmem:[%s5253_s1 + $0x350] sm:$0xff]  }
  0x4a   :  { %2145 = vmatmul.mubr.bf16.gmra.mrb[20].mxu1 %v3821_v10  ;;  %2242 = vmatmul.mubr.bf16.gmra.mrb[20].mxu0 %v3826_v13  ;;  %v3903_v10 = vld [vmem:[%s5254_s0 + $0xb4] ss:$72 sps:$4 sm:$0xff]   ;;  %v3908_v13 = vld [vmem:[%s5253_s1 + $0x308] sm:$0xff]  }
  0x4b   :  { %2152 = vmatprep.mubr.bf16.mxu1 %v3829_v16  ;;  %2249 = vmatprep.mubr.bf16.mxu0 %v3833_v18  ;;  %v3906_v16 = vld [vmem:[%s5254_s0 + $0xb0] ss:$72 sps:$4 sm:$0xff]   ;;  %v3909_v18 = vld [vmem:[%s5254_s0 + $0x13c] ss:$72 sps:$4 sm:$0xff]  }
  0x4c   :  { %3405 = vmatpush3.bf16.msra.mxu1 %v3835_v20  ;;  %3469 = vmatpush3.bf16.msra.mxu0 %v3838_v23  ;;  %v3915_v20 = vld [vmem:[%s5253_s1 + $0x290] sm:$0xff]   ;;  %v3927_v23 = vld [vmem:[%s5253_s1 + $0x358] sm:$0xff]  }
  0x4d   :  { %3406 = vmatprep.subr.bf16.mxu1 %v3842_v25  ;;  %3470 = vmatprep.subr.bf16.mxu0 %v3847_v29  ;;  %v3911_v25 = vld [vmem:[%s5254_s0 + $0x138] ss:$72 sps:$4 sm:$0xff]  }
  0x4e   :  { %v3932_v29 = vld [vmem:[%s5253_s1 + $0x2e0] sm:$0xff]  }
  0x50   :  { %3407 = vmatpush3.bf16.msra.mxu1 %v3845_v27  ;;  %3471 = vmatpush3.bf16.msra.mxu0 %v3848_v30  ;;  %v3928_v27 = vld [vmem:[%s5253_s1 + $0x318] sm:$0xff]  }
  0x51   :  { %3408 = vmatprep.subr.bf16.mxu1 %v3852_v33  ;;  %3472 = vmatprep.subr.bf16.mxu0 %v3857_v36  ;;  %v3923_v30 = vld [vmem:[%s5254_s0 + $0x1d4] ss:$72 sps:$4 sm:$0xff]   ;;  %v3938_v33 = vld [vmem:[%s5253_s1 + $0x320] sm:$0xff]   ;;  %v3926_v36 = vld [vmem:[%s5254_s0 + $0x1d0] ss:$72 sps:$4 sm:$0xff]  }
  0x52   :  { %2153 = vmatmul.mubr.bf16.gmra.mrb[24].mxu1 %v3831_v19  ;;  %2250 = vmatmul.mubr.bf16.gmra.mrb[24].mxu0 %v3836_v21  ;;  %v3913_v19 = vld [vmem:[%s5254_s0 + $0x144] ss:$72 sps:$4 sm:$0xff]   ;;  %v3918_v21 = vld [vmem:[%s5253_s1 + $0x310] sm:$0xff]  }
  0x53   :  { %2160 = vmatprep.mubr.bf16.mxu1 %v3839_v24  ;;  %2257 = vmatprep.mubr.bf16.mxu0 %v3843_v26  ;;  %v3925_v24 = vld [vmem:[%s5253_s1 + $0x298] sm:$0xff]   ;;  %v3916_v26 = vld [vmem:[%s5254_s0 + $0x140] ss:$72 sps:$4 sm:$0xff]  }
  0x54   :  { %3409 = vmatpush3.bf16.msra.mxu1 %v3855_v35  ;;  %3473 = vmatpush3.bf16.msra.mxu0 %v3858_v37  ;;  %v3921_v35 = vld [vmem:[%s5254_s0 + $0x1c8] ss:$72 sps:$4 sm:$0xff]   ;;  %v3929_v37 = vld [vmem:[%s5254_s0 + $0x25c] ss:$72 sps:$4 sm:$0xff]  }
  0x55   :  { %3410 = vmatprep.subr.bf16.mxu1 %v3862_v41  ;;  %3474 = vmatprep.subr.bf16.mxu0 %v3867_v44  ;;  %v3948_v41 = vld [vmem:[%s5253_s1 + $0x328] sm:$0xff]  }
  0x56   :  { %v3936_v44 = vld [vmem:[%s5254_s0 + $0x260] ss:$72 sps:$4 sm:$0xff]  }
  0x58   :  { %3411 = vmatpush3.bf16.msra.mxu1 %v3865_v43  ;;  %3475 = vmatpush3.bf16.msra.mxu0 %v3868_v45  ;;  %v3931_v43 = vld [vmem:[%s5254_s0 + $0x258] ss:$72 sps:$4 sm:$0xff]   ;;  %v3955_v45 = vld [vmem:[%s5253_s1 + $0x2b0] sm:$0xff]  }
  0x59   :  { %3412 = vmatprep.subr.bf16.mxu1 %v3872_v48  ;;  %3476 = vmatprep.subr.bf16.mxu0 %v3877_v52  ;;  %v3939_v48 = vld [vmem:[%s5254_s0 + $0x2ec] ss:$72 sps:$4 sm:$0xff]   ;;  %v3941_v52 = vld [vmem:[%s5254_s0 + $0x2e8] ss:$72 sps:$4 sm:$0xff]  }
  0x5a   :  { %2161 = vmatmul.mubr.bf16.gmra.mrb[28].mxu1 %v3841_v28  ;;  %2258 = vmatmul.mubr.bf16.gmra.mrb[28].mxu0 %v3846_v31  ;;  %v3919_v28 = vld [vmem:[%s5254_s0 + $0x1cc] ss:$72 sps:$4 sm:$0xff]   ;;  %v3935_v31 = vld [vmem:[%s5253_s1 + $0x2a0] sm:$0xff]  }
  0x5b   :  { %2168 = vmatprep.mubr.bf16.mxu1 %v3849_v32  ;;  %2265 = vmatprep.mubr.bf16.mxu0 %v3853_v34  ;;  %v3937_v32 = vld [vmem:[%s5253_s1 + $0x360] sm:$0xff]   ;;  %v3942_v34 = vld [vmem:[%s5253_s1 + $0x2e8] sm:$0xff]  }
  0x5c   :  { %3413 = vmatpush3.bf16.msra.mxu1 %v3875_v50  ;;  %3477 = vmatpush3.bf16.msra.mxu0 %v3878_v53  ;;  %v3962_v50 = vld [vmem:[%s5253_s1 + $0x2f8] sm:$0xff]  }
  0x5d   :  { %3414 = vmatprep.subr.bf16.mxu1 %v3882_v54  ;;  %3478 = vmatprep.subr.bf16.mxu0 %v3887_v60  ;;  %v3946_v53 = vld [vmem:[%s5254_s0 + $0x2f0] ss:$72 sps:$4 sm:$0xff]  }
  0x5e   :  { %v3967_v54 = vld [vmem:[%s5253_s1 + $0x378] sm:$0xff]  }
  0x5f   :  { %v3951_v60 = vld [vmem:[%s5254_s0 + $0x378] ss:$72 sps:$4 sm:$0xff]  }
  0x60   :  { %3415 = vmatpush3.bf16.msra.mxu1 %v3885_v59  ;;  %3479 = vmatpush3.bf16.msra.mxu0 %v3888_v61  ;;  %v4091_v59 = vmov 0   ;;  %v3956_v61 = vld [vmem:[%s5254_s0 + $0x380] ss:$72 sps:$4 sm:$0xff]  }
  0x61   :  { %3528 = vmatprep.subr.bf16.mxu1 %v3892_v62  ;;  %3592 = vmatprep.subr.bf16.mxu0 %v3897_v0  ;;  %v3959_v62 = vld [vmem:[%s5254_s0 + $0x40c] ss:$72 sps:$4 sm:$0xff]   ;;  %v3961_v0 = vld [vmem:[%s5254_s0 + $0x408] ss:$72 sps:$4 sm:$0xff]  }
  0x62   :  { %2169 = vmatmul.mubr.bf16.gmra.mrb[32].mxu1 %v3851_v38  ;;  %2266 = vmatmul.mubr.bf16.gmra.mrb[32].mxu0 %v3856_v39  ;;  %v3933_v38 = vld [vmem:[%s5254_s0 + $0x264] ss:$72 sps:$4 sm:$0xff]  }
  0x63   :  { %2176 = vmatprep.mubr.bf16.mxu1 %v3859_v40  ;;  %2273 = vmatprep.mubr.bf16.mxu0 %v3863_v42  ;;  %v3945_v39 = vld [vmem:[%s5253_s1 + $0x2a8] sm:$0xff]   ;;  %v3952_v42 = vld [vmem:[%s5253_s1 + $0x2f0] sm:$0xff]  }
  0x64   :  { %v3947_v40 = vld [vmem:[%s5253_s1 + $0x368] sm:$0xff]  }
  0x6a   :  { %2177 = vmatmul.mubr.bf16.gmra.mrb[36].mxu1 %v3861_v46  ;;  %2274 = vmatmul.mubr.bf16.gmra.mrb[36].mxu0 %v3866_v47  ;;  %v3957_v46 = vld [vmem:[%s5253_s1 + $0x370] sm:$0xff]  }
  0x6b   :  { %2184 = vmatprep.mubr.bf16.mxu1 %v3869_v49  ;;  %2281 = vmatprep.mubr.bf16.mxu0 %v3873_v51  ;;  %v3958_v47 = vld [vmem:[%s5253_s1 + $0x330] sm:$0xff]   ;;  %v3965_v51 = vld [vmem:[%s5253_s1 + $0x2b8] sm:$0xff]  }
  0x6c   :  { %v3943_v49 = vld [vmem:[%s5254_s0 + $0x2f4] ss:$72 sps:$4 sm:$0xff]  }
  0x72   :  { %2185 = vmatmul.mubr.bf16.gmra.mrb[40].mxu1 %v3871_v55  ;;  %2282 = vmatmul.mubr.bf16.gmra.mrb[40].mxu0 %v3876_v56  ;;  %v3968_v55 = vld [vmem:[%s5253_s1 + $0x338] sm:$0xff]  }
  0x73   :  { %2192 = vmatprep.mubr.bf16.mxu1 %v3879_v57  ;;  %2289 = vmatprep.mubr.bf16.mxu0 %v3883_v58  ;;  %v3949_v56 = vld [vmem:[%s5254_s0 + $0x37c] ss:$72 sps:$4 sm:$0xff]  }
  0x74   :  { %v3953_v57 = vld [vmem:[%s5254_s0 + $0x384] ss:$72 sps:$4 sm:$0xff]  }
  0x75   :  { %v3972_v58 = vld [vmem:[%s5253_s1 + $0x3c0] sm:$0xff]  }
  0x7a   :  { %2193 = vmatmul.mubr.bf16.gmra.mrb[44].mxu1 %v3881_v63  ;;  %2290 = vmatmul.mubr.bf16.gmra.mrb[44].mxu0 %v3886_v1  ;;  %v3963_v63 = vld [vmem:[%s5254_s0 + $0x414] ss:$72 sps:$4 sm:$0xff]   ;;  %v3966_v1 = vld [vmem:[%s5254_s0 + $0x410] ss:$72 sps:$4 sm:$0xff]  }
  0x7b   :  { %2330 = vmatprep.mubr.bf16.mxu1 %v3891_v2  ;;  %2427 = vmatprep.mubr.bf16.mxu0 %v3895_v3  ;;  %v3971_v2 = vld [vmem:[%s5254_s0 + $0x2c] ss:$72 sps:$4 sm:$0xff]  }
  0x7c   :  { %v3975_v3 = vld [vmem:[%s5254_s0 + $0x34] ss:$72 sps:$4 sm:$0xff]  }
  0x82   :  { %2331 = vmatmul.mubr.bf16.vlgmr.msra.gmra.mrb[48].mxu1 %v3889_v4  ;;  %2428 = vmatmul.mubr.bf16.vlgmr.msra.gmra.mrb[48].mxu0 %v3893_v5  ;;  %v3969_v4 = vld [vmem:[%s5254_s0 + $0x28] ss:$72 sps:$4 sm:$0xff]  }
  0x83   :  { %3529 = vmatpush3.bf16.msra.mxu1 %v3896_v6  ;;  %3593 = vmatpush3.bf16.msra.mxu0 %v3898_v7  ;;  %v3973_v5 = vld [vmem:[%s5254_s0 + $0x30] ss:$72 sps:$4 sm:$0xff]   ;;  %v3976_v6 = vld [vmem:[%s5253_s1 + $0x380] sm:$0xff]  }
  0x84   :  { %2338 = vmatprep.mubr.bf16.mxu1 %v3899_v8  ;;  %3530 = vmatprep.subr.bf16.mxu1 %v3902_v9  ;;  %v3977_v7 = vld [vmem:[%s5253_s1 + $0x400] sm:$0xff]   ;;  %v3981_v9 = vld [vmem:[%s5253_s1 + $0x3c8] sm:$0xff]  }
  0x85   :  { %2435 = vmatprep.mubr.bf16.mxu0 %v3903_v10  ;;  %3594 = vmatprep.subr.bf16.mxu0 %v3907_v12  ;;  %v3978_v8 = vld [vmem:[%s5254_s0 + $0xbc] ss:$72 sps:$4 sm:$0xff]   ;;  %v3986_v12 = vld [vmem:[%s5253_s1 + $0x408] sm:$0xff]  }
  0x86   :  { %v3982_v10 = vld [vmem:[%s5254_s0 + $0xc4] ss:$72 sps:$4 sm:$0xff]  }
  0x87   :  { %3531 = vmatpush3.bf16.msra.mxu1 %v3905_v11  ;;  %3595 = vmatpush3.bf16.msra.mxu0 %v3908_v13  ;;  %v3984_v11 = vld [vmem:[%s5253_s1 + $0x388] sm:$0xff]   ;;  %v3980_v13 = vld [vmem:[%s5254_s0 + $0xb8] ss:$72 sps:$4 sm:$0xff]  }
  0x88   :  { %3532 = vmatprep.subr.bf16.mxu1 %v3912_v14  ;;  %3596 = vmatprep.subr.bf16.mxu0 %v3917_v17  ;;  %v3985_v14 = vld [vmem:[%s5254_s0 + $0xc0] ss:$72 sps:$4 sm:$0xff]   ;;  %v3991_v17 = vld [vmem:[%s5254_s0 + $0x154] ss:$72 sps:$4 sm:$0xff]  }
  0x8a   :  { %2339 = vmatmul.mubr.bf16.gmra.mrb[52].mxu1 %v3901_v15  ;;  %2436 = vmatmul.mubr.bf16.gmra.mrb[52].mxu0 %v3906_v16  ;;  %v3990_v15 = vld [vmem:[%s5253_s1 + $0x3d0] sm:$0xff]  }
  0x8b   :  { %2346 = vmatprep.mubr.bf16.mxu1 %v3909_v18  ;;  %2443 = vmatprep.mubr.bf16.mxu0 %v3913_v19  ;;  %v3987_v16 = vld [vmem:[%s5254_s0 + $0x14c] ss:$72 sps:$4 sm:$0xff]  }
  0x8c   :  { %3533 = vmatpush3.bf16.msra.mxu1 %v3915_v20  ;;  %3597 = vmatpush3.bf16.msra.mxu0 %v3918_v21  ;;  %v3993_v18 = vld [vmem:[%s5253_s1 + $0x390] sm:$0xff]   ;;  %v3999_v20 = vld [vmem:[%s5253_s1 + $0x3d8] sm:$0xff]  }
  0x8d   :  { %3534 = vmatprep.subr.bf16.mxu1 %v3922_v22  ;;  %3598 = vmatprep.subr.bf16.mxu0 %v3927_v23  ;;  %v3995_v19 = vld [vmem:[%s5253_s1 + $0x410] sm:$0xff]   ;;  %v4002_v23 = vld [vmem:[%s5253_s1 + $0x398] sm:$0xff]  }
  0x8e   :  { %v3989_v21 = vld [vmem:[%s5254_s0 + $0x148] ss:$72 sps:$4 sm:$0xff]  }
  0x8f   :  { %v3994_v22 = vld [vmem:[%s5254_s0 + $0x150] ss:$72 sps:$4 sm:$0xff]  }
  0x90   :  { %3535 = vmatpush3.bf16.msra.mxu1 %v3925_v24  ;;  %3599 = vmatpush3.bf16.msra.mxu0 %v3928_v27  ;;  %v4004_v24 = vld [vmem:[%s5253_s1 + $0x418] sm:$0xff]   ;;  %v4000_v27 = vld [vmem:[%s5254_s0 + $0x1e4] ss:$72 sps:$4 sm:$0xff]  }
  0x91   :  { %3536 = vmatprep.subr.bf16.mxu1 %v3932_v29  ;;  %3600 = vmatprep.subr.bf16.mxu0 %v3937_v32  ;;  %v4012_v29 = vld [vmem:[%s5253_s1 + $0x3a0] sm:$0xff]  }
  0x92   :  { %2347 = vmatmul.mubr.bf16.gmra.mrb[56].mxu1 %v3911_v25  ;;  %2444 = vmatmul.mubr.bf16.gmra.mrb[56].mxu0 %v3916_v26  ;;  %v4008_v25 = vld [vmem:[%s5253_s1 + $0x3e0] sm:$0xff]  }
  0x93   :  { %2354 = vmatprep.mubr.bf16.mxu1 %v3919_v28  ;;  %2451 = vmatprep.mubr.bf16.mxu0 %v3923_v30  ;;  %v3996_v26 = vld [vmem:[%s5254_s0 + $0x1dc] ss:$72 sps:$4 sm:$0xff]   ;;  %v4018_v30 = vld [vmem:[%s5253_s1 + $0x3e8] sm:$0xff]   ;;  %v3998_v32 = vld [vmem:[%s5254_s0 + $0x1d8] ss:$72 sps:$4 sm:$0xff]  }
  0x94   :  { %3537 = vmatpush3.bf16.msra.mxu1 %v3935_v31  ;;  %3601 = vmatpush3.bf16.msra.mxu0 %v3938_v33  ;;  %v4009_v28 = vld [vmem:[%s5253_s1 + $0x420] sm:$0xff]   ;;  %v4014_v31 = vld [vmem:[%s5253_s1 + $0x428] sm:$0xff]  }
  0x95   :  { %3538 = vmatprep.subr.bf16.mxu1 %v3942_v34  ;;  %3602 = vmatprep.subr.bf16.mxu0 %v3947_v40  ;;  %v4021_v33 = vld [vmem:[%s5253_s1 + $0x3a8] sm:$0xff]   ;;  %v4036_v40 = vld [vmem:[%s5253_s1 + $0x3f8] sm:$0xff]  }
  0x96   :  { %v4003_v34 = vld [vmem:[%s5254_s0 + $0x1e0] ss:$72 sps:$4 sm:$0xff]  }
  0x98   :  { %3539 = vmatpush3.bf16.msra.mxu1 %v3945_v39  ;;  %3603 = vmatpush3.bf16.msra.mxu0 %v3948_v41  ;;  %v4030_v39 = vld [vmem:[%s5253_s1 + $0x3b0] sm:$0xff]   ;;  %v4032_v41 = vld [vmem:[%s5253_s1 + $0x438] sm:$0xff]  }
  0x99   :  { %3540 = vmatprep.subr.bf16.mxu1 %v3952_v42  ;;  %3604 = vmatprep.subr.bf16.mxu0 %v3957_v46  ;;  %v4039_v42 = vld [vmem:[%s5253_s1 + $0x3b8] sm:$0xff]   ;;  %v4019_v46 = vld [vmem:[%s5254_s0 + $0x304] ss:$72 sps:$4 sm:$0xff]  }
  0x9a   :  { %2355 = vmatmul.mubr.bf16.gmra.mrb[60].mxu1 %v3921_v35  ;;  %2452 = vmatmul.mubr.bf16.gmra.mrb[60].mxu0 %v3926_v36  ;;  %v4027_v35 = vld [vmem:[%s5253_s1 + $0x3f0] sm:$0xff]  }
  0x9b   :  { %2362 = vmatprep.mubr.bf16.mxu1 %v3929_v37  ;;  %2459 = vmatprep.mubr.bf16.mxu0 %v3933_v38  ;;  %v4005_v36 = vld [vmem:[%s5254_s0 + $0x26c] ss:$72 sps:$4 sm:$0xff]  }
  0x9c   :  { %3541 = vmatpush3.bf16.msra.mxu1 %v3955_v45  ;;  %3605 = vmatpush3.bf16.msra.mxu0 %v3958_v47  ;;  %v4010_v37 = vld [vmem:[%s5254_s0 + $0x274] ss:$72 sps:$4 sm:$0xff]   ;;  %v4041_v47 = vld [vmem:[%s5253_s1 + $0x440] sm:$0xff]  }
  0x9d   :  { %3542 = vmatprep.subr.bf16.mxu1 %v3962_v50  ;;  %3606 = vmatprep.subr.bf16.mxu0 %v3967_v54  ;;  %v4023_v38 = vld [vmem:[%s5253_s1 + $0x430] sm:$0xff]   ;;  %v4015_v45 = vld [vmem:[%s5254_s0 + $0x2fc] ss:$72 sps:$4 sm:$0xff]   ;;  %v4022_v50 = vld [vmem:[%s5254_s0 + $0x300] ss:$72 sps:$4 sm:$0xff]  }
  0x9e   :  { %v4026_v54 = vld [vmem:[%s5254_s0 + $0x388] ss:$72 sps:$4 sm:$0xff]  }
  0xa0   :  { %3543 = vmatpush3.bf16.msra.mxu1 %v3965_v51  ;;  %3607 = vmatpush3.bf16.msra.mxu0 %v3968_v55  ;;  %v4031_v55 = vld [vmem:[%s5254_s0 + $0x390] ss:$72 sps:$4 sm:$0xff]  }
  0xa1   :  { %2783 = vmatprep.subr.bf16.mxu0 %v4091_v59  ;;  %3656 = vmatprep.subr.bf16.mxu1 %v3972_v58 }
  0xa2   :  { %2363 = vmatmul.mubr.bf16.gmra.mrb[64].mxu1 %v3931_v43  ;;  %2460 = vmatmul.mubr.bf16.gmra.mrb[64].mxu0 %v3936_v44  ;;  %v4007_v43 = vld [vmem:[%s5254_s0 + $0x268] ss:$72 sps:$4 sm:$0xff]  }
  0xa3   :  { %2370 = vmatprep.mubr.bf16.mxu1 %v3939_v48  ;;  %2467 = vmatprep.mubr.bf16.mxu0 %v3943_v49  ;;  %v4013_v44 = vld [vmem:[%s5254_s0 + $0x270] ss:$72 sps:$4 sm:$0xff]   ;;  %v4045_v48 = vld [vmem:[%s5253_s1 + $0x448] ss:$0 sps:$4 sm:$0xff]  }
  0xa4   :  { %v4017_v49 = vld [vmem:[%s5254_s0 + $0x2f8] ss:$72 sps:$4 sm:$0xff]   ;;  %v2005_v51 = vsel %vm2003_vm0, %v4045_v48, 0 }
  0xaa   :  { %2371 = vmatmul.mubr.bf16.gmra.mrb[68].mxu1 %v3941_v52  ;;  %2468 = vmatmul.mubr.bf16.gmra.mrb[68].mxu0 %v3946_v53  ;;  %v4024_v52 = vld [vmem:[%s5254_s0 + $0x38c] ss:$72 sps:$4 sm:$0xff]  }
  0xab   :  { %2378 = vmatprep.mubr.bf16.mxu1 %v3949_v56  ;;  %2475 = vmatprep.mubr.bf16.mxu0 %v3953_v57  ;;  %v4028_v53 = vld [vmem:[%s5254_s0 + $0x394] ss:$72 sps:$4 sm:$0xff]   ;;  %v4037_v57 = vld [vmem:[%s5254_s0 + $0x424] ss:$72 sps:$4 sm:$0xff]  }
  0xac   :  { %v4033_v56 = vld [vmem:[%s5254_s0 + $0x41c] ss:$72 sps:$4 sm:$0xff]  }
  0xb2   :  { %2379 = vmatmul.mubr.bf16.gmra.mrb[72].mxu1 %v3951_v60  ;;  %2476 = vmatmul.mubr.bf16.gmra.mrb[72].mxu0 %v3956_v61 }
  0xb3   :  { %2386 = vmatprep.mubr.bf16.mxu1 %v3959_v62  ;;  %2483 = vmatprep.mubr.bf16.mxu0 %v3963_v63  ;;  %v4035_v62 = vld [vmem:[%s5254_s0 + $0x418] ss:$72 sps:$4 sm:$0xff]  }
  0xb4   :  { %v4040_v63 = vld [vmem:[%s5254_s0 + $0x420] ss:$72 sps:$4 sm:$0xff]  }
  0xba   :  { %2387 = vmatmul.mubr.bf16.gmra.mrb[76].mxu1 %v3961_v0  ;;  %2484 = vmatmul.mubr.bf16.gmra.mrb[76].mxu0 %v3966_v1 }
  0xbb   :  { %2524 = vmatprep.mubr.bf16.mxu1 %v3971_v2  ;;  %2621 = vmatprep.mubr.bf16.mxu0 %v3975_v3 }
  0xc2   :  { %2525 = vmatmul.mubr.bf16.vlgmr.msra.gmra.mrb[80].mxu1 %v3969_v4  ;;  %2622 = vmatmul.mubr.bf16.vlgmr.msra.gmra.mrb[80].mxu0 %v3973_v5  ;;  %v4044_v4 = vld [vmem:[%s5254_s0 + $0x3c] ss:$72 sps:$4 sm:$0xff]  }
  0xc3   :  { %3657 = vmatpush3.bf16.msra.mxu1 %v3976_v6  ;;  %2784 = vmatpush1.bf16.msra.mxu0 %v3977_v7  ;;  %v4048_v5 = vld [vmem:[%s5254_s0 + $0x44] ss:$72 sps:$4 sm:$0xff]  }
  0xc4   :  { %2532 = vmatprep.mubr.bf16.mxu1 %v3978_v8  ;;  %3658 = vmatprep.subr.bf16.mxu1 %v3981_v9 }
  0xc5   :  { %2629 = vmatprep.mubr.bf16.mxu0 %v3982_v10  ;;  %2785 = vmatprep.subr.bf16.mxu0 %v4091_v59 }
  0xc7   :  { %3659 = vmatpush3.bf16.msra.mxu1 %v3984_v11  ;;  %2786 = vmatpush1.bf16.msra.mxu0 %v3986_v12 }
  0xc8   :  { %3660 = vmatprep.subr.bf16.mxu1 %v3990_v15  ;;  %2787 = vmatprep.subr.bf16.mxu0 %v4091_v59  ;;  %v4046_v15 = vld [vmem:[%s5254_s0 + $0x40] ss:$72 sps:$4 sm:$0xff]  }
  0xca   :  { %2533 = vmatmul.mubr.bf16.gmra.mrb[84].mxu1 %v3980_v13  ;;  %2630 = vmatmul.mubr.bf16.gmra.mrb[84].mxu0 %v3985_v14  ;;  %v4042_v14 = vld [vmem:[%s5254_s0 + $0x38] ss:$72 sps:$4 sm:$0xff]  }
  0xcb   :  { %2540 = vmatprep.mubr.bf16.mxu1 %v3987_v16  ;;  %2637 = vmatprep.mubr.bf16.mxu0 %v3991_v17 }
  0xcc   :  { %3661 = vmatpush3.bf16.msra.mxu1 %v3993_v18  ;;  %2788 = vmatpush1.bf16.msra.mxu0 %v3995_v19 }
  0xcd   :  { %3662 = vmatprep.subr.bf16.mxu1 %v3999_v20  ;;  %2789 = vmatprep.subr.bf16.mxu0 %v4091_v59  ;;  %v4049_v20 = vld [vmem:[%s5254_s0 + $0xcc] ss:$72 sps:$4 sm:$0xff]  }
  0xd0   :  { %3663 = vmatpush3.bf16.msra.mxu1 %v4002_v23  ;;  %2790 = vmatpush1.bf16.msra.mxu0 %v4004_v24 }
  0xd1   :  { %2791 = vmatprep.subr.bf16.mxu0 %v4091_v59  ;;  %3664 = vmatprep.subr.bf16.mxu1 %v4008_v25 }
  0xd2   :  { %2541 = vmatmul.mubr.bf16.gmra.mrb[88].mxu1 %v3989_v21  ;;  %2638 = vmatmul.mubr.bf16.gmra.mrb[88].mxu0 %v3994_v22  ;;  %v4052_v21 = vld [vmem:[%s5254_s0 + $0xd4] ss:$72 sps:$4 sm:$0xff]  }
  0xd3   :  { %2548 = vmatprep.mubr.bf16.mxu1 %v3996_v26  ;;  %2645 = vmatprep.mubr.bf16.mxu0 %v4000_v27 }
  0xd4   :  { %2792 = vmatpush1.bf16.msra.mxu0 %v4009_v28  ;;  %3665 = vmatpush3.bf16.msra.mxu1 %v4012_v29 }
  0xd5   :  { %2793 = vmatprep.subr.bf16.mxu0 %v4091_v59  ;;  %3666 = vmatprep.subr.bf16.mxu1 %v4018_v30  ;;  %v4051_v30 = vld [vmem:[%s5254_s0 + $0xc8] ss:$72 sps:$4 sm:$0xff]  }
  0xd8   :  { %2794 = vmatpush1.bf16.msra.mxu0 %v4014_v31  ;;  %3667 = vmatpush3.bf16.msra.mxu1 %v4021_v33  ;;  %v4054_v31 = vld [vmem:[%s5254_s0 + $0xd0] ss:$72 sps:$4 sm:$0xff]  }
  0xd9   :  { %2795 = vmatprep.subr.bf16.mxu0 %v4091_v59  ;;  %3668 = vmatprep.subr.bf16.mxu1 %v4027_v35 }
  0xda   :  { %2549 = vmatmul.mubr.bf16.gmra.mrb[92].mxu1 %v3998_v32  ;;  %2646 = vmatmul.mubr.bf16.gmra.mrb[92].mxu0 %v4003_v34 }
  0xdb   :  { %2556 = vmatprep.mubr.bf16.mxu1 %v4005_v36  ;;  %2653 = vmatprep.mubr.bf16.mxu0 %v4010_v37  ;;  %v4055_v36 = vld [vmem:[%s5254_s0 + $0x15c] ss:$72 sps:$4 sm:$0xff]  }
  0xdc   :  { %2796 = vmatpush1.bf16.msra.mxu0 %v4023_v38  ;;  %3669 = vmatpush3.bf16.msra.mxu1 %v4030_v39  ;;  %v4058_v37 = vld [vmem:[%s5254_s0 + $0x164] ss:$72 sps:$4 sm:$0xff]  }
  0xdd   :  { %2797 = vmatprep.subr.bf16.mxu0 %v4091_v59  ;;  %3670 = vmatprep.subr.bf16.mxu1 %v4036_v40 }
  0xe0   :  { %2798 = vmatpush1.bf16.msra.mxu0 %v4032_v41  ;;  %3671 = vmatpush3.bf16.msra.mxu1 %v4039_v42 }
  0xe1   :  { %2799 = vmatprep.subr.bf16.mxu0 %v4091_v59 }
  0xe2   :  { %2557 = vmatmul.mubr.bf16.gmra.mrb[96].mxu1 %v4007_v43  ;;  %2654 = vmatmul.mubr.bf16.gmra.mrb[96].mxu0 %v4013_v44 }
  0xe3   :  { %2564 = vmatprep.mubr.bf16.mxu1 %v4015_v45  ;;  %2661 = vmatprep.mubr.bf16.mxu0 %v4019_v46  ;;  %v4057_v46 = vld [vmem:[%s5254_s0 + $0x158] ss:$72 sps:$4 sm:$0xff]  }
  0xe4   :  { %2800 = vmatpush1.bf16.msra.mxu0 %v4041_v47  ;;  %v4060_v47 = vld [vmem:[%s5254_s0 + $0x160] ss:$72 sps:$4 sm:$0xff]  }
  0xe5   :  { %2801 = vmatprep.subr.bf16.mxu0 %v4091_v59 }
  0xe8   :  { %2802 = vmatpush1.bf16.msra.mxu0 %v2005_v51 }
  0xea   :  { %2565 = vmatmul.mubr.bf16.gmra.mrb[100].mxu1 %v4017_v49  ;;  %2662 = vmatmul.mubr.bf16.gmra.mrb[100].mxu0 %v4022_v50 }
  0xeb   :  { %2572 = vmatprep.mubr.bf16.mxu1 %v4024_v52  ;;  %2669 = vmatprep.mubr.bf16.mxu0 %v4028_v53  ;;  %v4061_v52 = vld [vmem:[%s5254_s0 + $0x1ec] ss:$72 sps:$4 sm:$0xff]  }
  0xec   :  { %v4064_v53 = vld [vmem:[%s5254_s0 + $0x1f4] ss:$72 sps:$4 sm:$0xff]  }
  0xf2   :  { %2573 = vmatmul.mubr.bf16.gmra.mrb[104].mxu1 %v4026_v54  ;;  %2670 = vmatmul.mubr.bf16.gmra.mrb[104].mxu0 %v4031_v55 }
  0xf3   :  { %2580 = vmatprep.mubr.bf16.mxu1 %v4033_v56  ;;  %2677 = vmatprep.mubr.bf16.mxu0 %v4037_v57 }
  0xf5   :  { %v3248_v58 = vpop.f32.mrb[0].mxu1  ;;  %v3224_v59 = vpop.f32.mrb[0].mxu0 }
  0xf6   :  { %v3249_v60 = vpop.f32.mrb[1].mxu1  ;;  %v3225_v61 = vpop.f32.mrb[1].mxu0 }
  0xf7   :  { %v4872_v0 = vadd.f32 %v3249_v60, %v3248_v58  ;;  %v3251_v1 = vpop.f32.mrb[2].mxu1  ;;  %v4874_v2 = vadd.f32 %v3225_v61, %v3224_v59  ;;  %v3227_v3 = vpop.f32.mrb[2].mxu0  ;;  %v4953_v58 = vld [vmem:[%s5255_s2] ss:$0 sm:$0xff] }
  0xf8   :  { %v3252_v6 = vpop.f32.mrb[3].mxu1  ;;  %v3228_v7 = vpop.f32.mrb[3].mxu0 }
  0xf9   :  { %v4882_v8 = vadd.f32 %v3252_v6, %v3251_v1  ;;  %v4884_v9 = vadd.f32 %v3228_v7, %v3227_v3  ;;  %v4066_v1 = vld [vmem:[%s5254_s0 + $0x1f0] ss:$72 sps:$4 sm:$0xff]   ;;  %v2042_v3 = vadd.f32 %v4874_v2, %v4953_v58 }
  0xfa   :  { %2581 = vmatmul.mubr.bf16.gmra.mrb[108].mxu1 %v4035_v62  ;;  %2678 = vmatmul.mubr.bf16.gmra.mrb[108].mxu0 %v4040_v63  ;;  %v4063_v63 = vld [vmem:[%s5254_s0 + $0x1e8] ss:$72 sps:$4 sm:$0xff]  }
  0xfb   :  { %2718 = vmatprep.mubr.bf16.mxu1 %v4044_v4  ;;  %3200 = vmatprep.mubr.msk.bf16.mxu0 %vm1978_vm1, %v4048_v5 }
  0xfd   :  { %v3254_v10 = vpop.f32.mrb[4].mxu1  ;;  %v3230_v11 = vpop.f32.mrb[4].mxu0 }
  0xfe   :  { %v3255_v12 = vpop.f32.mrb[5].mxu1  ;;  %v3231_v13 = vpop.f32.mrb[5].mxu0 }
  0xff   :  { %v4893_v16 = vadd.f32 %v3255_v12, %v3254_v10  ;;  %v3257_v17 = vpop.f32.mrb[6].mxu1  ;;  %v4895_v18 = vadd.f32 %v3231_v13, %v3230_v11  ;;  %v3233_v19 = vpop.f32.mrb[6].mxu0  ;;  %v4067_v10 = vld [vmem:[%s5254_s0 + $0x27c] ss:$72 sps:$4 sm:$0xff]  }
 0x100   :  { %v3258_v22 = vpop.f32.mrb[7].mxu1  ;;  %v3234_v23 = vpop.f32.mrb[7].mxu0  ;;  %v4070_v11 = vld [vmem:[%s5254_s0 + $0x284] ss:$72 sps:$4 sm:$0xff]  }
 0x101   :  { %v4903_v24 = vadd.f32 %v3258_v22, %v3257_v17  ;;  %v4905_v25 = vadd.f32 %v3234_v23, %v3233_v19 }
 0x102   :  { %2719 = vmatmul.mubr.bf16.vlgmr.msra.gmra.mrb[112].mxu1 %v4042_v14  ;;  %2816 = vmatmul.mubr.bf16.vlgmr.msra.gmra.mrb[112].mxu0 %v4046_v15  ;;  %v2045_v14 = vadd.f32 %v4884_v9, %v4953_v58  ;;  %v4069_v9 = vld [vmem:[%s5254_s0 + $0x278] ss:$72 sps:$4 sm:$0xff]  }
 0x103   :  { %2726 = vmatprep.mubr.bf16.mxu1 %v4049_v20  ;;  %3201 = vmatprep.mubr.msk.bf16.mxu0 %vm1978_vm1, %v4052_v21 }
 0x105   :  { %v3260_v26 = vpop.f32.mrb[8].mxu1  ;;  %v3236_v27 = vpop.f32.mrb[8].mxu0 }
 0x106   :  { %v3261_v28 = vpop.f32.mrb[9].mxu1  ;;  %v3237_v29 = vpop.f32.mrb[9].mxu0 }
 0x107   :  { %v4914_v32 = vadd.f32 %v3261_v28, %v3260_v26  ;;  %v3263_v33 = vpop.f32.mrb[10].mxu1  ;;  %v4916_v34 = vadd.f32 %v3237_v29, %v3236_v27  ;;  %v3239_v35 = vpop.f32.mrb[10].mxu0  ;;  %v4072_v28 = vld [vmem:[%s5254_s0 + $0x280] ss:$72 sps:$4 sm:$0xff]   ;;  %v2050_v29 = vadd.f32 %v4895_v18, %v4953_v58 }
 0x108   :  { %v3264_v38 = vpop.f32.mrb[11].mxu1  ;;  %v3240_v39 = vpop.f32.mrb[11].mxu0 }
 0x109   :  { %v4924_v40 = vadd.f32 %v3264_v38, %v3263_v33  ;;  %v4926_v41 = vadd.f32 %v3240_v39, %v3239_v35 }
 0x10a   :  { %2727 = vmatmul.mubr.bf16.gmra.mrb[116].mxu1 %v4051_v30  ;;  %2824 = vmatmul.mubr.bf16.gmra.mrb[116].mxu0 %v4054_v31 }
 0x10b   :  { %2734 = vmatprep.mubr.bf16.mxu1 %v4055_v36  ;;  %3202 = vmatprep.mubr.msk.bf16.mxu0 %vm1978_vm1, %v4058_v37  ;;  %v4073_v36 = vld [vmem:[%s5254_s0 + $0x30c] ss:$72 sps:$4 sm:$0xff]  }
 0x10c   :  { %v4076_v37 = vld [vmem:[%s5254_s0 + $0x314] ss:$72 sps:$4 sm:$0xff]  }
 0x10d   :  { %v3266_v42 = vpop.f32.mrb[12].mxu1  ;;  %v3242_v43 = vpop.f32.mrb[12].mxu0 }
 0x10e   :  { %v3267_v44 = vpop.f32.mrb[13].mxu1  ;;  %v3243_v45 = vpop.f32.mrb[13].mxu0 }
 0x10f   :  { %v4935_v48 = vadd.f32 %v3267_v44, %v3266_v42  ;;  %v3269_v49 = vpop.f32.mrb[14].mxu1  ;;  %v4937_v50 = vadd.f32 %v3243_v45, %v3242_v43  ;;  %v3245_v51 = vpop.f32.mrb[14].mxu0  ;;  %v2053_v42 = vadd.f32 %v4905_v25, %v4953_v58  ;;  %v4075_v25 = vld [vmem:[%s5254_s0 + $0x308] ss:$72 sps:$4 sm:$0xff]  }
 0x110   :  { %v3270_v54 = vpop.f32.mrb[15].mxu1  ;;  %v3246_v55 = vpop.f32.mrb[15].mxu0 }
 0x111   :  { %v4945_v56 = vadd.f32 %v3270_v54, %v3269_v49  ;;  %v4947_v57 = vadd.f32 %v3246_v55, %v3245_v51  ;;  %v4078_v54 = vld [vmem:[%s5254_s0 + $0x310] ss:$72 sps:$4 sm:$0xff]   ;;  %v2058_v55 = vadd.f32 %v4916_v34, %v4953_v58 }
 0x112   :  { %2735 = vmatmul.mubr.bf16.gmra.mrb[120].mxu1 %v4057_v46  ;;  %2832 = vmatmul.mubr.bf16.gmra.mrb[120].mxu0 %v4060_v47 }
 0x113   :  { %2742 = vmatprep.mubr.bf16.mxu1 %v4061_v52  ;;  %3203 = vmatprep.mubr.msk.bf16.mxu0 %vm1978_vm1, %v4064_v53 }
 0x115   :  { %v3288_v59 = vpop.f32.mrb[16].mxu1  ;;  %v3352_v60 = vpop.f32.mrb[16].mxu0 }
 0x116   :  { %v3289_v61 = vpop.f32.mrb[17].mxu1  ;;  %v3353_v62 = vpop.f32.mrb[17].mxu0 }
 0x117   :  { %v3290_v4 = vadd.f32 %v3289_v61, %v3288_v59  ;;  %v3291_v5 = vpop.f32.mrb[18].mxu1  ;;  %v3354_v6 = vadd.f32 %v3353_v62, %v3352_v60  ;;  %v3355_v7 = vpop.f32.mrb[18].mxu0 }
 0x118   :  { %v3292_v12 = vpop.f32.mrb[19].mxu1  ;;  %v3356_v13 = vpop.f32.mrb[19].mxu0 }
 0x119   :  { %v2139_v15 = vadd.f32 %v3290_v4, %v2042_v3  ;;  %v3293_v17 = vadd.f32 %v3292_v12, %v3291_v5  ;;  %v3357_v2 = vadd.f32 %v3356_v13, %v3355_v7  ;;  %v2061_v5 = vadd.f32 %v4926_v41, %v4953_v58  ;;  %v4081_v41 = vld [vmem:[%s5254_s0 + $0x398] ss:$72 sps:$4 sm:$0xff]  }
 0x11a   :  { %2743 = vmatmul.mubr.bf16.gmra.mrb[124].mxu1 %v4063_v63  ;;  %2840 = vmatmul.mubr.bf16.gmra.mrb[124].mxu0 %v4066_v1  ;;  %v4079_v63 = vld [vmem:[%s5254_s0 + $0x39c] ss:$72 sps:$4 sm:$0xff]  }
 0x11b   :  { %v2142_v19 = vadd.f32 %v3293_v17, %v2045_v14  ;;  %v4971_v20 = vadd.f32 %v3354_v6, %v2139_v15  ;;  %2750 = vmatprep.mubr.bf16.mxu1 %v4067_v10  ;;  %3204 = vmatprep.mubr.msk.bf16.mxu0 %vm1978_vm1, %v4070_v11  ;;  %v4082_v1 = vld [vmem:[%s5254_s0 + $0x3a4] ss:$72 sps:$4 sm:$0xff]  }
 0x11d   :  { %v4974_v21 = vadd.f32 %v3357_v2, %v2142_v19  ;;  %v3294_v22 = vpop.f32.mrb[20].mxu1  ;;  %v3358_v23 = vpop.f32.mrb[20].mxu0  ;;  %v4084_v2 = vld [vmem:[%s5254_s0 + $0x3a0] ss:$72 sps:$4 sm:$0xff]   ;;  %v2066_v19 = vadd.f32 %v4937_v50, %v4953_v58 }
 0x11e   :  { %v3295_v26 = vpop.f32.mrb[21].mxu1  ;;  %v3359_v27 = vpop.f32.mrb[21].mxu0 }
 0x11f   :  { %v3296_v30 = vadd.f32 %v3295_v26, %v3294_v22  ;;  %v3297_v31 = vpop.f32.mrb[22].mxu1  ;;  %v3360_v33 = vadd.f32 %v3359_v27, %v3358_v23  ;;  %v3361_v35 = vpop.f32.mrb[22].mxu0 }
 0x120   :  { %v3298_v38 = vpop.f32.mrb[23].mxu1  ;;  %v3362_v39 = vpop.f32.mrb[23].mxu0 }
 0x121   :  { %v2147_v43 = vadd.f32 %v3296_v30, %v2050_v29  ;;  %v3299_v44 = vadd.f32 %v3298_v38, %v3297_v31  ;;  %v3363_v18 = vadd.f32 %v3362_v39, %v3361_v35  ;;  %v2069_v31 = vadd.f32 %v4947_v57, %v4953_v58  ;;  %v4087_v57 = vld [vmem:[%s5254_s0 + $0x428] ss:$72 sps:$4 sm:$0xff]  }
 0x122   :  { %2751 = vmatmul.mubr.bf16.gmra.mrb[128].mxu1 %v4069_v9  ;;  %2848 = vmatmul.mubr.bf16.gmra.mrb[128].mxu0 %v4072_v28  ;;  %v4085_v9 = vld [vmem:[%s5254_s0 + $0x42c] ss:$72 sps:$4 sm:$0xff]  }
 0x123   :  { %v2150_v45 = vadd.f32 %v3299_v44, %v2053_v42  ;;  %v4992_v46 = vadd.f32 %v3360_v33, %v2147_v43  ;;  %2758 = vmatprep.mubr.bf16.mxu1 %v4073_v36  ;;  %3205 = vmatprep.mubr.msk.bf16.mxu0 %vm1978_vm1, %v4076_v37  ;;  %v4088_v28 = vld [vmem:[%s5254_s0 + $0x434] ss:$72 sps:$4 sm:$0xff]  }
 0x125   :  { %v4995_v47 = vadd.f32 %v3363_v18, %v2150_v45  ;;  %v3300_v49 = vpop.f32.mrb[24].mxu1  ;;  %v3364_v51 = vpop.f32.mrb[24].mxu0  ;;  %v4090_v18 = vld [vmem:[%s5254_s0 + $0x430] ss:$72 sps:$4 sm:$0xff]   ;;  %v2074_v45 = vadd.f32 %v4872_v0, %v4953_v58 }
 0x126   :  { %v3301_v52 = vpop.f32.mrb[25].mxu1  ;;  %v3365_v53 = vpop.f32.mrb[25].mxu0 }
 0x127   :  { %v3302_v59 = vadd.f32 %v3301_v52, %v3300_v49  ;;  %v3303_v60 = vpop.f32.mrb[26].mxu1  ;;  %v3366_v61 = vadd.f32 %v3365_v53, %v3364_v51  ;;  %v3367_v62 = vpop.f32.mrb[26].mxu0 }
 0x128   :  { %v3304_v3 = vpop.f32.mrb[27].mxu1  ;;  %v3368_v4 = vpop.f32.mrb[27].mxu0 }
 0x129   :  { %v2155_v6 = vadd.f32 %v3302_v59, %v2058_v55  ;;  %v3305_v7 = vadd.f32 %v3304_v3, %v3303_v60  ;;  %v3369_v34 = vadd.f32 %v3368_v4, %v3367_v62  ;;  %v2077_v55 = vadd.f32 %v4882_v8, %v4953_v58 }
 0x12a   :  { %2759 = vmatmul.mubr.bf16.gmra.mrb[132].mxu1 %v4075_v25  ;;  %2856 = vmatmul.mubr.bf16.gmra.mrb[132].mxu0 %v4078_v54 }
 0x12b   :  { %v2158_v10 = vadd.f32 %v3305_v7, %v2061_v5  ;;  %v5013_v11 = vadd.f32 %v3366_v61, %v2155_v6  ;;  %2766 = vmatprep.mubr.bf16.mxu1 %v4079_v63  ;;  %3206 = vmatprep.mubr.msk.bf16.mxu0 %vm1978_vm1, %v4082_v1  ;;  %v2082_v6 = vadd.f32 %v4893_v16, %v4953_v58 }
 0x12d   :  { %v5016_v12 = vadd.f32 %v3369_v34, %v2158_v10  ;;  %v3306_v13 = vpop.f32.mrb[28].mxu1  ;;  %v3370_v14 = vpop.f32.mrb[28].mxu0 }
 0x12e   :  { %v3307_v15 = vpop.f32.mrb[29].mxu1  ;;  %v3371_v17 = vpop.f32.mrb[29].mxu0 }
 0x12f   :  { %v3308_v22 = vadd.f32 %v3307_v15, %v3306_v13  ;;  %v3309_v23 = vpop.f32.mrb[30].mxu1  ;;  %v3372_v26 = vadd.f32 %v3371_v17, %v3370_v14  ;;  %v3373_v27 = vpop.f32.mrb[30].mxu0  ;;  %v2085_v15 = vadd.f32 %v4903_v24, %v4953_v58 }
 0x130   :  { %v3310_v29 = vpop.f32.mrb[31].mxu1  ;;  %v3374_v30 = vpop.f32.mrb[31].mxu0 }
 0x131   :  { %v2163_v33 = vadd.f32 %v3308_v22, %v2066_v19  ;;  %v3311_v35 = vadd.f32 %v3310_v29, %v3309_v23  ;;  %v3375_v50 = vadd.f32 %v3374_v30, %v3373_v27 }
 0x132   :  { %2767 = vmatmul.mubr.bf16.gmra.mrb[136].mxu1 %v4081_v41  ;;  %2864 = vmatmul.mubr.bf16.gmra.mrb[136].mxu0 %v4084_v2 }
 0x133   :  { %v2166_v36 = vadd.f32 %v3311_v35, %v2069_v31  ;;  %v5034_v37 = vadd.f32 %v3372_v26, %v2163_v33  ;;  %2774 = vmatprep.mubr.bf16.mxu1 %v4085_v9  ;;  %3207 = vmatprep.mubr.msk.bf16.mxu0 %vm1978_vm1, %v4088_v28  ;;  %v2090_v28 = vadd.f32 %v4914_v32, %v4953_v58 }
 0x135   :  { %v5037_v38 = vadd.f32 %v3375_v50, %v2166_v36  ;;  %v3312_v39 = vpop.f32.mrb[32].mxu1  ;;  %v3376_v42 = vpop.f32.mrb[32].mxu0  ;;  %v2093_v50 = vadd.f32 %v4924_v40, %v4953_v58 }
 0x136   :  { %v3313_v43 = vpop.f32.mrb[33].mxu1  ;;  %v3377_v44 = vpop.f32.mrb[33].mxu0 }
 0x137   :  { %v3314_v49 = vadd.f32 %v3313_v43, %v3312_v39  ;;  %v3315_v51 = vpop.f32.mrb[34].mxu1  ;;  %v3378_v52 = vadd.f32 %v3377_v44, %v3376_v42  ;;  %v3379_v53 = vpop.f32.mrb[34].mxu0 }
 0x138   :  { %v3316_v25 = vpop.f32.mrb[35].mxu1  ;;  %v3380_v54 = vpop.f32.mrb[35].mxu0 }
 0x139   :  { %v2171_v59 = vadd.f32 %v3314_v49, %v2074_v45  ;;  %v3317_v60 = vadd.f32 %v3316_v25, %v3315_v51  ;;  %v3381_v61 = vadd.f32 %v3380_v54, %v3379_v53  ;;  %v2098_v51 = vadd.f32 %v4935_v48, %v4953_v58 }
 0x13a   :  { %2775 = vmatmul.mubr.bf16.gmra.mrb[140].mxu1 %v4087_v57  ;;  %2872 = vmatmul.mubr.bf16.gmra.mrb[140].mxu0 %v4090_v18 }
 0x13b   :  { %v2174_v62 = vadd.f32 %v3317_v60, %v2077_v55  ;;  %v5049_v63 = vadd.f32 %v3378_v52, %v2171_v59  ;;  %v2101_v59 = vadd.f32 %v4945_v56, %v4953_v58 }
 0x13d   :  { %v5051_v1 = vadd.f32 %v3381_v61, %v2174_v62  ;;  %v3318_v0 = vpop.f32.mrb[36].mxu1  ;;  %v3382_v3 = vpop.f32.mrb[36].mxu0 }
 0x13e   :  { %v3319_v4 = vpop.f32.mrb[37].mxu1  ;;  %v3383_v5 = vpop.f32.mrb[37].mxu0 }
 0x13f   :  { %v3320_v7 = vadd.f32 %v3319_v4, %v3318_v0  ;;  %v3321_v34 = vpop.f32.mrb[38].mxu1  ;;  %v3384_v8 = vadd.f32 %v3383_v5, %v3382_v3  ;;  %v3385_v10 = vpop.f32.mrb[38].mxu0 }
 0x140   :  { %v3322_v13 = vpop.f32.mrb[39].mxu1  ;;  %v3386_v14 = vpop.f32.mrb[39].mxu0 }
 0x141   :  { %v2179_v17 = vadd.f32 %v3320_v7, %v2082_v6  ;;  %v3323_v41 = vadd.f32 %v3322_v13, %v3321_v34  ;;  %v3387_v2 = vadd.f32 %v3386_v14, %v3385_v10 }
 0x143   :  { %v2182_v19 = vadd.f32 %v3323_v41, %v2085_v15  ;;  %v5057_v22 = vadd.f32 %v3384_v8, %v2179_v17 }
 0x145   :  { %v5059_v23 = vadd.f32 %v3387_v2, %v2182_v19  ;;  %v3324_v26 = vpop.f32.mrb[40].mxu1  ;;  %v3388_v27 = vpop.f32.mrb[40].mxu0 }
 0x146   :  { %v3325_v16 = vpop.f32.mrb[41].mxu1  ;;  %v3389_v9 = vpop.f32.mrb[41].mxu0 }
 0x147   :  { %v3326_v29 = vadd.f32 %v3325_v16, %v3324_v26  ;;  %v3327_v30 = vpop.f32.mrb[42].mxu1  ;;  %v3390_v31 = vadd.f32 %v3389_v9, %v3388_v27  ;;  %v3391_v33 = vpop.f32.mrb[42].mxu0 }
 0x148   :  { %v3328_v24 = vpop.f32.mrb[43].mxu1  ;;  %v3392_v35 = vpop.f32.mrb[43].mxu0 }
 0x149   :  { %v2187_v36 = vadd.f32 %v3326_v29, %v2090_v28  ;;  %v3329_v39 = vadd.f32 %v3328_v24, %v3327_v30  ;;  %v3393_v42 = vadd.f32 %v3392_v35, %v3391_v33 }
 0x14b   :  { %v2190_v43 = vadd.f32 %v3329_v39, %v2093_v50  ;;  %v5065_v44 = vadd.f32 %v3390_v31, %v2187_v36 }
 0x14d   :  { %v5067_v57 = vadd.f32 %v3393_v42, %v2190_v43  ;;  %v3330_v18 = vpop.f32.mrb[44].mxu1  ;;  %v3394_v45 = vpop.f32.mrb[44].mxu0 }
 0x14e   :  { %v3331_v32 = vpop.f32.mrb[45].mxu1  ;;  %v3395_v49 = vpop.f32.mrb[45].mxu0 }
 0x14f   :  { %v3332_v52 = vadd.f32 %v3331_v32, %v3330_v18  ;;  %v3333_v53 = vpop.f32.mrb[46].mxu1  ;;  %v3396_v25 = vadd.f32 %v3395_v49, %v3394_v45  ;;  %v3397_v54 = vpop.f32.mrb[46].mxu0 }
 0x150   :  { %v3334_v40 = vpop.f32.mrb[47].mxu1  ;;  %v3398_v55 = vpop.f32.mrb[47].mxu0 }
 0x151   :  { %v2195_v60 = vadd.f32 %v3332_v52, %v2098_v51  ;;  %v3335_v61 = vadd.f32 %v3334_v40, %v3333_v53  ;;  %v3399_v62 = vadd.f32 %v3398_v55, %v3397_v54 }
 0x153   :  { %v2198_v0 = vadd.f32 %v3335_v61, %v2101_v59  ;;  %v5073_v3 = vadd.f32 %v3396_v25, %v2195_v60 }
 0x155   :  { %v5075_v4 = vadd.f32 %v3399_v62, %v2198_v0  ;;  %v3416_v5 = vpop.f32.mrb[48].mxu1  ;;  %v3480_v6 = vpop.f32.mrb[48].mxu0 }
 0x156   :  { %v3417_v48 = vpop.f32.mrb[49].mxu1  ;;  %v3481_v7 = vpop.f32.mrb[49].mxu0 }
 0x157   :  { %v3418_v34 = vadd.f32 %v3417_v48, %v3416_v5  ;;  %v3419_v8 = vpop.f32.mrb[50].mxu1  ;;  %v3482_v10 = vadd.f32 %v3481_v7, %v3480_v6  ;;  %v3483_v13 = vpop.f32.mrb[50].mxu0 }
 0x158   :  { %v3420_v14 = vpop.f32.mrb[51].mxu1  ;;  %v3484_v15 = vpop.f32.mrb[51].mxu0 }
 0x159   :  { %v2333_v56 = vadd.f32 %v3418_v34, %v4971_v20  ;;  %v3421_v58 = vadd.f32 %v3420_v14, %v3419_v8  ;;  %v3485_v17 = vadd.f32 %v3484_v15, %v3483_v13 }
 0x15b   :  { %v2336_v41 = vadd.f32 %v3421_v58, %v4974_v21  ;;  %v5079_v2 = vadd.f32 %v3482_v10, %v2333_v56 }
 0x15d   :  { %v5081_v19 = vadd.f32 %v3485_v17, %v2336_v41  ;;  %v3422_v26 = vpop.f32.mrb[52].mxu1  ;;  %v3486_v27 = vpop.f32.mrb[52].mxu0 }
 0x15e   :  { %v3423_v16 = vpop.f32.mrb[53].mxu1  ;;  %v3487_v9 = vpop.f32.mrb[53].mxu0 }
 0x15f   :  { %v3424_v28 = vadd.f32 %v3423_v16, %v3422_v26  ;;  %v3425_v29 = vpop.f32.mrb[54].mxu1  ;;  %v3488_v30 = vadd.f32 %v3487_v9, %v3486_v27  ;;  %v3489_v31 = vpop.f32.mrb[54].mxu0 }
 0x160   :  { %v3426_v33 = vpop.f32.mrb[55].mxu1  ;;  %v3490_v24 = vpop.f32.mrb[55].mxu0 }
 0x161   :  { %v2341_v20 = vadd.f32 %v3424_v28, %v4992_v46  ;;  %v3427_v35 = vadd.f32 %v3426_v33, %v3425_v29  ;;  %v3491_v50 = vadd.f32 %v3490_v24, %v3489_v31 }
 0x163   :  { %v2344_v21 = vadd.f32 %v3427_v35, %v4995_v47  ;;  %v5085_v36 = vadd.f32 %v3488_v30, %v2341_v20 }
 0x165   :  { %v5087_v39 = vadd.f32 %v3491_v50, %v2344_v21  ;;  %v3428_v42 = vpop.f32.mrb[56].mxu1  ;;  %v3492_v43 = vpop.f32.mrb[56].mxu0 }
 0x166   :  { %v3429_v18 = vpop.f32.mrb[57].mxu1  ;;  %v3493_v45 = vpop.f32.mrb[57].mxu0 }
 0x167   :  { %v3430_v32 = vadd.f32 %v3429_v18, %v3428_v42  ;;  %v3431_v49 = vpop.f32.mrb[58].mxu1  ;;  %v3494_v51 = vadd.f32 %v3493_v45, %v3492_v43  ;;  %v3495_v52 = vpop.f32.mrb[58].mxu0 }
 0x168   :  { %v3432_v53 = vpop.f32.mrb[59].mxu1  ;;  %v3496_v25 = vpop.f32.mrb[59].mxu0 }
 0x169   :  { %v2349_v46 = vadd.f32 %v3430_v32, %v5013_v11  ;;  %v3433_v54 = vadd.f32 %v3432_v53, %v3431_v49  ;;  %v3497_v40 = vadd.f32 %v3496_v25, %v3495_v52 }
 0x16b   :  { %v2352_v47 = vadd.f32 %v3433_v54, %v5016_v12  ;;  %v5091_v55 = vadd.f32 %v3494_v51, %v2349_v46 }
 0x16d   :  { %v5093_v59 = vadd.f32 %v3497_v40, %v2352_v47  ;;  %v3434_v60 = vpop.f32.mrb[60].mxu1  ;;  %v3498_v61 = vpop.f32.mrb[60].mxu0 }
 0x16e   :  { %v3435_v62 = vpop.f32.mrb[61].mxu1  ;;  %v3499_v0 = vpop.f32.mrb[61].mxu0 }
 0x16f   :  { %v3436_v5 = vadd.f32 %v3435_v62, %v3434_v60  ;;  %v3437_v6 = vpop.f32.mrb[62].mxu1  ;;  %v3500_v48 = vadd.f32 %v3499_v0, %v3498_v61  ;;  %v3501_v7 = vpop.f32.mrb[62].mxu0 }
 0x170   :  { %v3438_v34 = vpop.f32.mrb[63].mxu1  ;;  %v3502_v8 = vpop.f32.mrb[63].mxu0 }
 0x171   :  { %v2357_v11 = vadd.f32 %v3436_v5, %v5034_v37  ;;  %v3439_v10 = vadd.f32 %v3438_v34, %v3437_v6  ;;  %v3503_v13 = vadd.f32 %v3502_v8, %v3501_v7 }
 0x173   :  { %v2360_v12 = vadd.f32 %v3439_v10, %v5037_v38  ;;  %v5097_v14 = vadd.f32 %v3500_v48, %v2357_v11 }
 0x175   :  { %v5099_v15 = vadd.f32 %v3503_v13, %v2360_v12  ;;  %v3440_v56 = vpop.f32.mrb[64].mxu1  ;;  %v3504_v58 = vpop.f32.mrb[64].mxu0 }
 0x176   :  { %v3441_v17 = vpop.f32.mrb[65].mxu1  ;;  %v3505_v41 = vpop.f32.mrb[65].mxu0 }
 0x177   :  { %v3442_v26 = vadd.f32 %v3441_v17, %v3440_v56  ;;  %v3443_v27 = vpop.f32.mrb[66].mxu1  ;;  %v3506_v16 = vadd.f32 %v3505_v41, %v3504_v58  ;;  %v3507_v9 = vpop.f32.mrb[66].mxu0 }
 0x178   :  { %v3444_v28 = vpop.f32.mrb[67].mxu1  ;;  %v3508_v29 = vpop.f32.mrb[67].mxu0 }
 0x179   :  { %v2365_v37 = vadd.f32 %v3442_v26, %v5049_v63  ;;  %v3445_v30 = vadd.f32 %v3444_v28, %v3443_v27  ;;  %v3509_v31 = vadd.f32 %v3508_v29, %v3507_v9 }
 0x17b   :  { %v2368_v38 = vadd.f32 %v3445_v30, %v5051_v1  ;;  %v5103_v33 = vadd.f32 %v3506_v16, %v2365_v37 }
 0x17d   :  { %v5105_v24 = vadd.f32 %v3509_v31, %v2368_v38  ;;  %v3446_v20 = vpop.f32.mrb[68].mxu1  ;;  %v3510_v35 = vpop.f32.mrb[68].mxu0 }
 0x17e   :  { %v3447_v50 = vpop.f32.mrb[69].mxu1  ;;  %v3511_v21 = vpop.f32.mrb[69].mxu0 }
 0x17f   :  { %v3448_v42 = vadd.f32 %v3447_v50, %v3446_v20  ;;  %v3449_v43 = vpop.f32.mrb[70].mxu1  ;;  %v3512_v18 = vadd.f32 %v3511_v21, %v3510_v35  ;;  %v3513_v45 = vpop.f32.mrb[70].mxu0 }
 0x180   :  { %v3450_v32 = vpop.f32.mrb[71].mxu1  ;;  %v3514_v49 = vpop.f32.mrb[71].mxu0 }
 0x181   :  { %v2373_v63 = vadd.f32 %v3448_v42, %v5057_v22  ;;  %v3451_v51 = vadd.f32 %v3450_v32, %v3449_v43  ;;  %v3515_v52 = vadd.f32 %v3514_v49, %v3513_v45 }
 0x183   :  { %v2376_v1 = vadd.f32 %v3451_v51, %v5059_v23  ;;  %v5109_v53 = vadd.f32 %v3512_v18, %v2373_v63 }
 0x185   :  { %v5111_v25 = vadd.f32 %v3515_v52, %v2376_v1  ;;  %v3452_v46 = vpop.f32.mrb[72].mxu1  ;;  %v3516_v54 = vpop.f32.mrb[72].mxu0 }
 0x186   :  { %v3453_v40 = vpop.f32.mrb[73].mxu1  ;;  %v3517_v47 = vpop.f32.mrb[73].mxu0 }
 0x187   :  { %v3454_v60 = vadd.f32 %v3453_v40, %v3452_v46  ;;  %v3455_v61 = vpop.f32.mrb[74].mxu1  ;;  %v3518_v62 = vadd.f32 %v3517_v47, %v3516_v54  ;;  %v3519_v0 = vpop.f32.mrb[74].mxu0 }
 0x188   :  { %v3456_v5 = vpop.f32.mrb[75].mxu1  ;;  %v3520_v6 = vpop.f32.mrb[75].mxu0 }
 0x189   :  { %v2381_v22 = vadd.f32 %v3454_v60, %v5065_v44  ;;  %v3457_v48 = vadd.f32 %v3456_v5, %v3455_v61  ;;  %v3521_v7 = vadd.f32 %v3520_v6, %v3519_v0 }
 0x18b   :  { %v2384_v23 = vadd.f32 %v3457_v48, %v5067_v57  ;;  %v5115_v34 = vadd.f32 %v3518_v62, %v2381_v22 }
 0x18d   :  { %v5117_v8 = vadd.f32 %v3521_v7, %v2384_v23  ;;  %v3458_v11 = vpop.f32.mrb[76].mxu1  ;;  %v3522_v10 = vpop.f32.mrb[76].mxu0 }
 0x18e   :  { %v3459_v13 = vpop.f32.mrb[77].mxu1  ;;  %v3523_v12 = vpop.f32.mrb[77].mxu0 }
 0x18f   :  { %v3460_v56 = vadd.f32 %v3459_v13, %v3458_v11  ;;  %v3461_v58 = vpop.f32.mrb[78].mxu1  ;;  %v3524_v17 = vadd.f32 %v3523_v12, %v3522_v10  ;;  %v3525_v41 = vpop.f32.mrb[78].mxu0 }
 0x190   :  { %v3462_v26 = vpop.f32.mrb[79].mxu1  ;;  %v3526_v27 = vpop.f32.mrb[79].mxu0 }
 0x191   :  { %v2389_v44 = vadd.f32 %v3460_v56, %v5073_v3  ;;  %v3463_v16 = vadd.f32 %v3462_v26, %v3461_v58  ;;  %v3527_v9 = vadd.f32 %v3526_v27, %v3525_v41 }
 0x193   :  { %v2392_v57 = vadd.f32 %v3463_v16, %v5075_v4  ;;  %v5121_v28 = vadd.f32 %v3524_v17, %v2389_v44 }
 0x195   :  { %v5123_v29 = vadd.f32 %v3527_v9, %v2392_v57  ;;  %v3544_v37 = vpop.f32.mrb[80].mxu1  ;;  %v3608_v30 = vpop.f32.mrb[80].mxu0 }
 0x196   :  { %v3545_v31 = vpop.f32.mrb[81].mxu1  ;;  %v3609_v38 = vpop.f32.mrb[81].mxu0 }
 0x197   :  { %v3546_v20 = vadd.f32 %v3545_v31, %v3544_v37  ;;  %v3547_v35 = vpop.f32.mrb[82].mxu1  ;;  %v3610_v50 = vadd.f32 %v3609_v38, %v3608_v30  ;;  %v3611_v21 = vpop.f32.mrb[82].mxu0 }
 0x198   :  { %v3548_v42 = vpop.f32.mrb[83].mxu1  ;;  %v3612_v43 = vpop.f32.mrb[83].mxu0 }
 0x199   :  { %v2527_v3 = vadd.f32 %v3546_v20, %v5079_v2  ;;  %v3549_v18 = vadd.f32 %v3548_v42, %v3547_v35  ;;  %v3613_v45 = vadd.f32 %v3612_v43, %v3611_v21 }
 0x19b   :  { %v2530_v4 = vadd.f32 %v3549_v18, %v5081_v19  ;;  %v5127_v32 = vadd.f32 %v3610_v50, %v2527_v3 }
 0x19d   :  { %v5129_v49 = vadd.f32 %v3613_v45, %v2530_v4  ;;  %v3550_v63 = vpop.f32.mrb[84].mxu1  ;;  %v3614_v51 = vpop.f32.mrb[84].mxu0 }
 0x19e   :  { %v3551_v52 = vpop.f32.mrb[85].mxu1  ;;  %v3615_v1 = vpop.f32.mrb[85].mxu0 }
 0x19f   :  { %v3552_v46 = vadd.f32 %v3551_v52, %v3550_v63  ;;  %v3553_v54 = vpop.f32.mrb[86].mxu1  ;;  %v3616_v40 = vadd.f32 %v3615_v1, %v3614_v51  ;;  %v3617_v47 = vpop.f32.mrb[86].mxu0 }
 0x1a0   :  { %v3554_v60 = vpop.f32.mrb[87].mxu1  ;;  %v3618_v61 = vpop.f32.mrb[87].mxu0 }
 0x1a1   :  { %v2535_v2 = vadd.f32 %v3552_v46, %v5085_v36  ;;  %v3555_v62 = vadd.f32 %v3554_v60, %v3553_v54  ;;  %v3619_v0 = vadd.f32 %v3618_v61, %v3617_v47 }
 0x1a3   :  { %v2538_v19 = vadd.f32 %v3555_v62, %v5087_v39  ;;  %v5133_v5 = vadd.f32 %v3616_v40, %v2535_v2 }
 0x1a5   :  { %v5135_v6 = vadd.f32 %v3619_v0, %v2538_v19  ;;  %v3556_v22 = vpop.f32.mrb[88].mxu1  ;;  %v3620_v48 = vpop.f32.mrb[88].mxu0 }
 0x1a6   :  { %v3557_v7 = vpop.f32.mrb[89].mxu1  ;;  %v3621_v23 = vpop.f32.mrb[89].mxu0 }
 0x1a7   :  { %v3558_v11 = vadd.f32 %v3557_v7, %v3556_v22  ;;  %v3559_v10 = vpop.f32.mrb[90].mxu1  ;;  %v3622_v13 = vadd.f32 %v3621_v23, %v3620_v48  ;;  %v3623_v12 = vpop.f32.mrb[90].mxu0 }
 0x1a8   :  { %v3560_v56 = vpop.f32.mrb[91].mxu1  ;;  %v3624_v58 = vpop.f32.mrb[91].mxu0 }
 0x1a9   :  { %v2543_v36 = vadd.f32 %v3558_v11, %v5091_v55  ;;  %v3561_v17 = vadd.f32 %v3560_v56, %v3559_v10  ;;  %v3625_v41 = vadd.f32 %v3624_v58, %v3623_v12 }
 0x1ab   :  { %v2546_v39 = vadd.f32 %v3561_v17, %v5093_v59  ;;  %v5139_v26 = vadd.f32 %v3622_v13, %v2543_v36 }
 0x1ad   :  { %v5141_v27 = vadd.f32 %v3625_v41, %v2546_v39  ;;  %v3562_v44 = vpop.f32.mrb[92].mxu1  ;;  %v3626_v16 = vpop.f32.mrb[92].mxu0 }
 0x1ae   :  { %v3563_v9 = vpop.f32.mrb[93].mxu1  ;;  %v3627_v57 = vpop.f32.mrb[93].mxu0 }
 0x1af   :  { %v3564_v37 = vadd.f32 %v3563_v9, %v3562_v44  ;;  %v3565_v30 = vpop.f32.mrb[94].mxu1  ;;  %v3628_v31 = vadd.f32 %v3627_v57, %v3626_v16  ;;  %v3629_v38 = vpop.f32.mrb[94].mxu0 }
 0x1b0   :  { %v3566_v20 = vpop.f32.mrb[95].mxu1  ;;  %v3630_v35 = vpop.f32.mrb[95].mxu0 }
 0x1b1   :  { %v2551_v55 = vadd.f32 %v3564_v37, %v5097_v14  ;;  %v3567_v50 = vadd.f32 %v3566_v20, %v3565_v30  ;;  %v3631_v21 = vadd.f32 %v3630_v35, %v3629_v38 }
 0x1b3   :  { %v2554_v59 = vadd.f32 %v3567_v50, %v5099_v15  ;;  %v5145_v42 = vadd.f32 %v3628_v31, %v2551_v55 }
 0x1b5   :  { %v5147_v43 = vadd.f32 %v3631_v21, %v2554_v59  ;;  %v3568_v3 = vpop.f32.mrb[96].mxu1  ;;  %v3632_v18 = vpop.f32.mrb[96].mxu0 }
 0x1b6   :  { %v3569_v45 = vpop.f32.mrb[97].mxu1  ;;  %v3633_v4 = vpop.f32.mrb[97].mxu0 }
 0x1b7   :  { %v3570_v63 = vadd.f32 %v3569_v45, %v3568_v3  ;;  %v3571_v51 = vpop.f32.mrb[98].mxu1  ;;  %v3634_v52 = vadd.f32 %v3633_v4, %v3632_v18  ;;  %v3635_v1 = vpop.f32.mrb[98].mxu0 }
 0x1b8   :  { %v3572_v46 = vpop.f32.mrb[99].mxu1  ;;  %v3636_v54 = vpop.f32.mrb[99].mxu0 }
 0x1b9   :  { %v2559_v14 = vadd.f32 %v3570_v63, %v5103_v33  ;;  %v3573_v40 = vadd.f32 %v3572_v46, %v3571_v51  ;;  %v3637_v47 = vadd.f32 %v3636_v54, %v3635_v1 }
 0x1bb   :  { %v2562_v15 = vadd.f32 %v3573_v40, %v5105_v24  ;;  %v5151_v60 = vadd.f32 %v3634_v52, %v2559_v14 }
 0x1bd   :  { %v5153_v61 = vadd.f32 %v3637_v47, %v2562_v15  ;;  %v3574_v2 = vpop.f32.mrb[100].mxu1  ;;  %v3638_v62 = vpop.f32.mrb[100].mxu0 }
 0x1be   :  { %v3575_v0 = vpop.f32.mrb[101].mxu1  ;;  %v3639_v19 = vpop.f32.mrb[101].mxu0 }
 0x1bf   :  { %v3576_v22 = vadd.f32 %v3575_v0, %v3574_v2  ;;  %v3577_v48 = vpop.f32.mrb[102].mxu1  ;;  %v3640_v7 = vadd.f32 %v3639_v19, %v3638_v62  ;;  %v3641_v23 = vpop.f32.mrb[102].mxu0 }
 0x1c0   :  { %v3578_v11 = vpop.f32.mrb[103].mxu1  ;;  %v3642_v10 = vpop.f32.mrb[103].mxu0 }
 0x1c1   :  { %v2567_v33 = vadd.f32 %v3576_v22, %v5109_v53  ;;  %v3579_v13 = vadd.f32 %v3578_v11, %v3577_v48  ;;  %v3643_v12 = vadd.f32 %v3642_v10, %v3641_v23 }
 0x1c3   :  { %v2570_v24 = vadd.f32 %v3579_v13, %v5111_v25  ;;  %v5157_v56 = vadd.f32 %v3640_v7, %v2567_v33 }
 0x1c5   :  { %v5159_v58 = vadd.f32 %v3643_v12, %v2570_v24  ;;  %v3580_v36 = vpop.f32.mrb[104].mxu1  ;;  %v3644_v17 = vpop.f32.mrb[104].mxu0 }
 0x1c6   :  { %v3581_v41 = vpop.f32.mrb[105].mxu1  ;;  %v3645_v39 = vpop.f32.mrb[105].mxu0 }
 0x1c7   :  { %v3582_v44 = vadd.f32 %v3581_v41, %v3580_v36  ;;  %v3583_v16 = vpop.f32.mrb[106].mxu1  ;;  %v3646_v9 = vadd.f32 %v3645_v39, %v3644_v17  ;;  %v3647_v57 = vpop.f32.mrb[106].mxu0 }
 0x1c8   :  { %v3584_v37 = vpop.f32.mrb[107].mxu1  ;;  %v3648_v30 = vpop.f32.mrb[107].mxu0 }
 0x1c9   :  { %v2575_v53 = vadd.f32 %v3582_v44, %v5115_v34  ;;  %v3585_v31 = vadd.f32 %v3584_v37, %v3583_v16  ;;  %v3649_v38 = vadd.f32 %v3648_v30, %v3647_v57 }
 0x1cb   :  { %v2578_v25 = vadd.f32 %v3585_v31, %v5117_v8  ;;  %v5163_v20 = vadd.f32 %v3646_v9, %v2575_v53 }
 0x1cd   :  { %v5165_v35 = vadd.f32 %v3649_v38, %v2578_v25  ;;  %v3586_v55 = vpop.f32.mrb[108].mxu1  ;;  %v3650_v50 = vpop.f32.mrb[108].mxu0 }
 0x1ce   :  { %v3587_v21 = vpop.f32.mrb[109].mxu1  ;;  %v3651_v59 = vpop.f32.mrb[109].mxu0 }
 0x1cf   :  { %v3588_v3 = vadd.f32 %v3587_v21, %v3586_v55  ;;  %v3589_v18 = vpop.f32.mrb[110].mxu1  ;;  %v3652_v45 = vadd.f32 %v3651_v59, %v3650_v50  ;;  %v3653_v4 = vpop.f32.mrb[110].mxu0 }
 0x1d0   :  { %v3590_v63 = vpop.f32.mrb[111].mxu1  ;;  %v3654_v51 = vpop.f32.mrb[111].mxu0 }
 0x1d1   :  { %v2583_v34 = vadd.f32 %v3588_v3, %v5121_v28  ;;  %v3591_v52 = vadd.f32 %v3590_v63, %v3589_v18  ;;  %v3655_v1 = vadd.f32 %v3654_v51, %v3653_v4 }
 0x1d3   :  { %v2586_v8 = vadd.f32 %v3591_v52, %v5123_v29  ;;  %v5169_v46 = vadd.f32 %v3652_v45, %v2583_v34 }
 0x1d5   :  { %v5171_v54 = vadd.f32 %v3655_v1, %v2586_v8  ;;  %v3672_v14 = vpop.f32.mrb[112].mxu1  ;;  %v2817_v40 = vpop.f32.mrb[112].mxu0 }
 0x1d6   :  { %v3673_v47 = vpop.f32.mrb[113].mxu1  ;;  %v2819_v15 = vpop.f32.mrb[113].mxu0 }
 0x1d7   :  { %v3674_v2 = vadd.f32 %v3673_v47, %v3672_v14  ;;  %v3675_v62 = vpop.f32.mrb[114].mxu1  ;;  %v2820_v0 = vpop.f32.mrb[114].mxu0 }
 0x1d8   :  { %v3676_v19 = vpop.f32.mrb[115].mxu1  ;;  %v2822_v22 = vpop.f32.mrb[115].mxu0 }
 0x1d9   :  { %v3677_v48 = vadd.f32 %v3676_v19, %v3675_v62  ;;  %v2721_v28 = vadd.f32 %v3674_v2, %v5127_v32 }
 0x1db   :  { %v2818_v7 = vadd.f32 %v2817_v40, %v2721_v28  ;;  %v2724_v23 = vadd.f32 %v3677_v48, %v5129_v49 }
 0x1dd   :  { %v2880_v29 = vmax.f32 %v2818_v7, 0.0  ;;  %v2821_v11 = vadd.f32 %v2820_v0, %v2724_v23  ;;  %v3678_v10 = vpop.f32.mrb[116].mxu1  ;;  %v2825_v33 = vpop.f32.mrb[116].mxu0 }
 0x1de   :  { %v3679_v13 = vpop.f32.mrb[117].mxu1  ;;  %v2827_v12 = vpop.f32.mrb[117].mxu0 }
 0x1df   :  { %2897 = vst.msk [vmem:[%s5256_s3] sm:$0xff] %vm2896_vm2, %v2880_v29  ;;  %v2881_v24 = vmax.f32 %v2821_v11, 0.0  ;;  %v3680_v36 = vadd.f32 %v3679_v13, %v3678_v10  ;;  %v3681_v17 = vpop.f32.mrb[118].mxu1  ;;  %v2828_v41 = vpop.f32.mrb[118].mxu0 }
 0x1e0   :  { %v3682_v32 = vpop.f32.mrb[119].mxu1  ;;  %v2830_v39 = vpop.f32.mrb[119].mxu0 }
 0x1e1   :  { %2898 = vst.msk [vmem:[%s5256_s3 + $0x8] sm:$0xff] %vm2896_vm2, %v2881_v24  ;;  %v3683_v49 = vadd.f32 %v3682_v32, %v3681_v17  ;;  %v2729_v44 = vadd.f32 %v3680_v36, %v5133_v5 }
 0x1e3   :  { %v2826_v16 = vadd.f32 %v2825_v33, %v2729_v44  ;;  %v2732_v9 = vadd.f32 %v3683_v49, %v5135_v6 }
 0x1e5   :  { %v2882_v57 = vmax.f32 %v2826_v16, 0.0  ;;  %v2829_v37 = vadd.f32 %v2828_v41, %v2732_v9  ;;  %v3684_v30 = vpop.f32.mrb[120].mxu1  ;;  %v2833_v53 = vpop.f32.mrb[120].mxu0 }
 0x1e6   :  { %v3685_v31 = vpop.f32.mrb[121].mxu1  ;;  %v2835_v38 = vpop.f32.mrb[121].mxu0 }
 0x1e7   :  { %2899 = vst.msk [vmem:[%s5256_s3 + $0x10] sm:$0xff] %vm2896_vm2, %v2882_v57  ;;  %v2883_v25 = vmax.f32 %v2829_v37, 0.0  ;;  %v3686_v55 = vadd.f32 %v3685_v31, %v3684_v30  ;;  %v3687_v50 = vpop.f32.mrb[122].mxu1  ;;  %v2836_v21 = vpop.f32.mrb[122].mxu0 }
 0x1e8   :  { %v3688_v59 = vpop.f32.mrb[123].mxu1  ;;  %v2838_v5 = vpop.f32.mrb[123].mxu0 }
 0x1e9   :  { %2900 = vst.msk [vmem:[%s5256_s3 + $0x18] sm:$0xff] %vm2896_vm2, %v2883_v25  ;;  %v3689_v6 = vadd.f32 %v3688_v59, %v3687_v50  ;;  %v2737_v3 = vadd.f32 %v3686_v55, %v5139_v26 }
 0x1eb   :  { %v2834_v18 = vadd.f32 %v2833_v53, %v2737_v3  ;;  %v2740_v45 = vadd.f32 %v3689_v6, %v5141_v27 }
 0x1ed   :  { %v2884_v4 = vmax.f32 %v2834_v18, 0.0  ;;  %v2837_v63 = vadd.f32 %v2836_v21, %v2740_v45  ;;  %v3690_v51 = vpop.f32.mrb[124].mxu1  ;;  %v2841_v34 = vpop.f32.mrb[124].mxu0 }
 0x1ee   :  { %v3691_v52 = vpop.f32.mrb[125].mxu1  ;;  %v2843_v1 = vpop.f32.mrb[125].mxu0 }
 0x1ef   :  { %2901 = vst.msk [vmem:[%s5256_s3 + $0x20] sm:$0xff] %vm2896_vm2, %v2884_v4  ;;  %v2885_v8 = vmax.f32 %v2837_v63, 0.0  ;;  %v3692_v14 = vadd.f32 %v3691_v52, %v3690_v51  ;;  %v3693_v40 = vpop.f32.mrb[126].mxu1  ;;  %v2844_v47 = vpop.f32.mrb[126].mxu0 }
 0x1f0   :  { %v3694_v15 = vpop.f32.mrb[127].mxu1  ;;  %v2846_v26 = vpop.f32.mrb[127].mxu0 }
 0x1f1   :  { %2902 = vst.msk [vmem:[%s5256_s3 + $0x28] sm:$0xff] %vm2896_vm2, %v2885_v8  ;;  %v3695_v27 = vadd.f32 %v3694_v15, %v3693_v40  ;;  %v2745_v2 = vadd.f32 %v3692_v14, %v5145_v42 }
 0x1f3   :  { %v2842_v62 = vadd.f32 %v2841_v34, %v2745_v2  ;;  %v2748_v0 = vadd.f32 %v3695_v27, %v5147_v43 }
 0x1f5   :  { %v2886_v19 = vmax.f32 %v2842_v62, 0.0  ;;  %v2845_v22 = vadd.f32 %v2844_v47, %v2748_v0  ;;  %v3696_v48 = vpop.f32.mrb[128].mxu1  ;;  %v2849_v28 = vpop.f32.mrb[128].mxu0 }
 0x1f6   :  { %v3697_v7 = vpop.f32.mrb[129].mxu1  ;;  %v2851_v23 = vpop.f32.mrb[129].mxu0 }
 0x1f7   :  { %2903 = vst.msk [vmem:[%s5256_s3 + $0x30] sm:$0xff] %vm2896_vm2, %v2886_v19  ;;  %v2887_v29 = vmax.f32 %v2845_v22, 0.0  ;;  %v3698_v11 = vadd.f32 %v3697_v7, %v3696_v48  ;;  %v3699_v10 = vpop.f32.mrb[130].mxu1  ;;  %v2852_v33 = vpop.f32.mrb[130].mxu0 }
 0x1f8   :  { %v3700_v13 = vpop.f32.mrb[131].mxu1  ;;  %v2854_v42 = vpop.f32.mrb[131].mxu0 }
 0x1f9   :  { %2904 = vst.msk [vmem:[%s5256_s3 + $0x38] sm:$0xff] %vm2896_vm2, %v2887_v29  ;;  %v3701_v43 = vadd.f32 %v3700_v13, %v3699_v10  ;;  %v2753_v12 = vadd.f32 %v3698_v11, %v5151_v60 }
 0x1fb   :  { %v2850_v24 = vadd.f32 %v2849_v28, %v2753_v12  ;;  %v2756_v36 = vadd.f32 %v3701_v43, %v5153_v61 }
 0x1fd   :  { %v2888_v17 = vmax.f32 %v2850_v24, 0.0  ;;  %v2853_v41 = vadd.f32 %v2852_v33, %v2756_v36  ;;  %v3702_v32 = vpop.f32.mrb[132].mxu1  ;;  %v2857_v39 = vpop.f32.mrb[132].mxu0 }
 0x1fe   :  { %v3703_v49 = vpop.f32.mrb[133].mxu1  ;;  %v2859_v44 = vpop.f32.mrb[133].mxu0 }
 0x1ff   :  { %2905 = vst.msk [vmem:[%s5256_s3 + $0x40] sm:$0xff] %vm2896_vm2, %v2888_v17  ;;  %v2889_v16 = vmax.f32 %v2853_v41, 0.0  ;;  %v3704_v9 = vadd.f32 %v3703_v49, %v3702_v32  ;;  %v3705_v57 = vpop.f32.mrb[134].mxu1  ;;  %v2860_v37 = vpop.f32.mrb[134].mxu0 }
 0x200   :  { %v3706_v30 = vpop.f32.mrb[135].mxu1  ;;  %v2862_v60 = vpop.f32.mrb[135].mxu0 }
 0x201   :  { %2906 = vst.msk [vmem:[%s5256_s3 + $0x48] sm:$0xff] %vm2896_vm2, %v2889_v16  ;;  %v3707_v61 = vadd.f32 %v3706_v30, %v3705_v57  ;;  %v2761_v53 = vadd.f32 %v3704_v9, %v5157_v56 }
 0x203   :  { %v2858_v31 = vadd.f32 %v2857_v39, %v2761_v53  ;;  %v2764_v38 = vadd.f32 %v3707_v61, %v5159_v58 }
 0x205   :  { %v2890_v25 = vmax.f32 %v2858_v31, 0.0  ;;  %v2861_v55 = vadd.f32 %v2860_v37, %v2764_v38  ;;  %v3708_v50 = vpop.f32.mrb[136].mxu1  ;;  %v2865_v21 = vpop.f32.mrb[136].mxu0 }
 0x206   :  { %v3709_v59 = vpop.f32.mrb[137].mxu1  ;;  %v2867_v5 = vpop.f32.mrb[137].mxu0 }
 0x207   :  { %2907 = vst.msk [vmem:[%s5256_s3 + $0x50] sm:$0xff] %vm2896_vm2, %v2890_v25  ;;  %v2891_v6 = vmax.f32 %v2861_v55, 0.0  ;;  %v3710_v3 = vadd.f32 %v3709_v59, %v3708_v50  ;;  %v3711_v18 = vpop.f32.mrb[138].mxu1  ;;  %v2868_v45 = vpop.f32.mrb[138].mxu0 }
 0x208   :  { %v3712_v4 = vpop.f32.mrb[139].mxu1  ;;  %v2870_v56 = vpop.f32.mrb[139].mxu0 }
 0x209   :  { %2908 = vst.msk [vmem:[%s5256_s3 + $0x58] sm:$0xff] %vm2896_vm2, %v2891_v6  ;;  %v3713_v58 = vadd.f32 %v3712_v4, %v3711_v18  ;;  %v2769_v63 = vadd.f32 %v3710_v3, %v5163_v20 }
 0x20b   :  { %v2866_v51 = vadd.f32 %v2865_v21, %v2769_v63  ;;  %v2772_v34 = vadd.f32 %v3713_v58, %v5165_v35 }
 0x20d   :  { %v2892_v52 = vmax.f32 %v2866_v51, 0.0  ;;  %v2869_v1 = vadd.f32 %v2868_v45, %v2772_v34  ;;  %v3714_v8 = vpop.f32.mrb[140].mxu1  ;;  %v2873_v14 = vpop.f32.mrb[140].mxu0 }
 0x20e   :  { %v3715_v40 = vpop.f32.mrb[141].mxu1  ;;  %v2875_v47 = vpop.f32.mrb[141].mxu0 }
 0x20f   :  { %2909 = vst.msk [vmem:[%s5256_s3 + $0x60] sm:$0xff] %vm2896_vm2, %v2892_v52  ;;  %v2893_v15 = vmax.f32 %v2869_v1, 0.0  ;;  %v3716_v26 = vadd.f32 %v3715_v40, %v3714_v8  ;;  %v3717_v27 = vpop.f32.mrb[142].mxu1  ;;  %v2876_v2 = vpop.f32.mrb[142].mxu0 }
 0x210   :  { %v3718_v62 = vpop.f32.mrb[143].mxu1  ;;  %v2878_v20 = vpop.f32.mrb[143].mxu0 }
 0x211   :  { %2910 = vst.msk [vmem:[%s5256_s3 + $0x68] sm:$0xff] %vm2896_vm2, %v2893_v15  ;;  %v3719_v35 = vadd.f32 %v3718_v62, %v3717_v27  ;;  %v2777_v0 = vadd.f32 %v3716_v26, %v5169_v46 }
 0x213   :  { %v2874_v19 = vadd.f32 %v2873_v14, %v2777_v0  ;;  %v2780_v22 = vadd.f32 %v3719_v35, %v5171_v54 }
 0x215   :  { %v2894_v48 = vmax.f32 %v2874_v19, 0.0  ;;  %v2877_v28 = vadd.f32 %v2876_v2, %v2780_v22 }
 0x217   :  { %2911 = vst.msk [vmem:[%s5256_s3 + $0x70] sm:$0xff] %vm2896_vm2, %v2894_v48  ;;  %v2895_v7 = vmax.f32 %v2877_v28, 0.0 }
 0x219   :  { %2912 = vst.msk [vmem:[%s5256_s3 + $0x78] sm:$0xff] %vm2896_vm2, %v2895_v7 }

// kernel: net_forward.28
= control target key start
LH: loop header
LB: loop body
LE: loop exit
PB: predicated region body
PF: predicated region fallthrough
CT: control target
= control target key end

     0   :  { %v484_v0 = vmov 0   ;;  %vm268_vm0 = vcmask 130048   ;;  %vm373_vm1 = vcmask 195584   ;;  %s634_s1 = inlined_call_operand.vmem [shape: bf16[400,24], index: 1, kind: input, shape index: {}]   ;;  %s635_s0 = inlined_call_operand.vmem [shape: bf16[32,400], index: 0, kind: input, shape index: {}]   ;;  %s636_s2 = inlined_call_operand.vmem [shape: f32[1,24], index: 2, kind: input, shape index: {}]   ;;  %s637_s3 = inlined_call_operand.vmem [shape: f32[32,24], index: 3, kind: output, shape index: {}]  }
   0x1   :  { %324 = vmatprep.subr.bf16.mxu1 %v484_v0  ;;  %v447_v1 = vld [vmem:[%s634_s1 + $0x40] sm:$0xff]   ;;  %v450_v4 = vld [vmem:[%s634_s1 + $0x48] sm:$0xff]   ;;  %v453_v7 = vld [vmem:[%s634_s1 + $0x50] sm:$0xff]  }
   0x2   :  { %v448_v2 = vld [vmem:[%s634_s1 + $0x80] sm:$0xff]   ;;  %418 = vmatprep.subr.bf16.mxu0 %v447_v1  ;;  %v451_v5 = vld [vmem:[%s634_s1 + $0x88] sm:$0xff]   ;;  %v454_v8 = vld [vmem:[%s634_s1 + $0x90] sm:$0xff]  }
   0x3   :  { %v449_v3 = vld [vmem:[%s634_s1] sm:$0xff]   ;;  %325 = vmatpush1.bf16.msra.mxu1 %v448_v2  ;;  %v452_v6 = vld [vmem:[%s634_s1 + $0x8] sm:$0xff]   ;;  %v455_v9 = vld [vmem:[%s634_s1 + $0x10] sm:$0xff]  }
   0x4   :  { %419 = vmatpush3.bf16.msra.mxu0 %v449_v3  ;;  %326 = vmatprep.subr.bf16.mxu1 %v484_v0  ;;  %v456_v10 = vld [vmem:[%s634_s1 + $0x58] sm:$0xff]   ;;  %v459_v13 = vld [vmem:[%s634_s1 + $0x60] sm:$0xff]   ;;  %v462_v16 = vld [vmem:[%s634_s1 + $0x68] sm:$0xff]  }
   0x5   :  { %420 = vmatprep.subr.bf16.mxu0 %v450_v4  ;;  %v457_v11 = vld [vmem:[%s634_s1 + $0x98] sm:$0xff]   ;;  %v460_v14 = vld [vmem:[%s634_s1 + $0xa0] sm:$0xff]   ;;  %v463_v17 = vld [vmem:[%s634_s1 + $0xa8] sm:$0xff]  }
   0x6   :  { %v458_v12 = vld [vmem:[%s634_s1 + $0x18] sm:$0xff]   ;;  %v461_v15 = vld [vmem:[%s634_s1 + $0x20] sm:$0xff]   ;;  %v464_v18 = vld [vmem:[%s634_s1 + $0x28] sm:$0xff]  }
   0x7   :  { %327 = vmatpush1.bf16.msra.mxu1 %v451_v5  ;;  %v465_v19 = vld [vmem:[%s634_s1 + $0x70] sm:$0xff]   ;;  %v468_v22 = vld [vmem:[%s634_s1 + $0x78] sm:$0xff]   ;;  %v474_v28 = vld [vmem:[%s634_s1 + $0xc0] sm:$0xff]  }
   0x8   :  { %421 = vmatpush3.bf16.msra.mxu0 %v452_v6  ;;  %328 = vmatprep.subr.bf16.mxu1 %v484_v0  ;;  %v466_v20 = vld [vmem:[%s634_s1 + $0xb0] sm:$0xff]   ;;  %v469_v24 = vld [vmem:[%s634_s1 + $0xb8] sm:$0xff]   ;;  %v382_v36 = vld [vmem:[%s636_s2] ss:$0 sm:$0xff] }
   0x9   :  { %422 = vmatprep.subr.bf16.mxu0 %v453_v7  ;;  %v467_v21 = vld [vmem:[%s634_s1 + $0x30] sm:$0xff]   ;;  %v477_v25 = vld [vmem:[%s635_s0 + $0xc] ss:$16 sps:$4 sm:$0xff]   ;;  %v475_v30 = vld [vmem:[%s635_s0 + $0x8] ss:$16 sps:$4 sm:$0xff]  }
   0xa   :  { %v473_v23 = vld [vmem:[%s635_s0 + $0x4] ss:$16 sps:$4 sm:$0xff]   ;;  %v470_v26 = vld [vmem:[%s634_s1 + $0x38] sm:$0xff]   ;;  %416 = vmatprep.mubr.msk.bf16.mxu1 %vm268_vm0, %v477_v25  ;;  %v471_v27 = vld [vmem:[%s635_s0] ss:$16 sps:$4 sm:$0xff]  }
   0xb   :  { %329 = vmatpush1.bf16.msra.mxu1 %v454_v8  ;;  %307 = vmatprep.mubr.bf16.mxu0 %v473_v23  ;;  %v478_v29 = vld [vmem:[%s635_s0 + $0x24] ss:$16 sps:$4 sm:$0xff]   ;;  %v481_v31 = vld [vmem:[%s635_s0 + $0x2c] ss:$16 sps:$4 sm:$0xff]   ;;  %v480_v32 = vld [vmem:[%s635_s0 + $0x20] ss:$16 sps:$4 sm:$0xff]  }
   0xc   :  { %423 = vmatpush3.bf16.msra.mxu0 %v455_v9  ;;  %330 = vmatprep.subr.bf16.mxu1 %v484_v0  ;;  %v483_v33 = vld [vmem:[%s635_s0 + $0x28] ss:$16 sps:$4 sm:$0xff]  }
   0xd   :  { %424 = vmatprep.subr.bf16.mxu0 %v456_v10 }
   0xf   :  { %331 = vmatpush1.bf16.msra.mxu1 %v457_v11 }
  0x10   :  { %425 = vmatpush3.bf16.msra.mxu0 %v458_v12  ;;  %332 = vmatprep.subr.bf16.mxu1 %v484_v0 }
  0x11   :  { %426 = vmatprep.subr.bf16.mxu0 %v459_v13 }
  0x13   :  { %333 = vmatpush1.bf16.msra.mxu1 %v460_v14 }
  0x14   :  { %427 = vmatpush3.bf16.msra.mxu0 %v461_v15  ;;  %334 = vmatprep.subr.bf16.mxu1 %v484_v0 }
  0x15   :  { %428 = vmatprep.subr.bf16.mxu0 %v462_v16 }
  0x17   :  { %335 = vmatpush1.bf16.msra.mxu1 %v463_v17 }
  0x18   :  { %429 = vmatpush3.bf16.msra.mxu0 %v464_v18  ;;  %336 = vmatprep.subr.bf16.mxu1 %v484_v0 }
  0x19   :  { %430 = vmatprep.subr.bf16.mxu0 %v465_v19 }
  0x1b   :  { %337 = vmatpush1.bf16.msra.mxu1 %v466_v20 }
  0x1c   :  { %431 = vmatpush3.bf16.msra.mxu0 %v467_v21  ;;  %338 = vmatprep.subr.bf16.mxu1 %v484_v0 }
  0x1d   :  { %432 = vmatprep.subr.bf16.mxu0 %v468_v22 }
  0x1f   :  { %339 = vmatpush1.bf16.msra.mxu1 %v469_v24 }
  0x20   :  { %433 = vmatpush3.bf16.msra.mxu0 %v470_v26  ;;  %340 = vmatprep.subr.bf16.mxu1 %v484_v0 }
  0x23   :  { %308 = vmatmul.mubr.bf16.vlgmr.msra.gmra.mrb[0].mxu0 %v471_v27  ;;  %341 = vmatpush1.bf16.msra.mxu1 %v474_v28 }
  0x24   :  { %315 = vmatprep.mubr.bf16.mxu0 %v478_v29 }
  0x26   :  { %357 = vmatmul.mubr.bf16.vlgmr.msra.gmra.mrb[0].mxu1 %v475_v30 }
  0x27   :  { %417 = vmatprep.mubr.msk.bf16.mxu1 %vm268_vm0, %v481_v31 }
  0x2b   :  { %316 = vmatmul.mubr.bf16.gmra.mrb[4].mxu0 %v480_v32 }
  0x2e   :  { %365 = vmatmul.mubr.bf16.gmra.mrb[4].mxu1 %v483_v33 }
  0xf6   :  { %v434_v34 = vpop.f32.mrb[0].mxu0 }
  0xf7   :  { %v435_v35 = vpop.f32.mrb[1].mxu0 }
  0xf8   :  { %v436_v37 = vadd.f32 %v435_v35, %v434_v34  ;;  %v437_v38 = vpop.f32.mrb[2].mxu0 }
  0xf9   :  { %v438_v39 = vpop.f32.mrb[3].mxu0  ;;  %v358_v40 = vpop.f32.mrb[0].mxu1 }
  0xfa   :  { %v439_v41 = vadd.f32 %v438_v39, %v437_v38  ;;  %v310_v42 = vadd.f32 %v436_v37, %v382_v36  ;;  %v360_v43 = vpop.f32.mrb[1].mxu1 }
  0xfb   :  { %v361_v44 = vpop.f32.mrb[2].mxu1 }
  0xfc   :  { %v359_v45 = vadd.f32 %v358_v40, %v310_v42  ;;  %v313_v46 = vadd.f32 %v439_v41, %v382_v36  ;;  %v363_v47 = vpop.f32.mrb[3].mxu1 }
  0xfe   :  { %374 = vst.msk [vmem:[%s637_s3] sm:$0xff] %vm373_vm1, %v359_v45  ;;  %v362_v48 = vadd.f32 %v361_v44, %v313_v46  ;;  %v440_v49 = vpop.f32.mrb[4].mxu0 }
  0xff   :  { %v441_v50 = vpop.f32.mrb[5].mxu0 }
 0x100   :  { %375 = vst.msk [vmem:[%s637_s3 + $0x8] sm:$0xff] %vm373_vm1, %v362_v48  ;;  %v442_v51 = vadd.f32 %v441_v50, %v440_v49  ;;  %v443_v52 = vpop.f32.mrb[6].mxu0 }
 0x101   :  { %v444_v53 = vpop.f32.mrb[7].mxu0  ;;  %v366_v54 = vpop.f32.mrb[4].mxu1 }
 0x102   :  { %v445_v55 = vadd.f32 %v444_v53, %v443_v52  ;;  %v318_v56 = vadd.f32 %v442_v51, %v382_v36  ;;  %v368_v57 = vpop.f32.mrb[5].mxu1 }
 0x103   :  { %v369_v58 = vpop.f32.mrb[6].mxu1 }
 0x104   :  { %v367_v59 = vadd.f32 %v366_v54, %v318_v56  ;;  %v321_v60 = vadd.f32 %v445_v55, %v382_v36  ;;  %v371_v61 = vpop.f32.mrb[7].mxu1 }
 0x106   :  { %376 = vst.msk [vmem:[%s637_s3 + $0x10] sm:$0xff] %vm373_vm1, %v367_v59  ;;  %v370_v62 = vadd.f32 %v369_v58, %v321_v60 }
 0x108   :  { %377 = vst.msk [vmem:[%s637_s3 + $0x18] sm:$0xff] %vm373_vm1, %v370_v62 }

// kernel: net_forward.29
= control target key start
LH: loop header
LB: loop body
LE: loop exit
PB: predicated region body
PF: predicated region fallthrough
CT: control target
= control target key end

     0   :  { %v231_v0 = vmov 0   ;;  %vm116_vm0 = vcmask 130048   ;;  %vm172_vm1 = vcmask 195584   ;;  %s306_s1 = inlined_call_operand.vmem [shape: bf16[144,24], index: 1, kind: input, shape index: {}]   ;;  %s307_s0 = inlined_call_operand.vmem [shape: bf16[32,144], index: 0, kind: input, shape index: {}]   ;;  %s308_s2 = inlined_call_operand.vmem [shape: f32[1,24], index: 2, kind: input, shape index: {}]   ;;  %s309_s3 = inlined_call_operand.vmem [shape: f32[32,24], index: 3, kind: output, shape index: {}]  }
   0x1   :  { %123 = vmatprep.subr.bf16.mxu0 %v231_v0  ;;  %197 = vmatprep.subr.bf16.mxu1 %v231_v0  ;;  %v216_v1 = vld [vmem:[%s306_s1] sm:$0xff]   ;;  %v217_v2 = vld [vmem:[%s306_s1 + $0x8] sm:$0xff]   ;;  %v218_v3 = vld [vmem:[%s306_s1 + $0x10] sm:$0xff]  }
   0x2   :  { %124 = vmatpush1.bf16.msra.mxu0 %v216_v1  ;;  %206 = vmatpush1.bf16.msra.mxu1 %v216_v1  ;;  %v219_v4 = vld [vmem:[%s306_s1 + $0x18] sm:$0xff]   ;;  %v227_v5 = vld [vmem:[%s307_s0 + $0x4] ss:$8 sps:$4 sm:$0xff]   ;;  %v222_v9 = vld [vmem:[%s306_s1 + $0x30] sm:$0xff]  }
   0x3   :  { %125 = vmatprep.subr.bf16.mxu0 %v231_v0  ;;  %198 = vmatprep.subr.bf16.mxu1 %v231_v0  ;;  %v230_v6 = vld [vmem:[%s307_s0 + $0x14] ss:$8 sps:$4 sm:$0xff]   ;;  %v220_v7 = vld [vmem:[%s306_s1 + $0x20] sm:$0xff]   ;;  %v221_v8 = vld [vmem:[%s306_s1 + $0x28] sm:$0xff]  }
   0x4   :  { %195 = vmatprep.mubr.msk.bf16.mxu0 %vm116_vm0, %v227_v5  ;;  %196 = vmatprep.mubr.msk.bf16.mxu1 %vm116_vm0, %v230_v6  ;;  %v223_v10 = vld [vmem:[%s306_s1 + $0x38] sm:$0xff]   ;;  %v224_v11 = vld [vmem:[%s306_s1 + $0x40] sm:$0xff]  }
   0x5   :  { %v225_v12 = vld [vmem:[%s307_s0] ss:$8 sps:$4 sm:$0xff]   ;;  %v228_v13 = vld [vmem:[%s307_s0 + $0x10] ss:$8 sps:$4 sm:$0xff]  }
   0x6   :  { %126 = vmatpush1.bf16.msra.mxu0 %v217_v2  ;;  %207 = vmatpush1.bf16.msra.mxu1 %v217_v2  ;;  %v181_v14 = vld [vmem:[%s308_s2] ss:$0 sm:$0xff] }
   0x7   :  { %127 = vmatprep.subr.bf16.mxu0 %v231_v0  ;;  %199 = vmatprep.subr.bf16.mxu1 %v231_v0 }
   0xa   :  { %128 = vmatpush1.bf16.msra.mxu0 %v218_v3  ;;  %208 = vmatpush1.bf16.msra.mxu1 %v218_v3 }
   0xb   :  { %129 = vmatprep.subr.bf16.mxu0 %v231_v0  ;;  %200 = vmatprep.subr.bf16.mxu1 %v231_v0 }
   0xe   :  { %130 = vmatpush1.bf16.msra.mxu0 %v219_v4  ;;  %209 = vmatpush1.bf16.msra.mxu1 %v219_v4 }
   0xf   :  { %131 = vmatprep.subr.bf16.mxu0 %v231_v0  ;;  %201 = vmatprep.subr.bf16.mxu1 %v231_v0 }
  0x12   :  { %132 = vmatpush1.bf16.msra.mxu0 %v220_v7  ;;  %210 = vmatpush1.bf16.msra.mxu1 %v220_v7 }
  0x13   :  { %133 = vmatprep.subr.bf16.mxu0 %v231_v0  ;;  %202 = vmatprep.subr.bf16.mxu1 %v231_v0 }
  0x16   :  { %134 = vmatpush1.bf16.msra.mxu0 %v221_v8  ;;  %211 = vmatpush1.bf16.msra.mxu1 %v221_v8 }
  0x17   :  { %135 = vmatprep.subr.bf16.mxu0 %v231_v0  ;;  %203 = vmatprep.subr.bf16.mxu1 %v231_v0 }
  0x1a   :  { %136 = vmatpush1.bf16.msra.mxu0 %v222_v9  ;;  %212 = vmatpush1.bf16.msra.mxu1 %v222_v9 }
  0x1b   :  { %137 = vmatprep.subr.bf16.mxu0 %v231_v0  ;;  %204 = vmatprep.subr.bf16.mxu1 %v231_v0 }
  0x1e   :  { %138 = vmatpush1.bf16.msra.mxu0 %v223_v10  ;;  %213 = vmatpush1.bf16.msra.mxu1 %v223_v10 }
  0x1f   :  { %139 = vmatprep.subr.bf16.mxu0 %v231_v0  ;;  %205 = vmatprep.subr.bf16.mxu1 %v231_v0 }
  0x22   :  { %140 = vmatpush1.bf16.msra.mxu0 %v224_v11  ;;  %214 = vmatpush1.bf16.msra.mxu1 %v224_v11 }
  0x25   :  { %156 = vmatmul.mubr.bf16.vlgmr.msra.gmra.mrb[0].mxu0 %v225_v12  ;;  %164 = vmatmul.mubr.bf16.vlgmr.msra.gmra.mrb[0].mxu1 %v228_v13 }
  0xf8   :  { %v157_v15 = vpop.f32.mrb[0].mxu0  ;;  %v165_v16 = vpop.f32.mrb[0].mxu1 }
  0xf9   :  { %v158_v17 = vadd.f32 %v181_v14, %v157_v15  ;;  %v166_v18 = vadd.f32 %v181_v14, %v165_v16  ;;  %v159_v19 = vpop.f32.mrb[1].mxu0  ;;  %v167_v20 = vpop.f32.mrb[1].mxu1 }
  0xfa   :  { %v160_v21 = vpop.f32.mrb[2].mxu0  ;;  %v168_v22 = vpop.f32.mrb[2].mxu1 }
  0xfb   :  { %173 = vst.msk [vmem:[%s309_s3] sm:$0xff] %vm172_vm1, %v158_v17  ;;  %175 = vst.msk [vmem:[%s309_s3 + $0x10] sm:$0xff] %vm172_vm1, %v166_v18  ;;  %v161_v23 = vadd.f32 %v181_v14, %v160_v21  ;;  %v169_v24 = vadd.f32 %v181_v14, %v168_v22  ;;  %v162_v25 = vpop.f32.mrb[3].mxu0  ;;  %v170_v26 = vpop.f32.mrb[3].mxu1 }
  0xfd   :  { %174 = vst.msk [vmem:[%s309_s3 + $0x8] sm:$0xff] %vm172_vm1, %v161_v23  ;;  %176 = vst.msk [vmem:[%s309_s3 + $0x18] sm:$0xff] %vm172_vm1, %v169_v24 }

// kernel: net_forward.31
= control target key start
LH: loop header
LB: loop body
LE: loop exit
PB: predicated region body
PF: predicated region fallthrough
CT: control target
= control target key end

     0   :  { %vm50_vm0 = vcmask 1041408   ;;  %vm51_vm1 = vcmask 1043458   ;;  %vm53_vm3 = vcmask 521220   ;;  %s140_s0 = inlined_call_operand.vmem [shape: f32[2,320], index: 0, kind: input, shape index: {}]   ;;  %s141_s1 = inlined_call_operand.vmem [shape: f32[2,320], index: 1, kind: input, shape index: {}]   ;;  %s142_s2 = inlined_call_operand.vmem [shape: f32[2,320], index: 2, kind: input, shape index: {}]   ;;  %s143_s3 = inlined_call_operand.vmem [shape: f32[2,320], index: 3, kind: input, shape index: {}]   ;;  %s144_s4 = inlined_call_operand.vmem [shape: f32[2,320], index: 4, kind: input, shape index: {}]   ;;  %s145_s5 = inlined_call_operand.vmem [shape: f32[2,320], index: 5, kind: input, shape index: {}]   ;;  %s146_s6 = inlined_call_operand.vmem [shape: f32[2,320], index: 6, kind: input, shape index: {}]   ;;  %s147_s7 = inlined_call_operand.vmem [shape: f32[2,320], index: 7, kind: input, shape index: {}]   ;;  %s148_s8 = inlined_call_operand.vmem [shape: f32[2,320], index: 8, kind: input, shape index: {}]   ;;  %s149_s9 = inlined_call_operand.vmem [shape: f32[2,320], index: 9, kind: output, shape index: {}]  }
   0x1   :  { %v32_v0 = vld [vmem:[%s140_s0] sm:$0x3f]  ;;  %vm52_vm2 = vmor %vm51_vm1, %vm50_vm0 }
   0x2   :  { %v33_v1 = vld [vmem:[%s141_s1] sm:$0x3f]  ;;  %vm54_vm4 = vmor %vm53_vm3, %vm52_vm2 }
   0x3   :  { %v35_v2 = vld [vmem:[%s142_s2] sm:$0x3f]  ;;  %v34_v3 = vadd.f32 %v33_v1, %v32_v0 }
   0x4   :  { %v37_v4 = vld [vmem:[%s143_s3] sm:$0x3f] }
   0x5   :  { %v36_v5 = vadd.f32 %v35_v2, %v34_v3  ;;  %v39_v6 = vld [vmem:[%s144_s4] sm:$0x3f] }
   0x6   :  { %v41_v8 = vld [vmem:[%s145_s5] sm:$0x3f] }
   0x7   :  { %v38_v7 = vadd.f32 %v37_v4, %v36_v5  ;;  %v43_v10 = vld [vmem:[%s146_s6] sm:$0x3f] }
   0x8   :  { %v45_v12 = vld [vmem:[%s147_s7] sm:$0x3f] }
   0x9   :  { %v40_v9 = vadd.f32 %v39_v6, %v38_v7  ;;  %v47_v14 = vld [vmem:[%s148_s8] sm:$0x3f] }
   0xb   :  { %v42_v11 = vadd.f32 %v41_v8, %v40_v9 }
   0xd   :  { %v44_v13 = vadd.f32 %v43_v10, %v42_v11 }
   0xf   :  { %v46_v15 = vadd.f32 %v45_v12, %v44_v13 }
  0x11   :  { %v48_v16 = vadd.f32 %v47_v14, %v46_v15 }
  0x13   :  { %v49_v17 = vmul.f32 0.11111111, %v48_v16 }
  0x15   :  { %55 = vst.msk [vmem:[%s149_s9] sm:$0x3f] %vm54_vm4, %v49_v17 }

// kernel: net_forward.30
= control target key start
LH: loop header
LB: loop body
LE: loop exit
PB: predicated region body
PF: predicated region fallthrough
CT: control target
= control target key end

     0   :  { %v291_v0 = vmov 0   ;;  %vm152_vm0 = vcmask 719872   ;;  %vm159_vm1 = vcmask 1043456   ;;  %vm212_vm2 = vcmask 195584   ;;  %s409_s1 = inlined_call_operand.vmem [shape: bf16[216,24], index: 1, kind: input, shape index: {}]   ;;  %s410_s0 = inlined_call_operand.vmem [shape: bf16[32,216], index: 0, kind: input, shape index: {}]   ;;  %s411_s2 = inlined_call_operand.vmem [shape: f32[1,24], index: 2, kind: input, shape index: {}]   ;;  %s412_s3 = inlined_call_operand.vmem [shape: f32[32,24], index: 3, kind: output, shape index: {}]  }
   0x1   :  { %163 = vmatprep.subr.bf16.mxu0 %v291_v0  ;;  %242 = vmatprep.subr.bf16.mxu1 %v291_v0  ;;  %v271_v1 = vld [vmem:[%s409_s1] sm:$0xff]   ;;  %v272_v2 = vld [vmem:[%s409_s1 + $0x8] sm:$0xff]   ;;  %v273_v3 = vld [vmem:[%s409_s1 + $0x10] sm:$0xff]  }
   0x2   :  { %164 = vmatpush1.bf16.msra.mxu0 %v271_v1  ;;  %256 = vmatpush1.bf16.msra.mxu1 %v271_v1  ;;  %v274_v4 = vld [vmem:[%s409_s1 + $0x18] sm:$0xff]   ;;  %v275_v5 = vld [vmem:[%s409_s1 + $0x20] sm:$0xff]   ;;  %v276_v8 = vld [vmem:[%s409_s1 + $0x28] sm:$0xff]  }
   0x3   :  { %165 = vmatprep.subr.bf16.mxu0 %v291_v0  ;;  %243 = vmatprep.subr.bf16.mxu1 %v291_v0  ;;  %v287_v6 = vld [vmem:[%s410_s0 + $0x4] ss:$8 sps:$4 sm:$0xff]   ;;  %v290_v7 = vld [vmem:[%s410_s0 + $0x14] ss:$8 sps:$4 sm:$0xff]   ;;  %v284_v16 = vld [vmem:[%s409_s1 + $0x68] ss:$0 sps:$4 sm:$0xff]  }
   0x4   :  { %240 = vmatprep.mubr.msk.bf16.mxu0 %vm152_vm0, %v287_v6  ;;  %241 = vmatprep.mubr.msk.bf16.mxu1 %vm152_vm0, %v290_v7  ;;  %v277_v9 = vld [vmem:[%s409_s1 + $0x30] sm:$0xff]   ;;  %v278_v10 = vld [vmem:[%s409_s1 + $0x38] sm:$0xff]   ;;  %v279_v11 = vld [vmem:[%s409_s1 + $0x40] sm:$0xff]   ;;  %v161_v17 = vsel %vm159_vm1, %v284_v16, 0 }
   0x5   :  { %v280_v12 = vld [vmem:[%s409_s1 + $0x48] sm:$0xff]   ;;  %v281_v13 = vld [vmem:[%s409_s1 + $0x50] sm:$0xff]   ;;  %v282_v14 = vld [vmem:[%s409_s1 + $0x58] sm:$0xff]  }
   0x6   :  { %166 = vmatpush1.bf16.msra.mxu0 %v272_v2  ;;  %257 = vmatpush1.bf16.msra.mxu1 %v272_v2  ;;  %v283_v15 = vld [vmem:[%s409_s1 + $0x60] sm:$0xff]   ;;  %v288_v19 = vld [vmem:[%s410_s0 + $0x10] ss:$8 sps:$4 sm:$0xff]  }
   0x7   :  { %167 = vmatprep.subr.bf16.mxu0 %v291_v0  ;;  %244 = vmatprep.subr.bf16.mxu1 %v291_v0  ;;  %v285_v18 = vld [vmem:[%s410_s0] ss:$8 sps:$4 sm:$0xff]  }
   0x8   :  { %v221_v20 = vld [vmem:[%s411_s2] ss:$0 sm:$0xff] }
   0xa   :  { %168 = vmatpush1.bf16.msra.mxu0 %v273_v3  ;;  %258 = vmatpush1.bf16.msra.mxu1 %v273_v3 }
   0xb   :  { %169 = vmatprep.subr.bf16.mxu0 %v291_v0  ;;  %245 = vmatprep.subr.bf16.mxu1 %v291_v0 }
   0xe   :  { %170 = vmatpush1.bf16.msra.mxu0 %v274_v4  ;;  %259 = vmatpush1.bf16.msra.mxu1 %v274_v4 }
   0xf   :  { %171 = vmatprep.subr.bf16.mxu0 %v291_v0  ;;  %246 = vmatprep.subr.bf16.mxu1 %v291_v0 }
  0x12   :  { %172 = vmatpush1.bf16.msra.mxu0 %v275_v5  ;;  %260 = vmatpush1.bf16.msra.mxu1 %v275_v5 }
  0x13   :  { %173 = vmatprep.subr.bf16.mxu0 %v291_v0  ;;  %247 = vmatprep.subr.bf16.mxu1 %v291_v0 }
  0x16   :  { %174 = vmatpush1.bf16.msra.mxu0 %v276_v8  ;;  %261 = vmatpush1.bf16.msra.mxu1 %v276_v8 }
  0x17   :  { %175 = vmatprep.subr.bf16.mxu0 %v291_v0  ;;  %248 = vmatprep.subr.bf16.mxu1 %v291_v0 }
  0x1a   :  { %176 = vmatpush1.bf16.msra.mxu0 %v277_v9  ;;  %262 = vmatpush1.bf16.msra.mxu1 %v277_v9 }
  0x1b   :  { %177 = vmatprep.subr.bf16.mxu0 %v291_v0  ;;  %249 = vmatprep.subr.bf16.mxu1 %v291_v0 }
  0x1e   :  { %178 = vmatpush1.bf16.msra.mxu0 %v278_v10  ;;  %263 = vmatpush1.bf16.msra.mxu1 %v278_v10 }
  0x1f   :  { %179 = vmatprep.subr.bf16.mxu0 %v291_v0  ;;  %250 = vmatprep.subr.bf16.mxu1 %v291_v0 }
  0x22   :  { %180 = vmatpush1.bf16.msra.mxu0 %v279_v11  ;;  %264 = vmatpush1.bf16.msra.mxu1 %v279_v11 }
  0x23   :  { %181 = vmatprep.subr.bf16.mxu0 %v291_v0  ;;  %251 = vmatprep.subr.bf16.mxu1 %v291_v0 }
  0x26   :  { %182 = vmatpush1.bf16.msra.mxu0 %v280_v12  ;;  %265 = vmatpush1.bf16.msra.mxu1 %v280_v12 }
  0x27   :  { %183 = vmatprep.subr.bf16.mxu0 %v291_v0  ;;  %252 = vmatprep.subr.bf16.mxu1 %v291_v0 }
  0x2a   :  { %184 = vmatpush1.bf16.msra.mxu0 %v281_v13  ;;  %266 = vmatpush1.bf16.msra.mxu1 %v281_v13 }
  0x2b   :  { %185 = vmatprep.subr.bf16.mxu0 %v291_v0  ;;  %253 = vmatprep.subr.bf16.mxu1 %v291_v0 }
  0x2e   :  { %186 = vmatpush1.bf16.msra.mxu0 %v282_v14  ;;  %267 = vmatpush1.bf16.msra.mxu1 %v282_v14 }
  0x2f   :  { %187 = vmatprep.subr.bf16.mxu0 %v291_v0  ;;  %254 = vmatprep.subr.bf16.mxu1 %v291_v0 }
  0x32   :  { %188 = vmatpush1.bf16.msra.mxu0 %v283_v15  ;;  %268 = vmatpush1.bf16.msra.mxu1 %v283_v15 }
  0x33   :  { %189 = vmatprep.subr.bf16.mxu0 %v291_v0  ;;  %255 = vmatprep.subr.bf16.mxu1 %v291_v0 }
  0x36   :  { %190 = vmatpush1.bf16.msra.mxu0 %v161_v17  ;;  %269 = vmatpush1.bf16.msra.mxu1 %v161_v17 }
  0x39   :  { %196 = vmatmul.mubr.bf16.vlgmr.msra.gmra.mrb[0].mxu0 %v285_v18  ;;  %204 = vmatmul.mubr.bf16.vlgmr.msra.gmra.mrb[0].mxu1 %v288_v19 }
 0x10c   :  { %v197_v21 = vpop.f32.mrb[0].mxu0  ;;  %v205_v22 = vpop.f32.mrb[0].mxu1 }
 0x10d   :  { %v198_v23 = vadd.f32 %v221_v20, %v197_v21  ;;  %v206_v24 = vadd.f32 %v221_v20, %v205_v22  ;;  %v199_v25 = vpop.f32.mrb[1].mxu0  ;;  %v207_v26 = vpop.f32.mrb[1].mxu1 }
 0x10e   :  { %v200_v27 = vpop.f32.mrb[2].mxu0  ;;  %v208_v28 = vpop.f32.mrb[2].mxu1 }
 0x10f   :  { %213 = vst.msk [vmem:[%s412_s3] sm:$0xff] %vm212_vm2, %v198_v23  ;;  %215 = vst.msk [vmem:[%s412_s3 + $0x10] sm:$0xff] %vm212_vm2, %v206_v24  ;;  %v201_v29 = vadd.f32 %v221_v20, %v200_v27  ;;  %v209_v30 = vadd.f32 %v221_v20, %v208_v28  ;;  %v202_v31 = vpop.f32.mrb[3].mxu0  ;;  %v210_v32 = vpop.f32.mrb[3].mxu1 }
 0x111   :  { %214 = vst.msk [vmem:[%s412_s3 + $0x8] sm:$0xff] %vm212_vm2, %v201_v29  ;;  %216 = vst.msk [vmem:[%s412_s3 + $0x18] sm:$0xff] %vm212_vm2, %v209_v30 }

// kernel: net_forward.32
= control target key start
LH: loop header
LB: loop body
LE: loop exit
PB: predicated region body
PF: predicated region fallthrough
CT: control target
= control target key end

     0   :  { %vm48_vm0 = vcmask 162816   ;;  %vm55_vm1 = vcmask 1041408   ;;  %vm108_vm2 = vcmask 195584   ;;  %s188_s1 = inlined_call_operand.vmem [shape: bf16[20,24], index: 1, kind: input, shape index: {}]   ;;  %s189_s0 = inlined_call_operand.vmem [shape: bf16[32,20], index: 0, kind: input, shape index: {}]   ;;  %s190_s2 = inlined_call_operand.vmem [shape: f32[1,24], index: 2, kind: input, shape index: {}]   ;;  %s191_s3 = inlined_call_operand.vmem [shape: f32[32,24], index: 3, kind: output, shape index: {}]  }
   0x1   :  { %v137_v0 = vld [vmem:[%s188_s1] sm:$0xff]   ;;  %v138_v1 = vld [vmem:[%s188_s1 + $0x8] ss:$0 sps:$4 sm:$0x33]  }
   0x2   :  { %v139_v2 = vld [vmem:[%s189_s0] sm:$0xff]   ;;  %128 = vmatprep.subr.bf16.mxu0 %v137_v0  ;;  %v57_v3 = vsel %vm55_vm1, %v138_v1, 0  ;;  %v140_v4 = vld [vmem:[%s189_s0 + $0x8] sm:$0xff]  }
   0x3   :  { %129 = vmatpush3.bf16.msra.mxu0 %v137_v0  ;;  %132 = vmatprep.mubr.msk.bf16.mxu0 %vm48_vm0, %v139_v2  ;;  %v117_v5 = vld [vmem:[%s190_s2] ss:$0 sm:$0xff] }
   0x4   :  { %136 = vmatprep.subr.msk.bf16.mxu0 %vm55_vm1, %v138_v1 }
   0x7   :  { %131 = vmatpush3.bf16.msra.mxu0 %v57_v3 }
   0xa   :  { %133 = vmatmul.mubr.msk.bf16.vlgmr.msra.gmra.mrb[0].mxu0 %vm48_vm0, %v140_v4 }
  0xdd   :  { %v134_v6 = vpop.f32.mrb[0].mxu0 }
  0xde   :  { %v102_v7 = vadd.f32 %v134_v6, %v117_v5  ;;  %v93_v8 = vpop.f32.mrb[1].mxu0 }
  0xdf   :  { %v94_v9 = vadd.f32 %v117_v5, %v93_v8  ;;  %v135_v10 = vpop.f32.mrb[2].mxu0 }
  0xe0   :  { %111 = vst.msk [vmem:[%s191_s3 + $0x10] sm:$0xff] %vm108_vm2, %v102_v7  ;;  %v105_v11 = vadd.f32 %v135_v10, %v117_v5  ;;  %v96_v12 = vpop.f32.mrb[3].mxu0 }
  0xe1   :  { %109 = vst.msk [vmem:[%s191_s3] sm:$0xff] %vm108_vm2, %v94_v9  ;;  %v97_v13 = vadd.f32 %v117_v5, %v96_v12 }
  0xe2   :  { %112 = vst.msk [vmem:[%s191_s3 + $0x18] sm:$0xff] %vm108_vm2, %v105_v11 }
  0xe3   :  { %110 = vst.msk [vmem:[%s191_s3 + $0x8] sm:$0xff] %vm108_vm2, %v97_v13 }

// kernel: net_forward.33
= control target key start
LH: loop header
LB: loop body
LE: loop exit
PB: predicated region body
PF: predicated region fallthrough
CT: control target
= control target key end

     0   :  { %vm1393_vm0 = vmmov 0   ;;  %vm1040_vm1 = vcmask 80896   ;;  %s1720_s1 = inlined_call_operand.vmem [shape: bf16[1408,10], index: 1, kind: input, shape index: {}]   ;;  %s1721_s0 = inlined_call_operand.vmem [shape: bf16[16,1408], index: 0, kind: input, shape index: {}]   ;;  %s1722_s2 = inlined_call_operand.vmem [shape: f32[1,10], index: 2, kind: input, shape index: {}]   ;;  %s1723_s3 = inlined_call_operand.vmem [shape: f32[16,10], index: 3, kind: output, shape index: {}]  }
   0x1   :  { %v1288_v0 = vld [vmem:[%s1720_s1 + $0x40] sm:$0xff]   ;;  %v1292_v4 = vld [vmem:[%s1720_s1 + $0x48] sm:$0xff]   ;;  %v1296_v8 = vld [vmem:[%s1720_s1 + $0x50] sm:$0xff]  }
   0x2   :  { %v1289_v1 = vld [vmem:[%s1720_s1] sm:$0xff]   ;;  %1147 = vmatprep.subr.bf16.mxu0 %v1288_v0  ;;  %v1293_v5 = vld [vmem:[%s1720_s1 + $0x8] sm:$0xff]   ;;  %v1297_v9 = vld [vmem:[%s1720_s1 + $0x10] sm:$0xff]  }
   0x3   :  { %v1290_v2 = vld [vmem:[%s1720_s1 + $0xc0] sm:$0xff]   ;;  %1148 = vmatpush3.bf16.msra.mxu0 %v1289_v1  ;;  %v1294_v6 = vld [vmem:[%s1720_s1 + $0xc8] sm:$0xff]   ;;  %v1298_v10 = vld [vmem:[%s1720_s1 + $0xd0] sm:$0xff]  }
   0x4   :  { %v1291_v3 = vld [vmem:[%s1720_s1 + $0x80] sm:$0xff]   ;;  %1169 = vmatprep.subr.bf16.mxu1 %v1290_v2  ;;  %1149 = vmatprep.subr.bf16.mxu0 %v1292_v4  ;;  %v1295_v7 = vld [vmem:[%s1720_s1 + $0x88] sm:$0xff]   ;;  %v1299_v11 = vld [vmem:[%s1720_s1 + $0x90] sm:$0xff]  }
   0x5   :  { %1170 = vmatpush3.bf16.msra.mxu1 %v1291_v3  ;;  %v1300_v12 = vld [vmem:[%s1720_s1 + $0x58] sm:$0xff]   ;;  %v1304_v16 = vld [vmem:[%s1720_s1 + $0x60] sm:$0xff]   ;;  %v1308_v20 = vld [vmem:[%s1720_s1 + $0x68] sm:$0xff]  }
   0x6   :  { %1171 = vmatprep.subr.bf16.mxu1 %v1294_v6  ;;  %v1301_v13 = vld [vmem:[%s1720_s1 + $0x18] sm:$0xff]   ;;  %v1305_v17 = vld [vmem:[%s1720_s1 + $0x20] sm:$0xff]   ;;  %v1309_v21 = vld [vmem:[%s1720_s1 + $0x28] sm:$0xff]  }
   0x7   :  { %1150 = vmatpush3.bf16.msra.mxu0 %v1293_v5  ;;  %v1302_v14 = vld [vmem:[%s1720_s1 + $0xd8] sm:$0xff]   ;;  %v1306_v18 = vld [vmem:[%s1720_s1 + $0xe0] sm:$0xff]   ;;  %v1310_v22 = vld [vmem:[%s1720_s1 + $0xe8] sm:$0xff]  }
   0x8   :  { %1151 = vmatprep.subr.bf16.mxu0 %v1296_v8  ;;  %v1303_v15 = vld [vmem:[%s1720_s1 + $0x98] sm:$0xff]   ;;  %v1307_v19 = vld [vmem:[%s1720_s1 + $0xa0] sm:$0xff]   ;;  %v1311_v23 = vld [vmem:[%s1720_s1 + $0xa8] sm:$0xff]  }
   0x9   :  { %1172 = vmatpush3.bf16.msra.mxu1 %v1295_v7  ;;  %v1312_v24 = vld [vmem:[%s1720_s1 + $0x70] sm:$0xff]   ;;  %v1316_v28 = vld [vmem:[%s1720_s1 + $0x78] sm:$0xff]   ;;  %v1319_v31 = vld [vmem:[%s1721_s0] ss:$44 sps:$4 sm:$0xff]  }
   0xa   :  { %1173 = vmatprep.subr.bf16.mxu1 %v1298_v10  ;;  %v1313_v25 = vld [vmem:[%s1720_s1 + $0x30] sm:$0xff]   ;;  %v1317_v29 = vld [vmem:[%s1720_s1 + $0x38] sm:$0xff]   ;;  %v1323_v34 = vld [vmem:[%s1720_s1 + $0x140] sm:$0xff]  }
   0xb   :  { %1152 = vmatpush3.bf16.msra.mxu0 %v1297_v9  ;;  %v1314_v26 = vld [vmem:[%s1720_s1 + $0xf0] sm:$0xff]   ;;  %v1318_v30 = vld [vmem:[%s1720_s1 + $0xf8] sm:$0xff]   ;;  %v1327_v37 = vld [vmem:[%s1720_s1 + $0x100] sm:$0xff]   ;;  %v1392_v9 = vmov 0.0  }
   0xc   :  { %1153 = vmatprep.subr.bf16.mxu0 %v1300_v12  ;;  %v1315_v27 = vld [vmem:[%s1720_s1 + $0xb0] sm:$0xff]   ;;  %v1322_v33 = vld [vmem:[%s1720_s1 + $0xb8] sm:$0xff]   ;;  %v1328_v38 = vld [vmem:[%s1720_s1 + $0x1c0] sm:$0xff]  }
   0xd   :  { %1174 = vmatpush3.bf16.msra.mxu1 %v1299_v11  ;;  %v1321_v32 = vld [vmem:[%s1721_s0 + $0x4] ss:$44 sps:$4 sm:$0xff]   ;;  %v1324_v35 = vld [vmem:[%s1721_s0 + $0x8] ss:$44 sps:$4 sm:$0xff]   ;;  %v1326_v36 = vld [vmem:[%s1721_s0 + $0xc] ss:$44 sps:$4 sm:$0xff]  }
   0xe   :  { %1175 = vmatprep.subr.bf16.mxu1 %v1302_v14  ;;  %826 = vmatprep.mubr.bf16.mxu0 %v1321_v32  ;;  %v1329_v39 = vld [vmem:[%s1720_s1 + $0x180] sm:$0xff]   ;;  %v1330_v40 = vld [vmem:[%s1720_s1 + $0x148] sm:$0xff]   ;;  %v1334_v44 = vld [vmem:[%s1720_s1 + $0x150] sm:$0xff]  }
   0xf   :  { %1154 = vmatpush3.bf16.msra.mxu0 %v1301_v13  ;;  %867 = vmatprep.mubr.bf16.mxu1 %v1326_v36  ;;  %v1331_v41 = vld [vmem:[%s1720_s1 + $0x108] sm:$0xff]   ;;  %v1335_v45 = vld [vmem:[%s1720_s1 + $0x110] sm:$0xff]   ;;  %v1338_v48 = vld [vmem:[%s1720_s1 + $0x158] sm:$0xff]  }
  0x10   :  { %1155 = vmatprep.subr.bf16.mxu0 %v1304_v16  ;;  %v1332_v42 = vld [vmem:[%s1720_s1 + $0x1c8] sm:$0xff]   ;;  %v1336_v46 = vld [vmem:[%s1720_s1 + $0x1d0] sm:$0xff]   ;;  %v1339_v49 = vld [vmem:[%s1720_s1 + $0x118] sm:$0xff]  }
  0x11   :  { %1176 = vmatpush3.bf16.msra.mxu1 %v1303_v15  ;;  %v1333_v43 = vld [vmem:[%s1720_s1 + $0x188] sm:$0xff]   ;;  %v1337_v47 = vld [vmem:[%s1720_s1 + $0x190] sm:$0xff]   ;;  %v1340_v50 = vld [vmem:[%s1720_s1 + $0x1d8] sm:$0xff]  }
  0x12   :  { %1177 = vmatprep.subr.bf16.mxu1 %v1306_v18  ;;  %v1341_v51 = vld [vmem:[%s1720_s1 + $0x198] sm:$0xff]   ;;  %v1342_v52 = vld [vmem:[%s1720_s1 + $0x160] sm:$0xff]   ;;  %v1346_v56 = vld [vmem:[%s1720_s1 + $0x168] sm:$0xff]  }
  0x13   :  { %1156 = vmatpush3.bf16.msra.mxu0 %v1305_v17  ;;  %v1343_v53 = vld [vmem:[%s1720_s1 + $0x120] sm:$0xff]   ;;  %v1347_v57 = vld [vmem:[%s1720_s1 + $0x128] sm:$0xff]   ;;  %v1350_v60 = vld [vmem:[%s1720_s1 + $0x170] sm:$0xff]  }
  0x14   :  { %1157 = vmatprep.subr.bf16.mxu0 %v1308_v20  ;;  %v1344_v54 = vld [vmem:[%s1720_s1 + $0x1e0] sm:$0xff]   ;;  %v1348_v58 = vld [vmem:[%s1720_s1 + $0x1e8] sm:$0xff]   ;;  %v1351_v61 = vld [vmem:[%s1720_s1 + $0x130] sm:$0xff]  }
  0x15   :  { %1178 = vmatpush3.bf16.msra.mxu1 %v1307_v19  ;;  %v1345_v55 = vld [vmem:[%s1720_s1 + $0x1a0] sm:$0xff]   ;;  %v1349_v59 = vld [vmem:[%s1720_s1 + $0x1a8] sm:$0xff]   ;;  %v1352_v62 = vld [vmem:[%s1720_s1 + $0x1f0] sm:$0xff]  }
  0x16   :  { %1179 = vmatprep.subr.bf16.mxu1 %v1310_v22  ;;  %v1353_v63 = vld [vmem:[%s1720_s1 + $0x1b0] sm:$0xff]   ;;  %v1354_v0 = vld [vmem:[%s1720_s1 + $0x178] sm:$0xff]   ;;  %v1361_v6 = vld [vmem:[%s1720_s1 + $0x240] sm:$0xff]  }
  0x17   :  { %1158 = vmatpush3.bf16.msra.mxu0 %v1309_v21  ;;  %v1355_v1 = vld [vmem:[%s1720_s1 + $0x138] sm:$0xff]   ;;  %v1359_v4 = vld [vmem:[%s1721_s0 + $0x14] ss:$44 sps:$4 sm:$0xff]   ;;  %v1367_v12 = vld [vmem:[%s1720_s1 + $0x248] sm:$0xff]  }
  0x18   :  { %1159 = vmatprep.subr.bf16.mxu0 %v1312_v24  ;;  %v1356_v2 = vld [vmem:[%s1720_s1 + $0x1f8] sm:$0xff]   ;;  %v1365_v10 = vld [vmem:[%s1720_s1 + $0x200] sm:$0xff]   ;;  %v1368_v13 = vld [vmem:[%s1720_s1 + $0x208] sm:$0xff]  }
  0x19   :  { %1180 = vmatpush3.bf16.msra.mxu1 %v1311_v23  ;;  %v1357_v3 = vld [vmem:[%s1721_s0 + $0x10] ss:$44 sps:$4 sm:$0xff]   ;;  %v1362_v7 = vld [vmem:[%s1721_s0 + $0x18] ss:$44 sps:$4 sm:$0xff]   ;;  %v1369_v14 = vld [vmem:[%s1720_s1 + $0x288] sm:$0xff]  }
  0x1a   :  { %1181 = vmatprep.subr.bf16.mxu1 %v1314_v26  ;;  %v1360_v5 = vld [vmem:[%s1720_s1 + $0x1b8] sm:$0xff]   ;;  %v1366_v11 = vld [vmem:[%s1720_s1 + $0x280] sm:$0xff]   ;;  %v1370_v15 = vld [vmem:[%s1720_s1 + $0x250] sm:$0xff]  }
  0x1b   :  { %1160 = vmatpush3.bf16.msra.mxu0 %v1313_v25  ;;  %v1364_v8 = vld [vmem:[%s1721_s0 + $0x1c] ss:$44 sps:$4 sm:$0xff]   ;;  %v1371_v16 = vld [vmem:[%s1720_s1 + $0x210] sm:$0xff]   ;;  %v1376_v21 = vld [vmem:[%s1720_s1 + $0x260] sm:$0xff]  }
  0x1c   :  { %1161 = vmatprep.subr.bf16.mxu0 %v1316_v28  ;;  %v1372_v17 = vld [vmem:[%s1720_s1 + $0x290] sm:$0xff]   ;;  %v1373_v18 = vld [vmem:[%s1720_s1 + $0x258] sm:$0xff]   ;;  %v1377_v22 = vld [vmem:[%s1720_s1 + $0x220] sm:$0xff]  }
  0x1d   :  { %1182 = vmatpush3.bf16.msra.mxu1 %v1315_v27  ;;  %v1374_v19 = vld [vmem:[%s1720_s1 + $0x218] sm:$0xff]   ;;  %v1378_v23 = vld [vmem:[%s1720_s1 + $0x2a0] sm:$0xff]   ;;  %v1379_v24 = vld [vmem:[%s1720_s1 + $0x268] sm:$0xff]  }
  0x1e   :  { %1183 = vmatprep.subr.bf16.mxu1 %v1318_v30  ;;  %v1375_v20 = vld [vmem:[%s1720_s1 + $0x298] sm:$0xff]   ;;  %v1380_v25 = vld [vmem:[%s1720_s1 + $0x228] sm:$0xff]   ;;  %v1382_v27 = vld [vmem:[%s1720_s1 + $0x270] sm:$0xff]  }
  0x1f   :  { %1162 = vmatpush3.bf16.msra.mxu0 %v1317_v29  ;;  %v1381_v26 = vld [vmem:[%s1720_s1 + $0x2a8] sm:$0xff]   ;;  %v1383_v28 = vld [vmem:[%s1720_s1 + $0x230] sm:$0xff]   ;;  %v1386_v32 = vld [vmem:[%s1720_s1 + $0x238] sm:$0xff]  }
  0x20   :  { %1191 = vmatprep.subr.bf16.mxu0 %v1323_v34  ;;  %v1384_v29 = vld [vmem:[%s1720_s1 + $0x2b0] sm:$0xff]   ;;  %v1387_v34 = vld [vmem:[%s1721_s0 + $0x20] ss:$44 sps:$4 sm:$0xff]  }
  0x21   :  { %1184 = vmatpush3.bf16.msra.mxu1 %v1322_v33  ;;  %v1389_v30 = vld [vmem:[%s1721_s0 + $0x24] ss:$44 sps:$4 sm:$0xff]   ;;  %v1390_v33 = vld [vmem:[%s1720_s1 + $0x2b8] sm:$0xff]  }
  0x22   :  { %827 = vmatmul.mubr.bf16.vlgmr.msra.gmra.mrb[0].mxu0 %v1319_v31  ;;  %1213 = vmatprep.subr.bf16.mxu1 %v1328_v38  ;;  %v1385_v31 = vld [vmem:[%s1720_s1 + $0x278] sm:$0xff]  }
  0x23   :  { %1192 = vmatpush3.bf16.msra.mxu0 %v1327_v37  ;;  %908 = vmatprep.mubr.bf16.mxu0 %v1359_v4  ;;  %v1047_v37 = vld [vmem:[%s1722_s2] ss:$0 sm:$0xff] }
  0x24   :  { %868 = vmatmul.mubr.bf16.vlgmr.msra.gmra.mrb[0].mxu1 %v1324_v35  ;;  %1193 = vmatprep.subr.bf16.mxu0 %v1330_v40  ;;  %v1391_v35 = vld [vmem:[%s1721_s0 + $0x28] ss:$44 sps:$4 sm:$0xff]  }
  0x25   :  { %1214 = vmatpush3.bf16.msra.mxu1 %v1329_v39  ;;  %949 = vmatprep.mubr.bf16.mxu1 %v1364_v8 }
  0x26   :  { %1215 = vmatprep.subr.bf16.mxu1 %v1332_v42 }
  0x27   :  { %1194 = vmatpush3.bf16.msra.mxu0 %v1331_v41 }
  0x28   :  { %1195 = vmatprep.subr.bf16.mxu0 %v1334_v44 }
  0x29   :  { %1216 = vmatpush3.bf16.msra.mxu1 %v1333_v43 }
  0x2a   :  { %1217 = vmatprep.subr.bf16.mxu1 %v1336_v46 }
  0x2b   :  { %1196 = vmatpush3.bf16.msra.mxu0 %v1335_v45 }
  0x2c   :  { %1197 = vmatprep.subr.bf16.mxu0 %v1338_v48 }
  0x2d   :  { %1218 = vmatpush3.bf16.msra.mxu1 %v1337_v47 }
  0x2e   :  { %1219 = vmatprep.subr.bf16.mxu1 %v1340_v50 }
  0x2f   :  { %1198 = vmatpush3.bf16.msra.mxu0 %v1339_v49 }
  0x30   :  { %1199 = vmatprep.subr.bf16.mxu0 %v1342_v52 }
  0x31   :  { %1220 = vmatpush3.bf16.msra.mxu1 %v1341_v51 }
  0x32   :  { %1221 = vmatprep.subr.bf16.mxu1 %v1344_v54 }
  0x33   :  { %1200 = vmatpush3.bf16.msra.mxu0 %v1343_v53 }
  0x34   :  { %1201 = vmatprep.subr.bf16.mxu0 %v1346_v56 }
  0x35   :  { %1222 = vmatpush3.bf16.msra.mxu1 %v1345_v55 }
  0x36   :  { %1223 = vmatprep.subr.bf16.mxu1 %v1348_v58 }
  0x37   :  { %1202 = vmatpush3.bf16.msra.mxu0 %v1347_v57 }
  0x38   :  { %1203 = vmatprep.subr.bf16.mxu0 %v1350_v60 }
  0x39   :  { %1224 = vmatpush3.bf16.msra.mxu1 %v1349_v59 }
  0x3a   :  { %1225 = vmatprep.subr.bf16.mxu1 %v1352_v62 }
  0x3b   :  { %1204 = vmatpush3.bf16.msra.mxu0 %v1351_v61 }
  0x3c   :  { %1205 = vmatprep.subr.bf16.mxu0 %v1354_v0 }
  0x3d   :  { %1226 = vmatpush3.bf16.msra.mxu1 %v1353_v63 }
  0x3e   :  { %1227 = vmatprep.subr.bf16.mxu1 %v1356_v2 }
  0x3f   :  { %1206 = vmatpush3.bf16.msra.mxu0 %v1355_v1 }
  0x40   :  { %1235 = vmatprep.subr.bf16.mxu0 %v1361_v6 }
  0x41   :  { %1228 = vmatpush3.bf16.msra.mxu1 %v1360_v5 }
  0x42   :  { %909 = vmatmul.mubr.bf16.vlgmr.msra.gmra.mrb[4].mxu0 %v1357_v3  ;;  %1266 = vmatprep.subr.bf16.mxu1 %v1392_v9 }
  0x43   :  { %1236 = vmatpush3.bf16.msra.mxu0 %v1365_v10  ;;  %990 = vmatprep.mubr.bf16.mxu0 %v1389_v30 }
  0x44   :  { %950 = vmatmul.mubr.bf16.vlgmr.msra.gmra.mrb[4].mxu1 %v1362_v7  ;;  %1237 = vmatprep.subr.bf16.mxu0 %v1367_v12 }
  0x45   :  { %1267 = vmatpush3.bf16.msra.mxu1 %v1366_v11  ;;  %1282 = vmatprep.mubr.msk.bf16.mxu1 %vm1393_vm0, %v1392_v9 }
  0x46   :  { %1268 = vmatprep.subr.bf16.mxu1 %v1392_v9 }
  0x47   :  { %1238 = vmatpush3.bf16.msra.mxu0 %v1368_v13 }
  0x48   :  { %1239 = vmatprep.subr.bf16.mxu0 %v1370_v15 }
  0x49   :  { %1269 = vmatpush3.bf16.msra.mxu1 %v1369_v14 }
  0x4a   :  { %1270 = vmatprep.subr.bf16.mxu1 %v1392_v9 }
  0x4b   :  { %1240 = vmatpush3.bf16.msra.mxu0 %v1371_v16 }
  0x4c   :  { %1241 = vmatprep.subr.bf16.mxu0 %v1373_v18 }
  0x4d   :  { %1271 = vmatpush3.bf16.msra.mxu1 %v1372_v17 }
  0x4e   :  { %1272 = vmatprep.subr.bf16.mxu1 %v1392_v9 }
  0x4f   :  { %1242 = vmatpush3.bf16.msra.mxu0 %v1374_v19 }
  0x50   :  { %1243 = vmatprep.subr.bf16.mxu0 %v1376_v21 }
  0x51   :  { %1273 = vmatpush3.bf16.msra.mxu1 %v1375_v20 }
  0x52   :  { %1274 = vmatprep.subr.bf16.mxu1 %v1392_v9 }
  0x53   :  { %1244 = vmatpush3.bf16.msra.mxu0 %v1377_v22 }
  0x54   :  { %1245 = vmatprep.subr.bf16.mxu0 %v1379_v24 }
  0x55   :  { %1275 = vmatpush3.bf16.msra.mxu1 %v1378_v23 }
  0x56   :  { %1276 = vmatprep.subr.bf16.mxu1 %v1392_v9 }
  0x57   :  { %1246 = vmatpush3.bf16.msra.mxu0 %v1380_v25 }
  0x58   :  { %1247 = vmatprep.subr.bf16.mxu0 %v1382_v27 }
  0x59   :  { %1277 = vmatpush3.bf16.msra.mxu1 %v1381_v26 }
  0x5a   :  { %1278 = vmatprep.subr.bf16.mxu1 %v1392_v9 }
  0x5b   :  { %1248 = vmatpush3.bf16.msra.mxu0 %v1383_v28 }
  0x5c   :  { %1249 = vmatprep.subr.bf16.mxu0 %v1385_v31 }
  0x5d   :  { %1279 = vmatpush3.bf16.msra.mxu1 %v1384_v29 }
  0x5e   :  { %1280 = vmatprep.subr.bf16.mxu1 %v1392_v9 }
  0x5f   :  { %1250 = vmatpush3.bf16.msra.mxu0 %v1386_v32 }
  0x61   :  { %1281 = vmatpush3.bf16.msra.mxu1 %v1390_v33 }
  0x62   :  { %991 = vmatmul.mubr.bf16.vlgmr.msra.gmra.mrb[8].mxu0 %v1387_v34 }
  0x64   :  { %1283 = vmatmul.mubr.bf16.vlgmr.msra.gmra.mrb[8].mxu1 %v1391_v35 }
  0xf5   :  { %v1163_v36 = vpop.f32.mrb[0].mxu0 }
  0xf6   :  { %v1164_v38 = vpop.f32.mrb[1].mxu0 }
  0xf7   :  { %v1165_v39 = vadd.f32 %v1164_v38, %v1163_v36  ;;  %v1166_v40 = vpop.f32.mrb[2].mxu0  ;;  %v1185_v41 = vpop.f32.mrb[0].mxu1 }
  0xf8   :  { %v1167_v42 = vpop.f32.mrb[3].mxu0  ;;  %v1186_v45 = vpop.f32.mrb[1].mxu1 }
  0xf9   :  { %v829_v43 = vadd.f32 %v1165_v39, %v1047_v37  ;;  %v1168_v44 = vadd.f32 %v1167_v42, %v1166_v40  ;;  %v1187_v46 = vadd.f32 %v1186_v45, %v1185_v41  ;;  %v1188_v47 = vpop.f32.mrb[2].mxu1 }
  0xfa   :  { %v1189_v49 = vpop.f32.mrb[3].mxu1 }
  0xfb   :  { %v832_v48 = vadd.f32 %v1168_v44, %v1047_v37  ;;  %v870_v50 = vadd.f32 %v1187_v46, %v829_v43  ;;  %v1190_v51 = vadd.f32 %v1189_v49, %v1188_v47 }
  0xfd   :  { %v873_v52 = vadd.f32 %v1190_v51, %v832_v48 }
 0x115   :  { %v1207_v53 = vpop.f32.mrb[4].mxu0 }
 0x116   :  { %v1208_v54 = vpop.f32.mrb[5].mxu0 }
 0x117   :  { %v1209_v55 = vadd.f32 %v1208_v54, %v1207_v53  ;;  %v1210_v56 = vpop.f32.mrb[6].mxu0  ;;  %v1229_v59 = vpop.f32.mrb[4].mxu1 }
 0x118   :  { %v1211_v57 = vpop.f32.mrb[7].mxu0  ;;  %v1230_v61 = vpop.f32.mrb[5].mxu1 }
 0x119   :  { %v911_v58 = vadd.f32 %v1209_v55, %v870_v50  ;;  %v1212_v60 = vadd.f32 %v1211_v57, %v1210_v56  ;;  %v1231_v63 = vadd.f32 %v1230_v61, %v1229_v59  ;;  %v1232_v0 = vpop.f32.mrb[6].mxu1 }
 0x11a   :  { %v1233_v1 = vpop.f32.mrb[7].mxu1 }
 0x11b   :  { %v914_v62 = vadd.f32 %v1212_v60, %v873_v52  ;;  %v952_v2 = vadd.f32 %v1231_v63, %v911_v58  ;;  %v1234_v3 = vadd.f32 %v1233_v1, %v1232_v0 }
 0x11d   :  { %v955_v4 = vadd.f32 %v1234_v3, %v914_v62 }
 0x135   :  { %v1251_v5 = vpop.f32.mrb[8].mxu0 }
 0x136   :  { %v1252_v6 = vpop.f32.mrb[9].mxu0 }
 0x137   :  { %v1033_v7 = vpop.f32.mrb[8].mxu1  ;;  %v1253_v8 = vadd.f32 %v1252_v6, %v1251_v5  ;;  %v1254_v9 = vpop.f32.mrb[10].mxu0 }
 0x138   :  { %v1284_v10 = vpop.f32.mrb[9].mxu1  ;;  %v1255_v11 = vpop.f32.mrb[11].mxu0 }
 0x139   :  { %v1036_v12 = vpop.f32.mrb[10].mxu1  ;;  %v993_v13 = vadd.f32 %v1253_v8, %v952_v2  ;;  %v1256_v14 = vadd.f32 %v1255_v11, %v1254_v9 }
 0x13a   :  { %v1285_v15 = vpop.f32.mrb[11].mxu1 }
 0x13b   :  { %v1034_v16 = vadd.f32 %v1033_v7, %v993_v13  ;;  %v996_v17 = vadd.f32 %v1256_v14, %v955_v4 }
 0x13d   :  { %1041 = vst.msk [vmem:[%s1723_s3] sm:$0xff] %vm1040_vm1, %v1034_v16  ;;  %v1037_v18 = vadd.f32 %v1036_v12, %v996_v17 }
 0x13f   :  { %1042 = vst.msk [vmem:[%s1723_s3 + $0x8] sm:$0xff] %vm1040_vm1, %v1037_v18 }

</bundles_post_ra>
